<compile_context>
chip_gen: v5e
topology: v5e:2x2
jax: 0.10.0
libtpu: 0.0.40
codegen_flags: <defaults>
</compile_context>

<pallas_src>
import functools

import jax
import jax.numpy as jnp
from jax.experimental import pallas as pl
from jax.experimental.pallas import tpu as pltpu

BITLINEAR_RMS_EPS = 1e-8   # eps of the RMSNorm baked into every BitLinear
LN_EPS = 1e-6              # MeshDiTBlock LayerNorm eps (elementwise_affine=False)
ADALN_RMSNORM_EPS = 1e-6   # AdaLNConditioning.norm eps


# ----------------------------------------------------------------------------------
# One-shot (wrapper-side, OUTSIDE the jitted step) weight quantization
# ----------------------------------------------------------------------------------
def _prequant_weight(w, g):
    """Quantize a (out, in) BitLinear weight once and fold its dequant scale into g.

    Returns:
      wq_t : (in, out) ternary bf16 weight, exact {-1, 0, 1}
      g'   : (1, in) f32 internal RMSNorm weight with the weight dequant scale folded in
             (g' = g * max(mean|w|, 1e-5)); the per-token amax/127 deferred scale then
             reproduces the full (1/s_act)*(1/s_w) rescale on the matmul result.
    """
    scale = jnp.maximum(jnp.mean(jnp.abs(w)), 1e-5)
    wq = jnp.clip(jnp.round(w / scale), -1.0, 1.0)
    g_folded = (g.reshape(1, -1) * scale).astype(jnp.float32)
    return jnp.transpose(wq).astype(jnp.bfloat16), g_folded


def prepare_weights(params):
    """Hoisted one-shot quantization.  Call ONCE; pass the result to every forward."""
    ad = params["adaln"]
    mlp = params["mlp"]
    inter_x = mlp["down_proj"]["w"].shape[1]
    inter_c = ad["down_proj"]["w"].shape[1]
    r = lambda v: v.reshape(1, -1).astype(jnp.float32)

    # x-path MLP: split the fused gate_proj columns into gate / value halves so the hot
    # kernel quantizes the activation once and never materializes a (tn, 2I) intermediate.
    w_mg, g_mg = _prequant_weight(mlp["gate_proj"]["w"], mlp["gate_proj"]["g"])
    w_md, g_md = _prequant_weight(mlp["down_proj"]["w"], mlp["down_proj"]["g"])

    w_in, g_in = _prequant_weight(ad["input_proj"]["w"], ad["input_proj"]["g"])
    w_gp, g_gp = _prequant_weight(ad["gate_proj"]["w"], ad["gate_proj"]["g"])
    w_dp, g_dp = _prequant_weight(ad["down_proj"]["w"], ad["down_proj"]["g"])
    w_op, g_op = _prequant_weight(ad["output_proj"]["w"], ad["output_proj"]["g"])
    w_pr, g_pr = _prequant_weight(ad["out_proj"]["w"], ad["out_proj"]["g"])

    return {
        "mlp": {
            "g_gate": g_mg,
            "wq_gate_g": w_mg[:, :inter_x],
            "wq_gate_v": w_mg[:, inter_x:],
            "g_down": g_md,
            "wq_down": w_md,
        },
        "adaln": {
            "g_in": g_in, "w_in": w_in,
            "g_gp": g_gp, "w_gp_g": w_gp[:, :inter_c], "w_gp_v": w_gp[:, inter_c:],
            "g_dp": g_dp, "w_dp": w_dp,
            "g_op": g_op, "w_op": w_op, "b_op": r(ad["output_proj"]["b"]),
            "norm_g": r(ad["norm_g"]),
            "g_pr": g_pr, "w_pr": w_pr, "b_pr": r(ad["out_proj"]["b"]),
        },
    }


# ----------------------------------------------------------------------------------
# Small helpers
# ----------------------------------------------------------------------------------
def _vmem_cap_bytes(default=96 << 20):
    """~3/4 of physical VMEM if the runtime exposes it, else a conservative default."""
    try:
        return int(pltpu.get_tpu_info().vmem_capacity_bytes * 3 // 4)
    except Exception:  # noqa: BLE001 - fall back on any introspection failure
        return default


def _const_spec(shape, index_map):
    """BlockSpec for a grid-constant operand: single-buffered when supported.

    The index_map never changes across the grid, so the default second (pipeline) buffer
    is dead VMEM — at production H the ternary MLP weights are tens of MiB each, and
    double-buffering them is what blows the VMEM budget (fatal on v7x's 64 MiB).
    """
    if hasattr(pl, "Buffered"):
        try:
            return pl.BlockSpec(shape, index_map, pipeline_mode=pl.Buffered(1))
        except TypeError:
            pass
    return pl.BlockSpec(shape, index_map)


# ----------------------------------------------------------------------------------
# In-kernel math (VMEM-resident values)
# ----------------------------------------------------------------------------------
def _silu(x):
    return x * jax.nn.sigmoid(x)


def _layernorm_no_affine(x, eps):
    # single pass: var = E[x^2] - mu^2 (saves one lane-reduce vs. two-pass LN)
    mu = jnp.mean(x, axis=-1, keepdims=True)
    var = jnp.maximum(jnp.mean(x * x, axis=-1, keepdims=True) - mu * mu, 0.0)
    return (x - mu) * jax.lax.rsqrt(var + eps)


def _quant_act(x, g, rms_eps):
    """BitLinear input path: internal RMSNorm (weight-scale folded into g) + int8 fake quant.

    Returns (xq bf16 with exact integer values in [-128, 127], per-row deferred scale amax/127).
    """
    xn = x * jax.lax.rsqrt(jnp.mean(x * x, axis=-1, keepdims=True) + rms_eps) * g
    amax = jnp.maximum(jnp.max(jnp.abs(xn), axis=-1, keepdims=True), 1e-5)
    xq = jnp.clip(jnp.round(xn * (127.0 / amax)), -128.0, 127.0)
    return xq.astype(jnp.bfloat16), amax * (1.0 / 127.0)


def _bitlinear(x, g, wq_t, rms_eps):
    """BitLinear with pre-quantized (in, out) ternary bf16 weight and deferred scales."""
    xq, s = _quant_act(x, g, rms_eps)
    return jnp.dot(xq, wq_t, preferred_element_type=jnp.float32) * s


# ----------------------------------------------------------------------------------
# Kernel 1: fused AdaLNConditioning path on c  ->  (B, 6*H) modulation parameters
# ----------------------------------------------------------------------------------
def _adaln_kernel(c_ref,
                  g_in_ref, w_in_ref,
                  g_gp_ref, w_gp_g_ref, w_gp_v_ref,
                  g_dp_ref, w_dp_ref,
                  g_op_ref, w_op_ref, b_op_ref,
                  norm_g_ref,
                  g_pr_ref, w_pr_ref, b_pr_ref,
                  o_ref, *, rms_eps, norm_eps):
    h = _silu(c_ref[...])                                              # ACT2FN['silu'](c)
    h = _bitlinear(h, g_in_ref[...], w_in_ref[...], rms_eps)           # input_proj
    # hgrn_mlp.gate_proj split into gate / value halves; one activation quant, two matmuls
    xq, s = _quant_act(h, g_gp_ref[...], rms_eps)
    gate = jnp.dot(xq, w_gp_g_ref[...], preferred_element_type=jnp.float32) * s
    v = jnp.dot(xq, w_gp_v_ref[...], preferred_element_type=jnp.float32) * s
    h = _bitlinear(_silu(gate) * v, g_dp_ref[...], w_dp_ref[...], rms_eps)        # down_proj
    h = _bitlinear(h, g_op_ref[...], w_op_ref[...], rms_eps) + b_op_ref[...]      # output_proj
    # AdaLNConditioning.norm : RMSNorm(eps=1e-6, learnable weight)
    h = h * jax.lax.rsqrt(jnp.mean(h * h, axis=-1, keepdims=True) + norm_eps) * norm_g_ref[...]
    o_ref[...] = _bitlinear(h, g_pr_ref[...], w_pr_ref[...], rms_eps) + b_pr_ref[...]  # out_proj


def adaln_conditioning(c, g_in, w_in, g_gp, w_gp_g, w_gp_v, g_dp, w_dp,
                       g_op, w_op, b_op, norm_g, g_pr, w_pr, b_pr):
    b_sz, _ = c.shape
    out_dim = w_pr.shape[1]
    operands = (c, g_in, w_in, g_gp, w_gp_g, w_gp_v, g_dp, w_dp,
                g_op, w_op, b_op, norm_g, g_pr, w_pr, b_pr)

    # No grid: all operands are whole-array VMEM resident (single-buffered).  Size the
    # scoped-VMEM budget explicitly so v5e's 16 MiB default is never the silent limit.
    # TODO(synk): for production H, tile the (6H x 6H) out_proj over output columns with a
    #             small grid instead of keeping all five weights whole-array resident.
    in_bytes = sum(int(a.size) * a.dtype.itemsize for a in operands)
    act_bytes = 8 * b_sz * out_dim * 4                       # f32 activation temporaries
    vmem_limit = min(max(2 * in_bytes + act_bytes + (4 << 20), 16 << 20), _vmem_cap_bytes())

    kernel = functools.partial(_adaln_kernel, rms_eps=BITLINEAR_RMS_EPS,
                               norm_eps=ADALN_RMSNORM_EPS)
    return pl.pallas_call(
        kernel,
        out_shape=jax.ShapeDtypeStruct((b_sz, out_dim), jnp.float32),
        compiler_params=pltpu.CompilerParams(vmem_limit_bytes=int(vmem_limit)),
    )(*operands)


# ----------------------------------------------------------------------------------
# Kernel 2: hot path on x — LN + modulate + (attn placeholder) + residual
#                           + LN + modulate + HGRNBitMLP + residual
# ----------------------------------------------------------------------------------
def _dit_x_kernel(x_ref,
                  shift_msa_ref, scale_msa_ref, gate_msa_ref,
                  shift_mlp_ref, scale_mlp_ref, gate_mlp_ref,
                  g_gate_ref, wq_gate_g_ref, wq_gate_v_ref,
                  g_down_ref, wq_down_ref,
                  o_ref, *, ln_eps, rms_eps):
    x = x_ref[0]                                                       # (TN, H) token tile

    # modulate(norm1(x), shift_msa, scale_msa); (1 + scale) computed once on the (1, H) row
    mod_x = _layernorm_no_affine(x, ln_eps) * (1.0 + scale_msa_ref[0]) + shift_msa_ref[0]

    # TODO(synk): HGRNBitAttention ('fused_recurrent') source is not provided; identity pass-through.
    attn_out = mod_x
    x1 = x + gate_msa_ref[0] * attn_out

    # modulate(norm2(x), shift_mlp, scale_mlp)
    mlp_in = _layernorm_no_affine(x1, ln_eps) * (1.0 + scale_mlp_ref[0]) + shift_mlp_ref[0]

    # HGRNBitMLP: one activation quant, two half-matmuls (gate / value), swish-gate, down_proj.
    xq, s = _quant_act(mlp_in, g_gate_ref[...], rms_eps)
    gate = jnp.dot(xq, wq_gate_g_ref[...], preferred_element_type=jnp.float32) * s
    v = jnp.dot(xq, wq_gate_v_ref[...], preferred_element_type=jnp.float32) * s
    mlp_out = _bitlinear(_silu(gate) * v, g_down_ref[...], wq_down_ref[...], rms_eps)

    o_ref[0] = x1 + gate_mlp_ref[0] * mlp_out


def dit_x_path(x, mod_parts, g_gate, wq_gate_g, wq_gate_v, g_down, wq_down):
    b_sz, n, h = x.shape
    inter = wq_down.shape[0]

    # f32 accumulation exactness of the exact-integer bf16 MXU trick: |xq|<=128, |wq|<=1.
    assert max(h, inter) * 128 < 2 ** 24, "K too large for exact f32 accumulation"

    # Token tile: big tiles when H is small (memory-bound on the f32 x tile), but keep at
    # least 2 grid points so both v7x TensorCores get work (no-op on 1-TC v5e/v6e).
    tn = min(n, 512 if h <= 512 else 256)
    while b_sz * pl.cdiv(n, tn) < 2 and tn > 8:
        tn = max(tn // 2, 8)
    grid = (b_sz, pl.cdiv(n, tn))

    kernel = functools.partial(_dit_x_kernel, ln_eps=LN_EPS, rms_eps=BITLINEAR_RMS_EPS)

    x_spec = pl.BlockSpec((1, tn, h), lambda b, t: (b, t, 0))
    # Modulation rows change with the batch grid axis -> keep default (double) buffering so
    # they stay prefetchable; their footprint is only 6*H*4 bytes.
    mod_spec = pl.BlockSpec((1, 1, h), lambda b, t: (b, 0, 0))
    # Ternary weights + folded RMS weights are grid-constant -> single-buffered (Buffered(1)).
    cw = lambda shape: _const_spec(shape, lambda b, t: (0, 0))

    # Scoped-VMEM budget: single-buffered bf16 weights + double-buffered x in/out tiles +
    # f32 activation temporaries, clamped to ~3/4 of physical VMEM per generation.
    weight_bytes = 2 * (wq_gate_g.size + wq_gate_v.size + wq_down.size)
    io_bytes = 2 * 2 * (tn * h * 4)
    tmp_bytes = 6 * tn * max(inter, h) * 4
    vmem_limit = min(max(int(1.25 * (weight_bytes + io_bytes + tmp_bytes)) + (8 << 20), 32 << 20),
                     _vmem_cap_bytes())
    # TODO(synk): at production H/I (>~2k/8k) the MLP weights exceed VMEM even single-buffered;
    #             add an inner "arbitrary" grid axis over I with an f32 down_proj accumulator.

    return pl.pallas_call(
        kernel,
        out_shape=jax.ShapeDtypeStruct((b_sz, n, h), jnp.float32),
        grid=grid,
        in_specs=[
            x_spec,                                                # x token tile
            mod_spec, mod_spec, mod_spec,                          # shift/scale/gate (msa)
            mod_spec, mod_spec, mod_spec,                          # shift/scale/gate (mlp)
            cw((1, h)),                                            # gate_proj folded RMS weight
            cw((h, inter)),                                        # gate half of gate_proj (H, I)
            cw((h, inter)),                                        # value half of gate_proj (H, I)
            cw((1, inter)),                                        # down_proj folded RMS weight
            cw((inter, h)),                                        # down_proj ternary weight (I, H)
        ],
        out_specs=pl.BlockSpec((1, tn, h), lambda b, t: (b, t, 0)),
        compiler_params=pltpu.CompilerParams(
            dimension_semantics=("parallel", "parallel"),          # shard grid across TCs (v7x)
            vmem_limit_bytes=int(vmem_limit),
        ),
    )(x, *mod_parts, g_gate, wq_gate_g, wq_gate_v, g_down, wq_down)


# ----------------------------------------------------------------------------------
# Parameter init (deterministic, synthetic) + full MeshDiTBlock forward
# ----------------------------------------------------------------------------------
def init_params(key, hidden_size, mlp_ratio=4.0):
    h = hidden_size
    inter_x = int(h * mlp_ratio)                       # MeshDiTBlock.mlp intermediate_size
    inter_c = int(h * mlp_ratio * 2 / 3)               # AdaLN hgrn_mlp intermediate_size
    inter_c = 256 * ((inter_c + 255) // 256)           # 256-aligned (MXU-friendly on v6e/v7x)
    out_dim = 6 * h
    ks = jax.random.split(key, 9)

    def w_(k, shape):
        return (0.02 * jax.random.normal(k, shape)).astype(jnp.float32)

    ones = lambda n_: jnp.ones((n_,), jnp.float32)
    return {
        "mlp": {   # HGRNBitMLP on x
            "gate_proj": {"w": w_(ks[0], (2 * inter_x, h)), "g": ones(h)},
            "down_proj": {"w": w_(ks[1], (h, inter_x)),     "g": ones(inter_x)},
        },
        "adaln": {  # AdaLNConditioning(hidden, hidden, 6*hidden)
            "input_proj":  {"w": w_(ks[2], (h, h)),             "g": ones(h)},
            "gate_proj":   {"w": w_(ks[3], (2 * inter_c, h)),   "g": ones(h)},
            "down_proj":   {"w": w_(ks[4], (h, inter_c)),       "g": ones(inter_c)},
            "output_proj": {"w": w_(ks[5], (out_dim, h)),       "g": ones(h),
                            "b": w_(ks[6], (out_dim,))},
            "norm_g": ones(out_dim),
            "out_proj":    {"w": w_(ks[7], (out_dim, out_dim)), "g": ones(out_dim),
                            "b": w_(ks[8], (out_dim,))},
        },
    }


@jax.jit
def mesh_dit_block_forward(x, c, prepped):
    """MeshDiTBlock.forward(x, c) given pre-quantized weights (see prepare_weights)."""
    b_sz, n, h = x.shape
    ad = prepped["adaln"]

    # --- adaLN conditioning path on c (one fused Pallas call) -> (B, 6H) ---
    mod = adaln_conditioning(
        c,
        ad["g_in"], ad["w_in"],
        ad["g_gp"], ad["w_gp_g"], ad["w_gp_v"],
        ad["g_dp"], ad["w_dp"],
        ad["g_op"], ad["w_op"], ad["b_op"],
        ad["norm_g"],
        ad["g_pr"], ad["w_pr"], ad["b_pr"],
    )

    # chunk(6, dim=1): shift_msa, scale_msa, gate_msa, shift_mlp, scale_mlp, gate_mlp
    mod_parts = [p.reshape(b_sz, 1, h) for p in jnp.split(mod, 6, axis=-1)]

    # --- main hot path on x (one fused, token-tiled Pallas call) ---
    mlp = prepped["mlp"]
    return dit_x_path(x, mod_parts,
                      mlp["g_gate"], mlp["wq_gate_g"], mlp["wq_gate_v"],
                      mlp["g_down"], mlp["wq_down"])


if __name__ == "__main__":
    B, N, H = 2, 8, 128          # H multiple of 128 so lanes/MXU are not padded in the test
    key = jax.random.PRNGKey(0)
    kx, kc, kp = jax.random.split(key, 3)
    x = jax.random.normal(kx, (B, N, H), dtype=jnp.float32)
    c = jax.random.normal(kc, (B, H), dtype=jnp.float32)
    params = init_params(kp, H, mlp_ratio=4.0)

    # One-shot weight quantization, hoisted OUT of the per-step jitted forward.
    prepped = prepare_weights(params)
    jax.block_until_ready(prepped)

    out = mesh_dit_block_forward(x, c, prepped)
    jax.block_until_ready(out)
    assert out.shape == (B, N, H) and out.dtype == jnp.float32
    assert bool(jnp.all(jnp.isfinite(out)))
    print("KERNEL_OK")
</pallas_src>

<mosaic_0001>
module attributes {stable_mosaic.version = 11 : i64} {
  func.func @_adaln_kernel(%arg0: memref<2x128xf32, #tpu.memory_space<vmem>>, %arg1: memref<1x128xf32, #tpu.memory_space<vmem>>, %arg2: memref<128x128xbf16, #tpu.memory_space<vmem>>, %arg3: memref<1x128xf32, #tpu.memory_space<vmem>>, %arg4: memref<128x512xbf16, #tpu.memory_space<vmem>>, %arg5: memref<128x512xbf16, #tpu.memory_space<vmem>>, %arg6: memref<1x512xf32, #tpu.memory_space<vmem>>, %arg7: memref<512x128xbf16, #tpu.memory_space<vmem>>, %arg8: memref<1x128xf32, #tpu.memory_space<vmem>>, %arg9: memref<128x768xbf16, #tpu.memory_space<vmem>>, %arg10: memref<1x768xf32, #tpu.memory_space<vmem>>, %arg11: memref<1x768xf32, #tpu.memory_space<vmem>>, %arg12: memref<1x768xf32, #tpu.memory_space<vmem>>, %arg13: memref<768x768xbf16, #tpu.memory_space<vmem>>, %arg14: memref<1x768xf32, #tpu.memory_space<vmem>>, %arg15: memref<2x768xf32, #tpu.memory_space<vmem>>) attributes {dimension_semantics = [], scalar_prefetch = 0 : i64, scratch_operands = 0 : i64, tpu.core_type = #tpu.core_type<tc>} {
    %c0 = arith.constant 0 : index
    %c0_0 = arith.constant 0 : index
    %0 = vector.load %arg0[%c0, %c0_0] : memref<2x128xf32, #tpu.memory_space<vmem>>, vector<2x128xf32>
    %1 = arith.negf %0 : vector<2x128xf32>
    %2 = math.exp %1 : vector<2x128xf32>
    %cst = arith.constant 1.000000e+00 : f32
    %3 = vector.broadcast %cst : f32 to vector<2x128xf32>
    %4 = arith.addf %3, %2 : vector<2x128xf32>
    %5 = arith.divf %3, %4 : vector<2x128xf32>
    %6 = arith.mulf %0, %5 : vector<2x128xf32>
    %c0_1 = arith.constant 0 : index
    %c0_2 = arith.constant 0 : index
    %7 = vector.load %arg1[%c0_1, %c0_2] : memref<1x128xf32, #tpu.memory_space<vmem>>, vector<1x128xf32>
    %c0_3 = arith.constant 0 : index
    %c0_4 = arith.constant 0 : index
    %8 = vector.load %arg2[%c0_3, %c0_4] : memref<128x128xbf16, #tpu.memory_space<vmem>>, vector<128x128xbf16>
    %9 = arith.mulf %6, %6 : vector<2x128xf32>
    %cst_5 = arith.constant dense<0.000000e+00> : vector<2xf32>
    %10 = vector.multi_reduction <add>, %9, %cst_5 [1] : vector<2x128xf32> to vector<2xf32>
    %11 = vector.shape_cast %10 : vector<2xf32> to vector<2x1xf32>
    %cst_6 = arith.constant 1.280000e+02 : f32
    %12 = vector.broadcast %cst_6 : f32 to vector<2x1xf32>
    %13 = arith.divf %11, %12 : vector<2x1xf32>
    %cst_7 = arith.constant 9.99999993E-9 : f32
    %14 = vector.broadcast %cst_7 : f32 to vector<2x1xf32>
    %15 = arith.addf %13, %14 : vector<2x1xf32>
    %16 = math.rsqrt %15 : vector<2x1xf32>
    %17 = vector.broadcast %16 : vector<2x1xf32> to vector<2x128xf32>
    %18 = arith.mulf %6, %17 : vector<2x128xf32>
    %19 = vector.broadcast %7 : vector<1x128xf32> to vector<2x128xf32>
    %20 = arith.mulf %18, %19 : vector<2x128xf32>
    %21 = math.absf %20 : vector<2x128xf32>
    %cst_8 = arith.constant dense<0xFF800000> : vector<2xf32>
    %22 = vector.multi_reduction <maximumf>, %21, %cst_8 [1] : vector<2x128xf32> to vector<2xf32>
    %23 = vector.shape_cast %22 : vector<2xf32> to vector<2x1xf32>
    %cst_9 = arith.constant 9.99999974E-6 : f32
    %24 = vector.broadcast %cst_9 : f32 to vector<2x1xf32>
    %25 = arith.maximumf %23, %24 : vector<2x1xf32>
    %cst_10 = arith.constant 1.270000e+02 : f32
    %26 = vector.broadcast %cst_10 : f32 to vector<2x1xf32>
    %27 = arith.divf %26, %25 : vector<2x1xf32>
    %28 = vector.broadcast %27 : vector<2x1xf32> to vector<2x128xf32>
    %29 = arith.mulf %20, %28 : vector<2x128xf32>
    %30 = math.roundeven %29 : vector<2x128xf32>
    %cst_11 = arith.constant -1.280000e+02 : f32
    %cst_12 = arith.constant 1.270000e+02 : f32
    %31 = vector.broadcast %cst_11 : f32 to vector<2x128xf32>
    %32 = arith.maximumf %31, %30 : vector<2x128xf32>
    %33 = vector.broadcast %cst_12 : f32 to vector<2x128xf32>
    %34 = arith.minimumf %33, %32 : vector<2x128xf32>
    %35 = arith.truncf %34 : vector<2x128xf32> to vector<2x128xbf16>
    %cst_13 = arith.constant 0.00787401571 : f32
    %36 = vector.broadcast %cst_13 : f32 to vector<2x1xf32>
    %37 = arith.mulf %25, %36 : vector<2x1xf32>
    %cst_14 = arith.constant dense<0.000000e+00> : vector<2x128xf32>
    %38 = tpu.matmul %35, %8, %cst_14 {dimension_numbers = #tpu.dot_dimension_numbers<[1], [0], [0], [1], [0, 0, 1, 1], [], []>} : vector<2x128xbf16>, vector<128x128xbf16>, vector<2x128xf32> -> vector<2x128xf32>
    %39 = vector.broadcast %37 : vector<2x1xf32> to vector<2x128xf32>
    %40 = arith.mulf %38, %39 : vector<2x128xf32>
    %c0_15 = arith.constant 0 : index
    %c0_16 = arith.constant 0 : index
    %41 = vector.load %arg3[%c0_15, %c0_16] : memref<1x128xf32, #tpu.memory_space<vmem>>, vector<1x128xf32>
    %42 = arith.mulf %40, %40 : vector<2x128xf32>
    %cst_17 = arith.constant dense<0.000000e+00> : vector<2xf32>
    %43 = vector.multi_reduction <add>, %42, %cst_17 [1] : vector<2x128xf32> to vector<2xf32>
    %44 = vector.shape_cast %43 : vector<2xf32> to vector<2x1xf32>
    %cst_18 = arith.constant 1.280000e+02 : f32
    %45 = vector.broadcast %cst_18 : f32 to vector<2x1xf32>
    %46 = arith.divf %44, %45 : vector<2x1xf32>
    %cst_19 = arith.constant 9.99999993E-9 : f32
    %47 = vector.broadcast %cst_19 : f32 to vector<2x1xf32>
    %48 = arith.addf %46, %47 : vector<2x1xf32>
    %49 = math.rsqrt %48 : vector<2x1xf32>
    %50 = vector.broadcast %49 : vector<2x1xf32> to vector<2x128xf32>
    %51 = arith.mulf %40, %50 : vector<2x128xf32>
    %52 = vector.broadcast %41 : vector<1x128xf32> to vector<2x128xf32>
    %53 = arith.mulf %51, %52 : vector<2x128xf32>
    %54 = math.absf %53 : vector<2x128xf32>
    %cst_20 = arith.constant dense<0xFF800000> : vector<2xf32>
    %55 = vector.multi_reduction <maximumf>, %54, %cst_20 [1] : vector<2x128xf32> to vector<2xf32>
    %56 = vector.shape_cast %55 : vector<2xf32> to vector<2x1xf32>
    %cst_21 = arith.constant 9.99999974E-6 : f32
    %57 = vector.broadcast %cst_21 : f32 to vector<2x1xf32>
    %58 = arith.maximumf %56, %57 : vector<2x1xf32>
    %cst_22 = arith.constant 1.270000e+02 : f32
    %59 = vector.broadcast %cst_22 : f32 to vector<2x1xf32>
    %60 = arith.divf %59, %58 : vector<2x1xf32>
    %61 = vector.broadcast %60 : vector<2x1xf32> to vector<2x128xf32>
    %62 = arith.mulf %53, %61 : vector<2x128xf32>
    %63 = math.roundeven %62 : vector<2x128xf32>
    %cst_23 = arith.constant -1.280000e+02 : f32
    %cst_24 = arith.constant 1.270000e+02 : f32
    %64 = vector.broadcast %cst_23 : f32 to vector<2x128xf32>
    %65 = arith.maximumf %64, %63 : vector<2x128xf32>
    %66 = vector.broadcast %cst_24 : f32 to vector<2x128xf32>
    %67 = arith.minimumf %66, %65 : vector<2x128xf32>
    %68 = arith.truncf %67 : vector<2x128xf32> to vector<2x128xbf16>
    %cst_25 = arith.constant 0.00787401571 : f32
    %69 = vector.broadcast %cst_25 : f32 to vector<2x1xf32>
    %70 = arith.mulf %58, %69 : vector<2x1xf32>
    %c0_26 = arith.constant 0 : index
    %c0_27 = arith.constant 0 : index
    %71 = vector.load %arg4[%c0_26, %c0_27] : memref<128x512xbf16, #tpu.memory_space<vmem>>, vector<128x512xbf16>
    %cst_28 = arith.constant dense<0.000000e+00> : vector<2x512xf32>
    %72 = tpu.matmul %68, %71, %cst_28 {dimension_numbers = #tpu.dot_dimension_numbers<[1], [0], [0], [1], [0, 0, 1, 1], [], []>} : vector<2x128xbf16>, vector<128x512xbf16>, vector<2x512xf32> -> vector<2x512xf32>
    %73 = vector.broadcast %70 : vector<2x1xf32> to vector<2x512xf32>
    %74 = arith.mulf %72, %73 : vector<2x512xf32>
    %c0_29 = arith.constant 0 : index
    %c0_30 = arith.constant 0 : index
    %75 = vector.load %arg5[%c0_29, %c0_30] : memref<128x512xbf16, #tpu.memory_space<vmem>>, vector<128x512xbf16>
    %cst_31 = arith.constant dense<0.000000e+00> : vector<2x512xf32>
    %76 = tpu.matmul %68, %75, %cst_31 {dimension_numbers = #tpu.dot_dimension_numbers<[1], [0], [0], [1], [0, 0, 1, 1], [], []>} : vector<2x128xbf16>, vector<128x512xbf16>, vector<2x512xf32> -> vector<2x512xf32>
    %77 = vector.broadcast %70 : vector<2x1xf32> to vector<2x512xf32>
    %78 = arith.mulf %76, %77 : vector<2x512xf32>
    %79 = arith.negf %74 : vector<2x512xf32>
    %80 = math.exp %79 : vector<2x512xf32>
    %cst_32 = arith.constant 1.000000e+00 : f32
    %81 = vector.broadcast %cst_32 : f32 to vector<2x512xf32>
    %82 = arith.addf %81, %80 : vector<2x512xf32>
    %83 = arith.divf %81, %82 : vector<2x512xf32>
    %84 = arith.mulf %74, %83 : vector<2x512xf32>
    %85 = arith.mulf %84, %78 : vector<2x512xf32>
    %c0_33 = arith.constant 0 : index
    %c0_34 = arith.constant 0 : index
    %86 = vector.load %arg6[%c0_33, %c0_34] : memref<1x512xf32, #tpu.memory_space<vmem>>, vector<1x512xf32>
    %c0_35 = arith.constant 0 : index
    %c0_36 = arith.constant 0 : index
    %87 = vector.load %arg7[%c0_35, %c0_36] : memref<512x128xbf16, #tpu.memory_space<vmem>>, vector<512x128xbf16>
    %88 = arith.mulf %85, %85 : vector<2x512xf32>
    %cst_37 = arith.constant dense<0.000000e+00> : vector<2xf32>
    %89 = vector.multi_reduction <add>, %88, %cst_37 [1] : vector<2x512xf32> to vector<2xf32>
    %90 = vector.shape_cast %89 : vector<2xf32> to vector<2x1xf32>
    %cst_38 = arith.constant 5.120000e+02 : f32
    %91 = vector.broadcast %cst_38 : f32 to vector<2x1xf32>
    %92 = arith.divf %90, %91 : vector<2x1xf32>
    %cst_39 = arith.constant 9.99999993E-9 : f32
    %93 = vector.broadcast %cst_39 : f32 to vector<2x1xf32>
    %94 = arith.addf %92, %93 : vector<2x1xf32>
    %95 = math.rsqrt %94 : vector<2x1xf32>
    %96 = vector.broadcast %95 : vector<2x1xf32> to vector<2x512xf32>
    %97 = arith.mulf %85, %96 : vector<2x512xf32>
    %98 = vector.broadcast %86 : vector<1x512xf32> to vector<2x512xf32>
    %99 = arith.mulf %97, %98 : vector<2x512xf32>
    %100 = math.absf %99 : vector<2x512xf32>
    %cst_40 = arith.constant dense<0xFF800000> : vector<2xf32>
    %101 = vector.multi_reduction <maximumf>, %100, %cst_40 [1] : vector<2x512xf32> to vector<2xf32>
    %102 = vector.shape_cast %101 : vector<2xf32> to vector<2x1xf32>
    %cst_41 = arith.constant 9.99999974E-6 : f32
    %103 = vector.broadcast %cst_41 : f32 to vector<2x1xf32>
    %104 = arith.maximumf %102, %103 : vector<2x1xf32>
    %cst_42 = arith.constant 1.270000e+02 : f32
    %105 = vector.broadcast %cst_42 : f32 to vector<2x1xf32>
    %106 = arith.divf %105, %104 : vector<2x1xf32>
    %107 = vector.broadcast %106 : vector<2x1xf32> to vector<2x512xf32>
    %108 = arith.mulf %99, %107 : vector<2x512xf32>
    %109 = math.roundeven %108 : vector<2x512xf32>
    %cst_43 = arith.constant -1.280000e+02 : f32
    %cst_44 = arith.constant 1.270000e+02 : f32
    %110 = vector.broadcast %cst_43 : f32 to vector<2x512xf32>
    %111 = arith.maximumf %110, %109 : vector<2x512xf32>
    %112 = vector.broadcast %cst_44 : f32 to vector<2x512xf32>
    %113 = arith.minimumf %112, %111 : vector<2x512xf32>
    %114 = arith.truncf %113 : vector<2x512xf32> to vector<2x512xbf16>
    %cst_45 = arith.constant 0.00787401571 : f32
    %115 = vector.broadcast %cst_45 : f32 to vector<2x1xf32>
    %116 = arith.mulf %104, %115 : vector<2x1xf32>
    %cst_46 = arith.constant dense<0.000000e+00> : vector<2x128xf32>
    %117 = tpu.matmul %114, %87, %cst_46 {dimension_numbers = #tpu.dot_dimension_numbers<[1], [0], [0], [1], [0, 0, 1, 1], [], []>} : vector<2x512xbf16>, vector<512x128xbf16>, vector<2x128xf32> -> vector<2x128xf32>
    %118 = vector.broadcast %116 : vector<2x1xf32> to vector<2x128xf32>
    %119 = arith.mulf %117, %118 : vector<2x128xf32>
    %c0_47 = arith.constant 0 : index
    %c0_48 = arith.constant 0 : index
    %120 = vector.load %arg8[%c0_47, %c0_48] : memref<1x128xf32, #tpu.memory_space<vmem>>, vector<1x128xf32>
    %c0_49 = arith.constant 0 : index
    %c0_50 = arith.constant 0 : index
    %121 = vector.load %arg9[%c0_49, %c0_50] : memref<128x768xbf16, #tpu.memory_space<vmem>>, vector<128x768xbf16>
    %122 = arith.mulf %119, %119 : vector<2x128xf32>
    %cst_51 = arith.constant dense<0.000000e+00> : vector<2xf32>
    %123 = vector.multi_reduction <add>, %122, %cst_51 [1] : vector<2x128xf32> to vector<2xf32>
    %124 = vector.shape_cast %123 : vector<2xf32> to vector<2x1xf32>
    %cst_52 = arith.constant 1.280000e+02 : f32
    %125 = vector.broadcast %cst_52 : f32 to vector<2x1xf32>
    %126 = arith.divf %124, %125 : vector<2x1xf32>
    %cst_53 = arith.constant 9.99999993E-9 : f32
    %127 = vector.broadcast %cst_53 : f32 to vector<2x1xf32>
    %128 = arith.addf %126, %127 : vector<2x1xf32>
    %129 = math.rsqrt %128 : vector<2x1xf32>
    %130 = vector.broadcast %129 : vector<2x1xf32> to vector<2x128xf32>
    %131 = arith.mulf %119, %130 : vector<2x128xf32>
    %132 = vector.broadcast %120 : vector<1x128xf32> to vector<2x128xf32>
    %133 = arith.mulf %131, %132 : vector<2x128xf32>
    %134 = math.absf %133 : vector<2x128xf32>
    %cst_54 = arith.constant dense<0xFF800000> : vector<2xf32>
    %135 = vector.multi_reduction <maximumf>, %134, %cst_54 [1] : vector<2x128xf32> to vector<2xf32>
    %136 = vector.shape_cast %135 : vector<2xf32> to vector<2x1xf32>
    %cst_55 = arith.constant 9.99999974E-6 : f32
    %137 = vector.broadcast %cst_55 : f32 to vector<2x1xf32>
    %138 = arith.maximumf %136, %137 : vector<2x1xf32>
    %cst_56 = arith.constant 1.270000e+02 : f32
    %139 = vector.broadcast %cst_56 : f32 to vector<2x1xf32>
    %140 = arith.divf %139, %138 : vector<2x1xf32>
    %141 = vector.broadcast %140 : vector<2x1xf32> to vector<2x128xf32>
    %142 = arith.mulf %133, %141 : vector<2x128xf32>
    %143 = math.roundeven %142 : vector<2x128xf32>
    %cst_57 = arith.constant -1.280000e+02 : f32
    %cst_58 = arith.constant 1.270000e+02 : f32
    %144 = vector.broadcast %cst_57 : f32 to vector<2x128xf32>
    %145 = arith.maximumf %144, %143 : vector<2x128xf32>
    %146 = vector.broadcast %cst_58 : f32 to vector<2x128xf32>
    %147 = arith.minimumf %146, %145 : vector<2x128xf32>
    %148 = arith.truncf %147 : vector<2x128xf32> to vector<2x128xbf16>
    %cst_59 = arith.constant 0.00787401571 : f32
    %149 = vector.broadcast %cst_59 : f32 to vector<2x1xf32>
    %150 = arith.mulf %138, %149 : vector<2x1xf32>
    %cst_60 = arith.constant dense<0.000000e+00> : vector<2x768xf32>
    %151 = tpu.matmul %148, %121, %cst_60 {dimension_numbers = #tpu.dot_dimension_numbers<[1], [0], [0], [1], [0, 0, 1, 1], [], []>} : vector<2x128xbf16>, vector<128x768xbf16>, vector<2x768xf32> -> vector<2x768xf32>
    %152 = vector.broadcast %150 : vector<2x1xf32> to vector<2x768xf32>
    %153 = arith.mulf %151, %152 : vector<2x768xf32>
    %c0_61 = arith.constant 0 : index
    %c0_62 = arith.constant 0 : index
    %154 = vector.load %arg10[%c0_61, %c0_62] : memref<1x768xf32, #tpu.memory_space<vmem>>, vector<1x768xf32>
    %155 = vector.broadcast %154 : vector<1x768xf32> to vector<2x768xf32>
    %156 = arith.addf %153, %155 : vector<2x768xf32>
    %157 = arith.mulf %156, %156 : vector<2x768xf32>
    %cst_63 = arith.constant dense<0.000000e+00> : vector<2xf32>
    %158 = vector.multi_reduction <add>, %157, %cst_63 [1] : vector<2x768xf32> to vector<2xf32>
    %159 = vector.shape_cast %158 : vector<2xf32> to vector<2x1xf32>
    %cst_64 = arith.constant 7.680000e+02 : f32
    %160 = vector.broadcast %cst_64 : f32 to vector<2x1xf32>
    %161 = arith.divf %159, %160 : vector<2x1xf32>
    %cst_65 = arith.constant 9.99999997E-7 : f32
    %162 = vector.broadcast %cst_65 : f32 to vector<2x1xf32>
    %163 = arith.addf %161, %162 : vector<2x1xf32>
    %164 = math.rsqrt %163 : vector<2x1xf32>
    %165 = vector.broadcast %164 : vector<2x1xf32> to vector<2x768xf32>
    %166 = arith.mulf %156, %165 : vector<2x768xf32>
    %c0_66 = arith.constant 0 : index
    %c0_67 = arith.constant 0 : index
    %167 = vector.load %arg11[%c0_66, %c0_67] : memref<1x768xf32, #tpu.memory_space<vmem>>, vector<1x768xf32>
    %168 = vector.broadcast %167 : vector<1x768xf32> to vector<2x768xf32>
    %169 = arith.mulf %166, %168 : vector<2x768xf32>
    %c0_68 = arith.constant 0 : index
    %c0_69 = arith.constant 0 : index
    %170 = vector.load %arg12[%c0_68, %c0_69] : memref<1x768xf32, #tpu.memory_space<vmem>>, vector<1x768xf32>
    %c0_70 = arith.constant 0 : index
    %c0_71 = arith.constant 0 : index
    %171 = vector.load %arg13[%c0_70, %c0_71] : memref<768x768xbf16, #tpu.memory_space<vmem>>, vector<768x768xbf16>
    %172 = arith.mulf %169, %169 : vector<2x768xf32>
    %cst_72 = arith.constant dense<0.000000e+00> : vector<2xf32>
    %173 = vector.multi_reduction <add>, %172, %cst_72 [1] : vector<2x768xf32> to vector<2xf32>
    %174 = vector.shape_cast %173 : vector<2xf32> to vector<2x1xf32>
    %cst_73 = arith.constant 7.680000e+02 : f32
    %175 = vector.broadcast %cst_73 : f32 to vector<2x1xf32>
    %176 = arith.divf %174, %175 : vector<2x1xf32>
    %cst_74 = arith.constant 9.99999993E-9 : f32
    %177 = vector.broadcast %cst_74 : f32 to vector<2x1xf32>
    %178 = arith.addf %176, %177 : vector<2x1xf32>
    %179 = math.rsqrt %178 : vector<2x1xf32>
    %180 = vector.broadcast %179 : vector<2x1xf32> to vector<2x768xf32>
    %181 = arith.mulf %169, %180 : vector<2x768xf32>
    %182 = vector.broadcast %170 : vector<1x768xf32> to vector<2x768xf32>
    %183 = arith.mulf %181, %182 : vector<2x768xf32>
    %184 = math.absf %183 : vector<2x768xf32>
    %cst_75 = arith.constant dense<0xFF800000> : vector<2xf32>
    %185 = vector.multi_reduction <maximumf>, %184, %cst_75 [1] : vector<2x768xf32> to vector<2xf32>
    %186 = vector.shape_cast %185 : vector<2xf32> to vector<2x1xf32>
    %cst_76 = arith.constant 9.99999974E-6 : f32
    %187 = vector.broadcast %cst_76 : f32 to vector<2x1xf32>
    %188 = arith.maximumf %186, %187 : vector<2x1xf32>
    %cst_77 = arith.constant 1.270000e+02 : f32
    %189 = vector.broadcast %cst_77 : f32 to vector<2x1xf32>
    %190 = arith.divf %189, %188 : vector<2x1xf32>
    %191 = vector.broadcast %190 : vector<2x1xf32> to vector<2x768xf32>
    %192 = arith.mulf %183, %191 : vector<2x768xf32>
    %193 = math.roundeven %192 : vector<2x768xf32>
    %cst_78 = arith.constant -1.280000e+02 : f32
    %cst_79 = arith.constant 1.270000e+02 : f32
    %194 = vector.broadcast %cst_78 : f32 to vector<2x768xf32>
    %195 = arith.maximumf %194, %193 : vector<2x768xf32>
    %196 = vector.broadcast %cst_79 : f32 to vector<2x768xf32>
    %197 = arith.minimumf %196, %195 : vector<2x768xf32>
    %198 = arith.truncf %197 : vector<2x768xf32> to vector<2x768xbf16>
    %cst_80 = arith.constant 0.00787401571 : f32
    %199 = vector.broadcast %cst_80 : f32 to vector<2x1xf32>
    %200 = arith.mulf %188, %199 : vector<2x1xf32>
    %cst_81 = arith.constant dense<0.000000e+00> : vector<2x768xf32>
    %201 = tpu.matmul %198, %171, %cst_81 {dimension_numbers = #tpu.dot_dimension_numbers<[1], [0], [0], [1], [0, 0, 1, 1], [], []>} : vector<2x768xbf16>, vector<768x768xbf16>, vector<2x768xf32> -> vector<2x768xf32>
    %202 = vector.broadcast %200 : vector<2x1xf32> to vector<2x768xf32>
    %203 = arith.mulf %201, %202 : vector<2x768xf32>
    %c0_82 = arith.constant 0 : index
    %c0_83 = arith.constant 0 : index
    %204 = vector.load %arg14[%c0_82, %c0_83] : memref<1x768xf32, #tpu.memory_space<vmem>>, vector<1x768xf32>
    %205 = vector.broadcast %204 : vector<1x768xf32> to vector<2x768xf32>
    %206 = arith.addf %203, %205 : vector<2x768xf32>
    %c0_84 = arith.constant 0 : index
    %c0_85 = arith.constant 0 : index
    %207 = vector.load %arg15[%c0_84, %c0_85] : memref<2x768xf32, #tpu.memory_space<vmem>>, vector<2x768xf32>
    tpu.vector_store %arg15[%c0_84, %c0_85], %206 {strides = array<i32>} : memref<2x768xf32, #tpu.memory_space<vmem>>, vector<2x768xf32>,
    return
  }
}

module attributes {stable_mosaic.version = 11 : i64} {
  func.func @_dit_x_kernel(%arg0: i32, %arg1: i32, %arg2: memref<1x8x128xf32, #tpu.memory_space<vmem>>, %arg3: memref<1x1x128xf32, #tpu.memory_space<vmem>>, %arg4: memref<1x1x128xf32, #tpu.memory_space<vmem>>, %arg5: memref<1x1x128xf32, #tpu.memory_space<vmem>>, %arg6: memref<1x1x128xf32, #tpu.memory_space<vmem>>, %arg7: memref<1x1x128xf32, #tpu.memory_space<vmem>>, %arg8: memref<1x1x128xf32, #tpu.memory_space<vmem>>, %arg9: memref<1x128xf32, #tpu.memory_space<vmem>>, %arg10: memref<128x512xbf16, #tpu.memory_space<vmem>>, %arg11: memref<128x512xbf16, #tpu.memory_space<vmem>>, %arg12: memref<1x512xf32, #tpu.memory_space<vmem>>, %arg13: memref<512x128xbf16, #tpu.memory_space<vmem>>, %arg14: memref<1x8x128xf32, #tpu.memory_space<vmem>>) attributes {dimension_semantics = [#tpu.dimension_semantics<parallel>, #tpu.dimension_semantics<parallel>], iteration_bounds = array<i64: 2, 1>, scalar_prefetch = 0 : i64, scratch_operands = 0 : i64, tpu.core_type = #tpu.core_type<tc>, window_params = [{transform_indices = @transform_0, window_bounds = array<i64: 1, 8, 128>}, {transform_indices = @transform_1, window_bounds = array<i64: 1, 1, 128>}, {transform_indices = @transform_2, window_bounds = array<i64: 1, 1, 128>}, {transform_indices = @transform_3, window_bounds = array<i64: 1, 1, 128>}, {transform_indices = @transform_4, window_bounds = array<i64: 1, 1, 128>}, {transform_indices = @transform_5, window_bounds = array<i64: 1, 1, 128>}, {transform_indices = @transform_6, window_bounds = array<i64: 1, 1, 128>}, {pipeline_mode = #tpu.pipeline_mode<synchronous>, transform_indices = @transform_7, window_bounds = array<i64: 1, 128>}, {pipeline_mode = #tpu.pipeline_mode<synchronous>, transform_indices = @transform_8, window_bounds = array<i64: 128, 512>}, {pipeline_mode = #tpu.pipeline_mode<synchronous>, transform_indices = @transform_9, window_bounds = array<i64: 128, 512>}, {pipeline_mode = #tpu.pipeline_mode<synchronous>, transform_indices = @transform_10, window_bounds = array<i64: 1, 512>}, {pipeline_mode = #tpu.pipeline_mode<synchronous>, transform_indices = @transform_11, window_bounds = array<i64: 512, 128>}, {transform_indices = @transform_12, window_bounds = array<i64: 1, 8, 128>}]} {
    %c0 = arith.constant 0 : index
    %c0_0 = arith.constant 0 : index
    %c0_1 = arith.constant 0 : index
    %0 = vector.load %arg2[%c0, %c0_0, %c0_1] : memref<1x8x128xf32, #tpu.memory_space<vmem>>, vector<1x8x128xf32>
    %1 = vector.shape_cast %0 : vector<1x8x128xf32> to vector<8x128xf32>
    %cst = arith.constant dense<0.000000e+00> : vector<8xf32>
    %2 = vector.multi_reduction <add>, %1, %cst [1] : vector<8x128xf32> to vector<8xf32>
    %3 = vector.shape_cast %2 : vector<8xf32> to vector<8x1xf32>
    %cst_2 = arith.constant 1.280000e+02 : f32
    %4 = vector.broadcast %cst_2 : f32 to vector<8x1xf32>
    %5 = arith.divf %3, %4 : vector<8x1xf32>
    %6 = arith.mulf %1, %1 : vector<8x128xf32>
    %cst_3 = arith.constant dense<0.000000e+00> : vector<8xf32>
    %7 = vector.multi_reduction <add>, %6, %cst_3 [1] : vector<8x128xf32> to vector<8xf32>
    %8 = vector.shape_cast %7 : vector<8xf32> to vector<8x1xf32>
    %cst_4 = arith.constant 1.280000e+02 : f32
    %9 = vector.broadcast %cst_4 : f32 to vector<8x1xf32>
    %10 = arith.divf %8, %9 : vector<8x1xf32>
    %11 = arith.mulf %5, %5 : vector<8x1xf32>
    %12 = arith.subf %10, %11 : vector<8x1xf32>
    %cst_5 = arith.constant 0.000000e+00 : f32
    %13 = vector.broadcast %cst_5 : f32 to vector<8x1xf32>
    %14 = arith.maximumf %12, %13 : vector<8x1xf32>
    %15 = vector.broadcast %5 : vector<8x1xf32> to vector<8x128xf32>
    %16 = arith.subf %1, %15 : vector<8x128xf32>
    %cst_6 = arith.constant 9.99999997E-7 : f32
    %17 = vector.broadcast %cst_6 : f32 to vector<8x1xf32>
    %18 = arith.addf %14, %17 : vector<8x1xf32>
    %19 = math.rsqrt %18 : vector<8x1xf32>
    %20 = vector.broadcast %19 : vector<8x1xf32> to vector<8x128xf32>
    %21 = arith.mulf %16, %20 : vector<8x128xf32>
    %c0_7 = arith.constant 0 : index
    %c0_8 = arith.constant 0 : index
    %c0_9 = arith.constant 0 : index
    %22 = vector.load %arg4[%c0_7, %c0_8, %c0_9] : memref<1x1x128xf32, #tpu.memory_space<vmem>>, vector<1x1x128xf32>
    %23 = vector.shape_cast %22 : vector<1x1x128xf32> to vector<1x128xf32>
    %cst_10 = arith.constant 1.000000e+00 : f32
    %24 = vector.broadcast %cst_10 : f32 to vector<1x128xf32>
    %25 = arith.addf %24, %23 : vector<1x128xf32>
    %26 = vector.broadcast %25 : vector<1x128xf32> to vector<8x128xf32>
    %27 = arith.mulf %21, %26 : vector<8x128xf32>
    %c0_11 = arith.constant 0 : index
    %c0_12 = arith.constant 0 : index
    %c0_13 = arith.constant 0 : index
    %28 = vector.load %arg3[%c0_11, %c0_12, %c0_13] : memref<1x1x128xf32, #tpu.memory_space<vmem>>, vector<1x1x128xf32>
    %29 = vector.shape_cast %28 : vector<1x1x128xf32> to vector<1x128xf32>
    %30 = vector.broadcast %29 : vector<1x128xf32> to vector<8x128xf32>
    %31 = arith.addf %27, %30 : vector<8x128xf32>
    %c0_14 = arith.constant 0 : index
    %c0_15 = arith.constant 0 : index
    %c0_16 = arith.constant 0 : index
    %32 = vector.load %arg5[%c0_14, %c0_15, %c0_16] : memref<1x1x128xf32, #tpu.memory_space<vmem>>, vector<1x1x128xf32>
    %33 = vector.shape_cast %32 : vector<1x1x128xf32> to vector<1x128xf32>
    %34 = vector.broadcast %33 : vector<1x128xf32> to vector<8x128xf32>
    %35 = arith.mulf %34, %31 : vector<8x128xf32>
    %36 = arith.addf %1, %35 : vector<8x128xf32>
    %cst_17 = arith.constant dense<0.000000e+00> : vector<8xf32>
    %37 = vector.multi_reduction <add>, %36, %cst_17 [1] : vector<8x128xf32> to vector<8xf32>
    %38 = vector.shape_cast %37 : vector<8xf32> to vector<8x1xf32>
    %cst_18 = arith.constant 1.280000e+02 : f32
    %39 = vector.broadcast %cst_18 : f32 to vector<8x1xf32>
    %40 = arith.divf %38, %39 : vector<8x1xf32>
    %41 = arith.mulf %36, %36 : vector<8x128xf32>
    %cst_19 = arith.constant dense<0.000000e+00> : vector<8xf32>
    %42 = vector.multi_reduction <add>, %41, %cst_19 [1] : vector<8x128xf32> to vector<8xf32>
    %43 = vector.shape_cast %42 : vector<8xf32> to vector<8x1xf32>
    %cst_20 = arith.constant 1.280000e+02 : f32
    %44 = vector.broadcast %cst_20 : f32 to vector<8x1xf32>
    %45 = arith.divf %43, %44 : vector<8x1xf32>
    %46 = arith.mulf %40, %40 : vector<8x1xf32>
    %47 = arith.subf %45, %46 : vector<8x1xf32>
    %cst_21 = arith.constant 0.000000e+00 : f32
    %48 = vector.broadcast %cst_21 : f32 to vector<8x1xf32>
    %49 = arith.maximumf %47, %48 : vector<8x1xf32>
    %50 = vector.broadcast %40 : vector<8x1xf32> to vector<8x128xf32>
    %51 = arith.subf %36, %50 : vector<8x128xf32>
    %cst_22 = arith.constant 9.99999997E-7 : f32
    %52 = vector.broadcast %cst_22 : f32 to vector<8x1xf32>
    %53 = arith.addf %49, %52 : vector<8x1xf32>
    %54 = math.rsqrt %53 : vector<8x1xf32>
    %55 = vector.broadcast %54 : vector<8x1xf32> to vector<8x128xf32>
    %56 = arith.mulf %51, %55 : vector<8x128xf32>
    %c0_23 = arith.constant 0 : index
    %c0_24 = arith.constant 0 : index
    %c0_25 = arith.constant 0 : index
    %57 = vector.load %arg7[%c0_23, %c0_24, %c0_25] : memref<1x1x128xf32, #tpu.memory_space<vmem>>, vector<1x1x128xf32>
    %58 = vector.shape_cast %57 : vector<1x1x128xf32> to vector<1x128xf32>
    %cst_26 = arith.constant 1.000000e+00 : f32
    %59 = vector.broadcast %cst_26 : f32 to vector<1x128xf32>
    %60 = arith.addf %59, %58 : vector<1x128xf32>
    %61 = vector.broadcast %60 : vector<1x128xf32> to vector<8x128xf32>
    %62 = arith.mulf %56, %61 : vector<8x128xf32>
    %c0_27 = arith.constant 0 : index
    %c0_28 = arith.constant 0 : index
    %c0_29 = arith.constant 0 : index
    %63 = vector.load %arg6[%c0_27, %c0_28, %c0_29] : memref<1x1x128xf32, #tpu.memory_space<vmem>>, vector<1x1x128xf32>
    %64 = vector.shape_cast %63 : vector<1x1x128xf32> to vector<1x128xf32>
    %65 = vector.broadcast %64 : vector<1x128xf32> to vector<8x128xf32>
    %66 = arith.addf %62, %65 : vector<8x128xf32>
    %c0_30 = arith.constant 0 : index
    %c0_31 = arith.constant 0 : index
    %67 = vector.load %arg9[%c0_30, %c0_31] : memref<1x128xf32, #tpu.memory_space<vmem>>, vector<1x128xf32>
    %68 = arith.mulf %66, %66 : vector<8x128xf32>
    %cst_32 = arith.constant dense<0.000000e+00> : vector<8xf32>
    %69 = vector.multi_reduction <add>, %68, %cst_32 [1] : vector<8x128xf32> to vector<8xf32>
    %70 = vector.shape_cast %69 : vector<8xf32> to vector<8x1xf32>
    %cst_33 = arith.constant 1.280000e+02 : f32
    %71 = vector.broadcast %cst_33 : f32 to vector<8x1xf32>
    %72 = arith.divf %70, %71 : vector<8x1xf32>
    %cst_34 = arith.constant 9.99999993E-9 : f32
    %73 = vector.broadcast %cst_34 : f32 to vector<8x1xf32>
    %74 = arith.addf %72, %73 : vector<8x1xf32>
    %75 = math.rsqrt %74 : vector<8x1xf32>
    %76 = vector.broadcast %75 : vector<8x1xf32> to vector<8x128xf32>
    %77 = arith.mulf %66, %76 : vector<8x128xf32>
    %78 = vector.broadcast %67 : vector<1x128xf32> to vector<8x128xf32>
    %79 = arith.mulf %77, %78 : vector<8x128xf32>
    %80 = math.absf %79 : vector<8x128xf32>
    %cst_35 = arith.constant dense<0xFF800000> : vector<8xf32>
    %81 = vector.multi_reduction <maximumf>, %80, %cst_35 [1] : vector<8x128xf32> to vector<8xf32>
    %82 = vector.shape_cast %81 : vector<8xf32> to vector<8x1xf32>
    %cst_36 = arith.constant 9.99999974E-6 : f32
    %83 = vector.broadcast %cst_36 : f32 to vector<8x1xf32>
    %84 = arith.maximumf %82, %83 : vector<8x1xf32>
    %cst_37 = arith.constant 1.270000e+02 : f32
    %85 = vector.broadcast %cst_37 : f32 to vector<8x1xf32>
    %86 = arith.divf %85, %84 : vector<8x1xf32>
    %87 = vector.broadcast %86 : vector<8x1xf32> to vector<8x128xf32>
    %88 = arith.mulf %79, %87 : vector<8x128xf32>
    %89 = math.roundeven %88 : vector<8x128xf32>
    %cst_38 = arith.constant -1.280000e+02 : f32
    %cst_39 = arith.constant 1.270000e+02 : f32
    %90 = vector.broadcast %cst_38 : f32 to vector<8x128xf32>
    %91 = arith.maximumf %90, %89 : vector<8x128xf32>
    %92 = vector.broadcast %cst_39 : f32 to vector<8x128xf32>
    %93 = arith.minimumf %92, %91 : vector<8x128xf32>
    %94 = arith.truncf %93 : vector<8x128xf32> to vector<8x128xbf16>
    %cst_40 = arith.constant 0.00787401571 : f32
    %95 = vector.broadcast %cst_40 : f32 to vector<8x1xf32>
    %96 = arith.mulf %84, %95 : vector<8x1xf32>
    %c0_41 = arith.constant 0 : index
    %c0_42 = arith.constant 0 : index
    %97 = vector.load %arg10[%c0_41, %c0_42] : memref<128x512xbf16, #tpu.memory_space<vmem>>, vector<128x512xbf16>
    %cst_43 = arith.constant dense<0.000000e+00> : vector<8x512xf32>
    %98 = tpu.matmul %94, %97, %cst_43 {dimension_numbers = #tpu.dot_dimension_numbers<[1], [0], [0], [1], [0, 0, 1, 1], [], []>} : vector<8x128xbf16>, vector<128x512xbf16>, vector<8x512xf32> -> vector<8x512xf32>
    %99 = vector.broadcast %96 : vector<8x1xf32> to vector<8x512xf32>
    %100 = arith.mulf %98, %99 : vector<8x512xf32>
    %c0_44 = arith.constant 0 : index
    %c0_45 = arith.constant 0 : index
    %101 = vector.load %arg11[%c0_44, %c0_45] : memref<128x512xbf16, #tpu.memory_space<vmem>>, vector<128x512xbf16>
    %cst_46 = arith.constant dense<0.000000e+00> : vector<8x512xf32>
    %102 = tpu.matmul %94, %101, %cst_46 {dimension_numbers = #tpu.dot_dimension_numbers<[1], [0], [0], [1], [0, 0, 1, 1], [], []>} : vector<8x128xbf16>, vector<128x512xbf16>, vector<8x512xf32> -> vector<8x512xf32>
    %103 = vector.broadcast %96 : vector<8x1xf32> to vector<8x512xf32>
    %104 = arith.mulf %102, %103 : vector<8x512xf32>
    %105 = arith.negf %100 : vector<8x512xf32>
    %106 = math.exp %105 : vector<8x512xf32>
    %cst_47 = arith.constant 1.000000e+00 : f32
    %107 = vector.broadcast %cst_47 : f32 to vector<8x512xf32>
    %108 = arith.addf %107, %106 : vector<8x512xf32>
    %109 = arith.divf %107, %108 : vector<8x512xf32>
    %110 = arith.mulf %100, %109 : vector<8x512xf32>
    %111 = arith.mulf %110, %104 : vector<8x512xf32>
    %c0_48 = arith.constant 0 : index
    %c0_49 = arith.constant 0 : index
    %112 = vector.load %arg12[%c0_48, %c0_49] : memref<1x512xf32, #tpu.memory_space<vmem>>, vector<1x512xf32>
    %c0_50 = arith.constant 0 : index
    %c0_51 = arith.constant 0 : index
    %113 = vector.load %arg13[%c0_50, %c0_51] : memref<512x128xbf16, #tpu.memory_space<vmem>>, vector<512x128xbf16>
    %114 = arith.mulf %111, %111 : vector<8x512xf32>
    %cst_52 = arith.constant dense<0.000000e+00> : vector<8xf32>
    %115 = vector.multi_reduction <add>, %114, %cst_52 [1] : vector<8x512xf32> to vector<8xf32>
    %116 = vector.shape_cast %115 : vector<8xf32> to vector<8x1xf32>
    %cst_53 = arith.constant 5.120000e+02 : f32
    %117 = vector.broadcast %cst_53 : f32 to vector<8x1xf32>
    %118 = arith.divf %116, %117 : vector<8x1xf32>
    %cst_54 = arith.constant 9.99999993E-9 : f32
    %119 = vector.broadcast %cst_54 : f32 to vector<8x1xf32>
    %120 = arith.addf %118, %119 : vector<8x1xf32>
    %121 = math.rsqrt %120 : vector<8x1xf32>
    %122 = vector.broadcast %121 : vector<8x1xf32> to vector<8x512xf32>
    %123 = arith.mulf %111, %122 : vector<8x512xf32>
    %124 = vector.broadcast %112 : vector<1x512xf32> to vector<8x512xf32>
    %125 = arith.mulf %123, %124 : vector<8x512xf32>
    %126 = math.absf %125 : vector<8x512xf32>
    %cst_55 = arith.constant dense<0xFF800000> : vector<8xf32>
    %127 = vector.multi_reduction <maximumf>, %126, %cst_55 [1] : vector<8x512xf32> to vector<8xf32>
    %128 = vector.shape_cast %127 : vector<8xf32> to vector<8x1xf32>
    %cst_56 = arith.constant 9.99999974E-6 : f32
    %129 = vector.broadcast %cst_56 : f32 to vector<8x1xf32>
    %130 = arith.maximumf %128, %129 : vector<8x1xf32>
    %cst_57 = arith.constant 1.270000e+02 : f32
    %131 = vector.broadcast %cst_57 : f32 to vector<8x1xf32>
    %132 = arith.divf %131, %130 : vector<8x1xf32>
    %133 = vector.broadcast %132 : vector<8x1xf32> to vector<8x512xf32>
    %134 = arith.mulf %125, %133 : vector<8x512xf32>
    %135 = math.roundeven %134 : vector<8x512xf32>
    %cst_58 = arith.constant -1.280000e+02 : f32
    %cst_59 = arith.constant 1.270000e+02 : f32
    %136 = vector.broadcast %cst_58 : f32 to vector<8x512xf32>
    %137 = arith.maximumf %136, %135 : vector<8x512xf32>
    %138 = vector.broadcast %cst_59 : f32 to vector<8x512xf32>
    %139 = arith.minimumf %138, %137 : vector<8x512xf32>
    %140 = arith.truncf %139 : vector<8x512xf32> to vector<8x512xbf16>
    %cst_60 = arith.constant 0.00787401571 : f32
    %141 = vector.broadcast %cst_60 : f32 to vector<8x1xf32>
    %142 = arith.mulf %130, %141 : vector<8x1xf32>
    %cst_61 = arith.constant dense<0.000000e+00> : vector<8x128xf32>
    %143 = tpu.matmul %140, %113, %cst_61 {dimension_numbers = #tpu.dot_dimension_numbers<[1], [0], [0], [1], [0, 0, 1, 1], [], []>} : vector<8x512xbf16>, vector<512x128xbf16>, vector<8x128xf32> -> vector<8x128xf32>
    %144 = vector.broadcast %142 : vector<8x1xf32> to vector<8x128xf32>
    %145 = arith.mulf %143, %144 : vector<8x128xf32>
    %c0_62 = arith.constant 0 : index
    %c0_63 = arith.constant 0 : index
    %c0_64 = arith.constant 0 : index
    %146 = vector.load %arg8[%c0_62, %c0_63, %c0_64] : memref<1x1x128xf32, #tpu.memory_space<vmem>>, vector<1x1x128xf32>
    %147 = vector.shape_cast %146 : vector<1x1x128xf32> to vector<1x128xf32>
    %148 = vector.broadcast %147 : vector<1x128xf32> to vector<8x128xf32>
    %149 = arith.mulf %148, %145 : vector<8x128xf32>
    %150 = arith.addf %36, %149 : vector<8x128xf32>
    %c0_65 = arith.constant 0 : index
    %c0_66 = arith.constant 0 : index
    %c0_67 = arith.constant 0 : index
    %151 = vector.load %arg14[%c0_65, %c0_66, %c0_67] : memref<1x8x128xf32, #tpu.memory_space<vmem>>, vector<1x8x128xf32>
    %152 = vector.shape_cast %151 : vector<1x8x128xf32> to vector<8x128xf32>
    %153 = vector.shape_cast %150 : vector<8x128xf32> to vector<1x8x128xf32>
    tpu.vector_store %arg14[%c0_65, %c0_66, %c0_67], %153 {strides = array<i32>} : memref<1x8x128xf32, #tpu.memory_space<vmem>>, vector<1x8x128xf32>,
    return
  }
  func.func @transform_0(%arg0: i32, %arg1: i32) -> (i32, i32, i32) {
    %c0_i32 = arith.constant 0 : i32
    %c0_i32_0 = arith.constant 0 : i32
    return %arg0, %arg1, %c0_i32 : i32, i32, i32
  }
  func.func @transform_1(%arg0: i32, %arg1: i32) -> (i32, i32, i32) {
    %c0_i32 = arith.constant 0 : i32
    %c0_i32_0 = arith.constant 0 : i32
    %c0_i32_1 = arith.constant 0 : i32
    return %arg0, %c0_i32, %c0_i32_0 : i32, i32, i32
  }
  func.func @transform_2(%arg0: i32, %arg1: i32) -> (i32, i32, i32) {
    %c0_i32 = arith.constant 0 : i32
    %c0_i32_0 = arith.constant 0 : i32
    %c0_i32_1 = arith.constant 0 : i32
    return %arg0, %c0_i32, %c0_i32_0 : i32, i32, i32
  }
  func.func @transform_3(%arg0: i32, %arg1: i32) -> (i32, i32, i32) {
    %c0_i32 = arith.constant 0 : i32
    %c0_i32_0 = arith.constant 0 : i32
    %c0_i32_1 = arith.constant 0 : i32
    return %arg0, %c0_i32, %c0_i32_0 : i32, i32, i32
  }
  func.func @transform_4(%arg0: i32, %arg1: i32) -> (i32, i32, i32) {
    %c0_i32 = arith.constant 0 : i32
    %c0_i32_0 = arith.constant 0 : i32
    %c0_i32_1 = arith.constant 0 : i32
    return %arg0, %c0_i32, %c0_i32_0 : i32, i32, i32
  }
  func.func @transform_5(%arg0: i32, %arg1: i32) -> (i32, i32, i32) {
    %c0_i32 = arith.constant 0 : i32
    %c0_i32_0 = arith.constant 0 : i32
    %c0_i32_1 = arith.constant 0 : i32
    return %arg0, %c0_i32, %c0_i32_0 : i32, i32, i32
  }
  func.func @transform_6(%arg0: i32, %arg1: i32) -> (i32, i32, i32) {
    %c0_i32 = arith.constant 0 : i32
    %c0_i32_0 = arith.constant 0 : i32
    %c0_i32_1 = arith.constant 0 : i32
    return %arg0, %c0_i32, %c0_i32_0 : i32, i32, i32
  }
  func.func @transform_7(%arg0: i32, %arg1: i32) -> (i32, i32) {
    %c0_i32 = arith.constant 0 : i32
    %c0_i32_0 = arith.constant 0 : i32
    %c0_i32_1 = arith.constant 0 : i32
    return %c0_i32, %c0_i32_0 : i32, i32
  }
  func.func @transform_8(%arg0: i32, %arg1: i32) -> (i32, i32) {
    %c0_i32 = arith.constant 0 : i32
    %c0_i32_0 = arith.constant 0 : i32
    %c0_i32_1 = arith.constant 0 : i32
    return %c0_i32, %c0_i32_0 : i32, i32
  }
  func.func @transform_9(%arg0: i32, %arg1: i32) -> (i32, i32) {
    %c0_i32 = arith.constant 0 : i32
    %c0_i32_0 = arith.constant 0 : i32
    %c0_i32_1 = arith.constant 0 : i32
    return %c0_i32, %c0_i32_0 : i32, i32
  }
  func.func @transform_10(%arg0: i32, %arg1: i32) -> (i32, i32) {
    %c0_i32 = arith.constant 0 : i32
    %c0_i32_0 = arith.constant 0 : i32
    %c0_i32_1 = arith.constant 0 : i32
    return %c0_i32, %c0_i32_0 : i32, i32
  }
  func.func @transform_11(%arg0: i32, %arg1: i32) -> (i32, i32) {
    %c0_i32 = arith.constant 0 : i32
    %c0_i32_0 = arith.constant 0 : i32
    %c0_i32_1 = arith.constant 0 : i32
    return %c0_i32, %c0_i32_0 : i32, i32
  }
  func.func @transform_12(%arg0: i32, %arg1: i32) -> (i32, i32, i32) {
    %c0_i32 = arith.constant 0 : i32
    %c0_i32_0 = arith.constant 0 : i32
    return %arg0, %arg1, %c0_i32 : i32, i32, i32
  }
}

</mosaic_0001>

<bundles_post_ra>
// kernel: mesh_dit_block_forward.3
= control target key start
LH: loop header
LB: loop body
LE: loop exit
PB: predicated region body
PF: predicated region fallthrough
CT: control target
= control target key end

     0   :  { %s3298_s0 = inlined_call_operand.hbm [shape: f32[2,8,128], index: 0, kind: input, shape index: {}]   ;;  %s3299_s1 = inlined_call_operand.vmem [shape: f32[2,1,128], index: 1, kind: input, shape index: {}]   ;;  %s3300_s2 = inlined_call_operand.vmem [shape: f32[2,1,128], index: 2, kind: input, shape index: {}]   ;;  %s3301_s3 = inlined_call_operand.vmem [shape: f32[2,1,128], index: 3, kind: input, shape index: {}]   ;;  %s3302_s4 = inlined_call_operand.vmem [shape: f32[2,1,128], index: 4, kind: input, shape index: {}]   ;;  %s3303_s5 = inlined_call_operand.vmem [shape: f32[2,1,128], index: 5, kind: input, shape index: {}]   ;;  %s3304_s6 = inlined_call_operand.vmem [shape: f32[2,1,128], index: 6, kind: input, shape index: {}]   ;;  %s3305_s7 = inlined_call_operand.hbm [shape: f32[1,128], index: 7, kind: input, shape index: {}]   ;;  %s3306_s8 = inlined_call_operand.hbm [shape: bf16[128,512], index: 8, kind: input, shape index: {}]   ;;  %s3307_s9 = inlined_call_operand.hbm [shape: bf16[128,512], index: 9, kind: input, shape index: {}]   ;;  %s3308_s10 = inlined_call_operand.hbm [shape: f32[1,512], index: 10, kind: input, shape index: {}]   ;;  %s3309_s11 = inlined_call_operand.hbm [shape: bf16[512,128], index: 11, kind: input, shape index: {}]   ;;  %s3310_s12 = inlined_call_operand.hbm [shape: f32[2,8,128], index: 12, kind: output, shape index: {}]  }
   0x1   :  { %3313 = sst [smem:[#allocation19_spill]] %s3303_s5 }
   0x2   :  { %3314 = sst [smem:[#allocation20_spill]] %s3304_s6 }
   0x3   :  { %3315 = sst [smem:[#allocation21_spill]] %s3305_s7 }
   0x4   :  { %3316 = sst [smem:[#allocation22_spill]] %s3306_s8 }
   0x5   :  { %3317 = sst [smem:[#allocation23_spill]] %s3307_s9 }
   0x6   :  { %3318 = sst [smem:[#allocation24_spill]] %s3308_s10 }
   0x7   :  { %3319 = sst [smem:[#allocation25_spill]] %s3310_s12 }
   0x8   :  { %17 = vsyncpa [#allocation3], 0 }
   0x9   :  { %19 = vsyncpa [#allocation3 + $0x1], 0 }
   0xa   :  { %20 = vsyncpa [#allocation6], 0 }
   0xb   :  { %21 = vsyncpa [#allocation9], 0 }
   0xc   :  { %22 = vsyncpa [#allocation12], 0 }
   0xd   :  { %23 = vsyncpa [#allocation4], 0 }
   0xe   :  { %25 = vsyncpa [#allocation4 + $0x1], 0  ;;  %s2981_s21 = smov 0   ;;  %s2983_s22 = smov 0  }
   0xf   :  { %s2985_s23 = smov 0   ;;  %s2987_s24 = smov 0  }
  0x10   :  { %s2989_s25 = smov 0   ;;  %s2991_s26 = smov 0  }
  0x11 LB: > { %s3311_s27 = sadd.s32 4294967295, %s2903_s26   ;;  %p1928_p0 = scmp.ge.s32.totalorder %s2903_s26, 1  ;;  %s2903_s26 = sphi %s2991_s26, %s31_s26   ;;  %s2899_s25 = sphi %s2989_s25, %s3339_s25   ;;  %s2895_s24 = sphi %s2987_s24, %s3338_s24   ;;  %s2891_s23 = sphi %s2985_s23, %s3337_s23   ;;  %s2887_s22 = sphi %s2983_s22, %s3336_s22   ;;  %s2883_s21 = sphi %s2981_s21, %s3335_s21  }
  0x12   : > { %p3015_p1 = scmp.eq.s32.totalorder %s3311_s27, 0  ;;  %p365_p2 = scmp.lt.s32.totalorder %s2903_s26, 3 }
  0x13   : > { %s3321_s7 = sld [smem:[#allocation21_spill]]  ;;  %p1934_p4 = scmp.ge.s32.totalorder %s2903_s26, 2 }
  0x14   : > { %p3023_p3 = pnand %p1928_p0, %p365_p2  ;;  %s2905_s15 = smov [#allocation5]  }
  0x15   : > { %s379_s16 = sshll.u32 %s2905_s15, 4  ;;  %s3324_s9 = sld [smem:[#allocation23_spill]]  ;;  %s380_s16 = int_to_ptr.vmem [resolvable:$true] %s379_s16 }
  0x16   : > { %p2497_p5 = pneg %p3023_p3  ;;  %s2906_s29 = smov [#allocation8]  }
  0x17   : > { %s404_s30 = sshll.u32 %s2906_s29, 4  ;;  %s3325_s8 = sld [smem:[#allocation22_spill]]  ;;  %s405_s30 = int_to_ptr.vmem [resolvable:$true] %s404_s30 }
  0x18   : > { %p3032_p6 = pnand %p2497_p5, %p3015_p1  ;;  %s2907_s12 = smov 256  }
  0x19   : > { %s377_s13 = sshll.u32 %s3321_s7, 4  ;;  %s2908_s6 = smov 16   ;;  %s378_s13 = int_to_ptr.hbm [resolvable:$true] %s377_s13 }
  0x1a   : > { %2500 = dma.hbm_to_vmem [thread:$0]  (!%p3032_p6), %s378_s13, 16, %s380_s16, [#allocation6]  }
  0x1b   : > { %s402_s20 = sshll.u32 %s3324_s9, 4  ;;  %s3326_s10 = sld [smem:[#allocation24_spill]]  ;;  %s403_s20 = int_to_ptr.hbm [resolvable:$true] %s402_s20 }
  0x1c   : > { %2506 = dma.hbm_to_vmem [thread:$0]  (!%p3032_p6), %s403_s20, 4096, %s405_s30, [#allocation9], %s2907_s12, %s2907_s12, %s2908_s6  }
  0x1d   : > { %s388_s7 = sshll.u32 %s3325_s8, 4  ;;  %s2909_s5 = smov [#allocation7]   ;;  %s389_s7 = int_to_ptr.hbm [resolvable:$true] %s388_s7 }
  0x1e   : > { %s390_s13 = sshll.u32 %s2909_s5, 4  ;;  %s2910_s27 = smov [#allocation10]   ;;  %s391_s13 = int_to_ptr.vmem [resolvable:$true] %s390_s13 }
  0x1f   : > { %2503 = dma.hbm_to_vmem [thread:$0]  (!%p3032_p6), %s389_s7, 4096, %s391_s13, [#allocation6], %s2907_s12, %s2907_s12, %s2908_s6  }
  0x20   : > { %s419_s16 = sshll.u32 %s2910_s27, 4  ;;  %s428_s30 = sshll.u32 %s3309_s11, 4  ;;  %s420_s16 = int_to_ptr.vmem [resolvable:$true] %s419_s16  ;;  %s429_s30 = int_to_ptr.hbm [resolvable:$true] %s428_s30 }
  0x21   : > { %s417_s9 = sshll.u32 %s3326_s10, 4  ;;  %s2911_s5 = smov [#allocation11]   ;;  %s418_s9 = int_to_ptr.hbm [resolvable:$true] %s417_s9 }
  0x22   : > { %2509 = dma.hbm_to_vmem [thread:$0]  (!%p3032_p6), %s418_s9, 64, %s420_s16, [#allocation9]  }
  0x23   : > { %s430_s15 = sshll.u32 %s2911_s5, 4  ;;  %s2912_s6 = smov 64   ;;  %s431_s15 = int_to_ptr.vmem [resolvable:$true] %s430_s15 }
  0x24   : > { %s2913_s7 = smov 4   ;;  %s1927_s12 = sadd.s32 4294967294, %s2903_s26  }
  0x25   : > { %2512 = dma.hbm_to_vmem [thread:$0]  (!%p3032_p6), %s429_s30, 4096, %s431_s15, [#allocation12], %s2912_s6, %s2912_s6, %s2913_s7  }
  0x26   : > { %s43_s18 = sadd.s32 1, %s2899_s25  ;;  %s52_s19 = sadd.s32 1, %s2891_s23 }
  0x27   : > { %p45_p7 = scmp.ge.s32.totalorder %s43_s18, 2  ;;  %p59_p8 = scmp.ne.s32.totalorder %s2891_s23, %s2887_s22 }
  0x28   : > { %p60_p9 = scmp.eq.s32.totalorder %s2903_s26, 0  ;;  %p65_p10 = scmp.ne.s32.totalorder %s2887_s22, %s2883_s21 }
  0x29   : > { %s3341_s18 = smov (%p45_p7, %s43_s18), 0  ;;  %s3329_s27 = sadd.s32 4294967295, %s2903_s26  }
  0x2a   : > { %p3068_p11 = por %p60_p9, %p59_p8  ;;  %p3074_p12 = por %p3015_p1, %p65_p10 }
  0x2b   : > { %s47_s13 = ssub.s32 %s2899_s25, %s3341_s18  ;;  %p352_p13 = scmp.eq.s32.totalorder %s3329_s27, 1 }
  0x2c   : > { %p50_p0 = scmp.eq.s32.totalorder %s47_s13, 0  ;;  %p358_p2 = scmp.eq.s32.totalorder %s1927_s12, 1 }
  0x2d   : > { %p3082_p5 = por %p352_p13, %p59_p8  ;;  %p2526_p6 = scmp.lt.s32.totalorder %s2903_s26, 2 }
  0x2e   : > { %s3088_s29 = scalar_select %p50_p0, %s2891_s23, %s52_s19  }
  0x2f   : > { %p3090_p7 = por %p358_p2, %p65_p10  ;;  %s444_s30 = sand.u32 1, %s2891_s23  }
  0x30   : > { %s1935_s5 = sshll.u32 %s444_s30, 3  ;;  %s1936_s15 = sshll.u32 %s2899_s25, 3 }
  0x31   : > { %s453_s27 = scalar_lea.hbm %s3298_s0, %s1936_s15  ;;  %s448_s13 = scalar_lea.vmem [#allocation2], %s1935_s5 }
  0x32   : > { %s457_s12 = sshll.u32 %s448_s13, 4  ;;  %s455_s8 = sshll.u32 %s453_s27, 4  ;;  %s458_s12 = int_to_ptr.vmem [resolvable:$true] %s457_s12  ;;  %s456_s8 = int_to_ptr.hbm [resolvable:$true] %s455_s8 }
  0x33   : > { %p2514_p8 = pnand %p2526_p6, %p3068_p11  ;;  %s445_s19 = scalar_lea.sflag [#allocation3], %s444_s30 }
  0x34   : > { %502 = sbr.rel (%p3023_p3) target bundleno = 1303 (0x517), region = 68  ;;  %s3104_s10 = sand.u32 (!%p3023_p3), 1, %s2887_s22  }
  0x35   : > { %2516 = dma.hbm_to_vmem [thread:$0]  (!%p2514_p8), %s456_s8, 128, %s458_s12, %s445_s19  }
  0x36   : > { %s1938_s15 = sshll.u32 (!%p3023_p3), %s3104_s10, 3  ;;  %s505_s5 = scalar_lea.sflag (!%p3023_p3), [#allocation3], %s3104_s10 }
  0x37   : > { %s508_s6 = scalar_lea.vmem (!%p3023_p3), [#allocation2], %s1938_s15 }
  0x39   : > { %2862 = dma.done.wait (%p3074_p12), %s505_s5, 128  }
  0x3a   : > { %2864 = vsyncadd (%p3074_p12), %s505_s5, 4294967168 }
  0x3b   : > { %2866 = dma.done.wait (%p3015_p1), [#allocation6], 4112  }
  0x3c   : > { %2868 = vsyncadd (%p3015_p1), [#allocation6], 4294963184 }
  0x3d   : > { %2870 = dma.done.wait (%p3015_p1), [#allocation9], 4160  }
  0x3e   : > { %2872 = vsyncadd (%p3015_p1), [#allocation9], 4294963136 }
  0x3f   : > { %2874 = dma.done.wait (%p3015_p1), [#allocation12], 4096  }
  0x40   : > { %2876 = vsyncadd (%p3015_p1), [#allocation12], 4294963200  ;;  %v611_v0 = vld [vmem:[%s508_s6] sm:$0xff]  ;;  %p593_p3 = scmp.lt.s32.totalorder %s2895_s24, 1  ;;  %v2914_v2 = vmov 128.0   ;;  %s3332_s27 = sld [smem:[#allocation19_spill]] }
  0x41   : > { %612 = vadd.xlane.f32.xlu0 %v611_v0  ;;  %v622_v1 = vmul.f32 %v611_v0, %v611_v0  ;;  %2597 = vrcp.f32 %v2914_v2  ;;  %v2059_v60 = vld [vmem:[#allocation7 + $0xe0] sm:$0xf]  ;;  %v2367_v61 = vld [vmem:[#allocation7 + $0xec] sm:$0xf0]  ;;  %v2365_v62 = vld [vmem:[#allocation7 + $0xe4] sm:$0xf] }
  0x42   : > { %s3128_s8 = scalar_select %p593_p3, %s2895_s24, 1  ;;  %v2060_v63 = vor.u32 %v2367_v61, %v2059_v60  ;;  %v2368_v2 = vld [vmem:[#allocation7 + $0xf4] sm:$0xf0]  ;;  %v2351_v60 = vld [vmem:[#allocation7 + $0x6c] sm:$0xf0] }
  0x43   : > { %v2349_v61 = vld [vmem:[#allocation7 + $0x64] sm:$0xf]  ;;  %s3333_s5 = sld [smem:[#allocation20_spill]]  ;;  %s2334_s14 = sshll.u32 %s2895_s24, 3 }
  0x44   : > { %s595_s17 = scalar_lea.vmem %s3299_s1, %s3128_s8  ;;  %s601_s28 = scalar_lea.vmem %s3301_s3, %s3128_s8  ;;  %931 = vmatpush.bf16.msra.mxu0 %v2060_v63  ;;  %v1997_v63 = vld [vmem:[#allocation7 + $0x70] sm:$0xf0] }
  0x45   : > { %s598_s12 = scalar_lea.vmem %s3300_s2, %s3128_s8  ;;  %v2592_v29 = vld [vmem:[%s595_s17] ss:$0 sm:$0xff]  ;;  %s604_s17 = scalar_lea.vmem %s3302_s4, %s3128_s8 }
  0x46   : > { %v642_v20 = vld [vmem:[%s598_s12] sm:$0x1]  ;;  %s607_s13 = scalar_lea.vmem %s3332_s27, %s3128_s8  ;;  %s1728_s24 = scalar_lea.sflag [#allocation4], %s3104_s10 }
  0x47   : > { %v2598_v3 = vpop.eup %2597  ;;  %v643_v22 = vadd.f32 1.0, %v642_v20  ;;  %v2593_v31 = vld [vmem:[%s601_s28] ss:$0 sm:$0xff] }
  0x48   : > { %v615_v4 = vmul.f32 128.0, %v2598_v3  ;;  %vm619_vm0 = vweird.f32 %v2598_v3  ;;  %v682_v47 = vld [vmem:[%s607_s13] sm:$0x1] }
  0x49   : > { %623 = vadd.xlane.f32.xlu0 %v622_v1  ;;  %v645_v26 = vperm.slane %v643_v22, 0  ;;  %v683_v49 = vadd.f32 1.0, %v682_v47  ;;  %v2594_v56 = vld [vmem:[%s604_s17] ss:$0 sm:$0xff]  ;;  %v2067_v1 = vld [vmem:[#allocation7 + $0xe8] sm:$0xf]  ;;  %s610_s6 = scalar_lea.vmem %s3333_s5, %s3128_s8 }
  0x4a   : > { %v616_v5 = vsub.f32 1.0, %v615_v4  ;;  %v2068_v4 = vor.u32 %v2368_v2, %v2067_v1  ;;  %v2011_v47 = vld [vmem:[#allocation7 + $0x80] sm:$0xf]  ;;  %v2352_v1 = vld [vmem:[#allocation7 + $0x74] sm:$0xf0]  ;;  %v2000_v2 = vor.u32 %v2349_v61, %v1997_v63  ;;  %s3334_s17 = sld [smem:[#allocation25_spill]] }
  0x4b   : > { %v685_v53 = vperm.slane %v683_v49, 0  ;;  %v2353_v49 = vld [vmem:[#allocation7 + $0x84] sm:$0xf]  ;;  %v2173_v61 = vld [vmem:[#allocation8 + $0xd0] sm:$0xf0]  ;;  %s592_s8 = scalar_lea.vmem [#allocation13], %s1938_s15 }
  0x4c   : > { %v617_v6 = vmul.f32 %v2598_v3, %v616_v5  ;;  %v2366_v5 = vld [vmem:[#allocation7 + $0xec] sm:$0xf]  ;;  %957 = vmatpush.bf16.msra.mxu2 %v2068_v4  ;;  %s1741_s28 = sshll.u32 %s592_s8, 4  ;;  %s1742_s28 = int_to_ptr.vmem [resolvable:$true] %s1741_s28 }
  0x4d   : > { %v2350_v4 = vld [vmem:[#allocation7 + $0x6c] sm:$0xf] }
  0x4e   : > { %v618_v7 = vadd.f32 %v2598_v3, %v617_v6  ;;  %v2069_v6 = vld [vmem:[#allocation7 + $0xf8] sm:$0xf0] }
  0x50   : > { %v3138_v9 = vsel %vm619_vm0, %v2598_v3, %v618_v7  ;;  %v2043_v7 = vld [vmem:[#allocation7 + $0xc0] sm:$0xf]  ;;  %s1739_s7 = scalar_lea.hbm %s3334_s17, %s2334_s14  ;;  %s2829_s5 = scalar_lea.hbm %s3334_s17, 16 }
  0x51   : > { %s1743_s27 = sshll.u32 %s1739_s7, 4  ;;  %s1744_s27 = int_to_ptr.hbm [resolvable:$true] %s1743_s27 }
  0x52   : > { %s2823_s13 = sshra.s32 %s1744_s27, 4  ;;  %s2824_s13 = int_to_ptr.hbm [resolvable:$true] %s2823_s13 }
  0x53   : > { %s2825_s12 = scalar_lea.hbm %s2824_s13, 8  ;;  %p2830_p11 = scmp.lt.s32.totalorder %s2824_s13, %s3334_s17 }
  0x54   : > { %p2826_p1 = scmp.ne.s32.totalorder %s2824_s13, %s2825_s12  ;;  %p2831_p12 = scmp.lt.s32.totalorder %s2829_s5, %s2825_s12 }
  0x56   : > { %p2827_p9 = pnand %p2826_p1, %p3082_p5  ;;  %p2832_p13 = por %p2831_p12, %p2830_p11 }
  0x58   : > { %p2828_p10 = pneg %p2827_p9 }
  0x5a   : > { %p2833_p0 = pnand %p2832_p13, %p2828_p10 }
  0xb4   : > { %v613_v8 = vpop.xlane.xlu0 %612 }
  0xb5   : > { %v621_v10 = vmul.f32 %v3138_v9, %v613_v8 }
  0xb7   : > { %v626_v12 = vmul.f32 %v621_v10, %v621_v10  ;;  %v629_v25 = vsub.f32 %v611_v0, %v621_v10  ;;  %v2072_v10 = vor.u32 %v2366_v5, %v2069_v6  ;;  %v2005_v5 = vld [vmem:[#allocation7 + $0x78] sm:$0xf0] }
  0xb8   : > { %v2008_v6 = vor.u32 %v2350_v4, %v2005_v5  ;;  %v2155_v5 = vld [vmem:[#allocation8 + $0xa0] sm:$0xf] }
  0xb9   : > { %970 = vmatpush.bf16.msra.mxu3 %v2072_v10  ;;  %v2345_v10 = vld [vmem:[#allocation7 + $0x44] sm:$0xf] }
  0xbc   : > { %v624_v11 = vpop.xlane.xlu0 %623 }
  0xbd   : > { %v625_v13 = vmul.f32 %v624_v11, %v3138_v9  ;;  %v2363_v11 = vld [vmem:[#allocation7 + $0xcc] sm:$0xf0] }
  0xbf   : > { %v627_v14 = vsub.f32 %v625_v13, %v626_v12  ;;  %v2361_v12 = vld [vmem:[#allocation7 + $0xc4] sm:$0xf]  ;;  %v2045_v13 = vld [vmem:[#allocation7 + $0xd0] sm:$0xf0] }
  0xc1   : > { %v628_v15 = vmax.f32 %v627_v14, 0.0 }
  0xc3   : > { %v630_v16 = vadd.f32 1e-06, %v628_v15  ;;  %v2044_v15 = vor.u32 %v2363_v11, %v2043_v7  ;;  %v1979_v7 = vld [vmem:[#allocation7 + $0x40] sm:$0xf] }
  0xc5   : > { %2599 = vrsqrt.f32 %v630_v16  ;;  %vm637_vm2 = vweird.f32 %v630_v16  ;;  %932 = vmatpush.bf16.msra.mxu0 %v2044_v15 }
  0xcb   : > { %v2600_v17 = vpop.eup %2599 }
  0xcc   : > { %v632_v18 = vmul.f32 %v2600_v17, %v630_v16  ;;  %vm638_vm1 = vweird.f32 %v2600_v17  ;;  %v2048_v16 = vor.u32 %v2361_v12, %v2045_v13  ;;  %v1981_v12 = vld [vmem:[#allocation7 + $0x50] sm:$0xf0]  ;;  %v1987_v13 = vld [vmem:[#allocation7 + $0x48] sm:$0xf] }
  0xcd   : > { %vm639_vm3 = vmor %vm637_vm2, %vm638_vm1  ;;  %v1984_v15 = vor.u32 %v2345_v10, %v1981_v12  ;;  %v2157_v10 = vld [vmem:[#allocation8 + $0xb0] sm:$0xf0]  ;;  %v2392_v12 = vld [vmem:[#allocation8 + $0xb4] sm:$0xf0] }
  0xce   : > { %v633_v19 = vmul.f32 %v2600_v17, %v632_v18  ;;  %v2364_v18 = vld [vmem:[#allocation7 + $0xd4] sm:$0xf0] }
  0xd0   : > { %v634_v21 = vmul.f32 0.5, %v633_v19  ;;  %v2362_v19 = vld [vmem:[#allocation7 + $0xcc] sm:$0xf] }
  0xd2   : > { %v635_v23 = vsub.f32 1.5, %v634_v21  ;;  %v2053_v21 = vld [vmem:[#allocation7 + $0xd8] sm:$0xf0] }
  0xd4   : > { %v636_v24 = vmul.f32 %v2600_v17, %v635_v23  ;;  %v2056_v23 = vor.u32 %v2362_v19, %v2053_v21  ;;  %v2343_v21 = vld [vmem:[#allocation7 + $0x2c] sm:$0xf0] }
  0xd6   : > { %v640_v27 = vsel %vm639_vm3, %v2600_v17, %v636_v24  ;;  %v2051_v17 = vld [vmem:[#allocation7 + $0xc8] sm:$0xf]  ;;  %971 = vmatpush.bf16.msra.mxu3 %v2056_v23 }
  0xd7   : > { %v641_v28 = vmul.f32 %v640_v27, %v629_v25  ;;  %v2052_v20 = vor.u32 %v2364_v18, %v2051_v17  ;;  %v2346_v17 = vld [vmem:[#allocation7 + $0x4c] sm:$0xf]  ;;  %v1989_v18 = vld [vmem:[#allocation7 + $0x58] sm:$0xf0] }
  0xd8   : > { %v1992_v19 = vor.u32 %v2346_v17, %v1989_v18  ;;  %v2165_v17 = vld [vmem:[#allocation8 + $0xb8] sm:$0xf0] }
  0xd9   : > { %v647_v30 = vmul.f32 %v645_v26, %v641_v28  ;;  %958 = vmatpush.bf16.msra.mxu2 %v2052_v20  ;;  %v1963_v20 = vld [vmem:[#allocation7 + $0x20] sm:$0xf] }
  0xda   : > { %v1964_v23 = vor.u32 %v2343_v21, %v1963_v20  ;;  %v2139_v20 = vld [vmem:[#allocation8 + $0x80] sm:$0xf]  ;;  %v2387_v21 = vld [vmem:[#allocation8 + $0x8c] sm:$0xf0] }
  0xdb   : > { %v652_v32 = vadd.f32 %v2592_v29, %v647_v30  ;;  %v2595_v29 = vld [vmem:[#allocation5] ss:$0 sm:$0xff] }
  0xdd   : > { %v657_v33 = vmul.f32 %v2593_v31, %v652_v32 }
  0xdf   : > { %v3156_v34 = vadd.f32 %v657_v33, %v611_v0  ;;  %v2061_v0 = vld [vmem:[#allocation7 + $0xf0] sm:$0xf0] }
  0xe0   : > { %v2064_v3 = vor.u32 %v2365_v62, %v2061_v0  ;;  %v2003_v0 = vld [vmem:[#allocation7 + $0x68] sm:$0xf] }
  0xe1   : > { %659 = vadd.xlane.f32.xlu1 %v3156_v34  ;;  %v662_v35 = vmul.f32 %v3156_v34, %v3156_v34 }
  0xe2   : > { %944 = vmatpush.bf16.msra.mxu1 %v2064_v3  ;;  %v2004_v3 = vor.u32 %v2352_v1, %v2003_v0  ;;  %v2396_v0 = vld [vmem:[#allocation8 + $0xd4] sm:$0xf0]  ;;  %v2394_v1 = vld [vmem:[#allocation8 + $0xcc] sm:$0xf] }
  0xe6   : > { %945 = vmatpush.bf16.msra.mxu1 %v2048_v16 }
  0xe9   : > { %663 = vadd.xlane.f32.xlu1 %v662_v35  ;;  %v2027_v35 = vld [vmem:[#allocation7 + $0xa0] sm:$0xf] }
 0x154   : > { %v660_v36 = vpop.xlane.xlu1 %659 }
 0x155   : > { %v661_v37 = vmul.f32 %v660_v36, %v3138_v9  ;;  %v2359_v36 = vld [vmem:[#allocation7 + $0xac] sm:$0xf0] }
 0x157   : > { %v666_v39 = vmul.f32 %v661_v37, %v661_v37  ;;  %v669_v52 = vsub.f32 %v3156_v34, %v661_v37  ;;  %v2357_v37 = vld [vmem:[#allocation7 + $0xa4] sm:$0xf] }
 0x15c   : > { %v664_v38 = vpop.xlane.xlu1 %663 }
 0x15d   : > { %v665_v40 = vmul.f32 %v664_v38, %v3138_v9  ;;  %v2028_v38 = vor.u32 %v2359_v36, %v2027_v35  ;;  %v2337_v35 = vld [vmem:[#allocation7 + $0x4] sm:$0xf] }
 0x15f   : > { %v667_v41 = vsub.f32 %v665_v40, %v666_v39  ;;  %v2029_v39 = vld [vmem:[#allocation7 + $0xb0] sm:$0xf0]  ;;  %v2035_v40 = vld [vmem:[#allocation7 + $0xa8] sm:$0xf]  ;;  %933 = vmatpush.bf16.msra.mxu0 %v2028_v38 }
 0x160   : > { %v1955_v38 = vld [vmem:[#allocation7 + $0x8] sm:$0xf] }
 0x161   : > { %v668_v42 = vmax.f32 %v667_v41, 0.0  ;;  %v2360_v41 = vld [vmem:[#allocation7 + $0xb4] sm:$0xf0] }
 0x163   : > { %v670_v43 = vadd.f32 1e-06, %v668_v42  ;;  %v2032_v42 = vor.u32 %v2357_v37, %v2029_v39  ;;  %v1949_v37 = vld [vmem:[#allocation7 + $0x10] sm:$0xf0]  ;;  %v2340_v39 = vld [vmem:[#allocation7 + $0x14] sm:$0xf0] }
 0x165   : > { %2601 = vrsqrt.f32 %v670_v43  ;;  %vm677_vm5 = vweird.f32 %v670_v43  ;;  %946 = vmatpush.bf16.msra.mxu1 %v2032_v42  ;;  %v2338_v42 = vld [vmem:[#allocation7 + $0xc] sm:$0xf] }
 0x16b   : > { %v2602_v44 = vpop.eup %2601 }
 0x16c   : > { %v672_v45 = vmul.f32 %v2602_v44, %v670_v43  ;;  %vm678_vm4 = vweird.f32 %v2602_v44  ;;  %v2036_v43 = vor.u32 %v2360_v41, %v2035_v40  ;;  %v1952_v40 = vor.u32 %v2337_v35, %v1949_v37  ;;  %v2381_v35 = vld [vmem:[#allocation8 + $0x64] sm:$0xf]  ;;  %v2125_v37 = vld [vmem:[#allocation8 + $0x70] sm:$0xf0] }
 0x16d   : > { %vm679_vm6 = vmor %vm677_vm5, %vm678_vm4  ;;  %v1956_v41 = vor.u32 %v2340_v39, %v1955_v38  ;;  %v2131_v38 = vld [vmem:[#allocation8 + $0x68] sm:$0xf]  ;;  %v2384_v39 = vld [vmem:[#allocation8 + $0x74] sm:$0xf0] }
 0x16e   : > { %v673_v46 = vmul.f32 %v2602_v44, %v672_v45  ;;  %v2037_v45 = vld [vmem:[#allocation7 + $0xb8] sm:$0xf0]  ;;  %959 = vmatpush.bf16.msra.mxu2 %v2036_v43 }
 0x16f   : > { %v1957_v43 = vld [vmem:[#allocation7 + $0x18] sm:$0xf0] }
 0x170   : > { %v674_v48 = vmul.f32 0.5, %v673_v46 }
 0x172   : > { %v675_v50 = vsub.f32 1.5, %v674_v48  ;;  %v2355_v48 = vld [vmem:[#allocation7 + $0x8c] sm:$0xf0] }
 0x174   : > { %v676_v51 = vmul.f32 %v2602_v44, %v675_v50  ;;  %v2012_v50 = vor.u32 %v2355_v48, %v2011_v47  ;;  %v2397_v47 = vld [vmem:[#allocation8 + $0xe4] sm:$0xf]  ;;  %v2189_v48 = vld [vmem:[#allocation8 + $0xf0] sm:$0xf0] }
 0x176   : > { %v680_v54 = vsel %vm679_vm6, %v2602_v44, %v676_v51  ;;  %v2358_v44 = vld [vmem:[#allocation7 + $0xac] sm:$0xf]  ;;  %v2013_v51 = vld [vmem:[#allocation7 + $0x90] sm:$0xf0]  ;;  %934 = vmatpush.bf16.msra.mxu0 %v2012_v50  ;;  %v2192_v50 = vor.u32 %v2397_v47, %v2189_v48  ;;  %v2379_v47 = vld [vmem:[#allocation8 + $0x4c] sm:$0xf0] }
 0x177   : > { %v681_v55 = vmul.f32 %v680_v54, %v669_v52  ;;  %v2040_v46 = vor.u32 %v2358_v44, %v2037_v45  ;;  %v2019_v52 = vld [vmem:[#allocation7 + $0x88] sm:$0xf]  ;;  %v2016_v54 = vor.u32 %v2353_v49, %v2013_v51  ;;  %v2187_v44 = vld [vmem:[#allocation8 + $0xe0] sm:$0xf]  ;;  %v1960_v45 = vor.u32 %v2338_v42, %v1957_v43  ;;  %v2382_v42 = vld [vmem:[#allocation8 + $0x6c] sm:$0xf] }
 0x178   : > { %v2195_v51 = vld [vmem:[#allocation8 + $0xe8] sm:$0xf]  ;;  %v2133_v43 = vld [vmem:[#allocation8 + $0x78] sm:$0xf0]  ;;  %v2377_v48 = vld [vmem:[#allocation8 + $0x44] sm:$0xf] }
 0x179   : > { %v687_v57 = vmul.f32 %v685_v53, %v681_v55  ;;  %972 = vmatpush.bf16.msra.mxu3 %v2040_v46  ;;  %v2356_v53 = vld [vmem:[#allocation7 + $0x94] sm:$0xf0]  ;;  %947 = vmatpush.bf16.msra.mxu1 %v2016_v54  ;;  %v2399_v46 = vld [vmem:[#allocation8 + $0xec] sm:$0xf0] }
 0x17a   : > { %v2020_v55 = vor.u32 %v2356_v53, %v2019_v52  ;;  %v2188_v49 = vor.u32 %v2399_v46, %v2187_v44  ;;  %v2400_v52 = vld [vmem:[#allocation8 + $0xf4] sm:$0xf0]  ;;  %v2398_v53 = vld [vmem:[#allocation8 + $0xec] sm:$0xf]  ;;  %v2107_v44 = vld [vmem:[#allocation8 + $0x40] sm:$0xf]  ;;  %v2136_v46 = vor.u32 %v2382_v42, %v2133_v43 }
 0x17b   : > { %v692_v58 = vadd.f32 %v2594_v56, %v687_v57  ;;  %v2354_v56 = vld [vmem:[#allocation7 + $0x8c] sm:$0xf]  ;;  %v2021_v57 = vld [vmem:[#allocation7 + $0x98] sm:$0xf0]  ;;  %v2196_v54 = vor.u32 %v2400_v52, %v2195_v51  ;;  %v2115_v51 = vld [vmem:[#allocation8 + $0x48] sm:$0xf] }
 0x17c   : > { %960 = vmatpush.bf16.msra.mxu2 %v2020_v55  ;;  %v2197_v55 = vld [vmem:[#allocation8 + $0xf8] sm:$0xf0]  ;;  %v2380_v52 = vld [vmem:[#allocation8 + $0x54] sm:$0xf0] }
 0x17d   : > { %v694_v59 = vmul.f32 %v692_v58, %v692_v58  ;;  %948 = vmatpush.bf16.msra.mxu1 %v2000_v2  ;;  %v2181_v2 = vld [vmem:[#allocation8 + $0xd8] sm:$0xf0] }
 0x17e   : > { %v2184_v4 = vor.u32 %v2394_v1, %v2181_v2  ;;  %v2099_v1 = vld [vmem:[#allocation8 + $0x28] sm:$0xf]  ;;  %v2376_v2 = vld [vmem:[#allocation8 + $0x34] sm:$0xf0] }
 0x17f   : > { %695 = vadd.xlane.f32.xlu2 %v694_v59  ;;  %v1995_v59 = vld [vmem:[#allocation7 + $0x60] sm:$0xf] }
 0x180   : > { %v1996_v62 = vor.u32 %v2351_v60, %v1995_v59  ;;  %961 = vmatpush.bf16.msra.mxu2 %v2004_v3  ;;  %v2393_v60 = vld [vmem:[#allocation8 + $0xc4] sm:$0xf] }
 0x181   : > { %949 = vmatpush.bf16.msra.mxu1 %v1984_v15  ;;  %v2176_v63 = vor.u32 %v2393_v60, %v2173_v61  ;;  %v2116_v60 = vor.u32 %v2380_v52, %v2115_v51  ;;  %v2375_v61 = vld [vmem:[#allocation8 + $0x2c] sm:$0xf0] }
 0x182   : > { %935 = vmatpush.bf16.msra.mxu0 %v1996_v62  ;;  %v2179_v62 = vld [vmem:[#allocation8 + $0xc8] sm:$0xf] }
 0x183   : > { %v2180_v3 = vor.u32 %v2396_v0, %v2179_v62  ;;  %v2373_v62 = vld [vmem:[#allocation8 + $0x24] sm:$0xf]  ;;  %v2093_v0 = vld [vmem:[#allocation8 + $0x30] sm:$0xf0] }
 0x1f2   : > { %v696_v8 = vpop.xlane.xlu2 %695 }
 0x1f3   : > { %v697_v14 = vmul.f32 %v696_v8, %v3138_v9  ;;  %v2347_v8 = vld [vmem:[#allocation7 + $0x4c] sm:$0xf0] }
 0x1f4   : > { %v1980_v11 = vor.u32 %v2347_v8, %v1979_v7  ;;  %v2389_v7 = vld [vmem:[#allocation8 + $0xa4] sm:$0xf] }
 0x1f5   : > { %v698_v22 = vadd.f32 1e-08, %v697_v14  ;;  %v2348_v14 = vld [vmem:[#allocation7 + $0x54] sm:$0xf0] }
 0x1f6   : > { %v1988_v16 = vor.u32 %v2348_v14, %v1987_v13  ;;  %936 = vmatpush.bf16.msra.mxu0 %v1980_v11  ;;  %v2163_v11 = vld [vmem:[#allocation8 + $0xa8] sm:$0xf]  ;;  %v2160_v14 = vor.u32 %v2389_v7, %v2157_v10  ;;  %v2075_v10 = vld [vmem:[#allocation8] sm:$0xf] }
 0x1f7   : > { %2603 = vrsqrt.f32 %v698_v22  ;;  %vm705_vm8 = vweird.f32 %v698_v22  ;;  %v2164_v15 = vor.u32 %v2392_v12, %v2163_v11  ;;  %v2100_v12 = vor.u32 %v2376_v2, %v2099_v1 }
 0x1f8   : > { %962 = vmatpush.bf16.msra.mxu2 %v1988_v16  ;;  %v2390_v16 = vld [vmem:[#allocation8 + $0xac] sm:$0xf] }
 0x1fa   : > { %937 = vmatpush.bf16.msra.mxu0 %v1964_v23  ;;  %v2141_v23 = vld [vmem:[#allocation8 + $0x90] sm:$0xf0] }
 0x1fd   : > { %v2604_v24 = vpop.eup %2603 }
 0x1fe   : > { %v700_v25 = vmul.f32 %v2604_v24, %v698_v22  ;;  %vm706_vm7 = vweird.f32 %v2604_v24  ;;  %v2341_v22 = vld [vmem:[#allocation7 + $0x24] sm:$0xf] }
 0x1ff   : > { %vm707_vm9 = vmor %vm705_vm8, %vm706_vm7 }
 0x200   : > { %v701_v9 = vmul.f32 %v2604_v24, %v700_v25  ;;  %v1971_v25 = vld [vmem:[#allocation7 + $0x28] sm:$0xf] }
 0x202   : > { %v702_v26 = vmul.f32 0.5, %v701_v9  ;;  %v2344_v9 = vld [vmem:[#allocation7 + $0x34] sm:$0xf0] }
 0x204   : > { %v703_v27 = vsub.f32 1.5, %v702_v26 }
 0x206   : > { %v704_v28 = vmul.f32 %v2604_v24, %v703_v27  ;;  %v1972_v27 = vor.u32 %v2344_v9, %v1971_v25  ;;  %v2147_v9 = vld [vmem:[#allocation8 + $0x88] sm:$0xf] }
 0x208   : > { %v708_v30 = vsel %vm707_vm9, %v2604_v24, %v704_v28  ;;  %v1965_v24 = vld [vmem:[#allocation7 + $0x30] sm:$0xf0]  ;;  %v2342_v28 = vld [vmem:[#allocation7 + $0x2c] sm:$0xf]  ;;  %963 = vmatpush.bf16.msra.mxu2 %v1972_v27 }
 0x209   : > { %v709_v31 = vmul.f32 %v708_v30, %v692_v58  ;;  %v2024_v58 = vor.u32 %v2354_v56, %v2021_v57  ;;  %v1968_v26 = vor.u32 %v2341_v22, %v1965_v24  ;;  %v2171_v56 = vld [vmem:[#allocation8 + $0xc0] sm:$0xf]  ;;  %v2395_v57 = vld [vmem:[#allocation8 + $0xcc] sm:$0xf0]  ;;  %v2385_v22 = vld [vmem:[#allocation8 + $0x84] sm:$0xf]  ;;  %v2140_v24 = vor.u32 %v2387_v21, %v2139_v20 }
 0x20a   : > { %v2172_v59 = vor.u32 %v2395_v57, %v2171_v56  ;;  %v2144_v25 = vor.u32 %v2385_v22, %v2141_v23  ;;  %v2117_v56 = vld [vmem:[#allocation8 + $0x58] sm:$0xf0]  ;;  %v2091_v57 = vld [vmem:[#allocation8 + $0x20] sm:$0xf]  ;;  %v2372_v20 = vld [vmem:[#allocation8 + $0x14] sm:$0xf0] }
 0x20b   : > { %v3173_v32 = vmul.f32 %v2595_v29, %v709_v31  ;;  %973 = vmatpush.bf16.msra.mxu3 %v2024_v58  ;;  %v1973_v29 = vld [vmem:[#allocation7 + $0x38] sm:$0xf0]  ;;  %950 = vmatpush.bf16.msra.mxu1 %v1968_v26  ;;  %v1947_v31 = vld [vmem:[#allocation7] sm:$0xf]  ;;  %v2200_v58 = vor.u32 %v2398_v53, %v2197_v55  ;;  %v2388_v26 = vld [vmem:[#allocation8 + $0x94] sm:$0xf0]  ;;  %v2092_v7 = vor.u32 %v2375_v61, %v2091_v57 }
 0x20c   : > { %v1976_v30 = vor.u32 %v2342_v28, %v1973_v29  ;;  %964 = vmatpush.bf16.msra.mxu2 %v1956_v41  ;;  %v2148_v27 = vor.u32 %v2388_v26, %v2147_v9  ;;  %v2386_v28 = vld [vmem:[#allocation8 + $0x8c] sm:$0xf]  ;;  %v2149_v29 = vld [vmem:[#allocation8 + $0x98] sm:$0xf0]  ;;  %v2132_v41 = vor.u32 %v2384_v39, %v2131_v38 }
 0x20d   : > { %v714_v33 = vand.u32 2147483647, %v3173_v32  ;;  %v2378_v53 = vld [vmem:[#allocation8 + $0x4c] sm:$0xf]  ;;  %v2085_v23 = vld [vmem:[#allocation8 + $0x18] sm:$0xf0] }
 0x20e   : > { %v2370_v22 = vld [vmem:[#allocation8 + $0xc] sm:$0xf] }
 0x20f   : > { %715 = vmax.xlane.f32.xlu2 %v714_v33  ;;  %974 = vmatpush.bf16.msra.mxu3 %v2008_v6  ;;  %v2339_v33 = vld [vmem:[#allocation7 + $0xc] sm:$0xf0] }
 0x210   : > { %v1948_v36 = vor.u32 %v2339_v33, %v1947_v31  ;;  %951 = vmatpush.bf16.msra.mxu1 %v1952_v40  ;;  %1205 = vmatpush.bf16.msrb.mxu2 %v2196_v54  ;;  %v2391_v6 = vld [vmem:[#allocation8 + $0xac] sm:$0xf0]  ;;  %v2123_v31 = vld [vmem:[#allocation8 + $0x60] sm:$0xf]  ;;  %v2128_v40 = vor.u32 %v2381_v35, %v2125_v37  ;;  %v2108_v54 = vor.u32 %v2379_v47, %v2107_v44 }
 0x211   : > { %v2156_v8 = vor.u32 %v2391_v6, %v2155_v5  ;;  %v2383_v33 = vld [vmem:[#allocation8 + $0x6c] sm:$0xf0]  ;;  %v2374_v5 = vld [vmem:[#allocation8 + $0x2c] sm:$0xf]  ;;  %v2101_v6 = vld [vmem:[#allocation8 + $0x38] sm:$0xf0] }
 0x212   : > { %938 = vmatpush.bf16.msra.mxu0 %v1948_v36  ;;  %v2124_v36 = vor.u32 %v2383_v33, %v2123_v31 }
 0x213   : > { %975 = vmatpush.bf16.msra.mxu3 %v1992_v19  ;;  %v2168_v19 = vor.u32 %v2390_v16, %v2165_v17  ;;  %v2104_v17 = vor.u32 %v2374_v5, %v2101_v6 }
 0x214   : > { %1192 = vmatpush.bf16.msrb.mxu1 %v2192_v50  ;;  %1206 = vmatpush.bf16.msrb.mxu2 %v2180_v3 }
 0x216   : > { %1179 = vmatpush.bf16.msrb.mxu0 %v2188_v49  ;;  %v2109_v49 = vld [vmem:[#allocation8 + $0x50] sm:$0xf0] }
 0x217   : > { %976 = vmatpush.bf16.msra.mxu3 %v1976_v30  ;;  %v2152_v30 = vor.u32 %v2386_v28, %v2149_v29  ;;  %v2112_v55 = vor.u32 %v2377_v48, %v2109_v49  ;;  %v2088_v28 = vor.u32 %v2370_v22, %v2085_v23 }
 0x218   : > { %1193 = vmatpush.bf16.msrb.mxu1 %v2176_v63  ;;  %1207 = vmatpush.bf16.msrb.mxu2 %v2164_v15  ;;  %v2120_v63 = vor.u32 %v2378_v53, %v2117_v56  ;;  %v2077_v15 = vld [vmem:[#allocation8 + $0x10] sm:$0xf0] }
 0x21a   : > { %1180 = vmatpush.bf16.msrb.mxu0 %v2172_v59 }
 0x21b   : > { %977 = vmatpush.bf16.msra.mxu3 %v1960_v45 }
 0x21c   : > { %1194 = vmatpush.bf16.msrb.mxu1 %v2160_v14  ;;  %1208 = vmatpush.bf16.msrb.mxu2 %v2148_v27  ;;  %v2369_v14 = vld [vmem:[#allocation8 + $0x4] sm:$0xf] }
 0x21d   : > { %v2080_v9 = vor.u32 %v2369_v14, %v2077_v15 }
 0x21e   : > { %1181 = vmatpush.bf16.msrb.mxu0 %v2156_v8  ;;  %v2096_v8 = vor.u32 %v2373_v62, %v2093_v0 }
 0x21f   : > { %1218 = vmatpush.bf16.msrb.mxu3 %v2200_v58 }
 0x220   : > { %1195 = vmatpush.bf16.msrb.mxu1 %v2144_v25  ;;  %1209 = vmatpush.bf16.msrb.mxu2 %v2132_v41 }
 0x222   : > { %1182 = vmatpush.bf16.msrb.mxu0 %v2140_v24 }
 0x223   : > { %1219 = vmatpush.bf16.msrb.mxu3 %v2184_v4 }
 0x224   : > { %1196 = vmatpush.bf16.msrb.mxu1 %v2128_v40  ;;  %1210 = vmatpush.bf16.msrb.mxu2 %v2116_v60 }
 0x226   : > { %1183 = vmatpush.bf16.msrb.mxu0 %v2124_v36 }
 0x227   : > { %1220 = vmatpush.bf16.msrb.mxu3 %v2168_v19  ;;  %v2083_v19 = vld [vmem:[#allocation8 + $0x8] sm:$0xf] }
 0x228   : > { %1197 = vmatpush.bf16.msrb.mxu1 %v2112_v55  ;;  %1211 = vmatpush.bf16.msrb.mxu2 %v2100_v12  ;;  %v2084_v27 = vor.u32 %v2372_v20, %v2083_v19 }
 0x22a   : > { %1184 = vmatpush.bf16.msrb.mxu0 %v2108_v54 }
 0x22b   : > { %1221 = vmatpush.bf16.msrb.mxu3 %v2152_v30 }
 0x22c   : > { %1198 = vmatpush.bf16.msrb.mxu1 %v2096_v8  ;;  %1212 = vmatpush.bf16.msrb.mxu2 %v2084_v27 }
 0x22e   : > { %1185 = vmatpush.bf16.msrb.mxu0 %v2092_v7 }
 0x22f   : > { %1222 = vmatpush.bf16.msrb.mxu3 %v2136_v46 }
 0x230   : > { %1199 = vmatpush.bf16.msrb.mxu1 %v2080_v9 }
 0x233   : > { %1223 = vmatpush.bf16.msrb.mxu3 %v2120_v63 }
 0x237   : > { %1224 = vmatpush.bf16.msrb.mxu3 %v2104_v17 }
 0x23b   : > { %1225 = vmatpush.bf16.msrb.mxu3 %v2088_v28 }
 0x282   : > { %v716_v13 = vpop.xlane.xlu2 %715 }
 0x283   : > { %v3176_v18 = vmax.f32 %v716_v13, 1e-05  ;;  %v2371_v13 = vld [vmem:[#allocation8 + $0xc] sm:$0xf0] }
 0x284   : > { %v2076_v25 = vor.u32 %v2371_v13, %v2075_v10 }
 0x285   : > { %2605 = vrcp.f32 %v3176_v18  ;;  %v729_v59 = vand.u32 2147483648, %v3176_v18  ;;  %v727_v4 = vand.u32 2147483647, %v3176_v18  ;;  %vm723_vm11 = vweird.f32 %v3176_v18 }
 0x286   : > { %1186 = vmatpush.bf16.msrb.mxu0 %v2076_v25 }
 0x287   : > { %v730_v16 = vor.u32 1.1754944e-38, %v729_v59  ;;  %vm728_vm13 = vcmp.eq.f32.partialorder %v727_v4, 8.507059e+37 }
 0x28b   : > { %v2606_v45 = vpop.eup %2605 }
 0x28c   : > { %v719_v50 = vmul.f32 %v2606_v45, %v3176_v18  ;;  %vm724_vm10 = vweird.f32 %v2606_v45 }
 0x28d   : > { %vm725_vm12 = vmor %vm723_vm11, %vm724_vm10 }
 0x28e   : > { %v720_v58 = vsub.f32 1.0, %v719_v50 }
 0x290   : > { %v721_v3 = vmul.f32 %v2606_v45, %v720_v58 }
 0x292   : > { %v722_v11 = vadd.f32 %v2606_v45, %v721_v3 }
 0x294   : > { %v726_v21 = vsel %vm725_vm12, %v2606_v45, %v722_v11 }
 0x295   : > { %v731_v24 = vsel %vm728_vm13, %v730_v16, %v726_v21 }
 0x296   : > { %v732_v26 = vmul.f32 127.0, %v731_v24 }
 0x298   : > { %v733_v29 = vmul.f32 %v732_v26, %v3173_v32  ;;  %v3186_v32 = vmul.f32 0.007874016, %v3176_v18 }
 0x29a   : > { %v2435_v30 = vcvt.f32.s32 %v733_v29  ;;  %v2433_v33 = vand.u32 2147483647, %v733_v29  ;;  %v2438_v36 = vand.u32 2147483648, %v733_v29 }
 0x29c   : > { %v2436_v31 = vcvt.s32.f32 %v2435_v30  ;;  %vm2434_vm14 = vcmp.lt.f32.partialorder %v2433_v33, 8388608.0 }
 0x29e   : > { %v2437_v35 = vand.u32 2147483647, %v2436_v31 }
 0x2a0   : > { %v2439_v37 = vor.u32 %v2438_v36, %v2437_v35 }
 0x2a2   : > { %v2440_v38 = vsel %vm2434_vm14, %v2439_v37, %v733_v29 }
 0x2a3   : > { %v735_v39 = vmax.f32 %v2440_v38, -128.0 }
 0x2a5   : > { %v736_v40 = vmin.f32 %v735_v39, 127.0 }
 0x2a7   : > { %v737_v41 = vpack.c.bf16 %v736_v40, %v736_v40 }
 0x2a9   : > { %939 = vmatmul.bf16.vlgmr.msra.gmra.mxu0 %v737_v41  ;;  %952 = vmatmul.bf16.vlgmr.msra.gmra.mxu1 %v737_v41 }
 0x2aa   : > { %965 = vmatmul.bf16.vlgmr.msra.gmra.mxu2 %v737_v41  ;;  %978 = vmatmul.bf16.vlgmr.msra.gmra.mxu3 %v737_v41 }
 0x2b9   : > { %1187 = vmatmul.bf16.vlgmr.msrb.gmra.mxu0 %v737_v41  ;;  %1200 = vmatmul.bf16.vlgmr.msrb.gmra.mxu1 %v737_v41 }
 0x2ba   : > { %1213 = vmatmul.bf16.vlgmr.msrb.gmra.mxu2 %v737_v41  ;;  %1226 = vmatmul.bf16.vlgmr.msrb.gmra.mxu3 %v737_v41 }
 0x326   : > { %v940_v42 = vpop.f32.mrf.mxu0  ;;  %v953_v43 = vpop.f32.mrf.mxu1 }
 0x327   : > { %v3189_v44 = vmul.f32 %v940_v42, %v3186_v32  ;;  %v3192_v45 = vmul.f32 %v953_v43, %v3186_v32 }
 0x329   : > { %v2201_v46 = vmul.f32 -1.442695, %v3189_v44  ;;  %v2202_v47 = vmul.f32 -1.442695, %v3192_v45 }
 0x32b   : > { %2607 = vpow2.f32 %v2201_v46 }
 0x32c   : > { %2609 = vpow2.f32 %v2202_v47 }
 0x32d   : > { %v966_v48 = vpop.f32.mrf.mxu2  ;;  %v979_v49 = vpop.f32.mrf.mxu3 }
 0x32e   : > { %v3197_v50 = vmul.f32 %v966_v48, %v3186_v32  ;;  %v3200_v18 = vmul.f32 %v979_v49, %v3186_v32  ;;  %v942_v51 = vpop.f32.mrf.mxu0  ;;  %v955_v52 = vpop.f32.mrf.mxu1 }
 0x330   : > { %v2203_v53 = vmul.f32 -1.442695, %v3197_v50  ;;  %v2204_v54 = vmul.f32 -1.442695, %v3200_v18 }
 0x331   : > { %v2608_v55 = vpop.eup %2607 }
 0x332   : > { %v2610_v56 = vpop.eup %2609  ;;  %v1247_v57 = vadd.f32 1.0, %v2608_v55  ;;  %2611 = vpow2.f32 %v2203_v53 }
 0x333   : > { %v1248_v58 = vadd.f32 1.0, %v2610_v56  ;;  %2613 = vpow2.f32 %v2204_v54 }
 0x334   : > { %2615 = vrcp.f32 %v1247_v57  ;;  %v1260_v8 = vand.u32 2147483647, %v1247_v57  ;;  %v1262_v12 = vand.u32 2147483648, %v1247_v57  ;;  %vm1256_vm1 = vweird.f32 %v1247_v57 }
 0x335   : > { %2617 = vrcp.f32 %v1248_v58  ;;  %v968_v59 = vpop.f32.mrf.mxu2  ;;  %v981_v60 = vpop.f32.mrf.mxu3  ;;  %v1275_v14 = vand.u32 2147483647, %v1248_v58  ;;  %v1277_v19 = vand.u32 2147483648, %v1248_v58  ;;  %vm1271_vm3 = vweird.f32 %v1248_v58 }
 0x336   : > { %v1188_v61 = vpop.f32.mrf.mxu0  ;;  %v1201_v62 = vpop.f32.mrf.mxu1  ;;  %vm1261_vm2 = vcmp.eq.f32.partialorder %v1260_v8, 8.507059e+37  ;;  %v1263_v23 = vor.u32 1.1754944e-38, %v1262_v12  ;;  %v2915_v8 = vmov 512.0  }
 0x337   : > { %vm1276_vm5 = vcmp.eq.f32.partialorder %v1275_v14, 8.507059e+37  ;;  %v1278_v27 = vor.u32 1.1754944e-38, %v1277_v19  ;;  %v1231_v28 = vmul.f32 %v1188_v61, %v3186_v32  ;;  %v1232_v29 = vmul.f32 %v1201_v62, %v3186_v32 }
 0x338   : > { %v2612_v63 = vpop.eup %2611 }
 0x339   : > { %v2614_v0 = vpop.eup %2613  ;;  %v3204_v1 = vadd.f32 1.0, %v2612_v63 }
 0x33a   : > { %v2616_v2 = vpop.eup %2615  ;;  %v3206_v3 = vadd.f32 1.0, %v2614_v0 }
 0x33b   : > { %v2618_v4 = vpop.eup %2617  ;;  %v1252_v5 = vmul.f32 %v2616_v2, %v1247_v57  ;;  %2619 = vrcp.f32 %v3204_v1  ;;  %vm1257_vm15 = vweird.f32 %v2616_v2  ;;  %v1290_v38 = vand.u32 2147483647, %v3204_v1 }
 0x33c   : > { %v1267_v6 = vmul.f32 %v2618_v4, %v1248_v58  ;;  %2621 = vrcp.f32 %v3206_v3  ;;  %vm1272_vm0 = vweird.f32 %v2618_v4  ;;  %vm1258_vm4 = vmor %vm1256_vm1, %vm1257_vm15  ;;  %v1292_v39 = vand.u32 2147483648, %v3204_v1 }
 0x33d   : > { %v1253_v7 = vsub.f32 1.0, %v1252_v5  ;;  %v1214_v10 = vpop.f32.mrf.mxu2  ;;  %v3210_v11 = vpop.f32.mrf.mxu3  ;;  %vm1273_vm6 = vmor %vm1271_vm3, %vm1272_vm0  ;;  %vm1286_vm8 = vweird.f32 %v3204_v1  ;;  %v1305_v47 = vand.u32 2147483647, %v3206_v3  ;;  %v1307_v48 = vand.u32 2147483648, %v3206_v3 }
 0x33e   : > { %v1268_v13 = vsub.f32 1.0, %v1267_v6  ;;  %v1190_v15 = vpop.f32.mrf.mxu0  ;;  %v1203_v16 = vpop.f32.mrf.mxu1  ;;  %v1293_v53 = vor.u32 1.1754944e-38, %v1292_v39  ;;  %vm1291_vm11 = vcmp.eq.f32.partialorder %v1290_v38, 8.507059e+37  ;;  %vm1301_vm12 = vweird.f32 %v3206_v3 }
 0x33f   : > { %v1254_v17 = vmul.f32 %v2616_v2, %v1253_v7  ;;  %vm1306_vm14 = vcmp.eq.f32.partialorder %v1305_v47, 8.507059e+37  ;;  %v1308_v56 = vor.u32 1.1754944e-38, %v1307_v48  ;;  %v1233_v57 = vmul.f32 %v1214_v10, %v3186_v32  ;;  %v2408_v47 = vld [vmem:[#allocation11 + $0x38] sm:$0xff] }
 0x340   : > { %v1269_v20 = vmul.f32 %v2618_v4, %v1268_v13  ;;  %2623 = vrcp.f32 %v2915_v8  ;;  %v2416_v48 = vld [vmem:[#allocation11 + $0x78] sm:$0xff]  ;;  %1667 = vmatpush.bf16.msra.mxu0 %v2408_v47  ;;  %v2418_v8 = vld [vmem:[#allocation11 + $0x88] sm:$0xff] }
 0x341   : > { %v2620_v21 = vpop.eup %2619  ;;  %v1255_v22 = vadd.f32 %v2616_v2, %v1254_v17  ;;  %1680 = vmatpush.bf16.msra.mxu1 %v2416_v48 }
 0x342   : > { %v1270_v24 = vadd.f32 %v2618_v4, %v1269_v20  ;;  %v1282_v25 = vmul.f32 %v2620_v21, %v3204_v1  ;;  %v2622_v9 = vpop.eup %2621  ;;  %vm1287_vm7 = vweird.f32 %v2620_v21  ;;  %v1234_v1 = vmul.f32 %v3210_v11, %v3186_v32 }
 0x343   : > { %v1259_v26 = vsel %vm1258_vm4, %v2616_v2, %v1255_v22  ;;  %v1297_v35 = vmul.f32 %v2622_v9, %v3206_v3  ;;  %vm1302_vm9 = vweird.f32 %v2622_v9  ;;  %vm1288_vm10 = vmor %vm1286_vm8, %vm1287_vm7  ;;  %v1319_v22 = vld [vmem:[#allocation10] sm:$0xf] }
 0x344   : > { %v1264_v30 = vsel %vm1261_vm2, %v1263_v23, %v1259_v26  ;;  %v1274_v31 = vsel %vm1273_vm6, %v2618_v4, %v1270_v24  ;;  %v1283_v33 = vsub.f32 1.0, %v1282_v25  ;;  %vm1303_vm13 = vmor %vm1301_vm12, %vm1302_vm9  ;;  %v1417_v24 = vperm.slane %v1319_v22, 0 }
 0x345   : > { %v1311_v36 = vmul.f32 %v1264_v30, %v3189_v44  ;;  %v1279_v37 = vsel %vm1276_vm5, %v1278_v27, %v1274_v31  ;;  %v1216_v40 = vpop.f32.mrf.mxu2  ;;  %v1229_v41 = vpop.f32.mrf.mxu3  ;;  %v1298_v46 = vsub.f32 1.0, %v1297_v35  ;;  %v1418_v25 = vperm.slane %v1319_v22, 1 }
 0x346   : > { %v1312_v42 = vmul.f32 %v1279_v37, %v3192_v45  ;;  %v1284_v43 = vmul.f32 %v2620_v21, %v1283_v33  ;;  %v1420_v26 = vperm.slane %v1319_v22, 3 }
 0x347   : > { %v1299_v49 = vmul.f32 %v2622_v9, %v1298_v46  ;;  %v1315_v51 = vmul.f32 %v1311_v36, %v1231_v28 }
 0x348   : > { %v1285_v44 = vadd.f32 %v2620_v21, %v1284_v43  ;;  %v1316_v52 = vmul.f32 %v1312_v42, %v1232_v29 }
 0x349   : > { %v1300_v55 = vadd.f32 %v2622_v9, %v1299_v49  ;;  %v1384_v60 = vmul.f32 %v1315_v51, %v1315_v51  ;;  %v2432_v49 = vld [vmem:[#allocation11 + $0xf8] sm:$0xff] }
 0x34a   : > { %v1289_v54 = vsel %vm1288_vm10, %v2620_v21, %v1285_v44  ;;  %v1385_v61 = vmul.f32 %v1316_v52, %v1316_v52  ;;  %v2424_v44 = vld [vmem:[#allocation11 + $0xb8] sm:$0xff]  ;;  %1706 = vmatpush.bf16.msra.mxu3 %v2432_v49 }
 0x34b   : > { %v1294_v45 = vsel %vm1291_vm11, %v1293_v53, %v1289_v54  ;;  %v1304_v59 = vsel %vm1303_vm13, %v2622_v9, %v1300_v55  ;;  %v1419_v9 = vperm.slane %v1319_v22, 2  ;;  %1693 = vmatpush.bf16.msra.mxu2 %v2424_v44  ;;  %v2423_v53 = vld [vmem:[#allocation11 + $0xb0] sm:$0xff]  ;;  %v2406_v55 = vld [vmem:[#allocation11 + $0x28] sm:$0xff] }
 0x34c   : > { %v1313_v58 = vmul.f32 %v1294_v45, %v3197_v50  ;;  %v1309_v62 = vsel %vm1306_vm14, %v1308_v56, %v1304_v59  ;;  %v1388_v4 = vadd.f32 %v1385_v61, %v1384_v60  ;;  %v2624_v50 = vpop.eup %2623  ;;  %v2431_v54 = vld [vmem:[#allocation11 + $0xf0] sm:$0xff]  ;;  %v2414_v45 = vld [vmem:[#allocation11 + $0x68] sm:$0xff]  ;;  %v2413_v59 = vld [vmem:[#allocation11 + $0x60] sm:$0xff] }
 0x34d   : > { %v1314_v63 = vmul.f32 %v1309_v62, %v3200_v18  ;;  %v1394_v10 = vmul.f32 512.0, %v2624_v50  ;;  %vm1398_vm15 = vweird.f32 %v2624_v50  ;;  %v2422_v56 = vld [vmem:[#allocation11 + $0xa8] sm:$0xff]  ;;  %v2421_v60 = vld [vmem:[#allocation11 + $0xa0] sm:$0xff]  ;;  %v2404_v62 = vld [vmem:[#allocation11 + $0x18] sm:$0xff] }
 0x34e   : > { %v1317_v0 = vmul.f32 %v1313_v58, %v1233_v57  ;;  %1707 = vmatpush.bf16.msra.mxu3 %v2431_v54  ;;  %v2430_v57 = vld [vmem:[#allocation11 + $0xe8] sm:$0xff]  ;;  %v2405_v58 = vld [vmem:[#allocation11 + $0x20] sm:$0xff] }
 0x34f   : > { %v1318_v3 = vmul.f32 %v1314_v63, %v1234_v1  ;;  %v1395_v12 = vsub.f32 1.0, %v1394_v10  ;;  %1694 = vmatpush.bf16.msra.mxu2 %v2423_v53  ;;  %v2429_v61 = vld [vmem:[#allocation11 + $0xe0] sm:$0xff]  ;;  %v2412_v63 = vld [vmem:[#allocation11 + $0x58] sm:$0xff] }
 0x350   : > { %v1386_v2 = vmul.f32 %v1317_v0, %v1317_v0  ;;  %v2428_v1 = vld [vmem:[#allocation11 + $0xd8] sm:$0xff] }
 0x351   : > { %v1387_v5 = vmul.f32 %v1318_v3, %v1318_v3  ;;  %v1396_v13 = vmul.f32 %v2624_v50, %v1395_v12 }
 0x352   : > { %v1389_v6 = vadd.f32 %v1388_v4, %v1386_v2  ;;  %1708 = vmatpush.bf16.msra.mxu3 %v2430_v57  ;;  %v2403_v2 = vld [vmem:[#allocation11 + $0x10] sm:$0xff] }
 0x353   : > { %v1397_v14 = vadd.f32 %v2624_v50, %v1396_v13  ;;  %1695 = vmatpush.bf16.msra.mxu2 %v2422_v56  ;;  %v2419_v4 = vld [vmem:[#allocation11 + $0x90] sm:$0xff]  ;;  %v2401_v13 = vld [vmem:[#allocation11] sm:$0xff] }
 0x354   : > { %v1390_v7 = vadd.f32 %v1389_v6, %v1387_v5  ;;  %v2427_v5 = vld [vmem:[#allocation11 + $0xd0] sm:$0xff]  ;;  %v2402_v6 = vld [vmem:[#allocation11 + $0x8] sm:$0xff] }
 0x355   : > { %v1399_v18 = vsel %vm1398_vm15, %v2624_v50, %v1397_v14  ;;  %v2426_v50 = vld [vmem:[#allocation11 + $0xc8] sm:$0xff]  ;;  %v2409_v14 = vld [vmem:[#allocation11 + $0x40] sm:$0xff] }
 0x356   : > { %1391 = vadd.xlane.f32.xlu0 %v1390_v7  ;;  %1709 = vmatpush.bf16.msra.mxu3 %v2429_v61  ;;  %v2410_v7 = vld [vmem:[#allocation11 + $0x48] sm:$0xff] }
 0x357   : > { %1696 = vmatpush.bf16.msra.mxu2 %v2421_v60 }
 0x35a   : > { %1710 = vmatpush.bf16.msra.mxu3 %v2428_v1 }
 0x35e   : > { %1711 = vmatpush.bf16.msra.mxu3 %v2427_v5 }
 0x362   : > { %1712 = vmatpush.bf16.msra.mxu3 %v2426_v50 }
 0x3c9   : > { %v1392_v15 = vpop.xlane.xlu0 %1391 }
 0x3ca   : > { %v1400_v16 = vmul.f32 %v1399_v18, %v1392_v15  ;;  %v2417_v18 = vld [vmem:[#allocation11 + $0x80] sm:$0xff] }
 0x3cb   : > { %v2425_v15 = vld [vmem:[#allocation11 + $0xc0] sm:$0xff] }
 0x3cc   : > { %v1401_v17 = vadd.f32 1e-08, %v1400_v16  ;;  %1713 = vmatpush.bf16.msra.mxu3 %v2425_v15 }
 0x3ce   : > { %2625 = vrsqrt.f32 %v1401_v17  ;;  %vm1408_vm1 = vweird.f32 %v1401_v17 }
 0x3d4   : > { %v2626_v32 = vpop.eup %2625 }
 0x3d5   : > { %v1403_v11 = vmul.f32 %v2626_v32, %v1401_v17  ;;  %vm1409_vm0 = vweird.f32 %v2626_v32 }
 0x3d6   : > { %vm1410_vm2 = vmor %vm1408_vm1, %vm1409_vm0 }
 0x3d7   : > { %v1404_v19 = vmul.f32 %v2626_v32, %v1403_v11 }
 0x3d9   : > { %v1405_v20 = vmul.f32 0.5, %v1404_v19 }
 0x3db   : > { %v1406_v21 = vsub.f32 1.5, %v1405_v20 }
 0x3dd   : > { %v1407_v23 = vmul.f32 %v2626_v32, %v1406_v21 }
 0x3df   : > { %v1411_v27 = vsel %vm1410_vm2, %v2626_v32, %v1407_v23 }
 0x3e0   : > { %v1412_v28 = vmul.f32 %v1411_v27, %v1315_v51  ;;  %v1413_v29 = vmul.f32 %v1411_v27, %v1316_v52  ;;  %v1414_v30 = vmul.f32 %v1411_v27, %v1317_v0  ;;  %v1415_v31 = vmul.f32 %v1411_v27, %v1318_v3  ;;  %v2407_v51 = vld [vmem:[#allocation11 + $0x30] sm:$0xff]  ;;  %v2420_v0 = vld [vmem:[#allocation11 + $0x98] sm:$0xff] }
 0x3e1   : > { %v2415_v52 = vld [vmem:[#allocation11 + $0x70] sm:$0xff]  ;;  %1668 = vmatpush.bf16.msra.mxu0 %v2407_v51  ;;  %1697 = vmatpush.bf16.msra.mxu2 %v2420_v0 }
 0x3e2   : > { %v3229_v33 = vmul.f32 %v1417_v24, %v1412_v28  ;;  %v3231_v35 = vmul.f32 %v1418_v25, %v1413_v29  ;;  %v3233_v36 = vmul.f32 %v1419_v9, %v1414_v30  ;;  %v3235_v37 = vmul.f32 %v1420_v26, %v1415_v31  ;;  %1681 = vmatpush.bf16.msra.mxu1 %v2415_v52  ;;  %v2411_v3 = vld [vmem:[#allocation11 + $0x50] sm:$0xff] }
 0x3e4   : > { %v1429_v38 = vand.u32 2147483647, %v3229_v33  ;;  %v1430_v39 = vand.u32 2147483647, %v3231_v35  ;;  %v1431_v40 = vand.u32 2147483647, %v3233_v36 }
 0x3e5   : > { %v1432_v41 = vand.u32 2147483647, %v3235_v37  ;;  %1669 = vmatpush.bf16.msra.mxu0 %v2406_v55  ;;  %1698 = vmatpush.bf16.msra.mxu2 %v2419_v4 }
 0x3e6   : > { %v1433_v42 = vmax.f32 %v1429_v38, %v1430_v39  ;;  %1682 = vmatpush.bf16.msra.mxu1 %v2414_v45 }
 0x3e7   : > { %v1434_v43 = vmax.f32 %v1431_v40, %v1432_v41 }
 0x3e9   : > { %v1435_v46 = vmax.f32 %v1433_v42, %v1434_v43  ;;  %1670 = vmatpush.bf16.msra.mxu0 %v2405_v58  ;;  %1699 = vmatpush.bf16.msra.mxu2 %v2418_v8 }
 0x3ea   : > { %1683 = vmatpush.bf16.msra.mxu1 %v2413_v59 }
 0x3eb   : > { %1436 = vmax.xlane.f32.xlu1 %v1435_v46 }
 0x3ed   : > { %1671 = vmatpush.bf16.msra.mxu0 %v2404_v62  ;;  %1700 = vmatpush.bf16.msra.mxu2 %v2417_v18 }
 0x3ee   : > { %1684 = vmatpush.bf16.msra.mxu1 %v2412_v63 }
 0x3f1   : > { %1672 = vmatpush.bf16.msra.mxu0 %v2403_v2 }
 0x3f2   : > { %1685 = vmatpush.bf16.msra.mxu1 %v2411_v3 }
 0x3f5   : > { %1673 = vmatpush.bf16.msra.mxu0 %v2402_v6 }
 0x3f6   : > { %1686 = vmatpush.bf16.msra.mxu1 %v2410_v7 }
 0x3f9   : > { %1674 = vmatpush.bf16.msra.mxu0 %v2401_v13 }
 0x3fa   : > { %1687 = vmatpush.bf16.msra.mxu1 %v2409_v14 }
 0x45e   : > { %v1437_v10 = vpop.xlane.xlu1 %1436 }
 0x45f   : > { %v3241_v12 = vmax.f32 %v1437_v10, 1e-05 }
 0x461   : > { %2627 = vrcp.f32 %v3241_v12  ;;  %v1450_v11 = vand.u32 2147483648, %v3241_v12  ;;  %v1448_v20 = vand.u32 2147483647, %v3241_v12  ;;  %vm1444_vm4 = vweird.f32 %v3241_v12 }
 0x463   : > { %v1451_v22 = vor.u32 1.1754944e-38, %v1450_v11  ;;  %vm1449_vm6 = vcmp.eq.f32.partialorder %v1448_v20, 8.507059e+37  ;;  %v2596_v11 = vld [vmem:[%s610_s6] ss:$0 sm:$0xff] }
 0x467   : > { %v2628_v16 = vpop.eup %2627 }
 0x468   : > { %v1440_v17 = vmul.f32 %v2628_v16, %v3241_v12  ;;  %vm1445_vm3 = vweird.f32 %v2628_v16 }
 0x469   : > { %vm1446_vm5 = vmor %vm1444_vm4, %vm1445_vm3 }
 0x46a   : > { %v1441_v32 = vsub.f32 1.0, %v1440_v17  ;;  %v1474_v17 = vmul.f32 0.007874016, %v3241_v12 }
 0x46c   : > { %v1442_v19 = vmul.f32 %v2628_v16, %v1441_v32 }
 0x46e   : > { %v1443_v21 = vadd.f32 %v2628_v16, %v1442_v19 }
 0x470   : > { %v1447_v23 = vsel %vm1446_vm5, %v2628_v16, %v1443_v21 }
 0x471   : > { %v1452_v24 = vsel %vm1449_vm6, %v1451_v22, %v1447_v23 }
 0x472   : > { %v1453_v25 = vmul.f32 127.0, %v1452_v24 }
 0x474   : > { %v1454_v9 = vmul.f32 %v1453_v25, %v3229_v33  ;;  %v1455_v26 = vmul.f32 %v1453_v25, %v3231_v35  ;;  %v1456_v27 = vmul.f32 %v1453_v25, %v3233_v36  ;;  %v1457_v29 = vmul.f32 %v1453_v25, %v3235_v37 }
 0x476   : > { %v2443_v28 = vcvt.f32.s32 %v1454_v9  ;;  %v2451_v30 = vcvt.f32.s32 %v1455_v26  ;;  %v2459_v31 = vcvt.f32.s32 %v1456_v27  ;;  %v2441_v38 = vand.u32 2147483647, %v1454_v9 }
 0x477   : > { %v2449_v40 = vand.u32 2147483647, %v1455_v26  ;;  %v2446_v46 = vand.u32 2147483648, %v1454_v9  ;;  %v2457_v47 = vand.u32 2147483647, %v1456_v27  ;;  %v2467_v48 = vcvt.f32.s32 %v1457_v29 }
 0x478   : > { %v2444_v39 = vcvt.s32.f32 %v2443_v28  ;;  %v2452_v41 = vcvt.s32.f32 %v2451_v30  ;;  %v2460_v42 = vcvt.s32.f32 %v2459_v31  ;;  %v2454_v33 = vand.u32 2147483648, %v1455_v26 }
 0x479   : > { %v2462_v35 = vand.u32 2147483648, %v1456_v27  ;;  %vm2442_vm7 = vcmp.lt.f32.partialorder %v2441_v38, 8388608.0  ;;  %v2468_v51 = vcvt.s32.f32 %v2467_v48  ;;  %vm2450_vm8 = vcmp.lt.f32.partialorder %v2449_v40, 8388608.0 }
 0x47a   : > { %v2445_v43 = vand.u32 2147483647, %v2444_v39  ;;  %v2453_v44 = vand.u32 2147483647, %v2452_v41  ;;  %v2461_v49 = vand.u32 2147483647, %v2460_v42 }
 0x47b   : > { %v2465_v53 = vand.u32 2147483647, %v1457_v29  ;;  %vm2458_vm9 = vcmp.lt.f32.partialorder %v2457_v47, 8388608.0  ;;  %v2469_v55 = vand.u32 2147483647, %v2468_v51  ;;  %v2470_v45 = vand.u32 2147483648, %v1457_v29 }
 0x47c   : > { %v2447_v36 = vor.u32 %v2446_v46, %v2445_v43  ;;  %v2455_v37 = vor.u32 %v2454_v33, %v2453_v44  ;;  %v2463_v52 = vor.u32 %v2462_v35, %v2461_v49 }
 0x47d   : > { %v2471_v61 = vor.u32 %v2470_v45, %v2469_v55  ;;  %vm2466_vm10 = vcmp.lt.f32.partialorder %v2465_v53, 8388608.0 }
 0x47e   : > { %v2448_v54 = vsel %vm2442_vm7, %v2447_v36, %v1454_v9  ;;  %v2456_v57 = vsel %vm2450_vm8, %v2455_v37, %v1455_v26  ;;  %v2464_v58 = vsel %vm2458_vm9, %v2463_v52, %v1456_v27 }
 0x47f   : > { %v1462_v56 = vmax.f32 %v2448_v54, -128.0  ;;  %v1463_v59 = vmax.f32 %v2456_v57, -128.0  ;;  %v1464_v60 = vmax.f32 %v2464_v58, -128.0  ;;  %v2472_v1 = vsel %vm2466_vm10, %v2471_v61, %v1457_v29 }
 0x480   : > { %v1465_v3 = vmax.f32 %v2472_v1, -128.0 }
 0x481   : > { %v1466_v62 = vmin.f32 %v1462_v56, 127.0  ;;  %v1467_v63 = vmin.f32 %v1463_v59, 127.0  ;;  %v1468_v0 = vmin.f32 %v1464_v60, 127.0 }
 0x482   : > { %v1469_v6 = vmin.f32 %v1465_v3, 127.0 }
 0x483   : > { %v1470_v2 = vpack.c.bf16 %v1466_v62, %v1466_v62  ;;  %v1471_v4 = vpack.c.bf16 %v1467_v63, %v1467_v63  ;;  %v1472_v5 = vpack.c.bf16 %v1468_v0, %v1468_v0 }
 0x484   : > { %v1473_v7 = vpack.c.bf16 %v1469_v6, %v1469_v6 }
 0x485   : > { %1675 = vmatmul.bf16.vlgmr.msra.gmra.mxu0 %v1470_v2  ;;  %1688 = vmatmul.bf16.vlgmr.msra.gmra.mxu1 %v1471_v4 }
 0x486   : > { %1701 = vmatmul.bf16.vlgmr.msra.gmra.mxu2 %v1472_v5  ;;  %1714 = vmatmul.bf16.vlgmr.msra.gmra.mxu3 %v1473_v7 }
 0x502   : > { %v1676_v8 = vpop.f32.mrf.mxu0  ;;  %v1689_v50 = vpop.f32.mrf.mxu1 }
 0x503   : > { %v1690_v10 = vadd.f32 %v1689_v50, %v1676_v8 }
 0x509   : > { %v1702_v13 = vpop.f32.mrf.mxu2  ;;  %v1715_v16 = vpop.f32.mrf.mxu3 }
 0x50a   : > { %v1703_v14 = vadd.f32 %v1702_v13, %v1690_v10  ;;  %v1678_v18 = vpop.f32.mrf.mxu0  ;;  %v1691_v15 = vpop.f32.mrf.mxu1 }
 0x50c   : > { %v1716_v32 = vadd.f32 %v1715_v16, %v1703_v14 }
 0x50e   : > { %v1719_v19 = vmul.f32 %v1716_v32, %v1474_v17 }
 0x510   : > { %v1724_v20 = vmul.f32 %v2596_v11, %v1719_v19 }
 0x511   : > { %v1704_v21 = vpop.f32.mrf.mxu2  ;;  %v1717_v23 = vpop.f32.mrf.mxu3 }
 0x512   : > { %v1725_v22 = vadd.f32 %v1724_v20, %v3156_v34 }
 0x514   : > { %1726 = vst [vmem:[%s592_s8] sm:$0xff] %v1725_v22 }
 0x515   : > { %2836 = shalt.err (!%p2833_p0)
}
 0x516   : > { %2495 = dma.vmem_to_hbm [thread:$0]  (%p3082_p5), %s1742_s28, 128, %s1744_s27, %s1728_s24  }
 0x517 PF: > { %s1755_s10 = sand.u32 1, %s2883_s21   ;;  %p2518_p2 = pnand %p1934_p4, %p3090_p7 }
 0x518   : > { %s1756_s9 = scalar_lea.sflag [#allocation4], %s1755_s10 }
 0x519   : > { %p2519_p6 = pneg %p2518_p2 }
 0x51b   : > { %2878 = dma.done.wait (%p2519_p6), %s1756_s9, 128  }
 0x51c   : > { %2880 = vsyncadd (%p2519_p6), %s1756_s9, 4294967168  ;;  %s31_s26 = sadd.s32 1, %s2903_s26   ;;  %s3335_s21 = smov %s2887_s22 }
 0x51d   : > { %p28_p8 = scmp.ge.s32.totalorder %s31_s26, 4   ;;  %s3336_s22 = smov %s2891_s23 }
 0x51e   : > { %s3337_s23 = smov %s3088_s29  ;;  %s3338_s24 = smov %s2899_s25 }
 0x51f   : > { %s3339_s25 = smov %s3341_s18  ;;  %30 = sbr.rel (!%p28_p8) target bundleno = 17 (0x11), region = 151 }
 0x524   :  { %1762 = vsyncpa [#allocation3], 1 }
 0x525   :  { %1764 = vsyncpa [#allocation3 + $0x1], 1 }
 0x526   :  { %1765 = vsyncpa [#allocation6], 1 }
 0x527   :  { %1766 = vsyncpa [#allocation9], 1 }
 0x528   :  { %1767 = vsyncpa [#allocation12], 1 }
 0x529   :  { %1768 = vsyncpa [#allocation4], 1 }
 0x52a   :  { %1770 = vsyncpa [#allocation4 + $0x1], 1 }

// kernel: mesh_dit_block_forward.2
= control target key start
LH: loop header
LB: loop body
LE: loop exit
PB: predicated region body
PF: predicated region fallthrough
CT: control target
= control target key end

     0   :  { %20 = vsyncpa [#allocation3], 0  ;;  %s7619_s0 = inlined_call_operand.hbm [shape: f32[2,128], index: 0, kind: input, shape index: {}]   ;;  %s7620_s1 = inlined_call_operand.hbm [shape: f32[1,128], index: 1, kind: input, shape index: {}]   ;;  %s7621_s2 = inlined_call_operand.hbm [shape: bf16[128,128], index: 2, kind: input, shape index: {}]   ;;  %s7622_s3 = inlined_call_operand.hbm [shape: f32[1,128], index: 3, kind: input, shape index: {}]   ;;  %s7623_s4 = inlined_call_operand.hbm [shape: bf16[128,512], index: 4, kind: input, shape index: {}]   ;;  %s7624_s5 = inlined_call_operand.hbm [shape: bf16[128,512], index: 5, kind: input, shape index: {}]   ;;  %s7625_s6 = inlined_call_operand.hbm [shape: f32[1,512], index: 6, kind: input, shape index: {}]   ;;  %s7626_s7 = inlined_call_operand.hbm [shape: bf16[512,128], index: 7, kind: input, shape index: {}]   ;;  %s7627_s8 = inlined_call_operand.hbm [shape: f32[1,128], index: 8, kind: input, shape index: {}]   ;;  %s7628_s9 = inlined_call_operand.hbm [shape: bf16[128,768], index: 9, kind: input, shape index: {}]   ;;  %s7629_s10 = inlined_call_operand.hbm [shape: f32[1,768], index: 10, kind: input, shape index: {}]   ;;  %s7630_s11 = inlined_call_operand.hbm [shape: f32[1,768], index: 11, kind: input, shape index: {}]   ;;  %s7631_s12 = inlined_call_operand.hbm [shape: f32[1,768], index: 12, kind: input, shape index: {}]   ;;  %s7632_s13 = inlined_call_operand.hbm [shape: bf16[768,768], index: 13, kind: input, shape index: {}]   ;;  %s7633_s14 = inlined_call_operand.hbm [shape: f32[1,768], index: 14, kind: input, shape index: {}]   ;;  %s7634_s15 = inlined_call_operand.vmem [shape: f32[2,768], index: 15, kind: output, shape index: {}]  }
   0x1   :  { %21 = vsyncpa [#allocation5], 0 }
   0x2   :  { %22 = vsyncpa [#allocation8], 0 }
   0x3   :  { %23 = vsyncpa [#allocation11], 0 }
   0x4   :  { %24 = vsyncpa [#allocation14], 0 }
   0x5   :  { %25 = vsyncpa [#allocation17], 0 }
   0x6   :  { %26 = vsyncpa [#allocation20], 0  ;;  %s44_s20 = sshll.u32 %s7620_s1, 4  ;;  %s45_s20 = int_to_ptr.hbm [resolvable:$true] %s44_s20 }
   0x7   :  { %27 = vsyncpa [#allocation23], 0  ;;  %s7098_s21 = smov [#allocation4]   ;;  %s68_s25 = sshll.u32 %s7622_s3, 4  ;;  %s69_s25 = int_to_ptr.hbm [resolvable:$true] %s68_s25 }
   0x8   :  { %s46_s22 = sshll.u32 %s7098_s21, 4  ;;  %s7099_s26 = smov [#allocation7]   ;;  %s47_s22 = int_to_ptr.vmem [resolvable:$true] %s46_s22 }
   0x9   :  { %49 = dma.hbm_to_vmem [thread:$0]  %s45_s20, 16, %s47_s22, [#allocation5]  }
   0xa   :  { %s70_s27 = sshll.u32 %s7099_s26, 4  ;;  %s91_s30 = sshll.u32 %s7624_s5, 4  ;;  %s71_s27 = int_to_ptr.vmem [resolvable:$true] %s70_s27  ;;  %s92_s30 = int_to_ptr.hbm [resolvable:$true] %s91_s30 }
   0xb   :  { %73 = dma.hbm_to_vmem [thread:$0]  %s69_s25, 16, %s71_s27, [#allocation8]  }
   0xc   :  { %s7100_s1 = smov [#allocation10]   ;;  %s7101_s17 = smov 256  }
   0xd   :  { %s93_s16 = sshll.u32 %s7100_s1, 4  ;;  %s7102_s18 = smov 16   ;;  %s94_s16 = int_to_ptr.vmem [resolvable:$true] %s93_s16 }
   0xe   :  { %99 = dma.hbm_to_vmem [thread:$0]  %s92_s30, 4096, %s94_s16, [#allocation11], %s7101_s17, %s7101_s17, %s7102_s18  }
   0xf   :  { %s115_s20 = sshll.u32 %s7626_s7, 4  ;;  %s7103_s21 = smov [#allocation13]   ;;  %s116_s20 = int_to_ptr.hbm [resolvable:$true] %s115_s20 }
  0x10   :  { %s117_s22 = sshll.u32 %s7103_s21, 4  ;;  %s139_s5 = sshll.u32 %s7628_s9, 4  ;;  %s118_s22 = int_to_ptr.vmem [resolvable:$true] %s117_s22  ;;  %s140_s5 = int_to_ptr.hbm [resolvable:$true] %s139_s5 }
  0x11   :  { %s7104_s25 = smov 64   ;;  %s7105_s26 = smov 4  }
  0x12   :  { %123 = dma.hbm_to_vmem [thread:$0]  %s116_s20, 4096, %s118_s22, [#allocation14], %s7104_s25, %s7104_s25, %s7105_s26  }
  0x13   :  { %s7106_s27 = smov [#allocation16]   ;;  %s164_s30 = sshll.u32 %s7630_s11, 4  ;;  %s165_s30 = int_to_ptr.hbm [resolvable:$true] %s164_s30 }
  0x14   :  { %s141_s28 = sshll.u32 %s7106_s27, 4  ;;  %s7107_s1 = smov 384   ;;  %s142_s28 = int_to_ptr.vmem [resolvable:$true] %s141_s28 }
  0x15   :  { %s7108_s16 = smov 24   ;;  %s7109_s9 = smov [#allocation19]  }
  0x16   :  { %147 = dma.hbm_to_vmem [thread:$0]  %s140_s5, 6144, %s142_s28, [#allocation17], %s7107_s1, %s7107_s1, %s7108_s16  }
  0x17   :  { %s166_s3 = sshll.u32 %s7109_s9, 4  ;;  %s185_s23 = sshll.u32 %s7632_s13, 4  ;;  %s167_s3 = int_to_ptr.vmem [resolvable:$true] %s166_s3  ;;  %s186_s23 = int_to_ptr.hbm [resolvable:$true] %s185_s23 }
  0x18   :  { %169 = dma.hbm_to_vmem [thread:$0]  %s165_s30, 96, %s167_s3, [#allocation20]  }
  0x19   :  { %s33_s24 = sshll.u32 %s7619_s0, 4  ;;  %s7110_s27 = smov [#allocation22]   ;;  %s34_s24 = int_to_ptr.hbm [resolvable:$true] %s33_s24 }
  0x1a   :  { %s187_s29 = sshll.u32 %s7110_s27, 4  ;;  %s7111_s11 = smov [#allocation2]   ;;  %s188_s29 = int_to_ptr.vmem [resolvable:$true] %s187_s29 }
  0x1b   :  { %193 = dma.hbm_to_vmem [thread:$0]  %s186_s23, 36864, %s188_s29, [#allocation23], %s7107_s1, %s7107_s1, %s7108_s16  }
  0x1c   :  { %s35_s5 = sshll.u32 %s7111_s11, 4  ;;  %s54_s9 = sshll.u32 %s7621_s2, 4  ;;  %s36_s5 = int_to_ptr.vmem [resolvable:$true] %s35_s5  ;;  %s55_s9 = int_to_ptr.hbm [resolvable:$true] %s54_s9 }
  0x1d   :  { %38 = dma.hbm_to_vmem [thread:$0]  %s34_s24, 32, %s36_s5, [#allocation3]  }
  0x1e   :  { %s78_s3 = sshll.u32 %s7623_s4, 4  ;;  %s7112_s19 = smov [#allocation6]   ;;  %s79_s3 = int_to_ptr.hbm [resolvable:$true] %s78_s3 }
  0x1f   :  { %s56_s0 = sshll.u32 %s7112_s19, 4  ;;  %s7113_s1 = smov [#allocation9]   ;;  %s57_s0 = int_to_ptr.vmem [resolvable:$true] %s56_s0 }
  0x20   :  { %62 = dma.hbm_to_vmem [thread:$0]  %s55_s9, 1024, %s57_s0, [#allocation5], %s7104_s25, %s7104_s25, %s7105_s26  }
  0x21   :  { %s80_s16 = sshll.u32 %s7113_s1, 4  ;;  %s105_s2 = sshll.u32 %s7625_s6, 4  ;;  %s81_s16 = int_to_ptr.vmem [resolvable:$true] %s80_s16  ;;  %s106_s2 = int_to_ptr.hbm [resolvable:$true] %s105_s2 }
  0x22   :  { %86 = dma.hbm_to_vmem [thread:$0]  %s79_s3, 4096, %s81_s16, [#allocation8], %s7101_s17, %s7101_s17, %s7102_s18  }
  0x23   :  { %s129_s22 = sshll.u32 %s7627_s8, 4  ;;  %s7114_s24 = smov [#allocation12]   ;;  %s130_s22 = int_to_ptr.hbm [resolvable:$true] %s129_s22 }
  0x24   :  { %s107_s27 = sshll.u32 %s7114_s24, 4  ;;  %s7115_s25 = smov [#allocation15]   ;;  %s108_s27 = int_to_ptr.vmem [resolvable:$true] %s107_s27 }
  0x25   :  { %110 = dma.hbm_to_vmem [thread:$0]  %s106_s2, 64, %s108_s27, [#allocation11]  }
  0x26   :  { %s131_s26 = sshll.u32 %s7115_s25, 4  ;;  %s153_s6 = sshll.u32 %s7629_s10, 4  ;;  %s132_s26 = int_to_ptr.vmem [resolvable:$true] %s131_s26  ;;  %s154_s6 = int_to_ptr.hbm [resolvable:$true] %s153_s6 }
  0x27   :  { %134 = dma.hbm_to_vmem [thread:$0]  %s130_s22, 16, %s132_s26, [#allocation14]  }
  0x28   :  { %s175_s18 = sshll.u32 %s7631_s12, 4  ;;  %s7116_s28 = smov [#allocation18]   ;;  %s176_s18 = int_to_ptr.hbm [resolvable:$true] %s175_s18 }
  0x29   :  { %s155_s8 = sshll.u32 %s7116_s28, 4  ;;  %s7117_s7 = smov [#allocation21]   ;;  %s156_s8 = int_to_ptr.vmem [resolvable:$true] %s155_s8 }
  0x2a   :  { %158 = dma.hbm_to_vmem [thread:$0]  %s154_s6, 96, %s156_s8, [#allocation17]  }
  0x2b   :  { %s177_s9 = sshll.u32 %s7117_s7, 4  ;;  %s199_s3 = sshll.u32 %s7633_s14, 4  ;;  %s178_s9 = int_to_ptr.vmem [resolvable:$true] %s177_s9  ;;  %s200_s3 = int_to_ptr.hbm [resolvable:$true] %s199_s3 }
  0x2c   :  { %180 = dma.hbm_to_vmem [thread:$0]  %s176_s18, 96, %s178_s9, [#allocation20]  }
  0x2d   :  { %s7118_s10 = smov [#allocation24]  }
  0x2e   :  { %s201_s19 = sshll.u32 %s7118_s10, 4  ;;  %s202_s19 = int_to_ptr.vmem [resolvable:$true] %s201_s19 }
  0x2f   :  { %204 = dma.hbm_to_vmem [thread:$0]  %s200_s3, 96, %s202_s19, [#allocation23]  }
  0x30   :  { %7082 = dma.done.wait [#allocation3], 32  }
  0x31   :  { %7083 = vsyncadd [#allocation3], 4294967264 }
  0x32   :  { %7084 = dma.done.wait [#allocation5], 1040  }
  0x33   :  { %7085 = vsyncadd [#allocation5], 4294966256 }
  0x34   :  { %7086 = dma.done.wait [#allocation8], 4112  }
  0x35   :  { %7087 = vsyncadd [#allocation8], 4294963184 }
  0x36   :  { %7088 = dma.done.wait [#allocation11], 4160  }
  0x37   :  { %7089 = vsyncadd [#allocation11], 4294963136 }
  0x38   :  { %7090 = dma.done.wait [#allocation14], 4112  }
  0x39   :  { %7091 = vsyncadd [#allocation14], 4294963184 }
  0x3a   :  { %7092 = dma.done.wait [#allocation17], 6240  }
  0x3b   :  { %7093 = vsyncadd [#allocation17], 4294961056 }
  0x3c   :  { %7094 = dma.done.wait [#allocation20], 192  }
  0x3d   :  { %7095 = vsyncadd [#allocation20], 4294967104 }
  0x3e   :  { %7096 = dma.done.wait [#allocation23], 36960  }
  0x3f   :  { %7097 = vsyncadd [#allocation23], 4294930336  ;;  %v265_v0 = vld [vmem:[#allocation2] sm:$0x3]  ;;  %vm304_vm4 = vcmask 1041408   ;;  %v7119_v17 = vmov 128.0  }
  0x40   :  { %v4338_v1 = vmul.f32 -1.442695, %v265_v0  ;;  %v6671_v33 = vld [vmem:[#allocation4] ss:$0 sm:$0xff]  ;;  %v6109_v40 = vld [vmem:[#allocation6 + $0x30] sm:$0xff]  ;;  %v6108_v41 = vld [vmem:[#allocation6 + $0x28] sm:$0xff] }
  0x41   :  { %v6110_v39 = vld [vmem:[#allocation6 + $0x38] sm:$0xff]  ;;  %v6107_v42 = vld [vmem:[#allocation6 + $0x20] sm:$0xff]  ;;  %v6105_v44 = vld [vmem:[#allocation6 + $0x10] sm:$0xff] }
  0x42   :  { %6674 = vpow2.f32 %v4338_v1  ;;  %406 = vmatpush.bf16.msra.mxu0 %v6110_v39  ;;  %v6106_v43 = vld [vmem:[#allocation6 + $0x18] sm:$0xff]  ;;  %v6104_v45 = vld [vmem:[#allocation6 + $0x8] sm:$0xff]  ;;  %v6103_v47 = vld [vmem:[#allocation6] sm:$0xff] }
  0x43   :  { %v4479_v39 = vld [vmem:[#allocation9 + $0xd8] sm:$0xf0] }
  0x46   :  { %407 = vmatpush.bf16.msra.mxu0 %v6109_v40 }
  0x48   :  { %v6675_v2 = vpop.eup %6674 }
  0x49   :  { %v269_v3 = vadd.f32 1.0, %v6675_v2 }
  0x4a   :  { %408 = vmatpush.bf16.msra.mxu0 %v6108_v41 }
  0x4b   :  { %6676 = vrcp.f32 %v269_v3  ;;  %v281_v6 = vand.u32 2147483648, %v269_v3  ;;  %vm275_vm0 = vweird.f32 %v269_v3  ;;  %v279_v8 = vand.u32 2147483647, %v269_v3 }
  0x4c   :  { %6678 = vrcp.f32 %v7119_v17  ;;  %v4487_v17 = vld [vmem:[#allocation9 + $0xf0] sm:$0xf0] }
  0x4d   :  { %v282_v10 = vor.u32 1.1754944e-38, %v281_v6  ;;  %vm280_vm3 = vcmp.eq.f32.partialorder %v279_v8, 8.507059e+37 }
  0x4e   :  { %409 = vmatpush.bf16.msra.mxu0 %v6107_v42 }
  0x51   :  { %v6677_v4 = vpop.eup %6676 }
  0x52   :  { %v271_v5 = vmul.f32 %v6677_v4, %v269_v3  ;;  %vm276_vm1 = vweird.f32 %v6677_v4  ;;  %v6679_v18 = vpop.eup %6678  ;;  %410 = vmatpush.bf16.msra.mxu0 %v6106_v43 }
  0x53   :  { %vm277_vm2 = vmor %vm275_vm0, %vm276_vm1  ;;  %v309_v19 = vmul.f32 128.0, %v6679_v18  ;;  %vm313_vm5 = vweird.f32 %v6679_v18 }
  0x54   :  { %v272_v7 = vsub.f32 1.0, %v271_v5 }
  0x55   :  { %v310_v20 = vsub.f32 1.0, %v309_v19  ;;  %v6142_v19 = vld [vmem:[#allocation9 + $0xf4] sm:$0xf0] }
  0x56   :  { %v273_v9 = vmul.f32 %v6677_v4, %v272_v7  ;;  %411 = vmatpush.bf16.msra.mxu0 %v6105_v44 }
  0x57   :  { %v311_v21 = vmul.f32 %v6679_v18, %v310_v20 }
  0x58   :  { %v274_v11 = vadd.f32 %v6677_v4, %v273_v9 }
  0x59   :  { %v312_v22 = vadd.f32 %v6679_v18, %v311_v21 }
  0x5a   :  { %v278_v12 = vsel %vm277_vm2, %v6677_v4, %v274_v11  ;;  %412 = vmatpush.bf16.msra.mxu0 %v6104_v45 }
  0x5b   :  { %v283_v13 = vsel %vm280_vm3, %v282_v10, %v278_v12  ;;  %v7260_v23 = vsel %vm313_vm5, %v6679_v18, %v312_v22  ;;  %v4493_v18 = vld [vmem:[#allocation9 + $0xe8] sm:$0xf] }
  0x5c   :  { %v285_v14 = vmul.f32 %v283_v13, %v265_v0  ;;  %v4485_v13 = vld [vmem:[#allocation9 + $0xe0] sm:$0xf]  ;;  %v4494_v22 = vor.u32 %v6142_v19, %v4493_v18  ;;  %v4429_v18 = vld [vmem:[#allocation9 + $0x68] sm:$0xf]  ;;  %v6126_v19 = vld [vmem:[#allocation9 + $0x74] sm:$0xf0] }
  0x5e   :  { %v303_v15 = vmul.f32 %v285_v14, %v285_v14  ;;  %413 = vmatpush.bf16.msra.mxu0 %v6103_v47  ;;  %686 = vmatpush.bf16.msra.mxu3 %v4494_v22  ;;  %v6672_v47 = vld [vmem:[#allocation7] ss:$0 sm:$0xff]  ;;  %v6124_v22 = vld [vmem:[#allocation9 + $0x6c] sm:$0xf] }
  0x60   :  { %v305_v16 = vsel %vm304_vm4, %v303_v15, 0.0  ;;  %v6139_v15 = vld [vmem:[#allocation9 + $0xe4] sm:$0xf] }
  0x61   :  { %306 = vadd.xlane.f32.xlu0 %v305_v16  ;;  %v4490_v21 = vor.u32 %v6139_v15, %v4487_v17  ;;  %v6123_v15 = vld [vmem:[#allocation9 + $0x64] sm:$0xf]  ;;  %v4423_v17 = vld [vmem:[#allocation9 + $0x70] sm:$0xf0] }
  0x63   :  { %673 = vmatpush.bf16.msra.mxu2 %v4490_v21  ;;  %v4430_v21 = vor.u32 %v6126_v19, %v4429_v18  ;;  %v6170_v18 = vld [vmem:[#allocation10 + $0xd4] sm:$0xf0]  ;;  %v6168_v19 = vld [vmem:[#allocation10 + $0xcc] sm:$0xf] }
  0xd4   :  { %v307_v24 = vpop.xlane.xlu0 %306 }
  0xd5   :  { %v315_v25 = vmul.f32 %v7260_v23, %v307_v24  ;;  %v6140_v24 = vld [vmem:[#allocation9 + $0xec] sm:$0xf] }
  0xd7   :  { %v316_v26 = vadd.f32 1e-08, %v315_v25  ;;  %v4495_v25 = vld [vmem:[#allocation9 + $0xf8] sm:$0xf0] }
  0xd9   :  { %6680 = vrsqrt.f32 %v316_v26  ;;  %vm323_vm7 = vweird.f32 %v316_v26 }
  0xdf   :  { %v6681_v27 = vpop.eup %6680 }
  0xe0   :  { %v318_v28 = vmul.f32 %v6681_v27, %v316_v26  ;;  %vm324_vm6 = vweird.f32 %v6681_v27  ;;  %v4469_v26 = vld [vmem:[#allocation9 + $0xc0] sm:$0xf] }
  0xe1   :  { %vm325_vm8 = vmor %vm323_vm7, %vm324_vm6 }
  0xe2   :  { %v319_v29 = vmul.f32 %v6681_v27, %v318_v28  ;;  %v4498_v28 = vor.u32 %v6140_v24, %v4495_v25  ;;  %v4431_v24 = vld [vmem:[#allocation9 + $0x78] sm:$0xf0] }
  0xe3   :  { %v4434_v25 = vor.u32 %v6124_v22, %v4431_v24  ;;  %v4581_v24 = vld [vmem:[#allocation10 + $0xa0] sm:$0xf] }
  0xe4   :  { %v320_v30 = vmul.f32 0.5, %v319_v29  ;;  %v6137_v29 = vld [vmem:[#allocation9 + $0xcc] sm:$0xf0]  ;;  %699 = vmatpush.bf16.msrb.mxu0 %v4498_v28  ;;  %v6119_v28 = vld [vmem:[#allocation9 + $0x44] sm:$0xf] }
  0xe6   :  { %v321_v31 = vsub.f32 1.5, %v320_v30  ;;  %v6135_v30 = vld [vmem:[#allocation9 + $0xc4] sm:$0xf] }
  0xe8   :  { %v322_v32 = vmul.f32 %v6681_v27, %v321_v31  ;;  %v4471_v31 = vld [vmem:[#allocation9 + $0xd0] sm:$0xf0] }
  0xea   :  { %v326_v34 = vsel %vm325_vm8, %v6681_v27, %v322_v32  ;;  %v4470_v32 = vor.u32 %v6137_v29, %v4469_v26  ;;  %v4405_v26 = vld [vmem:[#allocation9 + $0x40] sm:$0xf] }
  0xeb   :  { %v327_v35 = vmul.f32 %v326_v34, %v285_v14  ;;  %v6141_v14 = vld [vmem:[#allocation9 + $0xec] sm:$0xf0]  ;;  %v4477_v34 = vld [vmem:[#allocation9 + $0xc8] sm:$0xf] }
  0xec   :  { %v4486_v16 = vor.u32 %v6141_v14, %v4485_v13  ;;  %v4421_v13 = vld [vmem:[#allocation9 + $0x60] sm:$0xf]  ;;  %v6125_v14 = vld [vmem:[#allocation9 + $0x6c] sm:$0xf0] }
  0xed   :  { %v331_v36 = vmul.f32 %v6671_v33, %v327_v35  ;;  %v4474_v33 = vor.u32 %v6135_v30, %v4471_v31  ;;  %v6138_v35 = vld [vmem:[#allocation9 + $0xd4] sm:$0xf0]  ;;  %v4407_v30 = vld [vmem:[#allocation9 + $0x50] sm:$0xf0]  ;;  %v4413_v31 = vld [vmem:[#allocation9 + $0x48] sm:$0xf] }
  0xee   :  { %660 = vmatpush.bf16.msra.mxu1 %v4486_v16  ;;  %v4422_v16 = vor.u32 %v6125_v14, %v4421_v13  ;;  %v6167_v14 = vld [vmem:[#allocation10 + $0xc4] sm:$0xf] }
  0xef   :  { %v332_v37 = vand.u32 2147483647, %v331_v36  ;;  %674 = vmatpush.bf16.msra.mxu2 %v4474_v33  ;;  %v4410_v33 = vor.u32 %v6119_v28, %v4407_v30  ;;  %v4583_v28 = vld [vmem:[#allocation10 + $0xb0] sm:$0xf0]  ;;  %v6166_v30 = vld [vmem:[#allocation10 + $0xb4] sm:$0xf0] }
  0xf1   :  { %v333_v38 = vsel %vm304_vm4, %v332_v37, -inf }
  0xf2   :  { %334 = vmax.xlane.f32.xlu0 %v333_v38  ;;  %v4478_v38 = vor.u32 %v6138_v35, %v4477_v34  ;;  %661 = vmatpush.bf16.msra.mxu1 %v4470_v32  ;;  %v6122_v32 = vld [vmem:[#allocation9 + $0x54] sm:$0xf0]  ;;  %v6120_v35 = vld [vmem:[#allocation9 + $0x4c] sm:$0xf] }
  0xf3   :  { %v4414_v34 = vor.u32 %v6122_v32, %v4413_v31 }
  0xf4   :  { %687 = vmatpush.bf16.msra.mxu3 %v4478_v38  ;;  %v4389_v38 = vld [vmem:[#allocation9 + $0x20] sm:$0xf] }
 0x165   :  { %v335_v46 = vpop.xlane.xlu0 %334 }
 0x166   :  { %v336_v48 = vmax.f32 %v335_v46, 1e-05 }
 0x168   :  { %6682 = vrcp.f32 %v336_v48  ;;  %v348_v52 = vand.u32 2147483648, %v336_v48  ;;  %v346_v54 = vand.u32 2147483647, %v336_v48  ;;  %vm342_vm10 = vweird.f32 %v336_v48 }
 0x169   :  { %v357_v7 = vmul.f32 0.007874016, %v336_v48 }
 0x16a   :  { %v349_v56 = vor.u32 1.1754944e-38, %v348_v52  ;;  %vm347_vm12 = vcmp.eq.f32.partialorder %v346_v54, 8.507059e+37  ;;  %v6133_v54 = vld [vmem:[#allocation9 + $0xac] sm:$0xf0] }
 0x16e   :  { %v6683_v49 = vpop.eup %6682 }
 0x16f   :  { %v338_v50 = vmul.f32 %v6683_v49, %v336_v48  ;;  %vm343_vm9 = vweird.f32 %v6683_v49 }
 0x170   :  { %vm344_vm11 = vmor %vm342_vm10, %vm343_vm9 }
 0x171   :  { %v339_v51 = vsub.f32 1.0, %v338_v50 }
 0x173   :  { %v340_v53 = vmul.f32 %v6683_v49, %v339_v51 }
 0x175   :  { %v341_v55 = vadd.f32 %v6683_v49, %v340_v53  ;;  %v4453_v53 = vld [vmem:[#allocation9 + $0xa0] sm:$0xf] }
 0x177   :  { %v345_v57 = vsel %vm344_vm11, %v6683_v49, %v341_v55  ;;  %v6131_v55 = vld [vmem:[#allocation9 + $0xa4] sm:$0xf] }
 0x178   :  { %v350_v58 = vsel %vm347_vm12, %v349_v56, %v345_v57  ;;  %v4454_v56 = vor.u32 %v6133_v54, %v4453_v53  ;;  %v4455_v57 = vld [vmem:[#allocation9 + $0xb0] sm:$0xf0]  ;;  %v6111_v53 = vld [vmem:[#allocation9 + $0x4] sm:$0xf] }
 0x179   :  { %v351_v59 = vmul.f32 127.0, %v350_v58  ;;  %v4461_v58 = vld [vmem:[#allocation9 + $0xa8] sm:$0xf] }
 0x17a   :  { %662 = vmatpush.bf16.msra.mxu1 %v4454_v56  ;;  %v4381_v56 = vld [vmem:[#allocation9 + $0x8] sm:$0xf] }
 0x17b   :  { %v352_v60 = vmul.f32 %v351_v59, %v331_v36  ;;  %v6136_v36 = vld [vmem:[#allocation9 + $0xcc] sm:$0xf]  ;;  %v6134_v59 = vld [vmem:[#allocation9 + $0xb4] sm:$0xf0] }
 0x17c   :  { %v4482_v40 = vor.u32 %v6136_v36, %v4479_v39  ;;  %v4415_v36 = vld [vmem:[#allocation9 + $0x58] sm:$0xf0]  ;;  %v6117_v39 = vld [vmem:[#allocation9 + $0x2c] sm:$0xf0] }
 0x17d   :  { %v6545_v61 = vcvt.f32.s32 %v352_v60  ;;  %v6543_v63 = vand.u32 2147483647, %v352_v60  ;;  %v6548_v1 = vand.u32 2147483648, %v352_v60 }
 0x17e   :  { %700 = vmatpush.bf16.msrb.mxu0 %v4482_v40  ;;  %v6115_v40 = vld [vmem:[#allocation9 + $0x24] sm:$0xf] }
 0x17f   :  { %v6546_v62 = vcvt.s32.f32 %v6545_v61  ;;  %vm6544_vm13 = vcmp.lt.f32.partialorder %v6543_v63, 8388608.0  ;;  %v4462_v61 = vor.u32 %v6134_v59, %v4461_v58  ;;  %v4463_v63 = vld [vmem:[#allocation9 + $0xb8] sm:$0xf0] }
 0x181   :  { %v6547_v0 = vand.u32 2147483647, %v6546_v62  ;;  %v6132_v62 = vld [vmem:[#allocation9 + $0xac] sm:$0xf]  ;;  %688 = vmatpush.bf16.msra.mxu3 %v4462_v61  ;;  %v4383_v61 = vld [vmem:[#allocation9 + $0x18] sm:$0xf0] }
 0x183   :  { %v6549_v2 = vor.u32 %v6548_v1, %v6547_v0  ;;  %v4466_v0 = vor.u32 %v6132_v62, %v4463_v63  ;;  %v4437_v1 = vld [vmem:[#allocation9 + $0x80] sm:$0xf] }
 0x184   :  { %v4613_v62 = vld [vmem:[#allocation10 + $0xe0] sm:$0xf] }
 0x185   :  { %v6550_v3 = vsel %vm6544_vm13, %v6549_v2, %v352_v60  ;;  %v4458_v60 = vor.u32 %v6131_v55, %v4455_v57  ;;  %v6129_v2 = vld [vmem:[#allocation9 + $0x8c] sm:$0xf0]  ;;  %701 = vmatpush.bf16.msrb.mxu0 %v4466_v0  ;;  %v4375_v55 = vld [vmem:[#allocation9 + $0x10] sm:$0xf0]  ;;  %v6114_v57 = vld [vmem:[#allocation9 + $0x14] sm:$0xf0] }
 0x186   :  { %v354_v4 = vmax.f32 %v6550_v3, -128.0  ;;  %v6127_v3 = vld [vmem:[#allocation9 + $0x84] sm:$0xf]  ;;  %v4378_v58 = vor.u32 %v6111_v53, %v4375_v55  ;;  %v4382_v59 = vor.u32 %v6114_v57, %v4381_v56  ;;  %v6173_v0 = vld [vmem:[#allocation10 + $0xec] sm:$0xf0] }
 0x187   :  { %675 = vmatpush.bf16.msra.mxu2 %v4458_v60  ;;  %v6112_v60 = vld [vmem:[#allocation9 + $0xc] sm:$0xf]  ;;  %v6155_v53 = vld [vmem:[#allocation10 + $0x64] sm:$0xf]  ;;  %v4551_v55 = vld [vmem:[#allocation10 + $0x70] sm:$0xf0] }
 0x188   :  { %v355_v5 = vmin.f32 %v354_v4, 127.0  ;;  %v4438_v4 = vor.u32 %v6129_v2, %v4437_v1  ;;  %v4386_v63 = vor.u32 %v6112_v60, %v4383_v61  ;;  %v6171_v1 = vld [vmem:[#allocation10 + $0xe4] sm:$0xf]  ;;  %v4615_v2 = vld [vmem:[#allocation10 + $0xf0] sm:$0xf0] }
 0x189   :  { %v4557_v56 = vld [vmem:[#allocation10 + $0x68] sm:$0xf]  ;;  %v6158_v57 = vld [vmem:[#allocation10 + $0x74] sm:$0xf0]  ;;  %v6156_v60 = vld [vmem:[#allocation10 + $0x6c] sm:$0xf] }
 0x18a   :  { %v356_v6 = vpack.c.bf16 %v355_v5, %v355_v5  ;;  %v4439_v5 = vld [vmem:[#allocation9 + $0x90] sm:$0xf0]  ;;  %663 = vmatpush.bf16.msra.mxu1 %v4438_v4  ;;  %v4618_v4 = vor.u32 %v6171_v1, %v4615_v2  ;;  %v4559_v61 = vld [vmem:[#allocation10 + $0x78] sm:$0xf0]  ;;  %v6153_v1 = vld [vmem:[#allocation10 + $0x4c] sm:$0xf0] }
 0x18b   :  { %v6151_v2 = vld [vmem:[#allocation10 + $0x44] sm:$0xf] }
 0x18c   :  { %414 = vmatmul.bf16.vlgmr.msra.gmra.mxu0 %v356_v6  ;;  %v4445_v6 = vld [vmem:[#allocation9 + $0x88] sm:$0xf] }
 0x18e   :  { %664 = vmatpush.bf16.msra.mxu1 %v4422_v16  ;;  %v4605_v16 = vld [vmem:[#allocation10 + $0xc8] sm:$0xf] }
 0x209   :  { %v415_v8 = vpop.f32.mrf.mxu0 }
 0x20a   :  { %v419_v9 = vmul.f32 %v415_v8, %v357_v7  ;;  %v6130_v7 = vld [vmem:[#allocation9 + $0x94] sm:$0xf0]  ;;  %v4442_v8 = vor.u32 %v6127_v3, %v4439_v5  ;;  %v4614_v3 = vor.u32 %v6173_v0, %v4613_v62  ;;  %v4621_v5 = vld [vmem:[#allocation10 + $0xe8] sm:$0xf]  ;;  %v4533_v62 = vld [vmem:[#allocation10 + $0x40] sm:$0xf]  ;;  %v4562_v0 = vor.u32 %v6156_v60, %v4559_v61 }
 0x20c   :  { %v421_v10 = vmul.f32 %v419_v9, %v419_v9  ;;  %676 = vmatpush.bf16.msra.mxu2 %v4442_v8 }
 0x20e   :  { %v422_v11 = vsel %vm304_vm4, %v421_v10, 0.0  ;;  %v6128_v10 = vld [vmem:[#allocation9 + $0x8c] sm:$0xf] }
 0x20f   :  { %423 = vadd.xlane.f32.xlu1 %v422_v11  ;;  %v4447_v11 = vld [vmem:[#allocation9 + $0x98] sm:$0xf0] }
 0x211   :  { %v417_v12 = vpop.f32.mrf.mxu0 }
 0x212   :  { %v4450_v12 = vor.u32 %v6128_v10, %v4447_v11  ;;  %v4597_v10 = vld [vmem:[#allocation10 + $0xc0] sm:$0xf]  ;;  %v6169_v11 = vld [vmem:[#allocation10 + $0xcc] sm:$0xf0] }
 0x213   :  { %v4598_v13 = vor.u32 %v6169_v11, %v4597_v10  ;;  %v4543_v10 = vld [vmem:[#allocation10 + $0x58] sm:$0xf0]  ;;  %v4517_v11 = vld [vmem:[#allocation10 + $0x20] sm:$0xf] }
 0x214   :  { %702 = vmatpush.bf16.msrb.mxu0 %v4450_v12 }
 0x218   :  { %703 = vmatpush.bf16.msrb.mxu0 %v4434_v25  ;;  %v6165_v25 = vld [vmem:[#allocation10 + $0xac] sm:$0xf0] }
 0x282   :  { %v424_v20 = vpop.xlane.xlu1 %423 }
 0x283   :  { %v425_v27 = vmul.f32 %v424_v20, %v7260_v23  ;;  %v4426_v20 = vor.u32 %v6123_v15, %v4423_v17  ;;  %v4599_v15 = vld [vmem:[#allocation10 + $0xd0] sm:$0xf0] }
 0x284   :  { %v4602_v17 = vor.u32 %v6167_v14, %v4599_v15  ;;  %v6149_v15 = vld [vmem:[#allocation10 + $0x2c] sm:$0xf0] }
 0x285   :  { %v426_v37 = vadd.f32 1e-08, %v425_v27  ;;  %677 = vmatpush.bf16.msra.mxu2 %v4426_v20  ;;  %v6121_v27 = vld [vmem:[#allocation9 + $0x4c] sm:$0xf0]  ;;  %v4607_v20 = vld [vmem:[#allocation10 + $0xd8] sm:$0xf0] }
 0x286   :  { %v4406_v29 = vor.u32 %v6121_v27, %v4405_v26  ;;  %v4610_v22 = vor.u32 %v6168_v19, %v4607_v20  ;;  %v6163_v26 = vld [vmem:[#allocation10 + $0xa4] sm:$0xf]  ;;  %v4582_v27 = vor.u32 %v6165_v25, %v4581_v24  ;;  %v4525_v19 = vld [vmem:[#allocation10 + $0x28] sm:$0xf]  ;;  %v6150_v20 = vld [vmem:[#allocation10 + $0x34] sm:$0xf0] }
 0x287   :  { %6684 = vrsqrt.f32 %v426_v37  ;;  %vm433_vm15 = vweird.f32 %v426_v37  ;;  %v4586_v32 = vor.u32 %v6163_v26, %v4583_v28  ;;  %v6148_v24 = vld [vmem:[#allocation10 + $0x2c] sm:$0xf]  ;;  %v4527_v25 = vld [vmem:[#allocation10 + $0x38] sm:$0xf0]  ;;  %v4518_v26 = vor.u32 %v6149_v15, %v4517_v11  ;;  %v4501_v28 = vld [vmem:[#allocation10] sm:$0xf] }
 0x288   :  { %665 = vmatpush.bf16.msra.mxu1 %v4406_v29  ;;  %v4589_v29 = vld [vmem:[#allocation10 + $0xa8] sm:$0xf] }
 0x289   :  { %678 = vmatpush.bf16.msra.mxu2 %v4410_v33  ;;  %v4590_v33 = vor.u32 %v6166_v30, %v4589_v29  ;;  %v4526_v30 = vor.u32 %v6150_v20, %v4525_v19 }
 0x28d   :  { %v6685_v41 = vpop.eup %6684 }
 0x28e   :  { %v428_v42 = vmul.f32 %v6685_v41, %v426_v37  ;;  %vm434_vm14 = vweird.f32 %v6685_v41  ;;  %v4418_v37 = vor.u32 %v6120_v35, %v4415_v36  ;;  %v4591_v35 = vld [vmem:[#allocation10 + $0xb8] sm:$0xf0] }
 0x28f   :  { %vm435_vm0 = vmor %vm433_vm15, %vm434_vm14 }
 0x290   :  { %v429_v43 = vmul.f32 %v6685_v41, %v428_v42  ;;  %704 = vmatpush.bf16.msrb.mxu0 %v4418_v37  ;;  %v4391_v42 = vld [vmem:[#allocation9 + $0x30] sm:$0xf0] }
 0x292   :  { %v430_v44 = vmul.f32 0.5, %v429_v43  ;;  %v4397_v43 = vld [vmem:[#allocation9 + $0x28] sm:$0xf] }
 0x294   :  { %v431_v45 = vsub.f32 1.5, %v430_v44  ;;  %v6118_v44 = vld [vmem:[#allocation9 + $0x34] sm:$0xf0] }
 0x296   :  { %v432_v46 = vmul.f32 %v6685_v41, %v431_v45  ;;  %v4394_v45 = vor.u32 %v6115_v40, %v4391_v42  ;;  %v6159_v40 = vld [vmem:[#allocation10 + $0x84] sm:$0xf]  ;;  %v4573_v42 = vld [vmem:[#allocation10 + $0x88] sm:$0xf] }
 0x298   :  { %v436_v48 = vsel %vm435_vm0, %v6685_v41, %v432_v46  ;;  %v4390_v41 = vor.u32 %v6117_v39, %v4389_v38  ;;  %v4398_v46 = vor.u32 %v6118_v44, %v4397_v43  ;;  %679 = vmatpush.bf16.msra.mxu2 %v4394_v45  ;;  %v4565_v38 = vld [vmem:[#allocation10 + $0x80] sm:$0xf]  ;;  %v6161_v39 = vld [vmem:[#allocation10 + $0x8c] sm:$0xf0]  ;;  %v6162_v44 = vld [vmem:[#allocation10 + $0x94] sm:$0xf0] }
 0x299   :  { %v437_v49 = vmul.f32 %v436_v48, %v419_v9  ;;  %v4446_v9 = vor.u32 %v6130_v7, %v4445_v6  ;;  %v4399_v48 = vld [vmem:[#allocation9 + $0x38] sm:$0xf0]  ;;  %v6174_v6 = vld [vmem:[#allocation10 + $0xf4] sm:$0xf0]  ;;  %v6172_v7 = vld [vmem:[#allocation10 + $0xec] sm:$0xf]  ;;  %v4566_v43 = vor.u32 %v6161_v39, %v4565_v38 }
 0x29a   :  { %666 = vmatpush.bf16.msra.mxu1 %v4390_v41  ;;  %v4622_v8 = vor.u32 %v6174_v6, %v4621_v5  ;;  %v4567_v41 = vld [vmem:[#allocation10 + $0x90] sm:$0xf0]  ;;  %v4541_v5 = vld [vmem:[#allocation10 + $0x48] sm:$0xf]  ;;  %v6154_v6 = vld [vmem:[#allocation10 + $0x54] sm:$0xf0] }
 0x29b   :  { %v7266_v50 = vmul.f32 %v6672_v47, %v437_v49  ;;  %689 = vmatpush.bf16.msra.mxu3 %v4446_v9  ;;  %v6116_v47 = vld [vmem:[#allocation9 + $0x2c] sm:$0xf]  ;;  %v4623_v9 = vld [vmem:[#allocation10 + $0xf8] sm:$0xf0]  ;;  %v4570_v45 = vor.u32 %v6159_v40, %v4567_v41  ;;  %v4542_v14 = vor.u32 %v6154_v6, %v4541_v5  ;;  %v6146_v38 = vld [vmem:[#allocation10 + $0x14] sm:$0xf0] }
 0x29c   :  { %v4402_v49 = vor.u32 %v6116_v47, %v4399_v48  ;;  %680 = vmatpush.bf16.msra.mxu2 %v4378_v58  ;;  %v4626_v12 = vor.u32 %v6172_v7, %v4623_v9  ;;  %v6160_v47 = vld [vmem:[#allocation10 + $0x8c] sm:$0xf]  ;;  %v4575_v48 = vld [vmem:[#allocation10 + $0x98] sm:$0xf0]  ;;  %v4554_v58 = vor.u32 %v6155_v53, %v4551_v55 }
 0x29d   :  { %v442_v51 = vand.u32 2147483647, %v7266_v50  ;;  %v6152_v7 = vld [vmem:[#allocation10 + $0x4c] sm:$0xf]  ;;  %v4511_v41 = vld [vmem:[#allocation10 + $0x18] sm:$0xf0] }
 0x29e   :  { %705 = vmatpush.bf16.msrb.mxu0 %v4402_v49  ;;  %v4578_v49 = vor.u32 %v6160_v47, %v4575_v48  ;;  %v6144_v40 = vld [vmem:[#allocation10 + $0xc] sm:$0xf] }
 0x29f   :  { %v443_v52 = vsel %vm304_vm4, %v442_v51, -inf  ;;  %690 = vmatpush.bf16.msra.mxu3 %v4430_v21  ;;  %v4373_v51 = vld [vmem:[#allocation9] sm:$0xf]  ;;  %v4606_v21 = vor.u32 %v6170_v18, %v4605_v16  ;;  %v6147_v16 = vld [vmem:[#allocation10 + $0x24] sm:$0xf]  ;;  %v4514_v47 = vor.u32 %v6144_v40, %v4511_v41 }
 0x2a0   :  { %444 = vmax.xlane.f32.xlu1 %v443_v52  ;;  %v6113_v52 = vld [vmem:[#allocation9 + $0xc] sm:$0xf0]  ;;  %921 = vmatpush.bf16.msrb.mxu2 %v4618_v4  ;;  %v4519_v18 = vld [vmem:[#allocation10 + $0x30] sm:$0xf0] }
 0x2a1   :  { %v4374_v54 = vor.u32 %v6113_v52, %v4373_v51  ;;  %v4549_v51 = vld [vmem:[#allocation10 + $0x60] sm:$0xf]  ;;  %v6157_v52 = vld [vmem:[#allocation10 + $0x6c] sm:$0xf0] }
 0x2a2   :  { %706 = vmatpush.bf16.msrb.mxu0 %v4386_v63 }
 0x2a3   :  { %691 = vmatpush.bf16.msra.mxu3 %v4414_v34  ;;  %667 = vmatpush.bf16.msra.mxu1 %v4374_v54  ;;  %v6164_v34 = vld [vmem:[#allocation10 + $0xac] sm:$0xf]  ;;  %v4550_v54 = vor.u32 %v6157_v52, %v4549_v51 }
 0x2a4   :  { %922 = vmatpush.bf16.msrb.mxu2 %v4602_v17  ;;  %v4594_v37 = vor.u32 %v6164_v34, %v4591_v35  ;;  %v4546_v17 = vor.u32 %v6152_v7, %v4543_v10  ;;  %v4530_v35 = vor.u32 %v6148_v24, %v4527_v25 }
 0x2a6   :  { %947 = vmatpush.bf16.msra.mxu0 %v4626_v12 }
 0x2a7   :  { %692 = vmatpush.bf16.msra.mxu3 %v4398_v46  ;;  %908 = vmatpush.bf16.msrb.mxu1 %v4614_v3  ;;  %v4574_v46 = vor.u32 %v6162_v44, %v4573_v42  ;;  %v4535_v3 = vld [vmem:[#allocation10 + $0x50] sm:$0xf0] }
 0x2a8   :  { %923 = vmatpush.bf16.msrb.mxu2 %v4586_v32  ;;  %v4538_v9 = vor.u32 %v6151_v2, %v4535_v3  ;;  %v6143_v32 = vld [vmem:[#allocation10 + $0x4] sm:$0xf] }
 0x2aa   :  { %948 = vmatpush.bf16.msra.mxu0 %v4610_v22 }
 0x2ab   :  { %693 = vmatpush.bf16.msra.mxu3 %v4382_v59  ;;  %909 = vmatpush.bf16.msrb.mxu1 %v4598_v13  ;;  %v4558_v59 = vor.u32 %v6158_v57, %v4557_v56 }
 0x2ac   :  { %924 = vmatpush.bf16.msrb.mxu2 %v4570_v45 }
 0x2ae   :  { %949 = vmatpush.bf16.msra.mxu0 %v4594_v37  ;;  %v4509_v37 = vld [vmem:[#allocation10 + $0x8] sm:$0xf] }
 0x2af   :  { %934 = vmatpush.bf16.msrb.mxu3 %v4622_v8  ;;  %910 = vmatpush.bf16.msrb.mxu1 %v4582_v27  ;;  %v4534_v8 = vor.u32 %v6153_v1, %v4533_v62  ;;  %v4522_v27 = vor.u32 %v6147_v16, %v4519_v18 }
 0x2b0   :  { %925 = vmatpush.bf16.msrb.mxu2 %v4554_v58 }
 0x2b2   :  { %950 = vmatpush.bf16.msra.mxu0 %v4578_v49 }
 0x2b3   :  { %935 = vmatpush.bf16.msrb.mxu3 %v4606_v21  ;;  %911 = vmatpush.bf16.msrb.mxu1 %v4566_v43 }
 0x2b4   :  { %926 = vmatpush.bf16.msrb.mxu2 %v4538_v9 }
 0x2b6   :  { %951 = vmatpush.bf16.msra.mxu0 %v4562_v0 }
 0x2b7   :  { %936 = vmatpush.bf16.msrb.mxu3 %v4590_v33  ;;  %912 = vmatpush.bf16.msrb.mxu1 %v4550_v54  ;;  %v4503_v33 = vld [vmem:[#allocation10 + $0x10] sm:$0xf0] }
 0x2b8   :  { %927 = vmatpush.bf16.msrb.mxu2 %v4522_v27  ;;  %v4506_v44 = vor.u32 %v6143_v32, %v4503_v33 }
 0x2ba   :  { %952 = vmatpush.bf16.msra.mxu0 %v4546_v17 }
 0x2bb   :  { %937 = vmatpush.bf16.msrb.mxu3 %v4574_v46  ;;  %913 = vmatpush.bf16.msrb.mxu1 %v4534_v8  ;;  %v4510_v46 = vor.u32 %v6146_v38, %v4509_v37 }
 0x2bc   :  { %928 = vmatpush.bf16.msrb.mxu2 %v4506_v44 }
 0x2be   :  { %953 = vmatpush.bf16.msra.mxu0 %v4530_v35 }
 0x2bf   :  { %938 = vmatpush.bf16.msrb.mxu3 %v4558_v59  ;;  %914 = vmatpush.bf16.msrb.mxu1 %v4518_v26 }
 0x2c2   :  { %954 = vmatpush.bf16.msra.mxu0 %v4514_v47 }
 0x2c3   :  { %939 = vmatpush.bf16.msrb.mxu3 %v4542_v14 }
 0x2c7   :  { %940 = vmatpush.bf16.msrb.mxu3 %v4526_v30 }
 0x2cb   :  { %941 = vmatpush.bf16.msrb.mxu3 %v4510_v46 }
 0x313   :  { %v445_v31 = vpop.xlane.xlu1 %444 }
 0x314   :  { %v7270_v36 = vmax.f32 %v445_v31, 1e-05  ;;  %v6145_v31 = vld [vmem:[#allocation10 + $0xc] sm:$0xf0] }
 0x315   :  { %v4502_v43 = vor.u32 %v6145_v31, %v4501_v28 }
 0x316   :  { %6686 = vrcp.f32 %v7270_v36  ;;  %v458_v13 = vand.u32 2147483648, %v7270_v36  ;;  %v456_v22 = vand.u32 2147483647, %v7270_v36  ;;  %vm452_vm2 = vweird.f32 %v7270_v36 }
 0x317   :  { %915 = vmatpush.bf16.msrb.mxu1 %v4502_v43 }
 0x318   :  { %v459_v34 = vor.u32 1.1754944e-38, %v458_v13  ;;  %vm457_vm5 = vcmp.eq.f32.partialorder %v456_v22, 8.507059e+37 }
 0x31c   :  { %v6687_v63 = vpop.eup %6686 }
 0x31d   :  { %v448_v4 = vmul.f32 %v6687_v63, %v7270_v36  ;;  %vm453_vm1 = vweird.f32 %v6687_v63 }
 0x31e   :  { %vm454_vm3 = vmor %vm452_vm2, %vm453_vm1 }
 0x31f   :  { %v449_v12 = vsub.f32 1.0, %v448_v4 }
 0x321   :  { %v450_v21 = vmul.f32 %v6687_v63, %v449_v12 }
 0x323   :  { %v451_v29 = vadd.f32 %v6687_v63, %v450_v21 }
 0x325   :  { %v455_v39 = vsel %vm454_vm3, %v6687_v63, %v451_v29 }
 0x326   :  { %v460_v42 = vsel %vm457_vm5, %v459_v34, %v455_v39 }
 0x327   :  { %v461_v45 = vmul.f32 127.0, %v460_v42 }
 0x329   :  { %v462_v48 = vmul.f32 %v461_v45, %v7266_v50  ;;  %v7280_v50 = vmul.f32 0.007874016, %v7270_v36  ;;  %v1048_v45 = vld [vmem:[#allocation12] sm:$0xf] }
 0x32b   :  { %v6553_v49 = vcvt.f32.s32 %v462_v48  ;;  %v6551_v52 = vand.u32 2147483647, %v462_v48  ;;  %v6556_v54 = vand.u32 2147483648, %v462_v48 }
 0x32d   :  { %v6554_v51 = vcvt.s32.f32 %v6553_v49  ;;  %vm6552_vm6 = vcmp.lt.f32.partialorder %v6551_v52, 8388608.0 }
 0x32f   :  { %v6555_v53 = vand.u32 2147483647, %v6554_v51 }
 0x331   :  { %v6557_v55 = vor.u32 %v6556_v54, %v6555_v53 }
 0x333   :  { %v6558_v56 = vsel %vm6552_vm6, %v6557_v55, %v462_v48 }
 0x334   :  { %v464_v57 = vmax.f32 %v6558_v56, -128.0 }
 0x336   :  { %v465_v58 = vmin.f32 %v464_v57, 127.0 }
 0x338   :  { %v466_v59 = vpack.c.bf16 %v465_v58, %v465_v58 }
 0x33a   :  { %668 = vmatmul.bf16.vlgmr.msra.gmra.mxu1 %v466_v59  ;;  %681 = vmatmul.bf16.vlgmr.msra.gmra.mxu2 %v466_v59 }
 0x33b   :  { %694 = vmatmul.bf16.vlgmr.msra.gmra.mxu3 %v466_v59  ;;  %707 = vmatmul.bf16.vlgmr.msrb.gmra.mxu0 %v466_v59 }
 0x34a   :  { %916 = vmatmul.bf16.vlgmr.msrb.gmra.mxu1 %v466_v59  ;;  %929 = vmatmul.bf16.vlgmr.msrb.gmra.mxu2 %v466_v59 }
 0x34b   :  { %942 = vmatmul.bf16.vlgmr.msrb.gmra.mxu3 %v466_v59  ;;  %955 = vmatmul.bf16.vlgmr.msra.gmra.mxu0 %v466_v59 }
 0x3b7   :  { %v669_v60 = vpop.f32.mrf.mxu1 }
 0x3b8   :  { %v7283_v61 = vmul.f32 %v669_v60, %v7280_v50  ;;  %v708_v62 = vpop.f32.mrf.mxu0 }
 0x3b9   :  { %v7286_v63 = vmul.f32 %v708_v62, %v7280_v50 }
 0x3ba   :  { %v4627_v0 = vmul.f32 -1.442695, %v7283_v61 }
 0x3bb   :  { %v4630_v1 = vmul.f32 -1.442695, %v7286_v63 }
 0x3bc   :  { %6688 = vpow2.f32 %v4627_v0 }
 0x3bd   :  { %6690 = vpow2.f32 %v4630_v1  ;;  %v682_v2 = vpop.f32.mrf.mxu2 }
 0x3be   :  { %v7291_v3 = vmul.f32 %v682_v2, %v7280_v50  ;;  %v695_v36 = vpop.f32.mrf.mxu3 }
 0x3bf   :  { %v7294_v4 = vmul.f32 %v695_v36, %v7280_v50  ;;  %v671_v5 = vpop.f32.mrf.mxu1 }
 0x3c0   :  { %v4628_v6 = vmul.f32 -1.442695, %v7291_v3  ;;  %v710_v7 = vpop.f32.mrf.mxu0 }
 0x3c1   :  { %v4629_v8 = vmul.f32 -1.442695, %v7294_v4 }
 0x3c2   :  { %v6689_v9 = vpop.eup %6688  ;;  %6692 = vpow2.f32 %v4628_v6 }
 0x3c3   :  { %v6691_v10 = vpop.eup %6690  ;;  %v976_v11 = vadd.f32 1.0, %v6689_v9  ;;  %6694 = vpow2.f32 %v4629_v8 }
 0x3c4   :  { %v979_v12 = vadd.f32 1.0, %v6691_v10 }
 0x3c5   :  { %6696 = vrcp.f32 %v976_v11  ;;  %v684_v13 = vpop.f32.mrf.mxu2  ;;  %v989_v28 = vand.u32 2147483647, %v976_v11  ;;  %v991_v30 = vand.u32 2147483648, %v976_v11  ;;  %vm985_vm8 = vweird.f32 %v976_v11 }
 0x3c6   :  { %6698 = vrcp.f32 %v979_v12  ;;  %v697_v14 = vpop.f32.mrf.mxu3  ;;  %v1034_v32 = vand.u32 2147483647, %v979_v12  ;;  %v1036_v35 = vand.u32 2147483648, %v979_v12  ;;  %vm1030_vm11 = vweird.f32 %v979_v12 }
 0x3c7   :  { %v917_v15 = vpop.f32.mrf.mxu1  ;;  %vm990_vm10 = vcmp.eq.f32.partialorder %v989_v28, 8.507059e+37  ;;  %v992_v43 = vor.u32 1.1754944e-38, %v991_v30 }
 0x3c8   :  { %v6693_v16 = vpop.eup %6692  ;;  %v7298_v17 = vpop.f32.mrf.mxu0  ;;  %vm7307_vm13 = vcmp.eq.f32.partialorder %v1034_v32, 8.507059e+37  ;;  %v1037_v48 = vor.u32 1.1754944e-38, %v1036_v35  ;;  %v960_v36 = vmul.f32 %v917_v15, %v7280_v50 }
 0x3c9   :  { %v6695_v18 = vpop.eup %6694  ;;  %v977_v19 = vadd.f32 1.0, %v6693_v16  ;;  %v963_v14 = vmul.f32 %v7298_v17, %v7280_v50 }
 0x3ca   :  { %v7300_v20 = vadd.f32 1.0, %v6695_v18 }
 0x3cb   :  { %v6697_v21 = vpop.eup %6696  ;;  %6700 = vrcp.f32 %v977_v19  ;;  %v1004_v51 = vand.u32 2147483647, %v977_v19  ;;  %v1006_v54 = vand.u32 2147483648, %v977_v19  ;;  %vm1000_vm1 = vweird.f32 %v977_v19 }
 0x3cc   :  { %v6699_v22 = vpop.eup %6698  ;;  %v981_v24 = vmul.f32 %v6697_v21, %v976_v11  ;;  %6702 = vrcp.f32 %v7300_v20  ;;  %vm986_vm7 = vweird.f32 %v6697_v21  ;;  %v1021_v59 = vand.u32 2147483648, %v7300_v20 }
 0x3cd   :  { %v1026_v25 = vmul.f32 %v6699_v22, %v979_v12  ;;  %v7303_v26 = vpop.f32.mrf.mxu2  ;;  %vm1031_vm9 = vweird.f32 %v6699_v22  ;;  %vm987_vm12 = vmor %vm985_vm8, %vm986_vm7  ;;  %v1019_v1 = vand.u32 2147483647, %v7300_v20  ;;  %vm1005_vm3 = vcmp.eq.f32.partialorder %v1004_v51, 8.507059e+37 }
 0x3ce   :  { %v982_v27 = vsub.f32 1.0, %v981_v24  ;;  %v7305_v29 = vpop.f32.mrf.mxu3  ;;  %vm1032_vm14 = vmor %vm1030_vm11, %vm1031_vm9  ;;  %v1007_v5 = vor.u32 1.1754944e-38, %v1006_v54  ;;  %vm1015_vm5 = vweird.f32 %v7300_v20  ;;  %v1022_v8 = vor.u32 1.1754944e-38, %v1021_v59 }
 0x3cf   :  { %v1027_v31 = vsub.f32 1.0, %v1026_v25  ;;  %v919_v33 = vpop.f32.mrf.mxu1  ;;  %vm1020_vm7 = vcmp.eq.f32.partialorder %v1019_v1, 8.507059e+37  ;;  %v961_v15 = vmul.f32 %v7303_v26, %v7280_v50  ;;  %v1153_v51 = vperm.slane %v1048_v45, 3 }
 0x3d0   :  { %v983_v34 = vmul.f32 %v6697_v21, %v982_v27  ;;  %v958_v37 = vpop.f32.mrf.mxu0 }
 0x3d1   :  { %v6701_v38 = vpop.eup %6700  ;;  %v1028_v39 = vmul.f32 %v6699_v22, %v1027_v31 }
 0x3d2   :  { %v6703_v40 = vpop.eup %6702  ;;  %v984_v41 = vadd.f32 %v6697_v21, %v983_v34  ;;  %v996_v42 = vmul.f32 %v6701_v38, %v977_v19  ;;  %vm1001_vm15 = vweird.f32 %v6701_v38 }
 0x3d3   :  { %v1029_v44 = vadd.f32 %v6699_v22, %v1028_v39  ;;  %v1011_v46 = vmul.f32 %v6703_v40, %v7300_v20  ;;  %vm1016_vm0 = vweird.f32 %v6703_v40  ;;  %vm1002_vm2 = vmor %vm1000_vm1, %vm1001_vm15 }
 0x3d4   :  { %v988_v47 = vsel %vm987_vm12, %v6697_v21, %v984_v41  ;;  %v997_v49 = vsub.f32 1.0, %v996_v42  ;;  %vm1017_vm6 = vmor %vm1015_vm5, %vm1016_vm0 }
 0x3d5   :  { %v993_v52 = vsel %vm990_vm10, %v992_v43, %v988_v47  ;;  %v1033_v53 = vsel %vm1032_vm14, %v6699_v22, %v1029_v44  ;;  %v1012_v55 = vsub.f32 1.0, %v1011_v46  ;;  %v932_v56 = vpop.f32.mrf.mxu2  ;;  %v1150_v47 = vperm.slane %v1048_v45, 0 }
 0x3d6   :  { %v1040_v57 = vmul.f32 %v993_v52, %v7283_v61  ;;  %v998_v58 = vmul.f32 %v6701_v38, %v997_v49  ;;  %v945_v60 = vpop.f32.mrf.mxu3  ;;  %v1038_v62 = vsel %vm7307_vm13, %v1037_v48, %v1033_v53  ;;  %v1151_v48 = vperm.slane %v1048_v45, 1 }
 0x3d7   :  { %v1013_v0 = vmul.f32 %v6703_v40, %v1012_v55  ;;  %v1043_v6 = vmul.f32 %v1038_v62, %v7286_v63  ;;  %v962_v63 = vmul.f32 %v7305_v29, %v7280_v50  ;;  %v7120_v50 = vmov 512.0  }
 0x3d8   :  { %v999_v2 = vadd.f32 %v6701_v38, %v998_v58  ;;  %v1044_v9 = vmul.f32 %v1040_v57, %v960_v36  ;;  %6704 = vrcp.f32 %v7120_v50  ;;  %v1152_v49 = vperm.slane %v1048_v45, 2  ;;  %v6193_v50 = vld [vmem:[#allocation13 + $0x90] sm:$0xff] }
 0x3d9   :  { %v1014_v61 = vadd.f32 %v6703_v40, %v1013_v0  ;;  %v1047_v19 = vmul.f32 %v1043_v6, %v963_v14  ;;  %v6181_v14 = vld [vmem:[#allocation13 + $0x30] sm:$0xff] }
 0x3da   :  { %v1003_v7 = vsel %vm1002_vm2, %v6701_v38, %v999_v2  ;;  %v1113_v18 = vmul.f32 %v1044_v9, %v1044_v9 }
 0x3db   :  { %v1008_v10 = vsel %vm1005_vm3, %v1007_v5, %v1003_v7  ;;  %v1018_v11 = vsel %vm1017_vm6, %v6703_v40, %v1014_v61  ;;  %v1116_v25 = vmul.f32 %v1047_v19, %v1047_v19 }
 0x3dc   :  { %v1041_v12 = vmul.f32 %v1008_v10, %v7291_v3  ;;  %v1023_v13 = vsel %vm1020_vm7, %v1022_v8, %v1018_v11  ;;  %v1117_v3 = vsel %vm304_vm4, %v1113_v18, 0.0  ;;  %v6182_v10 = vld [vmem:[#allocation13 + $0x38] sm:$0xff]  ;;  %v6180_v18 = vld [vmem:[#allocation13 + $0x28] sm:$0xff] }
 0x3dd   :  { %v1042_v16 = vmul.f32 %v1023_v13, %v7294_v4  ;;  %v1122_v4 = vsel %vm304_vm4, %v1116_v25, 0.0  ;;  %v6190_v11 = vld [vmem:[#allocation13 + $0x78] sm:$0xff]  ;;  %1404 = vmatpush.bf16.msra.mxu1 %v6182_v10  ;;  %v6195_v25 = vld [vmem:[#allocation13 + $0xa0] sm:$0xff] }
 0x3de   :  { %v1045_v20 = vmul.f32 %v1041_v12, %v961_v15  ;;  %v6705_v29 = vpop.eup %6704  ;;  %v6198_v12 = vld [vmem:[#allocation13 + $0xb8] sm:$0xff]  ;;  %1417 = vmatpush.bf16.msra.mxu2 %v6190_v11  ;;  %v6189_v15 = vld [vmem:[#allocation13 + $0x70] sm:$0xff] }
 0x3df   :  { %v1046_v21 = vmul.f32 %v1042_v16, %v962_v63  ;;  %v1127_v31 = vmul.f32 512.0, %v6705_v29  ;;  %vm1131_vm8 = vweird.f32 %v6705_v29  ;;  %v6206_v13 = vld [vmem:[#allocation13 + $0xf8] sm:$0xff]  ;;  %1430 = vmatpush.bf16.msra.mxu3 %v6198_v12  ;;  %v6197_v16 = vld [vmem:[#allocation13 + $0xb0] sm:$0xff] }
 0x3e0   :  { %v1114_v22 = vmul.f32 %v1045_v20, %v1045_v20  ;;  %1443 = vmatpush.bf16.msrb.mxu0 %v6206_v13  ;;  %v6205_v63 = vld [vmem:[#allocation13 + $0xf0] sm:$0xff] }
 0x3e1   :  { %v1115_v24 = vmul.f32 %v1046_v21, %v1046_v21  ;;  %v1128_v32 = vsub.f32 1.0, %v1127_v31  ;;  %1405 = vmatpush.bf16.msra.mxu1 %v6181_v14  ;;  %v6176_v31 = vld [vmem:[#allocation13 + $0x8] sm:$0xff] }
 0x3e2   :  { %v1118_v27 = vsel %vm304_vm4, %v1114_v22, 0.0  ;;  %1418 = vmatpush.bf16.msra.mxu2 %v6189_v15  ;;  %v6179_v22 = vld [vmem:[#allocation13 + $0x20] sm:$0xff] }
 0x3e3   :  { %v1119_v17 = vadd.f32 %v1118_v27, %v1117_v3  ;;  %v1120_v28 = vsel %vm304_vm4, %v1115_v24, 0.0  ;;  %v1129_v33 = vmul.f32 %v6705_v29, %v1128_v32  ;;  %1431 = vmatpush.bf16.msra.mxu3 %v6197_v16  ;;  %v6187_v24 = vld [vmem:[#allocation13 + $0x60] sm:$0xff]  ;;  %v6178_v27 = vld [vmem:[#allocation13 + $0x18] sm:$0xff]  ;;  %v6184_v32 = vld [vmem:[#allocation13 + $0x48] sm:$0xff] }
 0x3e4   :  { %1444 = vmatpush.bf16.msrb.mxu0 %v6205_v63  ;;  %v6203_v3 = vld [vmem:[#allocation13 + $0xe0] sm:$0xff] }
 0x3e5   :  { %v1121_v26 = vadd.f32 %v1120_v28, %v1119_v17  ;;  %v1130_v34 = vadd.f32 %v6705_v29, %v1129_v33  ;;  %1406 = vmatpush.bf16.msra.mxu1 %v6180_v18  ;;  %v6186_v17 = vld [vmem:[#allocation13 + $0x58] sm:$0xff]  ;;  %v6192_v33 = vld [vmem:[#allocation13 + $0x88] sm:$0xff] }
 0x3e6   :  { %v6194_v28 = vld [vmem:[#allocation13 + $0x98] sm:$0xff] }
 0x3e7   :  { %v1123_v30 = vadd.f32 %v1122_v4, %v1121_v26  ;;  %v1132_v35 = vsel %vm1131_vm8, %v6705_v29, %v1130_v34  ;;  %v6202_v26 = vld [vmem:[#allocation13 + $0xd8] sm:$0xff]  ;;  %v6177_v4 = vld [vmem:[#allocation13 + $0x10] sm:$0xff]  ;;  %v6200_v34 = vld [vmem:[#allocation13 + $0xc8] sm:$0xff] }
 0x3e8   :  { %v6201_v29 = vld [vmem:[#allocation13 + $0xd0] sm:$0xff] }
 0x3e9   :  { %1124 = vadd.xlane.f32.xlu2 %v1123_v30  ;;  %1407 = vmatpush.bf16.msra.mxu1 %v6179_v22  ;;  %v6185_v30 = vld [vmem:[#allocation13 + $0x50] sm:$0xff] }
 0x3ed   :  { %1408 = vmatpush.bf16.msra.mxu1 %v6178_v27 }
 0x3f1   :  { %1409 = vmatpush.bf16.msra.mxu1 %v6177_v4 }
 0x3f5   :  { %1410 = vmatpush.bf16.msra.mxu1 %v6176_v31 }
 0x45c   :  { %v1125_v37 = vpop.xlane.xlu2 %1124 }
 0x45d   :  { %v1133_v38 = vmul.f32 %v1132_v35, %v1125_v37 }
 0x45f   :  { %v1134_v39 = vadd.f32 1e-08, %v1133_v38  ;;  %v6175_v38 = vld [vmem:[#allocation13] sm:$0xff] }
 0x460   :  { %1411 = vmatpush.bf16.msra.mxu1 %v6175_v38 }
 0x461   :  { %6706 = vrsqrt.f32 %v1134_v39  ;;  %vm1141_vm10 = vweird.f32 %v1134_v39 }
 0x467   :  { %v6707_v40 = vpop.eup %6706 }
 0x468   :  { %v1136_v41 = vmul.f32 %v6707_v40, %v1134_v39  ;;  %vm1142_vm9 = vweird.f32 %v6707_v40  ;;  %v6183_v39 = vld [vmem:[#allocation13 + $0x40] sm:$0xff] }
 0x469   :  { %vm1143_vm11 = vmor %vm1141_vm10, %vm1142_vm9 }
 0x46a   :  { %v1137_v42 = vmul.f32 %v6707_v40, %v1136_v41  ;;  %v6199_v41 = vld [vmem:[#allocation13 + $0xc0] sm:$0xff] }
 0x46c   :  { %v1138_v43 = vmul.f32 0.5, %v1137_v42 }
 0x46e   :  { %v1139_v44 = vsub.f32 1.5, %v1138_v43 }
 0x470   :  { %v1140_v46 = vmul.f32 %v6707_v40, %v1139_v44 }
 0x472   :  { %v1144_v52 = vsel %vm1143_vm11, %v6707_v40, %v1140_v46  ;;  %v6191_v40 = vld [vmem:[#allocation13 + $0x80] sm:$0xff] }
 0x473   :  { %v1145_v53 = vmul.f32 %v1144_v52, %v1044_v9  ;;  %v1146_v54 = vmul.f32 %v1144_v52, %v1045_v20  ;;  %v1147_v55 = vmul.f32 %v1144_v52, %v1046_v21  ;;  %v1148_v56 = vmul.f32 %v1144_v52, %v1047_v19  ;;  %v6188_v19 = vld [vmem:[#allocation13 + $0x68] sm:$0xff] }
 0x474   :  { %v6196_v20 = vld [vmem:[#allocation13 + $0xa8] sm:$0xff]  ;;  %1419 = vmatpush.bf16.msra.mxu2 %v6188_v19 }
 0x475   :  { %v7332_v57 = vmul.f32 %v1150_v47, %v1145_v53  ;;  %v7334_v58 = vmul.f32 %v1151_v48, %v1146_v54  ;;  %v7336_v59 = vmul.f32 %v1152_v49, %v1147_v55  ;;  %v7338_v60 = vmul.f32 %v1153_v51, %v1148_v56  ;;  %v6204_v21 = vld [vmem:[#allocation13 + $0xe8] sm:$0xff]  ;;  %1432 = vmatpush.bf16.msra.mxu3 %v6196_v20 }
 0x476   :  { %1445 = vmatpush.bf16.msrb.mxu0 %v6204_v21 }
 0x477   :  { %v1162_v62 = vand.u32 2147483647, %v7332_v57  ;;  %v1163_v0 = vand.u32 2147483647, %v7334_v58  ;;  %v1164_v1 = vand.u32 2147483647, %v7336_v59 }
 0x478   :  { %v1165_v2 = vand.u32 2147483647, %v7338_v60  ;;  %1420 = vmatpush.bf16.msra.mxu2 %v6187_v24 }
 0x479   :  { %v1166_v36 = vsel %vm304_vm4, %v1162_v62, -inf  ;;  %v1167_v5 = vsel %vm304_vm4, %v1163_v0, -inf  ;;  %v1168_v61 = vsel %vm304_vm4, %v1164_v1, -inf  ;;  %1433 = vmatpush.bf16.msra.mxu3 %v6195_v25 }
 0x47a   :  { %v1169_v6 = vsel %vm304_vm4, %v1165_v2, -inf  ;;  %v1170_v7 = vmax.f32 %v1166_v36, %v1167_v5  ;;  %1446 = vmatpush.bf16.msrb.mxu0 %v6203_v3 }
 0x47b   :  { %v1171_v8 = vmax.f32 %v1168_v61, %v1169_v6 }
 0x47c   :  { %1421 = vmatpush.bf16.msra.mxu2 %v6186_v17 }
 0x47d   :  { %v1172_v9 = vmax.f32 %v1170_v7, %v1171_v8  ;;  %1434 = vmatpush.bf16.msra.mxu3 %v6194_v28 }
 0x47e   :  { %1447 = vmatpush.bf16.msrb.mxu0 %v6202_v26 }
 0x47f   :  { %1173 = vmax.xlane.f32.xlu2 %v1172_v9 }
 0x480   :  { %1422 = vmatpush.bf16.msra.mxu2 %v6185_v30 }
 0x481   :  { %1435 = vmatpush.bf16.msra.mxu3 %v6193_v50 }
 0x482   :  { %1448 = vmatpush.bf16.msrb.mxu0 %v6201_v29 }
 0x484   :  { %1423 = vmatpush.bf16.msra.mxu2 %v6184_v32 }
 0x485   :  { %1436 = vmatpush.bf16.msra.mxu3 %v6192_v33 }
 0x486   :  { %1449 = vmatpush.bf16.msrb.mxu0 %v6200_v34 }
 0x488   :  { %1424 = vmatpush.bf16.msra.mxu2 %v6183_v39 }
 0x489   :  { %1437 = vmatpush.bf16.msra.mxu3 %v6191_v40 }
 0x48a   :  { %1450 = vmatpush.bf16.msrb.mxu0 %v6199_v41 }
 0x4f2   :  { %v1174_v35 = vpop.xlane.xlu2 %1173 }
 0x4f3   :  { %v7348_v37 = vmax.f32 %v1174_v35, 1e-05 }
 0x4f5   :  { %6708 = vrcp.f32 %v7348_v37  ;;  %v1187_v45 = vand.u32 2147483648, %v7348_v37  ;;  %v1185_v47 = vand.u32 2147483647, %v7348_v37  ;;  %vm1181_vm13 = vweird.f32 %v7348_v37 }
 0x4f7   :  { %v1188_v49 = vor.u32 1.1754944e-38, %v1187_v45  ;;  %vm1186_vm15 = vcmp.eq.f32.partialorder %v1185_v47, 8.507059e+37 }
 0x4fb   :  { %v6709_v42 = vpop.eup %6708 }
 0x4fc   :  { %v1177_v43 = vmul.f32 %v6709_v42, %v7348_v37  ;;  %vm1182_vm12 = vweird.f32 %v6709_v42 }
 0x4fd   :  { %vm1183_vm14 = vmor %vm1181_vm13, %vm1182_vm12 }
 0x4fe   :  { %v1178_v44 = vsub.f32 1.0, %v1177_v43 }
 0x500   :  { %v1179_v46 = vmul.f32 %v6709_v42, %v1178_v44  ;;  %v1211_v44 = vmul.f32 0.007874016, %v7348_v37 }
 0x502   :  { %v1180_v48 = vadd.f32 %v6709_v42, %v1179_v46 }
 0x504   :  { %v1184_v51 = vsel %vm1183_vm14, %v6709_v42, %v1180_v48 }
 0x505   :  { %v1189_v52 = vsel %vm1186_vm15, %v1188_v49, %v1184_v51  ;;  %v4929_v51 = vld [vmem:[#allocation16 + $0x150] sm:$0xf] }
 0x506   :  { %v1190_v53 = vmul.f32 127.0, %v1189_v52  ;;  %v6252_v52 = vld [vmem:[#allocation16 + $0x164] sm:$0xf0] }
 0x508   :  { %v1191_v54 = vmul.f32 %v1190_v53, %v7332_v57  ;;  %v1192_v55 = vmul.f32 %v1190_v53, %v7334_v58  ;;  %v1193_v56 = vmul.f32 %v1190_v53, %v7336_v59  ;;  %v1194_v0 = vmul.f32 %v1190_v53, %v7338_v60  ;;  %v6249_v53 = vld [vmem:[#allocation16 + $0x154] sm:$0xf] }
 0x50a   :  { %v6561_v62 = vcvt.f32.s32 %v1191_v54  ;;  %v6569_v1 = vcvt.f32.s32 %v1192_v55  ;;  %v6577_v2 = vcvt.f32.s32 %v1193_v56  ;;  %v6559_v36 = vand.u32 2147483647, %v1191_v54 }
 0x50b   :  { %v6567_v61 = vand.u32 2147483647, %v1192_v55  ;;  %v6564_v9 = vand.u32 2147483648, %v1191_v54  ;;  %v6575_v10 = vand.u32 2147483647, %v1193_v56  ;;  %v6585_v11 = vcvt.f32.s32 %v1194_v0 }
 0x50c   :  { %v6562_v5 = vcvt.s32.f32 %v6561_v62  ;;  %v6570_v6 = vcvt.s32.f32 %v6569_v1  ;;  %v6578_v7 = vcvt.s32.f32 %v6577_v2  ;;  %v6572_v57 = vand.u32 2147483648, %v1192_v55  ;;  %v6246_v62 = vld [vmem:[#allocation16 + $0x134] sm:$0xf0]  ;;  %v6243_v2 = vld [vmem:[#allocation16 + $0x124] sm:$0xf] }
 0x50d   :  { %v6580_v58 = vand.u32 2147483648, %v1193_v56  ;;  %vm6560_vm0 = vcmp.lt.f32.partialorder %v6559_v36, 8388608.0  ;;  %v6586_v14 = vcvt.s32.f32 %v6585_v11  ;;  %vm6568_vm1 = vcmp.lt.f32.partialorder %v6567_v61, 8388608.0  ;;  %v4907_v36 = vld [vmem:[#allocation16 + $0x138] sm:$0xf0] }
 0x50e   :  { %v6563_v8 = vand.u32 2147483647, %v6562_v5  ;;  %v6571_v12 = vand.u32 2147483647, %v6570_v6  ;;  %v6579_v13 = vand.u32 2147483647, %v6578_v7  ;;  %v4910_v61 = vor.u32 %v6243_v2, %v4907_v36 }
 0x50f   :  { %v6583_v16 = vand.u32 2147483647, %v1194_v0  ;;  %vm6576_vm2 = vcmp.lt.f32.partialorder %v6575_v10, 8388608.0  ;;  %v6587_v18 = vand.u32 2147483647, %v6586_v14  ;;  %v6588_v19 = vand.u32 2147483648, %v1194_v0 }
 0x510   :  { %v6565_v59 = vor.u32 %v6564_v9, %v6563_v8  ;;  %v6573_v60 = vor.u32 %v6572_v57, %v6571_v12  ;;  %v6581_v15 = vor.u32 %v6580_v58, %v6579_v13  ;;  %v6673_v57 = vld [vmem:[#allocation15] ss:$0 sm:$0xff]  ;;  %v4787_v2 = vld [vmem:[#allocation16 + $0x48] sm:$0xf0]  ;;  %v4865_v36 = vld [vmem:[#allocation16 + $0xc8] sm:$0xf] }
 0x511   :  { %v6589_v3 = vor.u32 %v6588_v19, %v6587_v18  ;;  %vm6584_vm3 = vcmp.lt.f32.partialorder %v6583_v16, 8388608.0  ;;  %v6237_v16 = vld [vmem:[#allocation16 + $0xf4] sm:$0xf]  ;;  %v4883_v18 = vld [vmem:[#allocation16 + $0x108] sm:$0xf0] }
 0x512   :  { %v6566_v63 = vsel %vm6560_vm0, %v6565_v59, %v1191_v54  ;;  %v6574_v21 = vsel %vm6568_vm1, %v6573_v60, %v1192_v55  ;;  %v6582_v22 = vsel %vm6576_vm2, %v6581_v15, %v1193_v56  ;;  %v4930_v54 = vor.u32 %v6252_v52, %v4929_v51  ;;  %v4931_v55 = vld [vmem:[#allocation16 + $0x168] sm:$0xf0]  ;;  %v4905_v56 = vld [vmem:[#allocation16 + $0x120] sm:$0xf]  ;;  %v4881_v60 = vld [vmem:[#allocation16 + $0xf0] sm:$0xf] }
 0x513   :  { %v1199_v20 = vmax.f32 %v6566_v63, -128.0  ;;  %v1200_v24 = vmax.f32 %v6574_v21, -128.0  ;;  %v1201_v25 = vmax.f32 %v6582_v22, -128.0  ;;  %v6590_v26 = vsel %vm6584_vm3, %v6589_v3, %v1194_v0  ;;  %v6240_v15 = vld [vmem:[#allocation16 + $0x104] sm:$0xf0] }
 0x514   :  { %v1202_v30 = vmax.f32 %v6590_v26, -128.0  ;;  %v4934_v1 = vor.u32 %v6249_v53, %v4931_v55  ;;  %1793 = vmatpush.bf16.msrb.mxu1 %v4930_v54  ;;  %v4906_v5 = vor.u32 %v6246_v62, %v4905_v56  ;;  %v4882_v63 = vor.u32 %v6240_v15, %v4881_v60  ;;  %v6234_v21 = vld [vmem:[#allocation16 + $0xd4] sm:$0xf0]  ;;  %v6231_v22 = vld [vmem:[#allocation16 + $0xc4] sm:$0xf] }
 0x515   :  { %v1203_v27 = vmin.f32 %v1199_v20, 127.0  ;;  %v1204_v17 = vmin.f32 %v1200_v24, 127.0  ;;  %v1205_v28 = vmin.f32 %v1201_v25, 127.0  ;;  %v4886_v19 = vor.u32 %v6237_v16, %v4883_v18  ;;  %v4857_v20 = vld [vmem:[#allocation16 + $0xc0] sm:$0xf] }
 0x516   :  { %v1206_v31 = vmin.f32 %v1202_v30, 127.0  ;;  %1806 = vmatpush.bf16.msrb.mxu2 %v4934_v1  ;;  %v4858_v24 = vor.u32 %v6234_v21, %v4857_v20  ;;  %v4859_v25 = vld [vmem:[#allocation16 + $0xd8] sm:$0xf0]  ;;  %v4937_v3 = vld [vmem:[#allocation16 + $0x158] sm:$0xf] }
 0x517   :  { %v1207_v4 = vpack.c.bf16 %v1203_v27, %v1203_v27  ;;  %v1208_v50 = vpack.c.bf16 %v1204_v17, %v1204_v17  ;;  %v1209_v29 = vpack.c.bf16 %v1205_v28, %v1205_v28  ;;  %v6253_v27 = vld [vmem:[#allocation16 + $0x16c] sm:$0xf0]  ;;  %v4862_v17 = vor.u32 %v6231_v22, %v4859_v25  ;;  %v6250_v26 = vld [vmem:[#allocation16 + $0x15c] sm:$0xf]  ;;  %v4891_v54 = vld [vmem:[#allocation16 + $0x110] sm:$0xf0] }
 0x518   :  { %v1210_v32 = vpack.c.bf16 %v1206_v31, %v1206_v31  ;;  %1794 = vmatpush.bf16.msrb.mxu1 %v4906_v5  ;;  %v4938_v28 = vor.u32 %v6253_v27, %v4937_v3  ;;  %v6225_v31 = vld [vmem:[#allocation16 + $0x94] sm:$0xf]  ;;  %v6238_v53 = vld [vmem:[#allocation16 + $0xfc] sm:$0xf]  ;;  %v4785_v56 = vld [vmem:[#allocation16 + $0x30] sm:$0xf] }
 0x519   :  { %1412 = vmatmul.bf16.vlgmr.msra.gmra.mxu1 %v1207_v4  ;;  %1425 = vmatmul.bf16.vlgmr.msra.gmra.mxu2 %v1208_v50  ;;  %v4939_v4 = vld [vmem:[#allocation16 + $0x170] sm:$0xf0]  ;;  %v4833_v50 = vld [vmem:[#allocation16 + $0x90] sm:$0xf]  ;;  %v4894_v55 = vor.u32 %v6238_v53, %v4891_v54  ;;  %v6216_v62 = vld [vmem:[#allocation16 + $0x44] sm:$0xf0] }
 0x51a   :  { %1438 = vmatmul.bf16.vlgmr.msra.gmra.mxu3 %v1209_v29  ;;  %1451 = vmatmul.bf16.vlgmr.msrb.gmra.mxu0 %v1210_v32  ;;  %v4942_v30 = vor.u32 %v6250_v26, %v4939_v4  ;;  %v6228_v29 = vld [vmem:[#allocation16 + $0xa4] sm:$0xf0]  ;;  %v4786_v1 = vor.u32 %v6216_v62, %v4785_v56  ;;  %v6226_v60 = vld [vmem:[#allocation16 + $0x9c] sm:$0xf]  ;;  %v4843_v15 = vld [vmem:[#allocation16 + $0xb0] sm:$0xf0] }
 0x51b   :  { %1807 = vmatpush.bf16.msrb.mxu2 %v4910_v61  ;;  %1819 = vmatpush.bf16.msrb.mxu3 %v4938_v28  ;;  %v4834_v32 = vor.u32 %v6228_v29, %v4833_v50  ;;  %v4945_v16 = vld [vmem:[#allocation16 + $0x160] sm:$0xf]  ;;  %v6254_v18 = vld [vmem:[#allocation16 + $0x174] sm:$0xf0]  ;;  %v4947_v20 = vld [vmem:[#allocation16 + $0x178] sm:$0xf0] }
 0x51c   :  { %1795 = vmatpush.bf16.msrb.mxu1 %v4882_v63  ;;  %1832 = vmatpush.bf16.msra.mxu0 %v4942_v30  ;;  %v4846_v63 = vor.u32 %v6226_v60, %v4843_v15  ;;  %v4946_v21 = vor.u32 %v6254_v18, %v4945_v16  ;;  %v6223_v25 = vld [vmem:[#allocation16 + $0x7c] sm:$0xf0]  ;;  %v6220_v3 = vld [vmem:[#allocation16 + $0x6c] sm:$0xf]  ;;  %v4921_v28 = vld [vmem:[#allocation16 + $0x130] sm:$0xf] }
 0x51d   :  { %v6248_v26 = vld [vmem:[#allocation16 + $0x144] sm:$0xf0]  ;;  %v6245_v50 = vld [vmem:[#allocation16 + $0x134] sm:$0xf]  ;;  %v4923_v29 = vld [vmem:[#allocation16 + $0x148] sm:$0xf0] }
 0x51e   :  { %v4922_v30 = vor.u32 %v6248_v26, %v4921_v28  ;;  %v4873_v53 = vld [vmem:[#allocation16 + $0xd0] sm:$0xf]  ;;  %v6236_v54 = vld [vmem:[#allocation16 + $0xe4] sm:$0xf0]  ;;  %v4875_v56 = vld [vmem:[#allocation16 + $0xe8] sm:$0xf0] }
 0x51f   :  { %1808 = vmatpush.bf16.msrb.mxu2 %v4886_v19  ;;  %v6251_v19 = vld [vmem:[#allocation16 + $0x164] sm:$0xf]  ;;  %v4801_v60 = vld [vmem:[#allocation16 + $0x40] sm:$0xf]  ;;  %v6218_v15 = vld [vmem:[#allocation16 + $0x54] sm:$0xf0] }
 0x520   :  { %1796 = vmatpush.bf16.msrb.mxu1 %v4858_v24  ;;  %v4950_v22 = vor.u32 %v6251_v19, %v4947_v20  ;;  %v4817_v24 = vld [vmem:[#allocation16 + $0x68] sm:$0xf]  ;;  %v6215_v18 = vld [vmem:[#allocation16 + $0x44] sm:$0xf]  ;;  %v4803_v19 = vld [vmem:[#allocation16 + $0x58] sm:$0xf0] }
 0x521   :  { %v4818_v27 = vor.u32 %v6223_v25, %v4817_v24  ;;  %v4806_v24 = vor.u32 %v6215_v18, %v4803_v19  ;;  %v4777_v25 = vld [vmem:[#allocation16 + $0x10] sm:$0xf]  ;;  %v4779_v28 = vld [vmem:[#allocation16 + $0x28] sm:$0xf0] }
 0x523   :  { %1809 = vmatpush.bf16.msrb.mxu2 %v4862_v17  ;;  %v4819_v17 = vld [vmem:[#allocation16 + $0x80] sm:$0xf0] }
 0x524   :  { %1797 = vmatpush.bf16.msrb.mxu1 %v4834_v32  ;;  %v4822_v4 = vor.u32 %v6220_v3, %v4819_v17  ;;  %v4926_v32 = vor.u32 %v6245_v50, %v4923_v29  ;;  %v6212_v3 = vld [vmem:[#allocation16 + $0x24] sm:$0xf0]  ;;  %v6209_v17 = vld [vmem:[#allocation16 + $0x14] sm:$0xf] }
 0x525   :  { %v4782_v50 = vor.u32 %v6209_v17, %v4779_v28 }
 0x596   :  { %v1413_v33 = vpop.f32.mrf.mxu1 }
 0x597   :  { %v1452_v34 = vpop.f32.mrf.mxu0 }
 0x59c   :  { %v1426_v35 = vpop.f32.mrf.mxu2 }
 0x59d   :  { %v1439_v38 = vpop.f32.mrf.mxu3  ;;  %v1427_v39 = vadd.f32 %v1426_v35, %v1413_v33  ;;  %v4835_v33 = vld [vmem:[#allocation16 + $0xa8] sm:$0xf0]  ;;  %v6247_v35 = vld [vmem:[#allocation16 + $0x13c] sm:$0xf0] }
 0x59e   :  { %v1415_v40 = vpop.f32.mrf.mxu1 }
 0x59f   :  { %v1440_v41 = vadd.f32 %v1439_v38, %v1427_v39  ;;  %v1454_v43 = vpop.f32.mrf.mxu0  ;;  %v4838_v38 = vor.u32 %v6225_v31, %v4835_v33  ;;  %v6244_v40 = vld [vmem:[#allocation16 + $0x12c] sm:$0xf]  ;;  %v4793_v31 = vld [vmem:[#allocation16 + $0x38] sm:$0xf]  ;;  %v6217_v33 = vld [vmem:[#allocation16 + $0x4c] sm:$0xf0] }
 0x5a0   :  { %v4809_v43 = vld [vmem:[#allocation16 + $0x60] sm:$0xf] }
 0x5a1   :  { %v1453_v42 = vadd.f32 %v1452_v34, %v1440_v41  ;;  %v4913_v34 = vld [vmem:[#allocation16 + $0x128] sm:$0xf]  ;;  %v4915_v41 = vld [vmem:[#allocation16 + $0x140] sm:$0xf0]  ;;  %1810 = vmatpush.bf16.msrb.mxu2 %v4838_v38  ;;  %v4897_v38 = vld [vmem:[#allocation16 + $0x100] sm:$0xf] }
 0x5a2   :  { %v4914_v39 = vor.u32 %v6247_v35, %v4913_v34  ;;  %v6214_v34 = vld [vmem:[#allocation16 + $0x3c] sm:$0xf]  ;;  %v4795_v35 = vld [vmem:[#allocation16 + $0x50] sm:$0xf0] }
 0x5a3   :  { %v1456_v45 = vmul.f32 %v1453_v42, %v1211_v44  ;;  %v4918_v42 = vor.u32 %v6244_v40, %v4915_v41  ;;  %v6222_v44 = vld [vmem:[#allocation16 + $0x74] sm:$0xf0]  ;;  %v6239_v40 = vld [vmem:[#allocation16 + $0x104] sm:$0xf]  ;;  %v4794_v41 = vor.u32 %v6217_v33, %v4793_v31 }
 0x5a4   :  { %v1428_v46 = vpop.f32.mrf.mxu2  ;;  %1820 = vmatpush.bf16.msrb.mxu3 %v4914_v39  ;;  %v6242_v39 = vld [vmem:[#allocation16 + $0x114] sm:$0xf0] }
 0x5a5   :  { %v1441_v47 = vpop.f32.mrf.mxu3  ;;  %v1506_v48 = vmul.f32 %v1456_v45, %v1456_v45  ;;  %1833 = vmatpush.bf16.msra.mxu0 %v4918_v42  ;;  %v4810_v46 = vor.u32 %v6222_v44, %v4809_v43  ;;  %v4899_v42 = vld [vmem:[#allocation16 + $0x118] sm:$0xf0]  ;;  %v4769_v43 = vld [vmem:[#allocation16 + $0x8] sm:$0xf] }
 0x5a6   :  { %v4811_v47 = vld [vmem:[#allocation16 + $0x78] sm:$0xf0] }
 0x5a7   :  { %v1507_v49 = vsel %vm304_vm4, %v1506_v48, 0.0  ;;  %v4889_v48 = vld [vmem:[#allocation16 + $0xf8] sm:$0xf]  ;;  %1798 = vmatpush.bf16.msrb.mxu1 %v4810_v46  ;;  %v4898_v46 = vor.u32 %v6242_v39, %v4897_v38 }
 0x5a8   :  { %1508 = vadd.xlane.f32.xlu0 %v1507_v49  ;;  %v6241_v49 = vld [vmem:[#allocation16 + $0x10c] sm:$0xf0] }
 0x5a9   :  { %v4890_v52 = vor.u32 %v6241_v49, %v4889_v48  ;;  %1834 = vmatpush.bf16.msra.mxu0 %v4894_v55  ;;  %v6208_v48 = vld [vmem:[#allocation16 + $0xc] sm:$0xf]  ;;  %v4771_v49 = vld [vmem:[#allocation16 + $0x20] sm:$0xf0]  ;;  %v6233_v55 = vld [vmem:[#allocation16 + $0xd4] sm:$0xf] }
 0x5ab   :  { %1821 = vmatpush.bf16.msrb.mxu3 %v4890_v52  ;;  %1799 = vmatpush.bf16.msrb.mxu1 %v4786_v1  ;;  %v4902_v52 = vor.u32 %v6239_v40, %v4899_v42  ;;  %v4874_v1 = vor.u32 %v6236_v54, %v4873_v53 }
 0x61b   :  { %v1509_v0 = vpop.xlane.xlu0 %1508 }
 0x61c   :  { %v1510_v37 = vmul.f32 %v1509_v0, %v7260_v23  ;;  %v6213_v0 = vld [vmem:[#allocation16 + $0x34] sm:$0xf] }
 0x61d   :  { %v4790_v5 = vor.u32 %v6213_v0, %v4787_v2  ;;  %v4774_v0 = vor.u32 %v6208_v48, %v4771_v49  ;;  %v4878_v2 = vor.u32 %v6233_v55, %v4875_v56 }
 0x61e   :  { %v1511_v6 = vadd.f32 1e-08, %v1510_v37  ;;  %v6235_v37 = vld [vmem:[#allocation16 + $0xdc] sm:$0xf0] }
 0x61f   :  { %v4866_v61 = vor.u32 %v6235_v37, %v4865_v36  ;;  %v4849_v36 = vld [vmem:[#allocation16 + $0xa0] sm:$0xf]  ;;  %v6230_v37 = vld [vmem:[#allocation16 + $0xb4] sm:$0xf0] }
 0x620   :  { %6710 = vrsqrt.f32 %v1511_v6  ;;  %vm1518_vm6 = vweird.f32 %v1511_v6 }
 0x621   :  { %1822 = vmatpush.bf16.msrb.mxu3 %v4866_v61 }
 0x626   :  { %v6711_v7 = vpop.eup %6710 }
 0x627   :  { %v1513_v8 = vmul.f32 %v6711_v7, %v1511_v6  ;;  %vm1519_vm5 = vweird.f32 %v6711_v7  ;;  %v6232_v6 = vld [vmem:[#allocation16 + $0xcc] sm:$0xf] }
 0x628   :  { %vm1520_vm7 = vmor %vm1518_vm6, %vm1519_vm5 }
 0x629   :  { %v1514_v9 = vmul.f32 %v6711_v7, %v1513_v8 }
 0x62b   :  { %v1515_v10 = vmul.f32 0.5, %v1514_v9  ;;  %v4761_v9 = vld [vmem:[#allocation16] sm:$0xf] }
 0x62d   :  { %v1516_v11 = vsub.f32 1.5, %v1515_v10  ;;  %v6210_v10 = vld [vmem:[#allocation16 + $0x14] sm:$0xf0] }
 0x62f   :  { %v1517_v12 = vmul.f32 %v6711_v7, %v1516_v11  ;;  %v6207_v11 = vld [vmem:[#allocation16 + $0x4] sm:$0xf] }
 0x631   :  { %v1521_v13 = vsel %vm1520_vm7, %v6711_v7, %v1517_v12  ;;  %v4867_v7 = vld [vmem:[#allocation16 + $0xe0] sm:$0xf0]  ;;  %v4762_v12 = vor.u32 %v6210_v10, %v4761_v9  ;;  %v6224_v9 = vld [vmem:[#allocation16 + $0x84] sm:$0xf0] }
 0x632   :  { %v1522_v23 = vmul.f32 %v1521_v13, %v1456_v45  ;;  %v6219_v45 = vld [vmem:[#allocation16 + $0x64] sm:$0xf]  ;;  %v4870_v8 = vor.u32 %v6232_v6, %v4867_v7  ;;  %v4841_v13 = vld [vmem:[#allocation16 + $0x98] sm:$0xf]  ;;  %v4850_v6 = vor.u32 %v6230_v37, %v4849_v36  ;;  %v4851_v7 = vld [vmem:[#allocation16 + $0xb8] sm:$0xf0] }
 0x633   :  { %v4814_v51 = vor.u32 %v6219_v45, %v4811_v47  ;;  %1800 = vmatpush.bf16.msrb.mxu1 %v4762_v12  ;;  %v4798_v45 = vor.u32 %v6214_v34, %v4795_v35  ;;  %v6211_v47 = vld [vmem:[#allocation16 + $0x1c] sm:$0xf0]  ;;  %v6221_v12 = vld [vmem:[#allocation16 + $0x74] sm:$0xf] }
 0x634   :  { %v7362_v58 = vmul.f32 %v6673_v57, %v1522_v23  ;;  %v4763_v57 = vld [vmem:[#allocation16 + $0x18] sm:$0xf0]  ;;  %v6229_v23 = vld [vmem:[#allocation16 + $0xac] sm:$0xf0]  ;;  %1835 = vmatpush.bf16.msra.mxu0 %v4870_v8  ;;  %v4770_v62 = vor.u32 %v6211_v47, %v4769_v43 }
 0x635   :  { %1811 = vmatpush.bf16.msrb.mxu2 %v4814_v51  ;;  %v4825_v8 = vld [vmem:[#allocation16 + $0x70] sm:$0xf] }
 0x636   :  { %v1527_v59 = vand.u32 2147483647, %v7362_v58 }
 0x637   :  { %1845 = vmatpush.bf16.msra.mxu1 %v4946_v21  ;;  %v4802_v21 = vor.u32 %v6218_v15, %v4801_v60 }
 0x638   :  { %v1528_v14 = vsel %vm304_vm4, %v1527_v59, -inf  ;;  %v4766_v59 = vor.u32 %v6207_v11, %v4763_v57  ;;  %1836 = vmatpush.bf16.msra.mxu0 %v4846_v63  ;;  %v4827_v57 = vld [vmem:[#allocation16 + $0x88] sm:$0xf0] }
 0x639   :  { %1529 = vmax.xlane.f32.xlu1 %v1528_v14  ;;  %1812 = vmatpush.bf16.msrb.mxu2 %v4790_v5  ;;  %v4842_v14 = vor.u32 %v6229_v23, %v4841_v13  ;;  %v6227_v5 = vld [vmem:[#allocation16 + $0xa4] sm:$0xf]  ;;  %v4826_v23 = vor.u32 %v6224_v9, %v4825_v8 }
 0x63a   :  { %v4854_v11 = vor.u32 %v6227_v5, %v4851_v7 }
 0x63b   :  { %1823 = vmatpush.bf16.msrb.mxu3 %v4842_v14  ;;  %1846 = vmatpush.bf16.msra.mxu1 %v4922_v30  ;;  %v4830_v14 = vor.u32 %v6221_v12, %v4827_v57  ;;  %v4778_v30 = vor.u32 %v6212_v3, %v4777_v25 }
 0x63c   :  { %1837 = vmatpush.bf16.msra.mxu0 %v4822_v4 }
 0x63d   :  { %1813 = vmatpush.bf16.msrb.mxu2 %v4766_v59 }
 0x63f   :  { %1824 = vmatpush.bf16.msrb.mxu3 %v4818_v27  ;;  %1847 = vmatpush.bf16.msra.mxu1 %v4898_v46 }
 0x640   :  { %1838 = vmatpush.bf16.msra.mxu0 %v4798_v45 }
 0x641   :  { %1858 = vmatpush.bf16.msra.mxu2 %v4950_v22 }
 0x643   :  { %1825 = vmatpush.bf16.msrb.mxu3 %v4794_v41  ;;  %1848 = vmatpush.bf16.msra.mxu1 %v4874_v1 }
 0x644   :  { %1839 = vmatpush.bf16.msra.mxu0 %v4774_v0 }
 0x645   :  { %1859 = vmatpush.bf16.msra.mxu2 %v4926_v32 }
 0x647   :  { %1826 = vmatpush.bf16.msrb.mxu3 %v4770_v62  ;;  %1849 = vmatpush.bf16.msra.mxu1 %v4850_v6 }
 0x649   :  { %1860 = vmatpush.bf16.msra.mxu2 %v4902_v52 }
 0x64b   :  { %1850 = vmatpush.bf16.msra.mxu1 %v4826_v23 }
 0x64d   :  { %1861 = vmatpush.bf16.msra.mxu2 %v4878_v2 }
 0x64f   :  { %1851 = vmatpush.bf16.msra.mxu1 %v4802_v21 }
 0x651   :  { %1862 = vmatpush.bf16.msra.mxu2 %v4854_v11 }
 0x653   :  { %1852 = vmatpush.bf16.msra.mxu1 %v4778_v30 }
 0x655   :  { %1863 = vmatpush.bf16.msra.mxu2 %v4830_v14 }
 0x659   :  { %1864 = vmatpush.bf16.msra.mxu2 %v4806_v24 }
 0x65d   :  { %1865 = vmatpush.bf16.msra.mxu2 %v4782_v50 }
 0x6ac   :  { %v1530_v44 = vpop.xlane.xlu1 %1529 }
 0x6ad   :  { %v7366_v51 = vmax.f32 %v1530_v44, 1e-05  ;;  %v1877_v44 = vld [vmem:[#allocation18] sm:$0x3f] }
 0x6ae   :  { %v1879_v47 = vperm.slane %v1877_v44, 0  ;;  %v1880_v48 = vperm.slane %v1877_v44, 1  ;;  %v1881_v0 = vperm.slane %v1877_v44, 2  ;;  %v1882_v37 = vperm.slane %v1877_v44, 3 }
 0x6af   :  { %6712 = vrcp.f32 %v7366_v51  ;;  %v1543_v59 = vand.u32 2147483648, %v7366_v51  ;;  %v1541_v63 = vand.u32 2147483647, %v7366_v51  ;;  %vm1537_vm9 = vweird.f32 %v7366_v51 }
 0x6b0   :  { %v1552_v45 = vmul.f32 0.007874016, %v7366_v51  ;;  %v1883_v8 = vperm.slane %v1877_v44, 4  ;;  %v1884_v15 = vperm.slane %v1877_v44, 5 }
 0x6b1   :  { %v1544_v22 = vor.u32 1.1754944e-38, %v1543_v59  ;;  %vm1542_vm11 = vcmp.eq.f32.partialorder %v1541_v63, 8.507059e+37 }
 0x6b5   :  { %v6713_v61 = vpop.eup %6712 }
 0x6b6   :  { %v1533_v10 = vmul.f32 %v6713_v61, %v7366_v51  ;;  %vm1538_vm8 = vweird.f32 %v6713_v61 }
 0x6b7   :  { %vm1539_vm10 = vmor %vm1537_vm9, %vm1538_vm8 }
 0x6b8   :  { %v1534_v13 = vsub.f32 1.0, %v1533_v10 }
 0x6ba   :  { %v1535_v16 = vmul.f32 %v6713_v61, %v1534_v13 }
 0x6bc   :  { %v1536_v20 = vadd.f32 %v6713_v61, %v1535_v16 }
 0x6be   :  { %v1540_v27 = vsel %vm1539_vm10, %v6713_v61, %v1536_v20 }
 0x6bf   :  { %v1545_v26 = vsel %vm1542_vm11, %v1544_v22, %v1540_v27 }
 0x6c0   :  { %v1546_v4 = vmul.f32 127.0, %v1545_v26  ;;  %v7121_v26 = vmov 768.0  }
 0x6c1   :  { %6714 = vrcp.f32 %v7121_v26 }
 0x6c2   :  { %v1547_v29 = vmul.f32 %v1546_v4, %v7362_v58 }
 0x6c4   :  { %v6593_v31 = vcvt.f32.s32 %v1547_v29  ;;  %v6591_v33 = vand.u32 2147483647, %v1547_v29  ;;  %v6596_v35 = vand.u32 2147483648, %v1547_v29 }
 0x6c6   :  { %v6594_v32 = vcvt.s32.f32 %v6593_v31  ;;  %vm6592_vm12 = vcmp.lt.f32.partialorder %v6591_v33, 8388608.0 }
 0x6c7   :  { %v6715_v4 = vpop.eup %6714 }
 0x6c8   :  { %v6595_v34 = vand.u32 2147483647, %v6594_v32  ;;  %v1917_v30 = vmul.f32 768.0, %v6715_v4  ;;  %vm1921_vm13 = vweird.f32 %v6715_v4 }
 0x6ca   :  { %v6597_v38 = vor.u32 %v6596_v35, %v6595_v34  ;;  %v1918_v50 = vsub.f32 1.0, %v1917_v30  ;;  %v6444_v30 = vld [vmem:[#allocation22 + $0x5e4] sm:$0xf0] }
 0x6cc   :  { %v6598_v39 = vsel %vm6592_vm12, %v6597_v38, %v1547_v29  ;;  %v1919_v29 = vmul.f32 %v6715_v4, %v1918_v50  ;;  %v5097_v50 = vld [vmem:[#allocation22 + $0x120] sm:$0xf] }
 0x6cd   :  { %v1549_v40 = vmax.f32 %v6598_v39, -128.0 }
 0x6ce   :  { %v1920_v31 = vadd.f32 %v6715_v4, %v1919_v29 }
 0x6cf   :  { %v1550_v41 = vmin.f32 %v1549_v40, 127.0 }
 0x6d0   :  { %v1922_v32 = vsel %vm1921_vm13, %v6715_v4, %v1920_v31  ;;  %v5697_v4 = vld [vmem:[#allocation22 + $0x5d0] sm:$0xf]  ;;  %v6294_v31 = vld [vmem:[#allocation22 + $0x134] sm:$0xf0] }
 0x6d1   :  { %v1551_v42 = vpack.c.bf16 %v1550_v41, %v1550_v41  ;;  %v5698_v29 = vor.u32 %v6444_v30, %v5697_v4 }
 0x6d3   :  { %1801 = vmatmul.bf16.vlgmr.msrb.gmra.mxu1 %v1551_v42  ;;  %1814 = vmatmul.bf16.vlgmr.msrb.gmra.mxu2 %v1551_v42 }
 0x6d4   :  { %1827 = vmatmul.bf16.vlgmr.msrb.gmra.mxu3 %v1551_v42  ;;  %1840 = vmatmul.bf16.vlgmr.msra.gmra.mxu0 %v1551_v42 }
 0x6d5   :  { %3851 = vmatpush.bf16.msrb.mxu2 %v5698_v29 }
 0x6e3   :  { %1853 = vmatmul.bf16.vlgmr.msra.gmra.mxu1 %v1551_v42  ;;  %1866 = vmatmul.bf16.vlgmr.msra.gmra.mxu2 %v1551_v42 }
 0x750   :  { %v1802_v58 = vpop.f32.mrf.mxu1 }
 0x751   :  { %v1841_v43 = vpop.f32.mrf.mxu0  ;;  %v1871_v46 = vmul.f32 %v1802_v58, %v1552_v45  ;;  %v1941_v58 = vld [vmem:[#allocation19] sm:$0x3f] }
 0x752   :  { %v1874_v36 = vmul.f32 %v1841_v43, %v1552_v45  ;;  %v1943_v44 = vperm.slane %v1941_v58, 0 }
 0x753   :  { %v7375_v55 = vadd.f32 %v1879_v47, %v1871_v46  ;;  %v1945_v46 = vperm.slane %v1941_v58, 2  ;;  %v1946_v47 = vperm.slane %v1941_v58, 3 }
 0x754   :  { %v1894_v11 = vadd.f32 %v1882_v37, %v1874_v36 }
 0x755   :  { %v1897_v51 = vmul.f32 %v7375_v55, %v7375_v55 }
 0x756   :  { %v1815_v49 = vpop.f32.mrf.mxu2  ;;  %v1900_v59 = vmul.f32 %v1894_v11, %v1894_v11 }
 0x757   :  { %v1872_v52 = vmul.f32 %v1815_v49, %v1552_v45  ;;  %v1828_v53 = vpop.f32.mrf.mxu3  ;;  %v1903_v10 = vsel %vm304_vm4, %v1897_v51, 0.0  ;;  %v1947_v49 = vperm.slane %v1941_v58, 4 }
 0x758   :  { %v1804_v54 = vpop.f32.mrf.mxu1  ;;  %v1873_v62 = vmul.f32 %v1828_v53, %v1552_v45  ;;  %v1908_v21 = vsel %vm304_vm4, %v1900_v59, 0.0 }
 0x759   :  { %v7377_v56 = vadd.f32 %v1880_v48, %v1872_v52  ;;  %v1843_v1 = vpop.f32.mrf.mxu0 }
 0x75a   :  { %v1893_v5 = vadd.f32 %v1881_v0, %v1873_v62 }
 0x75b   :  { %v1898_v2 = vmul.f32 %v7377_v56, %v7377_v56 }
 0x75c   :  { %v1899_v12 = vmul.f32 %v1893_v5, %v1893_v5 }
 0x75d   :  { %v1904_v6 = vsel %vm304_vm4, %v1898_v2, 0.0  ;;  %v1948_v2 = vperm.slane %v1941_v58, 5 }
 0x75e   :  { %v1817_v61 = vpop.f32.mrf.mxu2  ;;  %v1905_v13 = vadd.f32 %v1904_v6, %v1903_v10  ;;  %v1906_v14 = vsel %vm304_vm4, %v1899_v12, 0.0 }
 0x75f   :  { %v1830_v7 = vpop.f32.mrf.mxu3 }
 0x760   :  { %v1854_v9 = vpop.f32.mrf.mxu1  ;;  %v1907_v63 = vadd.f32 %v1906_v14, %v1905_v13 }
 0x761   :  { %v1875_v57 = vmul.f32 %v1854_v9, %v1552_v45 }
 0x762   :  { %v1909_v24 = vadd.f32 %v1908_v21, %v1907_v63  ;;  %v5121_v21 = vld [vmem:[#allocation22 + $0x150] sm:$0xf] }
 0x763   :  { %v1895_v23 = vadd.f32 %v1883_v8, %v1875_v57 }
 0x765   :  { %v1901_v60 = vmul.f32 %v1895_v23, %v1895_v23 }
 0x766   :  { %v1867_v16 = vpop.f32.mrf.mxu2 }
 0x767   :  { %v1876_v18 = vmul.f32 %v1867_v16, %v1552_v45  ;;  %v1910_v22 = vsel %vm304_vm4, %v1901_v60, 0.0  ;;  %v1944_v45 = vperm.slane %v1941_v58, 1  ;;  %v5073_v58 = vld [vmem:[#allocation22 + $0xf0] sm:$0xf] }
 0x768   :  { %v1856_v19 = vpop.f32.mrf.mxu1  ;;  %v1911_v3 = vadd.f32 %v1910_v22, %v1909_v24  ;;  %v6300_v22 = vld [vmem:[#allocation22 + $0x164] sm:$0xf0]  ;;  %v5313_v24 = vld [vmem:[#allocation22 + $0x2d0] sm:$0xf] }
 0x769   :  { %v1896_v20 = vadd.f32 %v1884_v15, %v1876_v18 }
 0x76b   :  { %v1902_v25 = vmul.f32 %v1896_v20, %v1896_v20 }
 0x76d   :  { %v1912_v27 = vsel %vm304_vm4, %v1902_v25, 0.0  ;;  %v5122_v25 = vor.u32 %v6300_v22, %v5121_v21  ;;  %v6324_v22 = vld [vmem:[#allocation22 + $0x224] sm:$0xf0] }
 0x76e   :  { %v1869_v17 = vpop.f32.mrf.mxu2  ;;  %v1913_v28 = vadd.f32 %v1912_v27, %v1911_v3  ;;  %v6348_v3 = vld [vmem:[#allocation22 + $0x2e4] sm:$0xf0]  ;;  %v5505_v27 = vld [vmem:[#allocation22 + $0x450] sm:$0xf] }
 0x76f   :  { %v6396_v17 = vld [vmem:[#allocation22 + $0x464] sm:$0xf0]  ;;  %3812 = vmatpush.bf16.msra.mxu3 %v5122_v25 }
 0x770   :  { %1914 = vadd.xlane.f32.xlu2 %v1913_v28  ;;  %v5314_v28 = vor.u32 %v6348_v3, %v5313_v24  ;;  %v5506_v26 = vor.u32 %v6396_v17, %v5505_v27  ;;  %v5409_v24 = vld [vmem:[#allocation22 + $0x390] sm:$0xf]  ;;  %v6372_v25 = vld [vmem:[#allocation22 + $0x3a4] sm:$0xf0] }
 0x771   :  { %v5601_v3 = vld [vmem:[#allocation22 + $0x510] sm:$0xf]  ;;  %v6420_v27 = vld [vmem:[#allocation22 + $0x524] sm:$0xf0] }
 0x772   :  { %3825 = vmatpush.bf16.msrb.mxu0 %v5314_v28  ;;  %3838 = vmatpush.bf16.msrb.mxu1 %v5506_v26 }
 0x7e3   :  { %v1915_v33 = vpop.xlane.xlu2 %1914 }
 0x7e4   :  { %v1923_v34 = vmul.f32 %v1922_v32, %v1915_v33  ;;  %v6342_v33 = vld [vmem:[#allocation22 + $0x2b4] sm:$0xf0] }
 0x7e6   :  { %v1924_v35 = vadd.f32 1e-06, %v1923_v34  ;;  %v5098_v34 = vor.u32 %v6294_v31, %v5097_v50 }
 0x7e8   :  { %6716 = vrsqrt.f32 %v1924_v35  ;;  %vm1931_vm15 = vweird.f32 %v1924_v35  ;;  %3813 = vmatpush.bf16.msra.mxu3 %v5098_v34 }
 0x7ee   :  { %v6717_v38 = vpop.eup %6716 }
 0x7ef   :  { %v1926_v39 = vmul.f32 %v6717_v38, %v1924_v35  ;;  %vm1932_vm14 = vweird.f32 %v6717_v38 }
 0x7f0   :  { %vm1933_vm0 = vmor %vm1931_vm15, %vm1932_vm14  ;;  %vm4317_vm15 = vcmask 1045508  }
 0x7f1   :  { %v1927_v40 = vmul.f32 %v6717_v38, %v1926_v39  ;;  %v6390_v39 = vld [vmem:[#allocation22 + $0x434] sm:$0xf0] }
 0x7f3   :  { %v1928_v41 = vmul.f32 0.5, %v1927_v40  ;;  %v5673_v40 = vld [vmem:[#allocation22 + $0x5a0] sm:$0xf] }
 0x7f5   :  { %v1929_v42 = vsub.f32 1.5, %v1928_v41 }
 0x7f7   :  { %v1930_v43 = vmul.f32 %v6717_v38, %v1929_v42  ;;  %v6438_v42 = vld [vmem:[#allocation22 + $0x5b4] sm:$0xf0] }
 0x7f9   :  { %v1934_v48 = vsel %vm1933_vm0, %v6717_v38, %v1930_v43  ;;  %v5481_v38 = vld [vmem:[#allocation22 + $0x420] sm:$0xf]  ;;  %v6288_v43 = vld [vmem:[#allocation22 + $0x104] sm:$0xf0]  ;;  %vm4319_vm0 = vcmask 1043456  }
 0x7fa   :  { %v1935_v52 = vmul.f32 %v1934_v48, %v7375_v55  ;;  %v1936_v53 = vmul.f32 %v1934_v48, %v7377_v56  ;;  %v1937_v54 = vmul.f32 %v1934_v48, %v1893_v5  ;;  %v1938_v62 = vmul.f32 %v1934_v48, %v1894_v11 }
 0x7fb   :  { %v1939_v0 = vmul.f32 %v1934_v48, %v1895_v23  ;;  %v1940_v1 = vmul.f32 %v1934_v48, %v1896_v20  ;;  %v5482_v41 = vor.u32 %v6390_v39, %v5481_v38  ;;  %v5457_v48 = vld [vmem:[#allocation22 + $0x3f0] sm:$0xf] }
 0x7fc   :  { %v7391_v51 = vmul.f32 %v1943_v44, %v1935_v52  ;;  %v7393_v36 = vmul.f32 %v1944_v45, %v1936_v53  ;;  %v7395_v37 = vmul.f32 %v1945_v46, %v1937_v54  ;;  %v7397_v61 = vmul.f32 %v1946_v47, %v1938_v62  ;;  %v5265_v46 = vld [vmem:[#allocation22 + $0x270] sm:$0xf]  ;;  %v6336_v47 = vld [vmem:[#allocation22 + $0x284] sm:$0xf0] }
 0x7fd   :  { %v7399_v6 = vmul.f32 %v1947_v49, %v1939_v0  ;;  %v7407_v7 = vmul.f32 %v1948_v2, %v1940_v1  ;;  %v5674_v45 = vor.u32 %v6438_v42, %v5673_v40  ;;  %v5074_v52 = vor.u32 %v6288_v43, %v5073_v58  ;;  %v6384_v53 = vld [vmem:[#allocation22 + $0x404] sm:$0xf0]  ;;  %v5649_v54 = vld [vmem:[#allocation22 + $0x570] sm:$0xf]  ;;  %v7425_v0 = vld [vmem:[#allocation21] sm:$0x3f]  ;;  %3839 = vmatpush.bf16.msrb.mxu1 %v5482_v41 }
 0x7fe   :  { %v2250_v55 = vmul.f32 %v7391_v51, %v7391_v51  ;;  %v2251_v56 = vmul.f32 %v7393_v36, %v7393_v36  ;;  %v2252_v5 = vmul.f32 %v7395_v37, %v7395_v37  ;;  %v2253_v8 = vmul.f32 %v7397_v61, %v7397_v61  ;;  %v6432_v62 = vld [vmem:[#allocation22 + $0x584] sm:$0xf0] }
 0x7ff   :  { %v2254_v12 = vmul.f32 %v7399_v6, %v7399_v6  ;;  %v2255_v23 = vmul.f32 %v7407_v7, %v7407_v7  ;;  %v5266_v1 = vor.u32 %v6336_v47, %v5265_v46  ;;  %v5458_v2 = vor.u32 %v6384_v53, %v5457_v48  ;;  %3852 = vmatpush.bf16.msrb.mxu2 %v5674_v45 }
 0x800   :  { %v2256_v9 = vsel %vm304_vm4, %v2250_v55, 0.0  ;;  %v2257_v10 = vsel %vm304_vm4, %v2251_v56, 0.0  ;;  %v2259_v57 = vsel %vm304_vm4, %v2252_v5, 0.0  ;;  %v2261_v59 = vsel %vm304_vm4, %v2253_v8, 0.0  ;;  %v5049_v55 = vld [vmem:[#allocation22 + $0xc0] sm:$0xf]  ;;  %3814 = vmatpush.bf16.msra.mxu3 %v5074_v52 }
 0x801   :  { %v2258_v11 = vadd.f32 %v2257_v10, %v2256_v9  ;;  %v2263_v60 = vsel %vm304_vm4, %v2254_v12, 0.0  ;;  %v2265_v16 = vsel %vm304_vm4, %v2255_v23, 0.0  ;;  %v6282_v56 = vld [vmem:[#allocation22 + $0xd4] sm:$0xf0]  ;;  %v5650_v8 = vor.u32 %v6432_v62, %v5649_v54  ;;  %v5241_v9 = vld [vmem:[#allocation22 + $0x240] sm:$0xf]  ;;  %3840 = vmatpush.bf16.msrb.mxu1 %v5458_v2 }
 0x802   :  { %v6330_v10 = vld [vmem:[#allocation22 + $0x254] sm:$0xf0]  ;;  %v2289_v28 = vperm.slane %v7425_v0, 1  ;;  %v2290_v4 = vperm.slane %v7425_v0, 2  ;;  %v2291_v30 = vperm.slane %v7425_v0, 3  ;;  %v2292_v50 = vperm.slane %v7425_v0, 4 }
 0x803   :  { %v2260_v13 = vadd.f32 %v2259_v57, %v2258_v11  ;;  %v5433_v11 = vld [vmem:[#allocation22 + $0x3c0] sm:$0xf]  ;;  %v6378_v12 = vld [vmem:[#allocation22 + $0x3d4] sm:$0xf0]  ;;  %3853 = vmatpush.bf16.msrb.mxu2 %v5650_v8 }
 0x804   :  { %v5625_v57 = vld [vmem:[#allocation22 + $0x540] sm:$0xf] }
 0x805   :  { %v2262_v14 = vadd.f32 %v2261_v59, %v2260_v13  ;;  %v6426_v13 = vld [vmem:[#allocation22 + $0x554] sm:$0xf0]  ;;  %v5050_v59 = vor.u32 %v6282_v56, %v5049_v55  ;;  %v5001_v56 = vld [vmem:[#allocation22 + $0x60] sm:$0xf] }
 0x806   :  { %v5626_v21 = vor.u32 %v6426_v13, %v5625_v57  ;;  %v5193_v8 = vld [vmem:[#allocation22 + $0x1e0] sm:$0xf] }
 0x807   :  { %v2264_v15 = vadd.f32 %v2263_v60, %v2262_v14  ;;  %v5242_v14 = vor.u32 %v6330_v10, %v5241_v9  ;;  %v5434_v60 = vor.u32 %v6378_v12, %v5433_v11  ;;  %3815 = vmatpush.bf16.msra.mxu3 %v5050_v59  ;;  %v6318_v10 = vld [vmem:[#allocation22 + $0x1f4] sm:$0xf0]  ;;  %v5385_v11 = vld [vmem:[#allocation22 + $0x360] sm:$0xf] }
 0x808   :  { %3854 = vmatpush.bf16.msrb.mxu2 %v5626_v21  ;;  %v6366_v12 = vld [vmem:[#allocation22 + $0x374] sm:$0xf0]  ;;  %v5194_v57 = vor.u32 %v6318_v10, %v5193_v8  ;;  %v6360_v21 = vld [vmem:[#allocation22 + $0x344] sm:$0xf0]  ;;  %v5841_v8 = vld [vmem:[#allocation22 + $0x6f0] sm:$0xf] }
 0x809   :  { %v2266_v63 = vadd.f32 %v2265_v16, %v2264_v15  ;;  %v5025_v15 = vld [vmem:[#allocation22 + $0x90] sm:$0xf]  ;;  %v6276_v16 = vld [vmem:[#allocation22 + $0xa4] sm:$0xf0]  ;;  %3841 = vmatpush.bf16.msrb.mxu1 %v5434_v60  ;;  %v5386_v13 = vor.u32 %v6366_v12, %v5385_v11  ;;  %v6414_v59 = vld [vmem:[#allocation22 + $0x4f4] sm:$0xf0] }
 0x80a   :  { %v5026_v26 = vor.u32 %v6276_v16, %v5025_v15  ;;  %v4977_v60 = vld [vmem:[#allocation22 + $0x30] sm:$0xf]  ;;  %v6264_v15 = vld [vmem:[#allocation22 + $0x44] sm:$0xf0] }
 0x80b   :  { %2267 = vadd.xlane.f32.xlu0 %v2266_v63  ;;  %v5217_v63 = vld [vmem:[#allocation22 + $0x210] sm:$0xf]  ;;  %v6528_v12 = vld [vmem:[#allocation22 + $0x884] sm:$0xf0] }
 0x80c   :  { %v5218_v29 = vor.u32 %v6324_v22, %v5217_v63  ;;  %3816 = vmatpush.bf16.msra.mxu3 %v5026_v26  ;;  %v5169_v16 = vld [vmem:[#allocation22 + $0x1b0] sm:$0xf]  ;;  %v4978_v63 = vor.u32 %v6264_v15, %v4977_v60  ;;  %v5145_v26 = vld [vmem:[#allocation22 + $0x180] sm:$0xf]  ;;  %v5267_v60 = vld [vmem:[#allocation22 + $0x288] sm:$0xf0] }
 0x80d   :  { %v6033_v10 = vld [vmem:[#allocation22 + $0x870] sm:$0xf] }
 0x87e   :  { %v2268_v18 = vpop.xlane.xlu0 %2267 }
 0x87f   :  { %v2269_v19 = vmul.f32 %v2268_v18, %v1922_v32  ;;  %v5289_v32 = vld [vmem:[#allocation22 + $0x2a0] sm:$0xf] }
 0x880   :  { %v5290_v35 = vor.u32 %v6342_v33, %v5289_v32  ;;  %v2293_v32 = vperm.slane %v7425_v0, 5  ;;  %v5410_v33 = vor.u32 %v6372_v25, %v5409_v24  ;;  %v5553_v25 = vld [vmem:[#allocation22 + $0x4b0] sm:$0xf] }
 0x881   :  { %v7421_v20 = vadd.f32 1e-08, %v2269_v19  ;;  %v2288_v19 = vperm.slane %v7425_v0, 0 }
 0x882   :  { %3826 = vmatpush.bf16.msrb.mxu0 %v5290_v35  ;;  %3842 = vmatpush.bf16.msrb.mxu1 %v5410_v33  ;;  %v5529_v33 = vld [vmem:[#allocation22 + $0x480] sm:$0xf] }
 0x883   :  { %6718 = vrsqrt.f32 %v7421_v20  ;;  %vm2277_vm2 = vweird.f32 %v7421_v20 }
 0x886   :  { %3827 = vmatpush.bf16.msrb.mxu0 %v5266_v1  ;;  %3843 = vmatpush.bf16.msrb.mxu1 %v5386_v13  ;;  %v5075_v13 = vld [vmem:[#allocation22 + $0x108] sm:$0xf0] }
 0x889   :  { %v6719_v44 = vpop.eup %6718 }
 0x88a   :  { %v2272_v49 = vmul.f32 %v6719_v44, %v7421_v20  ;;  %vm2278_vm1 = vweird.f32 %v6719_v44  ;;  %3828 = vmatpush.bf16.msrb.mxu0 %v5242_v14  ;;  %v5602_v20 = vor.u32 %v6420_v27, %v5601_v3  ;;  %v6408_v3 = vld [vmem:[#allocation22 + $0x4c4] sm:$0xf0] }
 0x88b   :  { %vm2279_vm3 = vmor %vm2277_vm2, %vm2278_vm1  ;;  %v5554_v27 = vor.u32 %v6408_v3, %v5553_v25  ;;  %v6327_v3 = vld [vmem:[#allocation22 + $0x244] sm:$0xf] }
 0x88c   :  { %v2273_v5 = vmul.f32 %v6719_v44, %v2272_v49  ;;  %3855 = vmatpush.bf16.msrb.mxu2 %v5602_v20  ;;  %v6402_v20 = vld [vmem:[#allocation22 + $0x494] sm:$0xf0] }
 0x88e   :  { %v2274_v23 = vmul.f32 0.5, %v2273_v5  ;;  %3829 = vmatpush.bf16.msrb.mxu0 %v5218_v29  ;;  %v6270_v5 = vld [vmem:[#allocation22 + $0x74] sm:$0xf0] }
 0x88f   :  { %v5002_v9 = vor.u32 %v6270_v5, %v5001_v56  ;;  %v6354_v29 = vld [vmem:[#allocation22 + $0x314] sm:$0xf0] }
 0x890   :  { %v2275_v18 = vsub.f32 1.5, %v2274_v23  ;;  %v5577_v23 = vld [vmem:[#allocation22 + $0x4e0] sm:$0xf] }
 0x891   :  { %3817 = vmatpush.bf16.msra.mxu3 %v5002_v9  ;;  %v5578_v14 = vor.u32 %v6414_v59, %v5577_v23  ;;  %v6480_v9 = vld [vmem:[#allocation22 + $0x704] sm:$0xf0]  ;;  %v6034_v23 = vor.u32 %v6528_v12, %v6033_v10  ;;  %v5721_v10 = vld [vmem:[#allocation22 + $0x600] sm:$0xf]  ;;  %v6450_v12 = vld [vmem:[#allocation22 + $0x614] sm:$0xf0] }
 0x892   :  { %v2276_v17 = vmul.f32 %v6719_v44, %v2275_v18  ;;  %3830 = vmatpush.bf16.msrb.mxu0 %v5194_v57  ;;  %v6312_v18 = vld [vmem:[#allocation22 + $0x1c4] sm:$0xf0]  ;;  %v5842_v11 = vor.u32 %v6480_v9, %v5841_v8  ;;  %v6285_v57 = vld [vmem:[#allocation22 + $0xf4] sm:$0xf] }
 0x893   :  { %3856 = vmatpush.bf16.msrb.mxu2 %v5578_v14  ;;  %v5170_v22 = vor.u32 %v6312_v18, %v5169_v16  ;;  %v5078_v59 = vor.u32 %v6285_v57, %v5075_v13  ;;  %v6333_v14 = vld [vmem:[#allocation22 + $0x274] sm:$0xf]  ;;  %v5817_v16 = vld [vmem:[#allocation22 + $0x6c0] sm:$0xf]  ;;  %v6498_v13 = vld [vmem:[#allocation22 + $0x794] sm:$0xf0] }
 0x894   :  { %v2280_v31 = vsel %vm2279_vm3, %v6719_v44, %v2276_v17  ;;  %v4953_v17 = vld [vmem:[#allocation22] sm:$0xf]  ;;  %v5270_v15 = vor.u32 %v6333_v14, %v5267_v60  ;;  %v4955_v14 = vld [vmem:[#allocation22 + $0x18] sm:$0xf0]  ;;  %v6303_v60 = vld [vmem:[#allocation22 + $0x184] sm:$0xf] }
 0x895   :  { %v2281_v34 = vmul.f32 %v2280_v31, %v7391_v51  ;;  %v2282_v35 = vmul.f32 %v2280_v31, %v7393_v36  ;;  %v2283_v38 = vmul.f32 %v2280_v31, %v7395_v37  ;;  %v2284_v39 = vmul.f32 %v2280_v31, %v7397_v61  ;;  %3818 = vmatpush.bf16.msra.mxu3 %v4978_v63  ;;  %v6474_v63 = vld [vmem:[#allocation22 + $0x6d4] sm:$0xf0]  ;;  %v6009_v18 = vld [vmem:[#allocation22 + $0x840] sm:$0xf] }
 0x896   :  { %v2285_v40 = vmul.f32 %v2280_v31, %v7399_v6  ;;  %v2286_v41 = vmul.f32 %v2280_v31, %v7407_v7  ;;  %3831 = vmatpush.bf16.msrb.mxu0 %v5170_v22  ;;  %v5051_v22 = vld [vmem:[#allocation22 + $0xd8] sm:$0xf0]  ;;  %v5913_v57 = vld [vmem:[#allocation22 + $0x780] sm:$0xf] }
 0x897   :  { %v7440_v42 = vmul.f32 %v2288_v19, %v2281_v34  ;;  %v7442_v58 = vmul.f32 %v2289_v28, %v2282_v35  ;;  %v7444_v43 = vmul.f32 %v2290_v4, %v2283_v38  ;;  %v7446_v44 = vmul.f32 %v2291_v30, %v2284_v39  ;;  %v5361_v19 = vld [vmem:[#allocation22 + $0x330] sm:$0xf]  ;;  %v6258_v28 = vld [vmem:[#allocation22 + $0x14] sm:$0xf0]  ;;  %3857 = vmatpush.bf16.msrb.mxu2 %v5554_v27  ;;  %v6492_v38 = vld [vmem:[#allocation22 + $0x764] sm:$0xf0] }
 0x898   :  { %v7448_v51 = vmul.f32 %v2292_v50, %v2285_v40  ;;  %v7450_v36 = vmul.f32 %v2293_v32, %v2286_v41  ;;  %v5362_v24 = vor.u32 %v6360_v21, %v5361_v19  ;;  %v4954_v4 = vor.u32 %v6258_v28, %v4953_v17  ;;  %v6306_v30 = vld [vmem:[#allocation22 + $0x194] sm:$0xf0]  ;;  %v5337_v50 = vld [vmem:[#allocation22 + $0x300] sm:$0xf]  ;;  %v5889_v34 = vld [vmem:[#allocation22 + $0x750] sm:$0xf] }
 0x899   :  { %v2306_v37 = vand.u32 2147483647, %v7440_v42  ;;  %v2307_v61 = vand.u32 2147483647, %v7442_v58  ;;  %v2308_v6 = vand.u32 2147483647, %v7444_v43  ;;  %v5146_v31 = vor.u32 %v6306_v30, %v5145_v26 }
 0x89a   :  { %v2309_v7 = vand.u32 2147483647, %v7446_v44  ;;  %v2310_v45 = vand.u32 2147483647, %v7448_v51  ;;  %v2311_v46 = vand.u32 2147483647, %v7450_v36  ;;  %3844 = vmatpush.bf16.msrb.mxu1 %v5362_v24  ;;  %v5338_v32 = vor.u32 %v6354_v29, %v5337_v50  ;;  %3819 = vmatpush.bf16.msra.mxu3 %v4954_v4 }
 0x89b   :  { %v2312_v47 = vsel %vm304_vm4, %v2306_v37, -inf  ;;  %v2313_v48 = vsel %vm304_vm4, %v2307_v61, -inf  ;;  %v2314_v49 = vsel %vm304_vm4, %v2308_v6, -inf  ;;  %v5530_v35 = vor.u32 %v6402_v20, %v5529_v33  ;;  %v6081_v39 = vld [vmem:[#allocation22 + $0x8d0] sm:$0xf]  ;;  %3832 = vmatpush.bf16.msrb.mxu0 %v5146_v31 }
 0x89c   :  { %v2315_v52 = vsel %vm304_vm4, %v2309_v7, -inf  ;;  %v2316_v53 = vsel %vm304_vm4, %v2310_v45, -inf  ;;  %v2318_v54 = vsel %vm304_vm4, %v2311_v46, -inf  ;;  %v6540_v40 = vld [vmem:[#allocation22 + $0x8e4] sm:$0xf0]  ;;  %v5890_v41 = vor.u32 %v6492_v38, %v5889_v34 }
 0x89d   :  { %v2317_v62 = vmax.f32 %v2312_v47, %v2316_v53  ;;  %v2319_v0 = vmax.f32 %v2313_v48, %v2318_v54  ;;  %v2321_v2 = vmax.f32 %v2314_v49, %v2315_v52  ;;  %v6082_v37 = vor.u32 %v6540_v40, %v6081_v39  ;;  %v6297_v61 = vld [vmem:[#allocation22 + $0x154] sm:$0xf]  ;;  %v5123_v6 = vld [vmem:[#allocation22 + $0x168] sm:$0xf0]  ;;  %3858 = vmatpush.bf16.msrb.mxu2 %v5530_v35  ;;  %v5865_v47 = vld [vmem:[#allocation22 + $0x720] sm:$0xf] }
 0x89e   :  { %3845 = vmatpush.bf16.msrb.mxu1 %v5338_v32  ;;  %v6345_v7 = vld [vmem:[#allocation22 + $0x2d4] sm:$0xf]  ;;  %v5126_v45 = vor.u32 %v6297_v61, %v5123_v6  ;;  %v5315_v46 = vld [vmem:[#allocation22 + $0x2e8] sm:$0xf0]  ;;  %v6486_v48 = vld [vmem:[#allocation22 + $0x734] sm:$0xf0]  ;;  %3864 = vmatpush.bf16.msrb.mxu3 %v5890_v41  ;;  %v5818_v24 = vor.u32 %v6474_v63, %v5817_v16  ;;  %v5722_v16 = vor.u32 %v6450_v12, %v5721_v10 }
 0x89f   :  { %v2320_v1 = vmax.f32 %v2317_v62, %v2319_v0  ;;  %3877 = vmatpush.bf16.msra.mxu0 %v6082_v37  ;;  %v5318_v49 = vor.u32 %v6345_v7, %v5315_v46  ;;  %v5866_v52 = vor.u32 %v6486_v48, %v5865_v47  ;;  %v6057_v53 = vld [vmem:[#allocation22 + $0x8a0] sm:$0xf]  ;;  %v6534_v54 = vld [vmem:[#allocation22 + $0x8b4] sm:$0xf0]  ;;  %v6291_v62 = vld [vmem:[#allocation22 + $0x124] sm:$0xf]  ;;  %v5914_v63 = vor.u32 %v6498_v13, %v5913_v57 }
 0x8a0   :  { %v6058_v0 = vor.u32 %v6534_v54, %v6057_v53  ;;  %v6522_v19 = vld [vmem:[#allocation22 + $0x854] sm:$0xf0]  ;;  %v6279_v21 = vld [vmem:[#allocation22 + $0xc4] sm:$0xf]  ;;  %v5243_v27 = vld [vmem:[#allocation22 + $0x258] sm:$0xf0] }
 0x8a1   :  { %v2322_v55 = vmax.f32 %v2320_v1, %v2321_v2  ;;  %v5099_v1 = vld [vmem:[#allocation22 + $0x138] sm:$0xf0]  ;;  %v6339_v2 = vld [vmem:[#allocation22 + $0x2a4] sm:$0xf]  ;;  %3903 = vmatpush.bf16.msra.mxu2 %v5318_v49  ;;  %v6010_v25 = vor.u32 %v6522_v19, %v6009_v18  ;;  %v5793_v17 = vld [vmem:[#allocation22 + $0x690] sm:$0xf]  ;;  %v5054_v28 = vor.u32 %v6279_v21, %v5051_v22  ;;  %v5246_v50 = vor.u32 %v6327_v3, %v5243_v27 }
 0x8a2   :  { %3890 = vmatpush.bf16.msra.mxu1 %v5126_v45  ;;  %v5102_v56 = vor.u32 %v6291_v62, %v5099_v1  ;;  %3865 = vmatpush.bf16.msrb.mxu3 %v5866_v52  ;;  %v6468_v26 = vld [vmem:[#allocation22 + $0x6a4] sm:$0xf0]  ;;  %v5985_v4 = vld [vmem:[#allocation22 + $0x810] sm:$0xf]  ;;  %v6273_v29 = vld [vmem:[#allocation22 + $0x94] sm:$0xf] }
 0x8a3   :  { %2323 = vmax.xlane.f32.xlu1 %v2322_v55  ;;  %v5291_v55 = vld [vmem:[#allocation22 + $0x2b8] sm:$0xf0]  ;;  %3878 = vmatpush.bf16.msra.mxu0 %v6058_v0  ;;  %v6516_v30 = vld [vmem:[#allocation22 + $0x824] sm:$0xf0]  ;;  %v5027_v31 = vld [vmem:[#allocation22 + $0xa8] sm:$0xf0]  ;;  %v5794_v20 = vor.u32 %v6468_v26, %v5793_v17 }
 0x8a4   :  { %v5294_v5 = vor.u32 %v6339_v2, %v5291_v55  ;;  %v6321_v32 = vld [vmem:[#allocation22 + $0x214] sm:$0xf]  ;;  %v5219_v33 = vld [vmem:[#allocation22 + $0x228] sm:$0xf0]  ;;  %v5986_v34 = vor.u32 %v6516_v30, %v5985_v4  ;;  %v5769_v35 = vld [vmem:[#allocation22 + $0x660] sm:$0xf]  ;;  %v5030_v38 = vor.u32 %v6273_v29, %v5027_v31 }
 0x8a5   :  { %v6462_v39 = vld [vmem:[#allocation22 + $0x674] sm:$0xf0]  ;;  %v5961_v40 = vld [vmem:[#allocation22 + $0x7e0] sm:$0xf]  ;;  %v5222_v37 = vor.u32 %v6321_v32, %v5219_v33  ;;  %v6267_v61 = vld [vmem:[#allocation22 + $0x64] sm:$0xf] }
 0x8a6   :  { %3891 = vmatpush.bf16.msra.mxu1 %v5102_v56  ;;  %3904 = vmatpush.bf16.msra.mxu2 %v5294_v5  ;;  %v6510_v41 = vld [vmem:[#allocation22 + $0x7f4] sm:$0xf0]  ;;  %v5003_v6 = vld [vmem:[#allocation22 + $0x78] sm:$0xf0]  ;;  %v6315_v7 = vld [vmem:[#allocation22 + $0x1e4] sm:$0xf]  ;;  %v5770_v46 = vor.u32 %v6462_v39, %v5769_v35 }
 0x8a7   :  { %3866 = vmatpush.bf16.msrb.mxu3 %v5842_v11  ;;  %3879 = vmatpush.bf16.msra.mxu0 %v6034_v23  ;;  %v5195_v45 = vld [vmem:[#allocation22 + $0x1f8] sm:$0xf0]  ;;  %v5962_v47 = vor.u32 %v6510_v41, %v5961_v40  ;;  %v5745_v48 = vld [vmem:[#allocation22 + $0x630] sm:$0xf]  ;;  %v5006_v49 = vor.u32 %v6267_v61, %v5003_v6  ;;  %v6456_v52 = vld [vmem:[#allocation22 + $0x644] sm:$0xf0] }
 0x8a8   :  { %v5937_v53 = vld [vmem:[#allocation22 + $0x7b0] sm:$0xf]  ;;  %v6504_v54 = vld [vmem:[#allocation22 + $0x7c4] sm:$0xf0]  ;;  %v5198_v0 = vor.u32 %v6315_v7, %v5195_v45  ;;  %v6261_v1 = vld [vmem:[#allocation22 + $0x34] sm:$0xf]  ;;  %v5746_v8 = vor.u32 %v6456_v52, %v5745_v48 }
 0x8a9   :  { %v4979_v2 = vld [vmem:[#allocation22 + $0x48] sm:$0xf0]  ;;  %v6309_v56 = vld [vmem:[#allocation22 + $0x1b4] sm:$0xf]  ;;  %v5938_v9 = vor.u32 %v6504_v54, %v5937_v53  ;;  %v6531_v7 = vld [vmem:[#allocation22 + $0x8a4] sm:$0xf] }
 0x8aa   :  { %3892 = vmatpush.bf16.msra.mxu1 %v5078_v59  ;;  %3905 = vmatpush.bf16.msra.mxu2 %v5270_v15  ;;  %v5171_v5 = vld [vmem:[#allocation22 + $0x1c8] sm:$0xf0]  ;;  %v4982_v11 = vor.u32 %v6261_v1, %v4979_v2  ;;  %v6255_v59 = vld [vmem:[#allocation22 + $0x4] sm:$0xf]  ;;  %v5147_v15 = vld [vmem:[#allocation22 + $0x198] sm:$0xf0] }
 0x8ab   :  { %3867 = vmatpush.bf16.msrb.mxu3 %v5818_v24  ;;  %3880 = vmatpush.bf16.msra.mxu0 %v6010_v25  ;;  %v5174_v23 = vor.u32 %v6309_v56, %v5171_v5  ;;  %v4958_v18 = vor.u32 %v6255_v59, %v4955_v14  ;;  %v5150_v19 = vor.u32 %v6303_v60, %v5147_v15  ;;  %v7474_v32 = vld [vmem:[#allocation22 + $0x454] sm:$0xf]  ;;  %v7476_v33 = vld [vmem:[#allocation22 + $0x468] sm:$0xf0] }
 0x8ac   :  { %v5699_v1 = vld [vmem:[#allocation22 + $0x5e8] sm:$0xf0]  ;;  %v6489_v5 = vld [vmem:[#allocation22 + $0x754] sm:$0xf] }
 0x8ad   :  { %v5891_v57 = vld [vmem:[#allocation22 + $0x768] sm:$0xf0] }
 0x8ae   :  { %3893 = vmatpush.bf16.msra.mxu1 %v5054_v28  ;;  %3906 = vmatpush.bf16.msra.mxu2 %v5246_v50  ;;  %v5651_v54 = vld [vmem:[#allocation22 + $0x588] sm:$0xf0] }
 0x8af   :  { %3868 = vmatpush.bf16.msrb.mxu3 %v5794_v20  ;;  %3881 = vmatpush.bf16.msra.mxu0 %v5986_v34 }
 0x8b2   :  { %3894 = vmatpush.bf16.msra.mxu1 %v5030_v38  ;;  %3907 = vmatpush.bf16.msra.mxu2 %v5222_v37 }
 0x8b3   :  { %3869 = vmatpush.bf16.msrb.mxu3 %v5770_v46  ;;  %3882 = vmatpush.bf16.msra.mxu0 %v5962_v47  ;;  %v7488_v47 = vld [vmem:[#allocation22 + $0x5d4] sm:$0xf] }
 0x8b4   :  { %v5702_v14 = vor.u32 %v7488_v47, %v5699_v1  ;;  %v6381_v47 = vld [vmem:[#allocation22 + $0x3f4] sm:$0xf] }
 0x8b6   :  { %3895 = vmatpush.bf16.msra.mxu1 %v5006_v49  ;;  %3908 = vmatpush.bf16.msra.mxu2 %v5198_v0 }
 0x8b7   :  { %3870 = vmatpush.bf16.msrb.mxu3 %v5746_v8  ;;  %3883 = vmatpush.bf16.msra.mxu0 %v5938_v9 }
 0x8ba   :  { %3896 = vmatpush.bf16.msra.mxu1 %v4982_v11  ;;  %3909 = vmatpush.bf16.msra.mxu2 %v5174_v23 }
 0x8bb   :  { %3871 = vmatpush.bf16.msrb.mxu3 %v5722_v16  ;;  %3884 = vmatpush.bf16.msra.mxu0 %v5914_v63 }
 0x8be   :  { %3897 = vmatpush.bf16.msra.mxu1 %v4958_v18  ;;  %3910 = vmatpush.bf16.msra.mxu2 %v5150_v19  ;;  %v5894_v18 = vor.u32 %v6489_v5, %v5891_v57  ;;  %v6537_v19 = vld [vmem:[#allocation22 + $0x8d4] sm:$0xf]  ;;  %v6423_v57 = vld [vmem:[#allocation22 + $0x544] sm:$0xf] }
 0x916   :  { %v2324_v62 = vpop.xlane.xlu1 %2323 }
 0x917   :  { %v7464_v55 = vmax.f32 %v2324_v62, 1e-05 }
 0x919   :  { %6720 = vrcp.f32 %v7464_v55  ;;  %v2337_v25 = vand.u32 2147483648, %v7464_v55  ;;  %v2335_v27 = vand.u32 2147483647, %v7464_v55  ;;  %vm2331_vm6 = vweird.f32 %v7464_v55 }
 0x91b   :  { %v2338_v28 = vor.u32 1.1754944e-38, %v2337_v25  ;;  %vm2336_vm8 = vcmp.eq.f32.partialorder %v2335_v27, 8.507059e+37 }
 0x91f   :  { %v6721_v21 = vpop.eup %6720 }
 0x920   :  { %v2327_v22 = vmul.f32 %v6721_v21, %v7464_v55  ;;  %vm2332_vm5 = vweird.f32 %v6721_v21 }
 0x921   :  { %vm2333_vm7 = vmor %vm2331_vm6, %vm2332_vm5 }
 0x922   :  { %v2328_v24 = vsub.f32 1.0, %v2327_v22  ;;  %v6387_v22 = vld [vmem:[#allocation22 + $0x424] sm:$0xf] }
 0x924   :  { %v2329_v3 = vmul.f32 %v6721_v21, %v2328_v24 }
 0x926   :  { %v2330_v17 = vadd.f32 %v6721_v21, %v2329_v3 }
 0x928   :  { %v2334_v26 = vsel %vm2333_vm7, %v6721_v21, %v2330_v17  ;;  %v6083_v21 = vld [vmem:[#allocation22 + $0x8e8] sm:$0xf0]  ;;  %v5483_v17 = vld [vmem:[#allocation22 + $0x438] sm:$0xf0] }
 0x929   :  { %v2339_v4 = vsel %vm2336_vm8, %v2338_v28, %v2334_v26 }
 0x92a   :  { %v2340_v30 = vmul.f32 127.0, %v2339_v4 }
 0x92c   :  { %v2341_v50 = vmul.f32 %v2340_v30, %v7440_v42  ;;  %v2342_v29 = vmul.f32 %v2340_v30, %v7442_v58  ;;  %v2343_v31 = vmul.f32 %v2340_v30, %v7444_v43  ;;  %v2344_v35 = vmul.f32 %v2340_v30, %v7446_v44 }
 0x92d   :  { %v7480_v40 = vmul.f32 %v2340_v30, %v7448_v51  ;;  %v5510_v42 = vor.u32 %v7474_v32, %v7476_v33  ;;  %v7496_v9 = vmul.f32 %v2340_v30, %v7450_v36  ;;  %v6435_v30 = vld [vmem:[#allocation22 + $0x5a4] sm:$0xf]  ;;  %v6477_v33 = vld [vmem:[#allocation22 + $0x6f4] sm:$0xf] }
 0x92e   :  { %v6599_v20 = vand.u32 2147483647, %v2341_v50  ;;  %v6601_v34 = vcvt.f32.s32 %v2341_v50  ;;  %v6609_v38 = vcvt.f32.s32 %v2342_v29  ;;  %v6617_v39 = vcvt.f32.s32 %v2343_v31  ;;  %v6501_v32 = vld [vmem:[#allocation22 + $0x7b4] sm:$0xf] }
 0x92f   :  { %v6607_v37 = vand.u32 2147483647, %v2342_v29  ;;  %v6604_v58 = vand.u32 2147483648, %v2341_v50  ;;  %v6612_v61 = vand.u32 2147483648, %v2342_v29  ;;  %v6615_v44 = vand.u32 2147483647, %v2343_v31 }
 0x930   :  { %v6602_v41 = vcvt.s32.f32 %v6601_v34  ;;  %v6610_v43 = vcvt.s32.f32 %v6609_v38  ;;  %v6618_v6 = vcvt.s32.f32 %v6617_v39  ;;  %vm7484_vm9 = vcmp.lt.f32.partialorder %v6599_v20, 8388608.0  ;;  %v5675_v34 = vld [vmem:[#allocation22 + $0x5b8] sm:$0xf0]  ;;  %v6483_v38 = vld [vmem:[#allocation22 + $0x724] sm:$0xf] }
 0x931   :  { %v6625_v46 = vcvt.f32.s32 %v2344_v35  ;;  %v6620_v49 = vand.u32 2147483648, %v2343_v31  ;;  %v6633_v52 = vcvt.f32.s32 %v7480_v40  ;;  %vm7491_vm10 = vcmp.lt.f32.partialorder %v6607_v37, 8388608.0  ;;  %v5867_v37 = vld [vmem:[#allocation22 + $0x738] sm:$0xf0] }
 0x932   :  { %v6603_v45 = vand.u32 2147483647, %v6602_v41  ;;  %v6611_v51 = vand.u32 2147483647, %v6610_v43  ;;  %v6619_v48 = vand.u32 2147483647, %v6618_v6  ;;  %v6641_v24 = vcvt.f32.s32 %v7496_v9 }
 0x933   :  { %v6623_v62 = vand.u32 2147483647, %v2344_v35  ;;  %v6626_v0 = vcvt.s32.f32 %v6625_v46  ;;  %v6634_v8 = vcvt.s32.f32 %v6633_v52  ;;  %vm6616_vm11 = vcmp.lt.f32.partialorder %v6615_v44, 8388608.0 }
 0x934   :  { %v6605_v53 = vor.u32 %v6604_v58, %v6603_v45  ;;  %v6613_v2 = vor.u32 %v6612_v61, %v6611_v51  ;;  %v6621_v56 = vor.u32 %v6620_v49, %v6619_v48  ;;  %v6628_v12 = vand.u32 2147483648, %v2344_v35  ;;  %v6059_v45 = vld [vmem:[#allocation22 + $0x8b8] sm:$0xf0]  ;;  %v5459_v51 = vld [vmem:[#allocation22 + $0x408] sm:$0xf0] }
 0x935   :  { %v6627_v11 = vand.u32 2147483647, %v6626_v0  ;;  %v6635_v63 = vand.u32 2147483647, %v6634_v8  ;;  %vm6624_vm12 = vcmp.lt.f32.partialorder %v6623_v62, 8388608.0  ;;  %v6636_v28 = vand.u32 2147483648, %v7480_v40 }
 0x936   :  { %v6606_v10 = vsel %vm7484_vm9, %v6605_v53, %v2341_v50  ;;  %v6614_v23 = vsel %vm7491_vm10, %v6613_v2, %v2342_v29  ;;  %v6622_v59 = vsel %vm6616_vm11, %v6621_v56, %v2343_v31  ;;  %v6631_v50 = vand.u32 2147483647, %v7480_v40  ;;  %v6429_v53 = vld [vmem:[#allocation22 + $0x574] sm:$0xf]  ;;  %v6035_v56 = vld [vmem:[#allocation22 + $0x888] sm:$0xf0] }
 0x937   :  { %v2353_v13 = vmax.f32 %v6606_v10, -128.0  ;;  %v2354_v60 = vmax.f32 %v6614_v23, -128.0  ;;  %v2355_v15 = vmax.f32 %v6622_v59, -128.0  ;;  %v6629_v16 = vor.u32 %v6628_v12, %v6627_v11  ;;  %v6525_v2 = vld [vmem:[#allocation22 + $0x874] sm:$0xf] }
 0x938   :  { %v6642_v29 = vcvt.s32.f32 %v6641_v24  ;;  %v6637_v39 = vor.u32 %v6636_v28, %v6635_v63  ;;  %v6639_v41 = vand.u32 2147483647, %v7496_v9  ;;  %v6644_v43 = vand.u32 2147483648, %v7496_v9  ;;  %v6375_v8 = vld [vmem:[#allocation22 + $0x3c4] sm:$0xf] }
 0x939   :  { %v2359_v36 = vmin.f32 %v2353_v13, 127.0  ;;  %v2360_v25 = vmin.f32 %v2354_v60, 127.0  ;;  %v2361_v3 = vmin.f32 %v2355_v15, 127.0  ;;  %v6630_v27 = vsel %vm6624_vm12, %v6629_v16, %v2344_v35  ;;  %v5435_v10 = vld [vmem:[#allocation22 + $0x3d8] sm:$0xf0] }
 0x93a   :  { %v2356_v4 = vmax.f32 %v6630_v27, -128.0  ;;  %v6643_v58 = vand.u32 2147483647, %v6642_v29  ;;  %v6086_v61 = vor.u32 %v6537_v19, %v6083_v21  ;;  %v5486_v6 = vor.u32 %v6387_v22, %v5483_v17  ;;  %v5627_v13 = vld [vmem:[#allocation22 + $0x558] sm:$0xf0] }
 0x93b   :  { %v7505_v26 = vpack.c.bf16 %v2359_v36, %v2359_v36  ;;  %v7508_v31 = vpack.c.bf16 %v2360_v25, %v2360_v25  ;;  %v7510_v20 = vpack.c.bf16 %v2361_v3, %v2361_v3  ;;  %v5678_v46 = vor.u32 %v6435_v30, %v5675_v34  ;;  %v6471_v59 = vld [vmem:[#allocation22 + $0x6c4] sm:$0xf]  ;;  %v6011_v63 = vld [vmem:[#allocation22 + $0x858] sm:$0xf0]  ;;  %v5411_v22 = vld [vmem:[#allocation22 + $0x3a8] sm:$0xf0] }
 0x93c   :  { %v2362_v35 = vmin.f32 %v2356_v4, 127.0  ;;  %vm7522_vm13 = vcmp.lt.f32.partialorder %v6631_v50, 8388608.0  ;;  %v6645_v49 = vor.u32 %v6644_v43, %v6643_v58  ;;  %v5870_v52 = vor.u32 %v6483_v38, %v5867_v37  ;;  %v6519_v60 = vld [vmem:[#allocation22 + $0x844] sm:$0xf]  ;;  %v6417_v24 = vld [vmem:[#allocation22 + $0x514] sm:$0xf] }
 0x93d   :  { %3820 = vmatmul.bf16.vlgmr.msra.gmra.mxu3 %v7505_v26  ;;  %3833 = vmatmul.bf16.vlgmr.msrb.gmra.mxu0 %v7508_v31  ;;  %v6638_v62 = vsel %vm7522_vm13, %v6637_v39, %v7480_v40  ;;  %vm7529_vm14 = vcmp.lt.f32.partialorder %v6639_v41, 8388608.0  ;;  %v6062_v1 = vor.u32 %v6531_v7, %v6059_v45  ;;  %v5462_v5 = vor.u32 %v6381_v47, %v5459_v51  ;;  %v5603_v25 = vld [vmem:[#allocation22 + $0x528] sm:$0xf0]  ;;  %v6465_v3 = vld [vmem:[#allocation22 + $0x694] sm:$0xf] }
 0x93e   :  { %3846 = vmatmul.bf16.vlgmr.msrb.gmra.mxu1 %v7510_v20  ;;  %v7517_v44 = vpack.c.bf16 %v2362_v35, %v2362_v35  ;;  %3916 = vmatpush.bf16.msra.mxu3 %v5510_v42  ;;  %v5843_v42 = vld [vmem:[#allocation22 + $0x708] sm:$0xf0]  ;;  %v6646_v0 = vsel %vm7529_vm14, %v6645_v49, %v7496_v9  ;;  %v5654_v40 = vor.u32 %v6429_v53, %v5651_v54  ;;  %v2357_v11 = vmax.f32 %v6638_v62, -128.0  ;;  %v6513_v30 = vld [vmem:[#allocation22 + $0x814] sm:$0xf] }
 0x93f   :  { %3929 = vmatpush.bf16.msrb.mxu0 %v5702_v14  ;;  %3942 = vmatpush.bf16.msrb.mxu1 %v5894_v18  ;;  %v5846_v12 = vor.u32 %v6477_v33, %v5843_v42  ;;  %v2358_v23 = vmax.f32 %v6646_v0, -128.0  ;;  %v5819_v14 = vld [vmem:[#allocation22 + $0x6d8] sm:$0xf0]  ;;  %v6038_v9 = vor.u32 %v6525_v2, %v6035_v56  ;;  %v5438_v15 = vor.u32 %v6375_v8, %v5435_v10  ;;  %v6369_v18 = vld [vmem:[#allocation22 + $0x394] sm:$0xf] }
 0x940   :  { %3859 = vmatmul.bf16.vlgmr.msrb.gmra.mxu2 %v7517_v44  ;;  %v5630_v16 = vor.u32 %v6423_v57, %v5627_v13  ;;  %v2363_v36 = vmin.f32 %v2357_v11, 127.0  ;;  %v5822_v19 = vor.u32 %v6471_v59, %v5819_v14  ;;  %v5795_v27 = vld [vmem:[#allocation22 + $0x6a8] sm:$0xf0]  ;;  %v6014_v17 = vor.u32 %v6519_v60, %v6011_v63  ;;  %v6363_v39 = vld [vmem:[#allocation22 + $0x364] sm:$0xf] }
 0x941   :  { %3955 = vmatpush.bf16.msrb.mxu2 %v6086_v61  ;;  %v2364_v21 = vmin.f32 %v2358_v23, 127.0  ;;  %v5414_v4 = vor.u32 %v6369_v18, %v5411_v22  ;;  %v5987_v50 = vld [vmem:[#allocation22 + $0x828] sm:$0xf0]  ;;  %v5606_v34 = vor.u32 %v6417_v24, %v5603_v25  ;;  %v5798_v38 = vor.u32 %v6465_v3, %v5795_v27  ;;  %v5387_v41 = vld [vmem:[#allocation22 + $0x378] sm:$0xf0] }
 0x942   :  { %3917 = vmatpush.bf16.msra.mxu3 %v5486_v6  ;;  %v7537_v28 = vpack.c.bf16 %v2363_v36, %v2363_v36  ;;  %v6411_v35 = vld [vmem:[#allocation22 + $0x4e4] sm:$0xf]  ;;  %v5579_v37 = vld [vmem:[#allocation22 + $0x4f8] sm:$0xf0]  ;;  %v5990_v61 = vor.u32 %v6513_v30, %v5987_v50  ;;  %v5390_v6 = vor.u32 %v6363_v39, %v5387_v41  ;;  %v6357_v51 = vld [vmem:[#allocation22 + $0x334] sm:$0xf] }
 0x943   :  { %3930 = vmatpush.bf16.msrb.mxu0 %v5678_v46  ;;  %3943 = vmatpush.bf16.msrb.mxu1 %v5870_v52  ;;  %v7539_v29 = vpack.c.bf16 %v2364_v21, %v2364_v21  ;;  %v6459_v58 = vld [vmem:[#allocation22 + $0x664] sm:$0xf]  ;;  %v5771_v43 = vld [vmem:[#allocation22 + $0x678] sm:$0xf0]  ;;  %v5582_v46 = vor.u32 %v6411_v35, %v5579_v37  ;;  %v5363_v48 = vld [vmem:[#allocation22 + $0x348] sm:$0xf0] }
 0x944   :  { %v6507_v7 = vld [vmem:[#allocation22 + $0x7e4] sm:$0xf]  ;;  %v5963_v45 = vld [vmem:[#allocation22 + $0x7f8] sm:$0xf0]  ;;  %v5774_v47 = vor.u32 %v6459_v58, %v5771_v43  ;;  %v6405_v49 = vld [vmem:[#allocation22 + $0x4b4] sm:$0xf]  ;;  %v5366_v33 = vor.u32 %v6357_v51, %v5363_v48 }
 0x945   :  { %3956 = vmatpush.bf16.msrb.mxu2 %v6062_v1  ;;  %v5555_v52 = vld [vmem:[#allocation22 + $0x4c8] sm:$0xf0]  ;;  %v6453_v53 = vld [vmem:[#allocation22 + $0x634] sm:$0xf]  ;;  %v5966_v62 = vor.u32 %v6507_v7, %v5963_v45  ;;  %v6351_v0 = vld [vmem:[#allocation22 + $0x304] sm:$0xf] }
 0x946   :  { %3918 = vmatpush.bf16.msra.mxu3 %v5462_v5  ;;  %v5747_v54 = vld [vmem:[#allocation22 + $0x648] sm:$0xf0]  ;;  %v5339_v1 = vld [vmem:[#allocation22 + $0x318] sm:$0xf0]  ;;  %v5558_v2 = vor.u32 %v6405_v49, %v5555_v52  ;;  %v6399_v5 = vld [vmem:[#allocation22 + $0x484] sm:$0xf] }
 0x947   :  { %3931 = vmatpush.bf16.msrb.mxu0 %v5654_v40  ;;  %3944 = vmatpush.bf16.msrb.mxu1 %v5846_v12  ;;  %v5939_v42 = vld [vmem:[#allocation22 + $0x7c8] sm:$0xf0]  ;;  %v5750_v56 = vor.u32 %v6453_v53, %v5747_v54  ;;  %v5531_v40 = vld [vmem:[#allocation22 + $0x498] sm:$0xf0]  ;;  %v6447_v8 = vld [vmem:[#allocation22 + $0x604] sm:$0xf]  ;;  %v5342_v14 = vor.u32 %v6351_v0, %v5339_v1 }
 0x948   :  { %v5723_v10 = vld [vmem:[#allocation22 + $0x618] sm:$0xf0]  ;;  %v6495_v11 = vld [vmem:[#allocation22 + $0x784] sm:$0xf]  ;;  %v5129_v12 = vld [vmem:[#allocation22 + $0x158] sm:$0xf]  ;;  %v5942_v57 = vor.u32 %v6501_v32, %v5939_v42 }
 0x949   :  { %3957 = vmatpush.bf16.msrb.mxu2 %v6038_v9  ;;  %v6301_v13 = vld [vmem:[#allocation22 + $0x16c] sm:$0xf0]  ;;  %v5321_v23 = vld [vmem:[#allocation22 + $0x2d8] sm:$0xf]  ;;  %v5915_v9 = vld [vmem:[#allocation22 + $0x798] sm:$0xf0]  ;;  %v5726_v63 = vor.u32 %v6447_v8, %v5723_v10 }
 0x94a   :  { %3919 = vmatpush.bf16.msra.mxu3 %v5438_v15  ;;  %v6349_v59 = vld [vmem:[#allocation22 + $0x2ec] sm:$0xf0]  ;;  %v5513_v60 = vld [vmem:[#allocation22 + $0x458] sm:$0xf]  ;;  %v5918_v22 = vor.u32 %v6495_v11, %v5915_v9  ;;  %v5105_v25 = vld [vmem:[#allocation22 + $0x128] sm:$0xf] }
 0x94b   :  { %3932 = vmatpush.bf16.msrb.mxu0 %v5630_v16  ;;  %3945 = vmatpush.bf16.msrb.mxu1 %v5822_v19  ;;  %v6397_v15 = vld [vmem:[#allocation22 + $0x46c] sm:$0xf0]  ;;  %v5534_v16 = vor.u32 %v6399_v5, %v5531_v40  ;;  %v5705_v36 = vld [vmem:[#allocation22 + $0x5d8] sm:$0xf]  ;;  %v5130_v19 = vor.u32 %v6301_v13, %v5129_v12  ;;  %v5322_v21 = vor.u32 %v6349_v59, %v5321_v23  ;;  %v6295_v3 = vld [vmem:[#allocation22 + $0x13c] sm:$0xf0] }
 0x94c   :  { %v6445_v18 = vld [vmem:[#allocation22 + $0x5ec] sm:$0xf0]  ;;  %v5514_v24 = vor.u32 %v6397_v15, %v5513_v60  ;;  %v5297_v27 = vld [vmem:[#allocation22 + $0x2a8] sm:$0xf]  ;;  %v6391_v50 = vld [vmem:[#allocation22 + $0x43c] sm:$0xf0]  ;;  %v5106_v39 = vor.u32 %v6295_v3, %v5105_v25 }
 0x94d   :  { %3872 = vmatmul.bf16.vlgmr.msrb.gmra.mxu3 %v7537_v28  ;;  %3958 = vmatpush.bf16.msrb.mxu2 %v6014_v17  ;;  %v5706_v17 = vor.u32 %v6445_v18, %v5705_v36  ;;  %v5489_v30 = vld [vmem:[#allocation22 + $0x428] sm:$0xf]  ;;  %v5081_v37 = vld [vmem:[#allocation22 + $0xf8] sm:$0xf]  ;;  %v6289_v58 = vld [vmem:[#allocation22 + $0x10c] sm:$0xf0] }
 0x94e   :  { %3885 = vmatmul.bf16.vlgmr.msra.gmra.mxu0 %v7539_v29  ;;  %3898 = vmatmul.bf16.vlgmr.msra.gmra.mxu1 %v7505_v26  ;;  %v5490_v35 = vor.u32 %v6391_v50, %v5489_v30  ;;  %v5273_v43 = vld [vmem:[#allocation22 + $0x278] sm:$0xf]  ;;  %v6385_v45 = vld [vmem:[#allocation22 + $0x40c] sm:$0xf0]  ;;  %v5082_v51 = vor.u32 %v6289_v58, %v5081_v37  ;;  %v5057_v52 = vld [vmem:[#allocation22 + $0xc8] sm:$0xf] }
 0x94f   :  { %3920 = vmatpush.bf16.msra.mxu3 %v5414_v4  ;;  %3933 = vmatpush.bf16.msrb.mxu0 %v5606_v34  ;;  %v6343_v4 = vld [vmem:[#allocation22 + $0x2bc] sm:$0xf0]  ;;  %v5681_v34 = vld [vmem:[#allocation22 + $0x5a8] sm:$0xf]  ;;  %v5465_v7 = vld [vmem:[#allocation22 + $0x3f8] sm:$0xf] }
 0x950   :  { %3946 = vmatpush.bf16.msrb.mxu1 %v5798_v38  ;;  %3911 = vmatmul.bf16.vlgmr.msra.gmra.mxu2 %v7508_v31  ;;  %v6439_v38 = vld [vmem:[#allocation22 + $0x5bc] sm:$0xf0]  ;;  %v5298_v41 = vor.u32 %v6343_v4, %v5297_v27  ;;  %v5466_v49 = vor.u32 %v6385_v45, %v5465_v7  ;;  %v5249_v54 = vld [vmem:[#allocation22 + $0x248] sm:$0xf]  ;;  %v5033_v40 = vld [vmem:[#allocation22 + $0x98] sm:$0xf] }
 0x951   :  { %3959 = vmatpush.bf16.msrb.mxu2 %v5990_v61  ;;  %v5682_v61 = vor.u32 %v6439_v38, %v5681_v34  ;;  %v6283_v53 = vld [vmem:[#allocation22 + $0xdc] sm:$0xf0]  ;;  %v5633_v0 = vld [vmem:[#allocation22 + $0x548] sm:$0xf]  ;;  %v6277_v8 = vld [vmem:[#allocation22 + $0xac] sm:$0xf0] }
 0x952   :  { %v6331_v32 = vld [vmem:[#allocation22 + $0x25c] sm:$0xf0]  ;;  %v5225_v10 = vld [vmem:[#allocation22 + $0x218] sm:$0xf]  ;;  %v6325_v12 = vld [vmem:[#allocation22 + $0x22c] sm:$0xf0] }
 0x953   :  { %3921 = vmatpush.bf16.msra.mxu3 %v5390_v6  ;;  %3934 = vmatpush.bf16.msrb.mxu0 %v5582_v46  ;;  %v6337_v6 = vld [vmem:[#allocation22 + $0x28c] sm:$0xf0]  ;;  %v5657_v46 = vld [vmem:[#allocation22 + $0x578] sm:$0xf]  ;;  %v6379_v42 = vld [vmem:[#allocation22 + $0x3dc] sm:$0xf0]  ;;  %v5226_v9 = vor.u32 %v6325_v12, %v5225_v10 }
 0x954   :  { %3947 = vmatpush.bf16.msrb.mxu1 %v5774_v47  ;;  %v6433_v47 = vld [vmem:[#allocation22 + $0x58c] sm:$0xf0]  ;;  %v5274_v48 = vor.u32 %v6337_v6, %v5273_v43  ;;  %v6427_v1 = vld [vmem:[#allocation22 + $0x55c] sm:$0xf0]  ;;  %v5609_v23 = vld [vmem:[#allocation22 + $0x518] sm:$0xf] }
 0x955   :  { %3960 = vmatpush.bf16.msrb.mxu2 %v5966_v62  ;;  %v5658_v62 = vor.u32 %v6433_v47, %v5657_v46  ;;  %v5634_v11 = vor.u32 %v6427_v1, %v5633_v0  ;;  %v6373_v13 = vld [vmem:[#allocation22 + $0x3ac] sm:$0xf0]  ;;  %v5009_v15 = vld [vmem:[#allocation22 + $0x68] sm:$0xf]  ;;  %v6319_v18 = vld [vmem:[#allocation22 + $0x1fc] sm:$0xf0] }
 0x956   :  { %v6421_v59 = vld [vmem:[#allocation22 + $0x52c] sm:$0xf0]  ;;  %v5177_v30 = vld [vmem:[#allocation22 + $0x1b8] sm:$0xf]  ;;  %v4961_v58 = vld [vmem:[#allocation22 + $0x8] sm:$0xf] }
 0x957   :  { %3922 = vmatpush.bf16.msra.mxu3 %v5366_v33  ;;  %3935 = vmatpush.bf16.msrb.mxu0 %v5558_v2  ;;  %v5441_v33 = vld [vmem:[#allocation22 + $0x3c8] sm:$0xf]  ;;  %v5058_v2 = vor.u32 %v6283_v53, %v5057_v52  ;;  %v5610_v36 = vor.u32 %v6421_v59, %v5609_v23  ;;  %v6265_v4 = vld [vmem:[#allocation22 + $0x4c] sm:$0xf0]  ;;  %v5369_v38 = vld [vmem:[#allocation22 + $0x338] sm:$0xf] }
 0x958   :  { %3948 = vmatpush.bf16.msrb.mxu1 %v5750_v56  ;;  %v5250_v56 = vor.u32 %v6331_v32, %v5249_v54  ;;  %v5442_v5 = vor.u32 %v6379_v42, %v5441_v33  ;;  %v6313_v34 = vld [vmem:[#allocation22 + $0x1cc] sm:$0xf0]  ;;  %v6259_v43 = vld [vmem:[#allocation22 + $0x1c] sm:$0xf0]  ;;  %v5153_v7 = vld [vmem:[#allocation22 + $0x188] sm:$0xf] }
 0x959   :  { %3961 = vmatpush.bf16.msrb.mxu2 %v5942_v57  ;;  %v5417_v57 = vld [vmem:[#allocation22 + $0x398] sm:$0xf]  ;;  %v6307_v45 = vld [vmem:[#allocation22 + $0x19c] sm:$0xf0]  ;;  %v5345_v46 = vld [vmem:[#allocation22 + $0x308] sm:$0xf] }
 0x95a   :  { %v5418_v60 = vor.u32 %v6373_v13, %v5417_v57  ;;  %v5897_v52 = vld [vmem:[#allocation22 + $0x758] sm:$0xf]  ;;  %v6493_v53 = vld [vmem:[#allocation22 + $0x76c] sm:$0xf0]  ;;  %v6298_v33 = vld [vmem:[#allocation22 + $0x15c] sm:$0xf]  ;;  %v5154_v0 = vor.u32 %v6307_v45, %v5153_v7 }
 0x95b   :  { %3923 = vmatpush.bf16.msra.mxu3 %v5342_v14  ;;  %3936 = vmatpush.bf16.msrb.mxu0 %v5534_v16  ;;  %v5034_v14 = vor.u32 %v6277_v8, %v5033_v40  ;;  %v6271_v16 = vld [vmem:[#allocation22 + $0x7c] sm:$0xf0]  ;;  %v6089_v54 = vld [vmem:[#allocation22 + $0x8d8] sm:$0xf]  ;;  %v6541_v32 = vld [vmem:[#allocation22 + $0x8ec] sm:$0xf0]  ;;  %v5898_v40 = vor.u32 %v6493_v53, %v5897_v52 }
 0x95c   :  { %3949 = vmatpush.bf16.msrb.mxu1 %v5726_v63  ;;  %v5201_v63 = vld [vmem:[#allocation22 + $0x1e8] sm:$0xf]  ;;  %v5010_v25 = vor.u32 %v6271_v16, %v5009_v15  ;;  %v5131_v42 = vld [vmem:[#allocation22 + $0x170] sm:$0xf0]  ;;  %v6090_v8 = vor.u32 %v6541_v32, %v6089_v54  ;;  %v6487_v12 = vld [vmem:[#allocation22 + $0x73c] sm:$0xf0] }
 0x95d   :  { %3962 = vmatpush.bf16.msrb.mxu2 %v5918_v22  ;;  %v5585_v22 = vld [vmem:[#allocation22 + $0x4e8] sm:$0xf]  ;;  %v5202_v3 = vor.u32 %v6319_v18, %v5201_v63  ;;  %v5134_v10 = vor.u32 %v6298_v33, %v5131_v42  ;;  %v6535_v23 = vld [vmem:[#allocation22 + $0x8bc] sm:$0xf0]  ;;  %v6292_v59 = vld [vmem:[#allocation22 + $0x12c] sm:$0xf] }
 0x95e   :  { %3924 = vmatmul.bf16.vlgmr.msra.gmra.mxu3 %v7510_v20  ;;  %3937 = vmatmul.bf16.vlgmr.msrb.gmra.mxu0 %v7517_v44  ;;  %v6065_v57 = vld [vmem:[#allocation22 + $0x8a8] sm:$0xf]  ;;  %v6481_v18 = vld [vmem:[#allocation22 + $0x70c] sm:$0xf0]  ;;  %v5801_v45 = vld [vmem:[#allocation22 + $0x698] sm:$0xf] }
 0x95f   :  { %3968 = vmatpush.bf16.msrb.mxu3 %v5130_v19  ;;  %3981 = vmatpush.bf16.msra.mxu0 %v5322_v21  ;;  %v5393_v19 = vld [vmem:[#allocation22 + $0x368] sm:$0xf]  ;;  %v6367_v21 = vld [vmem:[#allocation22 + $0x37c] sm:$0xf0]  ;;  %v6066_v16 = vor.u32 %v6535_v23, %v6065_v57  ;;  %v5035_v52 = vld [vmem:[#allocation22 + $0xb0] sm:$0xf0] }
 0x960   :  { %3994 = vmatpush.bf16.msra.mxu1 %v5514_v24  ;;  %3963 = vmatmul.bf16.vlgmr.msrb.gmra.mxu2 %v7539_v29  ;;  %v6415_v24 = vld [vmem:[#allocation22 + $0x4fc] sm:$0xf0]  ;;  %v5394_v27 = vor.u32 %v6367_v21, %v5393_v19  ;;  %v6041_v19 = vld [vmem:[#allocation22 + $0x878] sm:$0xf]  ;;  %v6322_v53 = vld [vmem:[#allocation22 + $0x21c] sm:$0xf] }
 0x961   :  { %4007 = vmatpush.bf16.msra.mxu2 %v5706_v17  ;;  %3950 = vmatmul.bf16.vlgmr.msrb.gmra.mxu1 %v7537_v28  ;;  %v4985_v17 = vld [vmem:[#allocation22 + $0x38] sm:$0xf]  ;;  %v5586_v50 = vor.u32 %v6415_v24, %v5585_v22  ;;  %v6529_v22 = vld [vmem:[#allocation22 + $0x88c] sm:$0xf0]  ;;  %v6286_v24 = vld [vmem:[#allocation22 + $0xfc] sm:$0xf] }
 0x962   :  { %v4986_v37 = vor.u32 %v6265_v4, %v4985_v17  ;;  %v6042_v4 = vor.u32 %v6529_v22, %v6041_v19  ;;  %v5227_v54 = vld [vmem:[#allocation22 + $0x230] sm:$0xf0]  ;;  %v5777_v42 = vld [vmem:[#allocation22 + $0x668] sm:$0xf]  ;;  %v6457_v23 = vld [vmem:[#allocation22 + $0x64c] sm:$0xf0] }
 0x963   :  { %3969 = vmatpush.bf16.msrb.mxu3 %v5106_v39  ;;  %3982 = vmatpush.bf16.msra.mxu0 %v5298_v41  ;;  %v6361_v39 = vld [vmem:[#allocation22 + $0x34c] sm:$0xf0]  ;;  %v5561_v41 = vld [vmem:[#allocation22 + $0x4b8] sm:$0xf]  ;;  %v6451_v19 = vld [vmem:[#allocation22 + $0x61c] sm:$0xf0] }
 0x964   :  { %3995 = vmatpush.bf16.msra.mxu1 %v5490_v35  ;;  %v6409_v35 = vld [vmem:[#allocation22 + $0x4cc] sm:$0xf0]  ;;  %v5370_v6 = vor.u32 %v6361_v39, %v5369_v38  ;;  %v6017_v38 = vld [vmem:[#allocation22 + $0x848] sm:$0xf] }
 0x965   :  { %4008 = vmatpush.bf16.msra.mxu2 %v5682_v61  ;;  %v5178_v61 = vor.u32 %v6313_v34, %v5177_v30  ;;  %v5562_v47 = vor.u32 %v6409_v35, %v5561_v41  ;;  %v6475_v34 = vld [vmem:[#allocation22 + $0x6dc] sm:$0xf0]  ;;  %v6280_v35 = vld [vmem:[#allocation22 + $0xcc] sm:$0xf] }
 0x966   :  { %v6523_v41 = vld [vmem:[#allocation22 + $0x85c] sm:$0xf0] }
 0x967   :  { %3970 = vmatpush.bf16.msrb.mxu3 %v5082_v51  ;;  %3983 = vmatpush.bf16.msra.mxu0 %v5274_v48  ;;  %v6355_v51 = vld [vmem:[#allocation22 + $0x31c] sm:$0xf0]  ;;  %v5537_v48 = vld [vmem:[#allocation22 + $0x488] sm:$0xf] }
 0x968   :  { %3996 = vmatpush.bf16.msra.mxu1 %v5466_v49  ;;  %v6403_v49 = vld [vmem:[#allocation22 + $0x49c] sm:$0xf0]  ;;  %v5346_v1 = vor.u32 %v6355_v51, %v5345_v46  ;;  %v6469_v46 = vld [vmem:[#allocation22 + $0x6ac] sm:$0xf0] }
 0x969   :  { %4009 = vmatpush.bf16.msra.mxu2 %v5658_v62  ;;  %v4962_v62 = vor.u32 %v6259_v43, %v4961_v58  ;;  %v6328_v58 = vld [vmem:[#allocation22 + $0x24c] sm:$0xf]  ;;  %v5251_v43 = vld [vmem:[#allocation22 + $0x260] sm:$0xf0] }
 0x96a   :  { %v5254_v51 = vor.u32 %v6328_v58, %v5251_v43 }
 0x96b   :  { %3971 = vmatpush.bf16.msrb.mxu3 %v5058_v2  ;;  %3984 = vmatpush.bf16.msra.mxu0 %v5250_v56  ;;  %v6346_v2 = vld [vmem:[#allocation22 + $0x2dc] sm:$0xf]  ;;  %v5323_v56 = vld [vmem:[#allocation22 + $0x2f0] sm:$0xf0] }
 0x96c   :  { %3997 = vmatpush.bf16.msra.mxu1 %v5442_v5  ;;  %v5538_v5 = vor.u32 %v6403_v49, %v5537_v48  ;;  %v5326_v13 = vor.u32 %v6346_v2, %v5323_v56  ;;  %v6517_v48 = vld [vmem:[#allocation22 + $0x82c] sm:$0xf0]  ;;  %v6274_v49 = vld [vmem:[#allocation22 + $0x9c] sm:$0xf]  ;;  %v5230_v2 = vor.u32 %v6322_v53, %v5227_v54  ;;  %v6511_v56 = vld [vmem:[#allocation22 + $0x7fc] sm:$0xf0] }
 0x96d   :  { %4010 = vmatpush.bf16.msra.mxu2 %v5634_v11  ;;  %v5873_v11 = vld [vmem:[#allocation22 + $0x728] sm:$0xf]  ;;  %v5038_v33 = vor.u32 %v6274_v49, %v5035_v52  ;;  %v6436_v49 = vld [vmem:[#allocation22 + $0x5ac] sm:$0xf]  ;;  %v5683_v53 = vld [vmem:[#allocation22 + $0x5c0] sm:$0xf0] }
 0x96e   :  { %v5874_v15 = vor.u32 %v6487_v12, %v5873_v11  ;;  %v6484_v54 = vld [vmem:[#allocation22 + $0x72c] sm:$0xf] }
 0x96f   :  { %3972 = vmatpush.bf16.msrb.mxu3 %v5034_v14  ;;  %3985 = vmatpush.bf16.msra.mxu0 %v5226_v9  ;;  %v5107_v14 = vld [vmem:[#allocation22 + $0x140] sm:$0xf0]  ;;  %v6340_v9 = vld [vmem:[#allocation22 + $0x2ac] sm:$0xf] }
 0x970   :  { %3998 = vmatpush.bf16.msra.mxu1 %v5418_v60  ;;  %v5299_v60 = vld [vmem:[#allocation22 + $0x2c0] sm:$0xf0]  ;;  %v5110_v63 = vor.u32 %v6292_v59, %v5107_v14  ;;  %v5945_v59 = vld [vmem:[#allocation22 + $0x7b8] sm:$0xf] }
 0x971   :  { %4011 = vmatpush.bf16.msra.mxu2 %v5610_v36  ;;  %v5849_v36 = vld [vmem:[#allocation22 + $0x6f8] sm:$0xf]  ;;  %v5302_v21 = vor.u32 %v6340_v9, %v5299_v60  ;;  %v6505_v9 = vld [vmem:[#allocation22 + $0x7cc] sm:$0xf0]  ;;  %v6262_v60 = vld [vmem:[#allocation22 + $0x3c] sm:$0xf] }
 0x972   :  { %v5850_v17 = vor.u32 %v6481_v18, %v5849_v36  ;;  %v5729_v18 = vld [vmem:[#allocation22 + $0x608] sm:$0xf] }
 0x973   :  { %3973 = vmatpush.bf16.msrb.mxu3 %v5010_v25  ;;  %3986 = vmatpush.bf16.msra.mxu0 %v5202_v3  ;;  %v5083_v25 = vld [vmem:[#allocation22 + $0x110] sm:$0xf0]  ;;  %v6334_v3 = vld [vmem:[#allocation22 + $0x27c] sm:$0xf] }
 0x974   :  { %3999 = vmatpush.bf16.msra.mxu1 %v5394_v27  ;;  %v5275_v27 = vld [vmem:[#allocation22 + $0x290] sm:$0xf0]  ;;  %v5086_v30 = vor.u32 %v6286_v24, %v5083_v25  ;;  %v5921_v24 = vld [vmem:[#allocation22 + $0x788] sm:$0xf]  ;;  %v6499_v25 = vld [vmem:[#allocation22 + $0x79c] sm:$0xf0] }
 0x975   :  { %4012 = vmatpush.bf16.msra.mxu2 %v5586_v50  ;;  %v5825_v50 = vld [vmem:[#allocation22 + $0x6c8] sm:$0xf]  ;;  %v5278_v39 = vor.u32 %v6334_v3, %v5275_v27  ;;  %v6256_v3 = vld [vmem:[#allocation22 + $0xc] sm:$0xf]  ;;  %v5922_v58 = vor.u32 %v6499_v25, %v5921_v24  ;;  %v6370_v25 = vld [vmem:[#allocation22 + $0x39c] sm:$0xf] }
 0x977   :  { %3974 = vmatpush.bf16.msrb.mxu3 %v4986_v37  ;;  %3987 = vmatpush.bf16.msra.mxu0 %v5178_v61  ;;  %v5059_v37 = vld [vmem:[#allocation22 + $0xe0] sm:$0xf0]  ;;  %v5826_v61 = vor.u32 %v6475_v34, %v5825_v50  ;;  %v6394_v50 = vld [vmem:[#allocation22 + $0x45c] sm:$0xf]  ;;  %v5515_v34 = vld [vmem:[#allocation22 + $0x470] sm:$0xf0] }
 0x978   :  { %4000 = vmatpush.bf16.msra.mxu1 %v5370_v6  ;;  %v6018_v6 = vor.u32 %v6523_v41, %v6017_v38  ;;  %v5062_v7 = vor.u32 %v6280_v35, %v5059_v37  ;;  %v6442_v38 = vld [vmem:[#allocation22 + $0x5dc] sm:$0xf]  ;;  %v5707_v41 = vld [vmem:[#allocation22 + $0x5f0] sm:$0xf0] }
 0x979   :  { %4013 = vmatpush.bf16.msra.mxu2 %v5562_v47  ;;  %v5993_v47 = vld [vmem:[#allocation22 + $0x818] sm:$0xf]  ;;  %v6490_v35 = vld [vmem:[#allocation22 + $0x75c] sm:$0xf]  ;;  %v5899_v37 = vld [vmem:[#allocation22 + $0x770] sm:$0xf0] }
 0x97a   :  { %v5994_v32 = vor.u32 %v6517_v48, %v5993_v47  ;;  %v5902_v47 = vor.u32 %v6490_v35, %v5899_v37  ;;  %v5491_v48 = vld [vmem:[#allocation22 + $0x440] sm:$0xf0]  ;;  %v6364_v37 = vld [vmem:[#allocation22 + $0x36c] sm:$0xf] }
 0x97b   :  { %3975 = vmatpush.bf16.msrb.mxu3 %v4962_v62  ;;  %3988 = vmatpush.bf16.msra.mxu0 %v5154_v0  ;;  %v5802_v62 = vor.u32 %v6469_v46, %v5801_v45  ;;  %v6463_v0 = vld [vmem:[#allocation22 + $0x67c] sm:$0xf0]  ;;  %v5518_v45 = vor.u32 %v6394_v50, %v5515_v34  ;;  %v5710_v46 = vor.u32 %v6442_v38, %v5707_v41  ;;  %v5803_v50 = vld [vmem:[#allocation22 + $0x6b0] sm:$0xf0]  ;;  %v6514_v34 = vld [vmem:[#allocation22 + $0x81c] sm:$0xf] }
 0x97c   :  { %4001 = vmatpush.bf16.msra.mxu1 %v5346_v1  ;;  %v5969_v1 = vld [vmem:[#allocation22 + $0x7e8] sm:$0xf]  ;;  %v5778_v11 = vor.u32 %v6463_v0, %v5777_v42  ;;  %v5686_v0 = vor.u32 %v6436_v49, %v5683_v53  ;;  %v5995_v38 = vld [vmem:[#allocation22 + $0x830] sm:$0xf0] }
 0x97d   :  { %4014 = vmatpush.bf16.msra.mxu2 %v5538_v5  ;;  %v6268_v5 = vld [vmem:[#allocation22 + $0x6c] sm:$0xf]  ;;  %v5970_v12 = vor.u32 %v6511_v56, %v5969_v1  ;;  %v5467_v56 = vld [vmem:[#allocation22 + $0x410] sm:$0xf0] }
 0x97e   :  { %3976 = vmatmul.bf16.vlgmr.msrb.gmra.mxu3 %v7505_v26  ;;  %3989 = vmatmul.bf16.vlgmr.msra.gmra.mxu0 %v7508_v31  ;;  %v5371_v53 = vld [vmem:[#allocation22 + $0x350] sm:$0xf0] }
 0x97f   :  { %4020 = vmatpush.bf16.msra.mxu3 %v5898_v40  ;;  %4033 = vmatpush.bf16.msrb.mxu0 %v6090_v8  ;;  %v5011_v40 = vld [vmem:[#allocation22 + $0x80] sm:$0xf0]  ;;  %v6316_v8 = vld [vmem:[#allocation22 + $0x1ec] sm:$0xf] }
 0x980   :  { %4046 = vmatpush.bf16.msrb.mxu1 %v5134_v10  ;;  %4015 = vmatmul.bf16.vlgmr.msra.gmra.mxu2 %v7517_v44  ;;  %v5203_v10 = vld [vmem:[#allocation22 + $0x200] sm:$0xf0]  ;;  %v5014_v57 = vor.u32 %v6268_v5, %v5011_v40  ;;  %v6430_v5 = vld [vmem:[#allocation22 + $0x57c] sm:$0xf] }
 0x981   :  { %4059 = vmatpush.bf16.msrb.mxu2 %v5326_v13  ;;  %4002 = vmatmul.bf16.vlgmr.msra.gmra.mxu1 %v7510_v20  ;;  %v5753_v13 = vld [vmem:[#allocation22 + $0x638] sm:$0xf]  ;;  %v5206_v14 = vor.u32 %v6316_v8, %v5203_v10  ;;  %v5659_v8 = vld [vmem:[#allocation22 + $0x590] sm:$0xf0]  ;;  %v6478_v10 = vld [vmem:[#allocation22 + $0x6fc] sm:$0xf] }
 0x982   :  { %v5754_v36 = vor.u32 %v6457_v23, %v5753_v13  ;;  %v5662_v23 = vor.u32 %v6430_v5, %v5659_v8  ;;  %v5347_v5 = vld [vmem:[#allocation22 + $0x320] sm:$0xf0] }
 0x983   :  { %4021 = vmatpush.bf16.msra.mxu3 %v5874_v15  ;;  %4034 = vmatpush.bf16.msrb.mxu0 %v6066_v16  ;;  %v4987_v15 = vld [vmem:[#allocation22 + $0x50] sm:$0xf0]  ;;  %v6310_v16 = vld [vmem:[#allocation22 + $0x1bc] sm:$0xf] }
 0x984   :  { %4047 = vmatpush.bf16.msrb.mxu1 %v5110_v63  ;;  %v5179_v63 = vld [vmem:[#allocation22 + $0x1d0] sm:$0xf0]  ;;  %v4990_v22 = vor.u32 %v6262_v60, %v4987_v15  ;;  %v6424_v60 = vld [vmem:[#allocation22 + $0x54c] sm:$0xf] }
 0x985   :  { %4060 = vmatpush.bf16.msrb.mxu2 %v5302_v21  ;;  %v5946_v21 = vor.u32 %v6505_v9, %v5945_v59  ;;  %v5182_v27 = vor.u32 %v6310_v16, %v5179_v63  ;;  %v5443_v9 = vld [vmem:[#allocation22 + $0x3e0] sm:$0xf0]  ;;  %v6472_v63 = vld [vmem:[#allocation22 + $0x6cc] sm:$0xf] }
 0x986   :  { %v5635_v16 = vld [vmem:[#allocation22 + $0x560] sm:$0xf0] }
 0x987   :  { %4022 = vmatpush.bf16.msra.mxu3 %v5850_v17  ;;  %4035 = vmatpush.bf16.msrb.mxu0 %v6042_v4  ;;  %v4963_v17 = vld [vmem:[#allocation22 + $0x20] sm:$0xf0]  ;;  %v6304_v4 = vld [vmem:[#allocation22 + $0x18c] sm:$0xf] }
 0x988   :  { %4048 = vmatpush.bf16.msrb.mxu1 %v5086_v30  ;;  %v5155_v30 = vld [vmem:[#allocation22 + $0x1a0] sm:$0xf0]  ;;  %v4966_v43 = vor.u32 %v6256_v3, %v4963_v17  ;;  %v5419_v3 = vld [vmem:[#allocation22 + $0x3b0] sm:$0xf0] }
 0x989   :  { %4061 = vmatpush.bf16.msrb.mxu2 %v5278_v39  ;;  %v5730_v39 = vor.u32 %v6451_v19, %v5729_v18  ;;  %v6520_v18 = vld [vmem:[#allocation22 + $0x84c] sm:$0xf]  ;;  %v6019_v19 = vld [vmem:[#allocation22 + $0x860] sm:$0xf0] }
 0x98a   :  { %v6022_v17 = vor.u32 %v6520_v18, %v6019_v19 }
 0x98b   :  { %4023 = vmatpush.bf16.msra.mxu3 %v5826_v61  ;;  %4036 = vmatpush.bf16.msrb.mxu0 %v6018_v6  ;;  %v6538_v61 = vld [vmem:[#allocation22 + $0x8dc] sm:$0xf]  ;;  %v6091_v6 = vld [vmem:[#allocation22 + $0x8f0] sm:$0xf0] }
 0x98c   :  { %4049 = vmatpush.bf16.msrb.mxu1 %v5062_v7  ;;  %v5158_v7 = vor.u32 %v6304_v4, %v5155_v30  ;;  %v6094_v52 = vor.u32 %v6538_v61, %v6091_v6  ;;  %v5611_v4 = vld [vmem:[#allocation22 + $0x530] sm:$0xf0]  ;;  %v6466_v30 = vld [vmem:[#allocation22 + $0x69c] sm:$0xf]  ;;  %v5998_v61 = vor.u32 %v6514_v34, %v5995_v38  ;;  %v5587_v6 = vld [vmem:[#allocation22 + $0x500] sm:$0xf0] }
 0x98d   :  { %4062 = vmatpush.bf16.msrb.mxu2 %v5254_v51  ;;  %v6388_v51 = vld [vmem:[#allocation22 + $0x42c] sm:$0xf]  ;;  %v5806_v35 = vor.u32 %v6466_v30, %v5803_v50  ;;  %v5305_v30 = vld [vmem:[#allocation22 + $0x2b0] sm:$0xf]  ;;  %v6344_v34 = vld [vmem:[#allocation22 + $0x2c4] sm:$0xf0] }
 0x98e   :  { %v5494_v42 = vor.u32 %v6388_v51, %v5491_v48  ;;  %v5497_v38 = vld [vmem:[#allocation22 + $0x430] sm:$0xf] }
 0x98f   :  { %4024 = vmatpush.bf16.msra.mxu3 %v5802_v62  ;;  %4037 = vmatpush.bf16.msrb.mxu0 %v5994_v32  ;;  %v5875_v62 = vld [vmem:[#allocation22 + $0x740] sm:$0xf0]  ;;  %v6532_v32 = vld [vmem:[#allocation22 + $0x8ac] sm:$0xf] }
 0x990   :  { %4050 = vmatpush.bf16.msrb.mxu1 %v5038_v33  ;;  %v6067_v33 = vld [vmem:[#allocation22 + $0x8c0] sm:$0xf0]  ;;  %v5878_v1 = vor.u32 %v6484_v54, %v5875_v62  ;;  %v6406_v54 = vld [vmem:[#allocation22 + $0x4bc] sm:$0xf] }
 0x991   :  { %4063 = vmatpush.bf16.msrb.mxu2 %v5230_v2  ;;  %v6382_v2 = vld [vmem:[#allocation22 + $0x3fc] sm:$0xf]  ;;  %v6070_v40 = vor.u32 %v6532_v32, %v6067_v33  ;;  %v5563_v32 = vld [vmem:[#allocation22 + $0x4d0] sm:$0xf0] }
 0x992   :  { %v5470_v13 = vor.u32 %v6382_v2, %v5467_v56  ;;  %v6454_v33 = vld [vmem:[#allocation22 + $0x63c] sm:$0xf]  ;;  %v6352_v56 = vld [vmem:[#allocation22 + $0x30c] sm:$0xf] }
 0x993   :  { %4025 = vmatpush.bf16.msra.mxu3 %v5778_v11  ;;  %4038 = vmatpush.bf16.msrb.mxu0 %v5970_v12  ;;  %v5851_v11 = vld [vmem:[#allocation22 + $0x710] sm:$0xf0]  ;;  %v6526_v12 = vld [vmem:[#allocation22 + $0x87c] sm:$0xf] }
 0x994   :  { %4051 = vmatpush.bf16.msrb.mxu1 %v5014_v57  ;;  %v6043_v57 = vld [vmem:[#allocation22 + $0x890] sm:$0xf0]  ;;  %v5854_v59 = vor.u32 %v6478_v10, %v5851_v11  ;;  %v6400_v10 = vld [vmem:[#allocation22 + $0x48c] sm:$0xf]  ;;  %v5539_v11 = vld [vmem:[#allocation22 + $0x4a0] sm:$0xf0] }
 0x995   :  { %4064 = vmatpush.bf16.msrb.mxu2 %v5206_v14  ;;  %v6376_v14 = vld [vmem:[#allocation22 + $0x3cc] sm:$0xf]  ;;  %v6046_v15 = vor.u32 %v6526_v12, %v6043_v57  ;;  %v5542_v18 = vor.u32 %v6400_v10, %v5539_v11 }
 0x996   :  { %v6448_v12 = vld [vmem:[#allocation22 + $0x60c] sm:$0xf] }
 0x997   :  { %4026 = vmatpush.bf16.msra.mxu3 %v5754_v36  ;;  %4039 = vmatpush.bf16.msrb.mxu0 %v5946_v21  ;;  %v5827_v36 = vld [vmem:[#allocation22 + $0x6e0] sm:$0xf0]  ;;  %v5446_v21 = vor.u32 %v6376_v14, %v5443_v9  ;;  %v5137_v14 = vld [vmem:[#allocation22 + $0x160] sm:$0xf]  ;;  %v6302_v9 = vld [vmem:[#allocation22 + $0x174] sm:$0xf0] }
 0x998   :  { %4052 = vmatpush.bf16.msrb.mxu1 %v4990_v22  ;;  %v5638_v22 = vor.u32 %v6424_v60, %v5635_v16  ;;  %v5830_v24 = vor.u32 %v6472_v63, %v5827_v36  ;;  %v5329_v60 = vld [vmem:[#allocation22 + $0x2e0] sm:$0xf]  ;;  %v6350_v16 = vld [vmem:[#allocation22 + $0x2f4] sm:$0xf0] }
 0x999   :  { %4065 = vmatpush.bf16.msrb.mxu2 %v5182_v27  ;;  %v6418_v27 = vld [vmem:[#allocation22 + $0x51c] sm:$0xf]  ;;  %v5521_v63 = vld [vmem:[#allocation22 + $0x460] sm:$0xf]  ;;  %v6398_v36 = vld [vmem:[#allocation22 + $0x474] sm:$0xf0] }
 0x99a   :  { %v5614_v41 = vor.u32 %v6418_v27, %v5611_v4  ;;  %v5522_v27 = vor.u32 %v6398_v36, %v5521_v63  ;;  %v6296_v4 = vld [vmem:[#allocation22 + $0x144] sm:$0xf0]  ;;  %v5617_v63 = vld [vmem:[#allocation22 + $0x520] sm:$0xf]  ;;  %v6422_v36 = vld [vmem:[#allocation22 + $0x534] sm:$0xf0] }
 0x99b   :  { %4027 = vmatpush.bf16.msra.mxu3 %v5730_v39  ;;  %4040 = vmatpush.bf16.msrb.mxu0 %v5922_v58  ;;  %v5422_v39 = vor.u32 %v6370_v25, %v5419_v3  ;;  %v5395_v58 = vld [vmem:[#allocation22 + $0x380] sm:$0xf0]  ;;  %v5138_v25 = vor.u32 %v6302_v9, %v5137_v14  ;;  %v5330_v3 = vor.u32 %v6350_v16, %v5329_v60  ;;  %v6326_v60 = vld [vmem:[#allocation22 + $0x234] sm:$0xf0] }
 0x99c   :  { %4053 = vmatpush.bf16.msrb.mxu1 %v4966_v43  ;;  %v6412_v43 = vld [vmem:[#allocation22 + $0x4ec] sm:$0xf]  ;;  %v5398_v51 = vor.u32 %v6364_v37, %v5395_v58  ;;  %v5306_v58 = vor.u32 %v6344_v34, %v5305_v30  ;;  %v6374_v16 = vld [vmem:[#allocation22 + $0x3b4] sm:$0xf0]  ;;  %v6320_v34 = vld [vmem:[#allocation22 + $0x204] sm:$0xf0] }
 0x99d   :  { %4066 = vmatpush.bf16.msrb.mxu2 %v5158_v7  ;;  %v6460_v7 = vld [vmem:[#allocation22 + $0x66c] sm:$0xf]  ;;  %v5590_v48 = vor.u32 %v6412_v43, %v5587_v6  ;;  %v6290_v6 = vld [vmem:[#allocation22 + $0x114] sm:$0xf0] }
 0x99e   :  { %4028 = vmatmul.bf16.vlgmr.msra.gmra.mxu3 %v7537_v28  ;;  %4041 = vmatmul.bf16.vlgmr.msrb.gmra.mxu0 %v7539_v29 }
 0x99f   :  { %4072 = vmatpush.bf16.msrb.mxu3 %v5518_v45  ;;  %4085 = vmatpush.bf16.msra.mxu0 %v5710_v46  ;;  %v5779_v45 = vld [vmem:[#allocation22 + $0x680] sm:$0xf0]  ;;  %v6508_v46 = vld [vmem:[#allocation22 + $0x7ec] sm:$0xf] }
 0x9a0   :  { %4098 = vmatpush.bf16.msra.mxu1 %v5902_v47  ;;  %4067 = vmatmul.bf16.vlgmr.msrb.gmra.mxu2 %v7508_v31  ;;  %v5971_v47 = vld [vmem:[#allocation22 + $0x800] sm:$0xf0]  ;;  %v5782_v49 = vor.u32 %v6460_v7, %v5779_v45  ;;  %v5281_v7 = vld [vmem:[#allocation22 + $0x280] sm:$0xf] }
 0x9a1   :  { %4111 = vmatpush.bf16.msra.mxu2 %v6094_v52  ;;  %4054 = vmatmul.bf16.vlgmr.msrb.gmra.mxu1 %v7505_v26  ;;  %v6358_v52 = vld [vmem:[#allocation22 + $0x33c] sm:$0xf]  ;;  %v5974_v62 = vor.u32 %v6508_v46, %v5971_v47  ;;  %v6338_v46 = vld [vmem:[#allocation22 + $0x294] sm:$0xf0]  ;;  %v5473_v47 = vld [vmem:[#allocation22 + $0x400] sm:$0xf] }
 0x9a2   :  { %v5374_v2 = vor.u32 %v6358_v52, %v5371_v53 }
 0x9a3   :  { %4073 = vmatpush.bf16.msrb.mxu3 %v5494_v42  ;;  %4086 = vmatpush.bf16.msra.mxu0 %v5686_v0  ;;  %v5755_v42 = vld [vmem:[#allocation22 + $0x650] sm:$0xf0]  ;;  %v6502_v0 = vld [vmem:[#allocation22 + $0x7bc] sm:$0xf] }
 0x9a4   :  { %4099 = vmatpush.bf16.msra.mxu1 %v5878_v1  ;;  %v5947_v1 = vld [vmem:[#allocation22 + $0x7d0] sm:$0xf0]  ;;  %v5758_v8 = vor.u32 %v6454_v33, %v5755_v42  ;;  %v5065_v33 = vld [vmem:[#allocation22 + $0xd0] sm:$0xf]  ;;  %v6284_v42 = vld [vmem:[#allocation22 + $0xe4] sm:$0xf0] }
 0x9a5   :  { %4112 = vmatpush.bf16.msra.mxu2 %v6070_v40  ;;  %v5566_v40 = vor.u32 %v6406_v54, %v5563_v32  ;;  %v5950_v57 = vor.u32 %v6502_v0, %v5947_v1  ;;  %v5257_v0 = vld [vmem:[#allocation22 + $0x250] sm:$0xf]  ;;  %v5066_v10 = vor.u32 %v6284_v42, %v5065_v33 }
 0x9a7   :  { %4074 = vmatpush.bf16.msrb.mxu3 %v5470_v13  ;;  %4087 = vmatpush.bf16.msra.mxu0 %v5662_v23  ;;  %v5731_v13 = vld [vmem:[#allocation22 + $0x620] sm:$0xf0]  ;;  %v6496_v23 = vld [vmem:[#allocation22 + $0x78c] sm:$0xf] }
 0x9a8   :  { %4100 = vmatpush.bf16.msra.mxu1 %v5854_v59  ;;  %v5923_v59 = vld [vmem:[#allocation22 + $0x7a0] sm:$0xf0]  ;;  %v5734_v19 = vor.u32 %v6448_v12, %v5731_v13  ;;  %v5041_v13 = vld [vmem:[#allocation22 + $0xa0] sm:$0xf] }
 0x9a9   :  { %4113 = vmatpush.bf16.msra.mxu2 %v6046_v15  ;;  %v5350_v15 = vor.u32 %v6352_v56, %v5347_v5  ;;  %v5449_v56 = vld [vmem:[#allocation22 + $0x3d0] sm:$0xf]  ;;  %v6380_v5 = vld [vmem:[#allocation22 + $0x3e4] sm:$0xf0] }
 0x9aa   :  { %v5450_v12 = vor.u32 %v6380_v5, %v5449_v56  ;;  %v6308_v56 = vld [vmem:[#allocation22 + $0x1a4] sm:$0xf0]  ;;  %v5353_v5 = vld [vmem:[#allocation22 + $0x310] sm:$0xf] }
 0x9ab   :  { %4075 = vmatpush.bf16.msrb.mxu3 %v5446_v21  ;;  %4088 = vmatpush.bf16.msra.mxu0 %v5638_v22  ;;  %v5713_v21 = vld [vmem:[#allocation22 + $0x5e0] sm:$0xf]  ;;  %v6446_v22 = vld [vmem:[#allocation22 + $0x5f4] sm:$0xf0] }
 0x9ac   :  { %4101 = vmatpush.bf16.msra.mxu1 %v5830_v24  ;;  %v5926_v24 = vor.u32 %v6496_v23, %v5923_v59  ;;  %v5714_v50 = vor.u32 %v6446_v22, %v5713_v21  ;;  %v6278_v23 = vld [vmem:[#allocation22 + $0xb4] sm:$0xf0]  ;;  %v5233_v59 = vld [vmem:[#allocation22 + $0x220] sm:$0xf] }
 0x9ad   :  { %4114 = vmatpush.bf16.msra.mxu2 %v6022_v17  ;;  %v5113_v17 = vld [vmem:[#allocation22 + $0x130] sm:$0xf] }
 0x9ae   :  { %v5114_v37 = vor.u32 %v6296_v4, %v5113_v17  ;;  %v6272_v17 = vld [vmem:[#allocation22 + $0x84] sm:$0xf0]  ;;  %v5209_v4 = vld [vmem:[#allocation22 + $0x1f0] sm:$0xf] }
 0x9af   :  { %4076 = vmatpush.bf16.msrb.mxu3 %v5422_v39  ;;  %4089 = vmatpush.bf16.msra.mxu0 %v5614_v41  ;;  %v6392_v39 = vld [vmem:[#allocation22 + $0x444] sm:$0xf0]  ;;  %v5689_v41 = vld [vmem:[#allocation22 + $0x5b0] sm:$0xf] }
 0x9b0   :  { %4102 = vmatpush.bf16.msra.mxu1 %v5806_v35  ;;  %v6440_v35 = vld [vmem:[#allocation22 + $0x5c4] sm:$0xf0]  ;;  %v5498_v43 = vor.u32 %v6392_v39, %v5497_v38  ;;  %v5401_v38 = vld [vmem:[#allocation22 + $0x370] sm:$0xf] }
 0x9b1   :  { %4115 = vmatpush.bf16.msra.mxu2 %v5998_v61  ;;  %v5089_v61 = vld [vmem:[#allocation22 + $0x100] sm:$0xf]  ;;  %v5690_v45 = vor.u32 %v6440_v35, %v5689_v41  ;;  %v6368_v39 = vld [vmem:[#allocation22 + $0x384] sm:$0xf0]  ;;  %v5593_v41 = vld [vmem:[#allocation22 + $0x4f0] sm:$0xf] }
 0x9b2   :  { %v5090_v52 = vor.u32 %v6290_v6, %v5089_v61  ;;  %v6416_v35 = vld [vmem:[#allocation22 + $0x504] sm:$0xf0]  ;;  %v4993_v6 = vld [vmem:[#allocation22 + $0x40] sm:$0xf] }
 0x9b3   :  { %4077 = vmatpush.bf16.msrb.mxu3 %v5398_v51  ;;  %4090 = vmatpush.bf16.msra.mxu0 %v5590_v48  ;;  %v6386_v51 = vld [vmem:[#allocation22 + $0x414] sm:$0xf0]  ;;  %v5665_v48 = vld [vmem:[#allocation22 + $0x580] sm:$0xf] }
 0x9b4   :  { %4103 = vmatpush.bf16.msra.mxu1 %v5782_v49  ;;  %v6434_v49 = vld [vmem:[#allocation22 + $0x594] sm:$0xf0]  ;;  %v5474_v32 = vor.u32 %v6386_v51, %v5473_v47  ;;  %v5377_v51 = vld [vmem:[#allocation22 + $0x340] sm:$0xf] }
 0x9b5   :  { %4116 = vmatpush.bf16.msra.mxu2 %v5974_v62  ;;  %v5282_v62 = vor.u32 %v6338_v46, %v5281_v7  ;;  %v5666_v1 = vor.u32 %v6434_v49, %v5665_v48  ;;  %v6266_v7 = vld [vmem:[#allocation22 + $0x54] sm:$0xf0]  ;;  %v5594_v46 = vor.u32 %v6416_v35, %v5593_v41  ;;  %v5569_v49 = vld [vmem:[#allocation22 + $0x4c0] sm:$0xf] }
 0x9b6   :  { %v6314_v47 = vld [vmem:[#allocation22 + $0x1d4] sm:$0xf0] }
 0x9b7   :  { %4078 = vmatpush.bf16.msrb.mxu3 %v5374_v2  ;;  %4091 = vmatpush.bf16.msra.mxu0 %v5566_v40  ;;  %v6332_v2 = vld [vmem:[#allocation22 + $0x264] sm:$0xf0]  ;;  %v5641_v40 = vld [vmem:[#allocation22 + $0x550] sm:$0xf]  ;;  %v6362_v48 = vld [vmem:[#allocation22 + $0x354] sm:$0xf0] }
 0x9b8   :  { %4104 = vmatpush.bf16.msra.mxu1 %v5758_v8  ;;  %v6428_v8 = vld [vmem:[#allocation22 + $0x564] sm:$0xf0]  ;;  %v5258_v11 = vor.u32 %v6332_v2, %v5257_v0  ;;  %v5378_v0 = vor.u32 %v6362_v48, %v5377_v51  ;;  %v5161_v2 = vld [vmem:[#allocation22 + $0x190] sm:$0xf]  ;;  %v6530_v51 = vld [vmem:[#allocation22 + $0x894] sm:$0xf0] }
 0x9b9   :  { %4117 = vmatpush.bf16.msra.mxu2 %v5950_v57  ;;  %v5642_v14 = vor.u32 %v6428_v8, %v5641_v40  ;;  %v6356_v8 = vld [vmem:[#allocation22 + $0x324] sm:$0xf0]  ;;  %v6287_v48 = vld [vmem:[#allocation22 + $0x104] sm:$0xf] }
 0x9ba   :  { %v3834_v53 = vpop.f32.mrf.mxu0 }
 0x9bb   :  { %4079 = vmatpush.bf16.msrb.mxu3 %v5350_v15  ;;  %4092 = vmatpush.bf16.msra.mxu0 %v5542_v18  ;;  %v3847_v54 = vpop.f32.mrf.mxu1  ;;  %v5425_v15 = vld [vmem:[#allocation22 + $0x3a0] sm:$0xf] }
 0x9bc   :  { %4105 = vmatpush.bf16.msra.mxu1 %v5734_v19  ;;  %v5042_v19 = vor.u32 %v6278_v23, %v5041_v13  ;;  %v6097_v13 = vld [vmem:[#allocation22 + $0x8e0] sm:$0xf] }
 0x9bd   :  { %4118 = vmatpush.bf16.msra.mxu2 %v5926_v24 }
 0x9be   :  { %4080 = vmatmul.bf16.vlgmr.msrb.gmra.mxu3 %v7510_v20  ;;  %4093 = vmatmul.bf16.vlgmr.msra.gmra.mxu0 %v7517_v44 }
 0x9bf   :  { %4124 = vmatpush.bf16.msra.mxu3 %v5138_v25  ;;  %4137 = vmatpush.bf16.msrb.mxu0 %v5330_v3  ;;  %v5234_v25 = vor.u32 %v6326_v60, %v5233_v59  ;;  %v5426_v3 = vor.u32 %v6374_v16, %v5425_v15  ;;  %v6542_v59 = vld [vmem:[#allocation22 + $0x8f4] sm:$0xf0]  ;;  %v5162_v60 = vor.u32 %v6308_v56, %v5161_v2  ;;  %v6347_v16 = vld [vmem:[#allocation22 + $0x2e4] sm:$0xf]  ;;  %v6524_v56 = vld [vmem:[#allocation22 + $0x864] sm:$0xf0] }
 0x9c0   :  { %4150 = vmatpush.bf16.msrb.mxu1 %v5522_v27  ;;  %4119 = vmatmul.bf16.vlgmr.msra.gmra.mxu2 %v7539_v29  ;;  %v3821_v57 = vpop.f32.mrf.mxu3  ;;  %v5017_v27 = vld [vmem:[#allocation22 + $0x70] sm:$0xf]  ;;  %v5354_v15 = vor.u32 %v6356_v8, %v5353_v5  ;;  %v6281_v5 = vld [vmem:[#allocation22 + $0xd4] sm:$0xf] }
 0x9c1   :  { %4163 = vmatpush.bf16.msrb.mxu2 %v5714_v50  ;;  %4106 = vmatmul.bf16.vlgmr.msra.gmra.mxu1 %v7537_v28  ;;  %v3835_v9 = vadd.f32 %v3834_v53, %v3821_v57  ;;  %v5618_v50 = vor.u32 %v6422_v36, %v5617_v63  ;;  %v4994_v53 = vor.u32 %v6266_v7, %v4993_v6  ;;  %v6494_v57 = vld [vmem:[#allocation22 + $0x774] sm:$0xf0]  ;;  %v5331_v63 = vld [vmem:[#allocation22 + $0x2f8] sm:$0xf0]  ;;  %v5857_v7 = vld [vmem:[#allocation22 + $0x700] sm:$0xf] }
 0x9c2   :  { %v3836_v21 = vpop.f32.mrf.mxu0 }
 0x9c3   :  { %4125 = vmatpush.bf16.msra.mxu3 %v5114_v37  ;;  %4138 = vmatpush.bf16.msrb.mxu0 %v5306_v58  ;;  %v3848_v18 = vadd.f32 %v3847_v54, %v3835_v9  ;;  %v3849_v22 = vpop.f32.mrf.mxu1  ;;  %v3860_v24 = vpop.f32.mrf.mxu2  ;;  %v5018_v37 = vor.u32 %v6272_v17, %v5017_v27  ;;  %v5210_v58 = vor.u32 %v6320_v34, %v5209_v4  ;;  %v5139_v9 = vld [vmem:[#allocation22 + $0x178] sm:$0xf0]  ;;  %v6073_v27 = vld [vmem:[#allocation22 + $0x8b0] sm:$0xf]  ;;  %v6536_v34 = vld [vmem:[#allocation22 + $0x8c4] sm:$0xf0] }
 0x9c4   :  { %4151 = vmatpush.bf16.msrb.mxu1 %v5498_v43  ;;  %v5402_v43 = vor.u32 %v6368_v39, %v5401_v38  ;;  %v6098_v22 = vor.u32 %v6542_v59, %v6097_v13  ;;  %v5334_v17 = vor.u32 %v6347_v16, %v5331_v63  ;;  %v6293_v38 = vld [vmem:[#allocation22 + $0x134] sm:$0xf]  ;;  %v5115_v39 = vld [vmem:[#allocation22 + $0x148] sm:$0xf0]  ;;  %v6518_v16 = vld [vmem:[#allocation22 + $0x834] sm:$0xf0] }
 0x9c5   :  { %4164 = vmatpush.bf16.msrb.mxu2 %v5690_v45  ;;  %v3861_v30 = vadd.f32 %v3860_v24, %v3848_v18  ;;  %v5185_v45 = vld [vmem:[#allocation22 + $0x1c0] sm:$0xf]  ;;  %v5118_v6 = vor.u32 %v6293_v38, %v5115_v39  ;;  %v6275_v63 = vld [vmem:[#allocation22 + $0xa4] sm:$0xf]  ;;  %v6512_v38 = vld [vmem:[#allocation22 + $0x804] sm:$0xf0] }
 0x9c6   :  { %v5186_v42 = vor.u32 %v6314_v47, %v5185_v45  ;;  %v6482_v45 = vld [vmem:[#allocation22 + $0x714] sm:$0xf0]  ;;  %v6269_v39 = vld [vmem:[#allocation22 + $0x74] sm:$0xf] }
 0x9c7   :  { %4126 = vmatpush.bf16.msra.mxu3 %v5090_v52  ;;  %4139 = vmatpush.bf16.msrb.mxu0 %v5282_v62  ;;  %v6410_v52 = vld [vmem:[#allocation22 + $0x4d4] sm:$0xf0]  ;;  %v4969_v62 = vld [vmem:[#allocation22 + $0x10] sm:$0xf] }
 0x9c8   :  { %4152 = vmatpush.bf16.msrb.mxu1 %v5474_v32  ;;  %v3823_v61 = vpop.f32.mrf.mxu3  ;;  %v6260_v32 = vld [vmem:[#allocation22 + $0x24] sm:$0xf0]  ;;  %v5570_v40 = vor.u32 %v6410_v52, %v5569_v49  ;;  %v5091_v49 = vld [vmem:[#allocation22 + $0x118] sm:$0xf0]  ;;  %v6335_v52 = vld [vmem:[#allocation22 + $0x284] sm:$0xf] }
 0x9c9   :  { %4165 = vmatpush.bf16.msrb.mxu2 %v5666_v1  ;;  %v4970_v23 = vor.u32 %v6260_v32, %v4969_v62  ;;  %v6074_v61 = vor.u32 %v6536_v34, %v6073_v27  ;;  %v5858_v62 = vor.u32 %v6482_v45, %v5857_v7  ;;  %v6464_v27 = vld [vmem:[#allocation22 + $0x684] sm:$0xf0] }
 0x9cb   :  { %4127 = vmatpush.bf16.msra.mxu3 %v5066_v10  ;;  %4140 = vmatpush.bf16.msrb.mxu0 %v5258_v11  ;;  %v3886_v54 = vpop.f32.mrf.mxu0  ;;  %v3862_v33 = vpop.f32.mrf.mxu2  ;;  %v5545_v10 = vld [vmem:[#allocation22 + $0x490] sm:$0xf]  ;;  %v6404_v11 = vld [vmem:[#allocation22 + $0x4a4] sm:$0xf0] }
 0x9cc   :  { %4153 = vmatpush.bf16.msrb.mxu1 %v5450_v12  ;;  %v3899_v1 = vpop.f32.mrf.mxu1  ;;  %v5905_v12 = vld [vmem:[#allocation22 + $0x760] sm:$0xf]  ;;  %v5546_v18 = vor.u32 %v6404_v11, %v5545_v10  ;;  %v5094_v33 = vor.u32 %v6287_v48, %v5091_v49  ;;  %v6329_v10 = vld [vmem:[#allocation22 + $0x254] sm:$0xf]  ;;  %v5259_v11 = vld [vmem:[#allocation22 + $0x268] sm:$0xf0] }
 0x9cd   :  { %4166 = vmatpush.bf16.msrb.mxu2 %v5642_v14  ;;  %v6299_v14 = vld [vmem:[#allocation22 + $0x164] sm:$0xf]  ;;  %v6458_v48 = vld [vmem:[#allocation22 + $0x654] sm:$0xf0] }
 0x9ce   :  { %v5142_v24 = vor.u32 %v6299_v14, %v5139_v9  ;;  %v5809_v14 = vld [vmem:[#allocation22 + $0x6a0] sm:$0xf]  ;;  %v6470_v9 = vld [vmem:[#allocation22 + $0x6b4] sm:$0xf0] }
 0x9cf   :  { %4128 = vmatpush.bf16.msra.mxu3 %v5042_v19  ;;  %4141 = vmatpush.bf16.msrb.mxu0 %v5234_v25  ;;  %v5906_v19 = vor.u32 %v6494_v57, %v5905_v12  ;;  %v5881_v25 = vld [vmem:[#allocation22 + $0x730] sm:$0xf] }
 0x9d0   :  { %4154 = vmatpush.bf16.msrb.mxu1 %v5426_v3  ;;  %v3873_v36 = vpop.f32.mrf.mxu3  ;;  %v6488_v3 = vld [vmem:[#allocation22 + $0x744] sm:$0xf0] }
 0x9d1   :  { %4167 = vmatpush.bf16.msrb.mxu2 %v5618_v50  ;;  %v3874_v21 = vadd.f32 %v3873_v36, %v3861_v30  ;;  %v5043_v36 = vld [vmem:[#allocation22 + $0xb8] sm:$0xf0] }
 0x9d3   :  { %4129 = vmatpush.bf16.msra.mxu3 %v5018_v37  ;;  %4142 = vmatpush.bf16.msrb.mxu0 %v5210_v58  ;;  %v7561_v4 = vadd.f32 %v3886_v54, %v3874_v21  ;;  %v3888_v50 = vpop.f32.mrf.mxu0  ;;  %v3912_v41 = vpop.f32.mrf.mxu2  ;;  %v6341_v37 = vld [vmem:[#allocation22 + $0x2b4] sm:$0xf]  ;;  %v5307_v58 = vld [vmem:[#allocation22 + $0x2c8] sm:$0xf0]  ;;  %v5810_v21 = vor.u32 %v6470_v9, %v5809_v14 }
 0x9d4   :  { %4155 = vmatpush.bf16.msrb.mxu1 %v5402_v43  ;;  %v3901_v35 = vpop.f32.mrf.mxu1  ;;  %v7563_v30 = vadd.f32 %v3912_v41, %v3899_v1  ;;  %v5882_v43 = vor.u32 %v6488_v3, %v5881_v25  ;;  %v5310_v47 = vor.u32 %v6341_v37, %v5307_v58  ;;  %v6025_v1 = vld [vmem:[#allocation22 + $0x850] sm:$0xf]  ;;  %v5019_v41 = vld [vmem:[#allocation22 + $0x88] sm:$0xf0]  ;;  %v6317_v37 = vld [vmem:[#allocation22 + $0x1f4] sm:$0xf] }
 0x9d5   :  { %4168 = vmatpush.bf16.msrb.mxu2 %v5594_v46  ;;  %v6049_v46 = vld [vmem:[#allocation22 + $0x880] sm:$0xf]  ;;  %v5785_v3 = vld [vmem:[#allocation22 + $0x670] sm:$0xf]  ;;  %v5211_v58 = vld [vmem:[#allocation22 + $0x208] sm:$0xf0] }
 0x9d6   :  { %v6050_v32 = vor.u32 %v6530_v51, %v6049_v46  ;;  %v5786_v45 = vor.u32 %v6464_v27, %v5785_v3  ;;  %v5761_v51 = vld [vmem:[#allocation22 + $0x640] sm:$0xf]  ;;  %v4971_v14 = vld [vmem:[#allocation22 + $0x28] sm:$0xf0]  ;;  %v6305_v9 = vld [vmem:[#allocation22 + $0x194] sm:$0xf] }
 0x9d7   :  { %4130 = vmatpush.bf16.msra.mxu3 %v4994_v53  ;;  %4143 = vmatpush.bf16.msrb.mxu0 %v5186_v42  ;;  %v5283_v53 = vld [vmem:[#allocation22 + $0x298] sm:$0xf0]  ;;  %v5833_v42 = vld [vmem:[#allocation22 + $0x6d0] sm:$0xf]  ;;  %v6539_v3 = vld [vmem:[#allocation22 + $0x8e4] sm:$0xf] }
 0x9d8   :  { %4156 = vmatpush.bf16.msrb.mxu1 %v5378_v0  ;;  %v3875_v54 = vpop.f32.mrf.mxu3  ;;  %v6476_v0 = vld [vmem:[#allocation22 + $0x6e4] sm:$0xf0]  ;;  %v5286_v2 = vor.u32 %v6335_v52, %v5283_v53  ;;  %v5214_v52 = vor.u32 %v6317_v37, %v5211_v58  ;;  %v6506_v53 = vld [vmem:[#allocation22 + $0x7d4] sm:$0xf0]  ;;  %v6099_v27 = vld [vmem:[#allocation22 + $0x8f8] sm:$0xf0] }
 0x9d9   :  { %4169 = vmatpush.bf16.msrb.mxu2 %v5570_v40  ;;  %v5067_v40 = vld [vmem:[#allocation22 + $0xe8] sm:$0xf0]  ;;  %v5834_v13 = vor.u32 %v6476_v0, %v5833_v42  ;;  %v6263_v54 = vld [vmem:[#allocation22 + $0x44] sm:$0xf]  ;;  %v5187_v42 = vld [vmem:[#allocation22 + $0x1d8] sm:$0xf0] }
 0x9da   :  { %v5070_v59 = vor.u32 %v6281_v5, %v5067_v40  ;;  %v5737_v5 = vld [vmem:[#allocation22 + $0x610] sm:$0xf]  ;;  %v6452_v40 = vld [vmem:[#allocation22 + $0x624] sm:$0xf0]  ;;  %v5499_v37 = vld [vmem:[#allocation22 + $0x448] sm:$0xf0] }
 0x9db   :  { %4131 = vmatpush.bf16.msra.mxu3 %v4970_v23  ;;  %4144 = vmatpush.bf16.msrb.mxu0 %v5162_v60  ;;  %v3914_v8 = vpop.f32.mrf.mxu2  ;;  %v3938_v12 = vpop.f32.mrf.mxu0  ;;  %v6026_v23 = vor.u32 %v6524_v56, %v6025_v1  ;;  %v6001_v60 = vld [vmem:[#allocation22 + $0x820] sm:$0xf]  ;;  %v5762_v56 = vor.u32 %v6458_v48, %v5761_v51  ;;  %v6437_v58 = vld [vmem:[#allocation22 + $0x5b4] sm:$0xf]  ;;  %v6075_v51 = vld [vmem:[#allocation22 + $0x8c8] sm:$0xf0] }
 0x9dc   :  { %4157 = vmatpush.bf16.msrb.mxu1 %v5354_v15  ;;  %v5262_v15 = vor.u32 %v6329_v10, %v5259_v11 }
 0x9dd   :  { %4170 = vmatpush.bf16.msrb.mxu2 %v5546_v18  ;;  %v6323_v18 = vld [vmem:[#allocation22 + $0x224] sm:$0xf] }
 0x9de   :  { %4132 = vmatmul.bf16.vlgmr.msra.gmra.mxu3 %v7505_v26  ;;  %4145 = vmatmul.bf16.vlgmr.msrb.gmra.mxu0 %v7508_v31  ;;  %v3951_v57 = vpop.f32.mrf.mxu1 }
 0x9df   :  { %4176 = vmatpush.bf16.msrb.mxu3 %v5906_v19  ;;  %4189 = vmatpush.bf16.msra.mxu0 %v6098_v22  ;;  %v5235_v19 = vld [vmem:[#allocation22 + $0x238] sm:$0xf0]  ;;  %v6002_v22 = vor.u32 %v6518_v16, %v6001_v60  ;;  %v5163_v60 = vld [vmem:[#allocation22 + $0x1a8] sm:$0xf0]  ;;  %v6395_v16 = vld [vmem:[#allocation22 + $0x464] sm:$0xf] }
 0x9e0   :  { %4202 = vmatpush.bf16.msra.mxu1 %v5142_v24  ;;  %4171 = vmatmul.bf16.vlgmr.msrb.gmra.mxu2 %v7517_v44  ;;  %v5046_v24 = vor.u32 %v6275_v63, %v5043_v36  ;;  %v5238_v50 = vor.u32 %v6323_v18, %v5235_v19  ;;  %v5523_v63 = vld [vmem:[#allocation22 + $0x478] sm:$0xf0]  ;;  %v6443_v36 = vld [vmem:[#allocation22 + $0x5e4] sm:$0xf]  ;;  %v5738_v19 = vor.u32 %v6452_v40, %v5737_v5 }
 0x9e1   :  { %4215 = vmatpush.bf16.msra.mxu2 %v5334_v17  ;;  %4158 = vmatmul.bf16.vlgmr.msrb.gmra.mxu1 %v7510_v20  ;;  %v3925_v25 = vpop.f32.mrf.mxu3  ;;  %v5977_v17 = vld [vmem:[#allocation22 + $0x7f0] sm:$0xf] }
 0x9e2   :  { %v3926_v34 = vadd.f32 %v3925_v25, %v7563_v30  ;;  %v5978_v46 = vor.u32 %v6512_v38, %v5977_v17  ;;  %v5953_v30 = vld [vmem:[#allocation22 + $0x7c0] sm:$0xf]  ;;  %v5526_v38 = vor.u32 %v6395_v16, %v5523_v63  ;;  %v5427_v16 = vld [vmem:[#allocation22 + $0x3b8] sm:$0xf0]  ;;  %v6419_v63 = vld [vmem:[#allocation22 + $0x524] sm:$0xf] }
 0x9e3   :  { %4177 = vmatpush.bf16.msrb.mxu3 %v5882_v43  ;;  %4190 = vmatpush.bf16.msra.mxu0 %v6074_v61  ;;  %v3964_v35 = vpop.f32.mrf.mxu2  ;;  %v7570_v43 = vld [vmem:[#allocation24] sm:$0x3f]  ;;  %v5954_v8 = vor.u32 %v6506_v53, %v5953_v30  ;;  %v5475_v53 = vld [vmem:[#allocation22 + $0x418] sm:$0xf0] }
 0x9e4   :  { %4203 = vmatpush.bf16.msra.mxu1 %v5118_v6  ;;  %v3939_v61 = vadd.f32 %v3938_v12, %v3926_v34  ;;  %v3940_v6 = vpop.f32.mrf.mxu0  ;;  %v4288_v0 = vperm.slane %v7570_v43, 0  ;;  %v5929_v12 = vld [vmem:[#allocation22 + $0x790] sm:$0xf]  ;;  %v5166_v34 = vor.u32 %v6305_v9, %v5163_v60 }
 0x9e5   :  { %4216 = vmatpush.bf16.msra.mxu2 %v5310_v47  ;;  %v5022_v47 = vor.u32 %v6269_v39, %v5019_v41  ;;  %v6102_v6 = vor.u32 %v6539_v3, %v6099_v27 }
 0x9e6   :  { %v3953_v7 = vpop.f32.mrf.mxu1  ;;  %v3952_v49 = vadd.f32 %v3951_v57, %v3939_v61  ;;  %v6500_v57 = vld [vmem:[#allocation22 + $0x7a4] sm:$0xf0] }
 0x9e7   :  { %4178 = vmatpush.bf16.msrb.mxu3 %v5858_v62  ;;  %4191 = vmatpush.bf16.msra.mxu0 %v6050_v32  ;;  %v4995_v62 = vld [vmem:[#allocation22 + $0x58] sm:$0xf0]  ;;  %v7573_v32 = vmul.f32 0.007874016, %v7464_v55  ;;  %v6257_v55 = vld [vmem:[#allocation22 + $0x14] sm:$0xf] }
 0x9e8   :  { %4204 = vmatpush.bf16.msra.mxu1 %v5094_v33  ;;  %v6311_v33 = vld [vmem:[#allocation22 + $0x1c4] sm:$0xf]  ;;  %v3965_v1 = vadd.f32 %v3964_v35, %v3952_v49  ;;  %v4998_v10 = vor.u32 %v6263_v54, %v4995_v62  ;;  %v4974_v25 = vor.u32 %v6257_v55, %v4971_v14  ;;  %v6389_v35 = vld [vmem:[#allocation22 + $0x434] sm:$0xf]  ;;  %v5691_v7 = vld [vmem:[#allocation22 + $0x5c8] sm:$0xf0] }
 0x9e9   :  { %4217 = vmatpush.bf16.msra.mxu2 %v5286_v2  ;;  %v4289_v2 = vperm.slane %v7570_v43, 1  ;;  %v3927_v11 = vpop.f32.mrf.mxu3  ;;  %v5502_v48 = vor.u32 %v6389_v35, %v5499_v37  ;;  %v5694_v30 = vor.u32 %v6437_v58, %v5691_v7  ;;  %v6431_v54 = vld [vmem:[#allocation22 + $0x584] sm:$0xf]  ;;  %v6473_v55 = vld [vmem:[#allocation22 + $0x6d4] sm:$0xf] }
 0x9ea   :  { %v6425_v11 = vld [vmem:[#allocation22 + $0x554] sm:$0xf]  ;;  %v5787_v35 = vld [vmem:[#allocation22 + $0x688] sm:$0xf0] }
 0x9eb   :  { %4179 = vmatpush.bf16.msrb.mxu3 %v5834_v13  ;;  %4192 = vmatpush.bf16.msra.mxu0 %v6026_v23  ;;  %v4280_v13 = vmul.f32 %v7561_v4, %v7573_v32  ;;  %v4281_v23 = vmul.f32 %v3965_v1, %v7573_v32  ;;  %v5930_v4 = vor.u32 %v6500_v57, %v5929_v12  ;;  %v6527_v1 = vld [vmem:[#allocation22 + $0x884] sm:$0xf]  ;;  %v5643_v57 = vld [vmem:[#allocation22 + $0x568] sm:$0xf0]  ;;  %v6509_v58 = vld [vmem:[#allocation22 + $0x7f4] sm:$0xf] }
 0x9ec   :  { %4205 = vmatpush.bf16.msra.mxu1 %v5070_v59  ;;  %v5190_v59 = vor.u32 %v6311_v33, %v5187_v42  ;;  %v5667_v33 = vld [vmem:[#allocation22 + $0x598] sm:$0xf0]  ;;  %v6479_v42 = vld [vmem:[#allocation22 + $0x704] sm:$0xf]  ;;  %v5646_v9 = vor.u32 %v6425_v11, %v5643_v57  ;;  %v5547_v11 = vld [vmem:[#allocation22 + $0x4a8] sm:$0xf0] }
 0x9ed   :  { %4218 = vmatpush.bf16.msra.mxu2 %v5262_v15  ;;  %v3966_v15 = vpop.f32.mrf.mxu2  ;;  %v4301_v18 = vadd.f32 %v4289_v2, %v4281_v23  ;;  %v4300_v17 = vadd.f32 %v4288_v0, %v4280_v13  ;;  %v5859_v0 = vld [vmem:[#allocation22 + $0x718] sm:$0xf0]  ;;  %v5670_v5 = vor.u32 %v6431_v54, %v5667_v33  ;;  %v5835_v13 = vld [vmem:[#allocation22 + $0x6e8] sm:$0xf0]  ;;  %v6521_v23 = vld [vmem:[#allocation22 + $0x854] sm:$0xf] }
 0x9ee   :  { %v6051_v2 = vld [vmem:[#allocation22 + $0x898] sm:$0xf0]  ;;  %v5862_v40 = vor.u32 %v6479_v42, %v5859_v0  ;;  %v5838_v60 = vor.u32 %v6473_v55, %v5835_v13  ;;  %v6371_v15 = vld [vmem:[#allocation22 + $0x3a4] sm:$0xf]  ;;  %v5739_v57 = vld [vmem:[#allocation22 + $0x628] sm:$0xf0] }
 0x9ef   :  { %4180 = vmatpush.bf16.msrb.mxu3 %v5810_v21  ;;  %4193 = vmatpush.bf16.msra.mxu0 %v6002_v22  ;;  %v5715_v21 = vld [vmem:[#allocation22 + $0x5f8] sm:$0xf0]  ;;  %v6491_v22 = vld [vmem:[#allocation22 + $0x764] sm:$0xf]  ;;  %v6054_v12 = vor.u32 %v6527_v1, %v6051_v2  ;;  %v6497_v13 = vld [vmem:[#allocation22 + $0x794] sm:$0xf] }
 0x9f0   :  { %4206 = vmatpush.bf16.msra.mxu1 %v5046_v24  ;;  %v5907_v24 = vld [vmem:[#allocation22 + $0x778] sm:$0xf0]  ;;  %v5718_v39 = vor.u32 %v6443_v36, %v5715_v21  ;;  %v6455_v54 = vld [vmem:[#allocation22 + $0x644] sm:$0xf] }
 0x9f1   :  { %4219 = vmatpush.bf16.msra.mxu2 %v5238_v50  ;;  %v4312_v50 = vrot.slane %v4301_v18, 6  ;;  %v5910_v41 = vor.u32 %v6491_v22, %v5907_v24  ;;  %v5619_v18 = vld [vmem:[#allocation22 + $0x538] sm:$0xf0]  ;;  %v6515_v22 = vld [vmem:[#allocation22 + $0x824] sm:$0xf] }
 0x9f2   :  { %v5811_v21 = vld [vmem:[#allocation22 + $0x6b8] sm:$0xf0]  ;;  %v6503_v33 = vld [vmem:[#allocation22 + $0x7c4] sm:$0xf] }
 0x9f3   :  { %4181 = vmatpush.bf16.msrb.mxu3 %v5786_v45  ;;  %4194 = vmatpush.bf16.msra.mxu0 %v5978_v46  ;;  %v7581_v61 = vsel %vm304_vm4, %v4300_v17, %v4312_v50  ;;  %v6485_v45 = vld [vmem:[#allocation22 + $0x734] sm:$0xf]  ;;  %v5883_v46 = vld [vmem:[#allocation22 + $0x748] sm:$0xf0]  ;;  %v6003_v24 = vld [vmem:[#allocation22 + $0x838] sm:$0xf0] }
 0x9f4   :  { %4207 = vmatpush.bf16.msra.mxu1 %v5022_v47  ;;  %v6533_v47 = vld [vmem:[#allocation22 + $0x8b4] sm:$0xf]  ;;  %v5886_v49 = vor.u32 %v6485_v45, %v5883_v46  ;;  %v5403_v50 = vld [vmem:[#allocation22 + $0x388] sm:$0xf0]  ;;  %v5955_v42 = vld [vmem:[#allocation22 + $0x7d8] sm:$0xf0] }
 0x9f5   :  { %4220 = vmatpush.bf16.msra.mxu2 %v5214_v52  ;;  %v6383_v52 = vld [vmem:[#allocation22 + $0x404] sm:$0xf]  ;;  %v6078_v62 = vor.u32 %v6533_v47, %v6075_v51  ;;  %v6365_v17 = vld [vmem:[#allocation22 + $0x374] sm:$0xf] }
 0x9f6   :  { %v5406_v46 = vor.u32 %v6365_v17, %v5403_v50 }
 0x9f7   :  { %4182 = vmatpush.bf16.msrb.mxu3 %v5762_v56  ;;  %4195 = vmatpush.bf16.msra.mxu0 %v5954_v8  ;;  %v5478_v56 = vor.u32 %v6383_v52, %v5475_v53  ;;  %v6377_v8 = vld [vmem:[#allocation22 + $0x3d4] sm:$0xf]  ;;  %v5571_v53 = vld [vmem:[#allocation22 + $0x4d8] sm:$0xf0] }
 0x9f8   :  { %4208 = vmatpush.bf16.msra.mxu1 %v4998_v10  ;;  %v5451_v10 = vld [vmem:[#allocation22 + $0x3e8] sm:$0xf0] }
 0x9f9   :  { %4221 = vmatpush.bf16.msra.mxu2 %v5190_v59  ;;  %v5454_v14 = vor.u32 %v6377_v8, %v5451_v10  ;;  %v6401_v8 = vld [vmem:[#allocation22 + $0x494] sm:$0xf]  ;;  %v5958_v10 = vor.u32 %v6503_v33, %v5955_v42 }
 0x9fb   :  { %4183 = vmatpush.bf16.msrb.mxu3 %v5738_v19  ;;  %4196 = vmatpush.bf16.msra.mxu0 %v5930_v4  ;;  %v7587_v59 = vpop.f32.mrf.mxu0  ;;  %v6467_v19 = vld [vmem:[#allocation22 + $0x6a4] sm:$0xf]  ;;  %v5430_v4 = vor.u32 %v6371_v15, %v5427_v16 }
 0x9fc   :  { %4209 = vmatpush.bf16.msra.mxu1 %v4974_v25  ;;  %v5622_v25 = vor.u32 %v6419_v63, %v5619_v18  ;;  %v5814_v3 = vor.u32 %v6467_v19, %v5811_v21 }
 0x9fd   :  { %4222 = vmatpush.bf16.msra.mxu2 %v5166_v34  ;;  %v6413_v34 = vld [vmem:[#allocation22 + $0x4f4] sm:$0xf] }
 0x9fe   :  { %4184 = vmatmul.bf16.vlgmr.msrb.gmra.mxu3 %v7537_v28  ;;  %4197 = vmatmul.bf16.vlgmr.msra.gmra.mxu0 %v7539_v29 }
 0x9ff   :  { %4228 = vmatpush.bf16.msra.mxu3 %v5526_v38  ;;  %4241 = vmatpush.bf16.msrb.mxu0 %v5718_v39  ;;  %v6006_v38 = vor.u32 %v6515_v22, %v6003_v24  ;;  %v5595_v39 = vld [vmem:[#allocation22 + $0x508] sm:$0xf0] }
 0xa00   :  { %4254 = vmatpush.bf16.msrb.mxu1 %v5910_v41  ;;  %4223 = vmatmul.bf16.vlgmr.msra.gmra.mxu2 %v7508_v31  ;;  %v7589_v31 = vpop.f32.mrf.mxu1  ;;  %v6461_v41 = vld [vmem:[#allocation22 + $0x674] sm:$0xf]  ;;  %v5598_v47 = vor.u32 %v6413_v34, %v5595_v39 }
 0xa01   :  { %4267 = vmatpush.bf16.msrb.mxu2 %v6102_v6  ;;  %4210 = vmatmul.bf16.vlgmr.msra.gmra.mxu1 %v7505_v26  ;;  %v6027_v26 = vld [vmem:[#allocation22 + $0x868] sm:$0xf0]  ;;  %v7591_v27 = vpop.f32.mrf.mxu3  ;;  %v5790_v51 = vor.u32 %v6461_v41, %v5787_v35 }
 0xa02   :  { %v6030_v36 = vor.u32 %v6521_v23, %v6027_v26  ;;  %v5979_v6 = vld [vmem:[#allocation22 + $0x808] sm:$0xf0]  ;;  %v3991_v24 = vadd.f32 %v7587_v59, %v7591_v27 }
 0xa03   :  { %4229 = vmatpush.bf16.msra.mxu3 %v5502_v48  ;;  %4242 = vmatpush.bf16.msrb.mxu0 %v5694_v30  ;;  %v7593_v37 = vpop.f32.mrf.mxu2  ;;  %v3992_v7 = vpop.f32.mrf.mxu0  ;;  %v6359_v48 = vld [vmem:[#allocation22 + $0x344] sm:$0xf]  ;;  %v5379_v30 = vld [vmem:[#allocation22 + $0x358] sm:$0xf0]  ;;  %v5982_v52 = vor.u32 %v6509_v58, %v5979_v6  ;;  %v5931_v23 = vld [vmem:[#allocation22 + $0x7a8] sm:$0xf0] }
 0xa04   :  { %4255 = vmatpush.bf16.msrb.mxu1 %v5886_v49  ;;  %v6407_v49 = vld [vmem:[#allocation22 + $0x4c4] sm:$0xf]  ;;  %v5382_v0 = vor.u32 %v6359_v48, %v5379_v30  ;;  %v4290_v58 = vperm.slane %v7570_v43, 2 }
 0xa05   :  { %4268 = vmatpush.bf16.msrb.mxu2 %v6078_v62  ;;  %v5763_v62 = vld [vmem:[#allocation22 + $0x658] sm:$0xf0]  ;;  %v5574_v1 = vor.u32 %v6407_v49, %v5571_v53 }
 0xa06   :  { %v5766_v2 = vor.u32 %v6455_v54, %v5763_v62 }
 0xa07   :  { %4230 = vmatpush.bf16.msra.mxu3 %v5478_v56  ;;  %4243 = vmatpush.bf16.msrb.mxu0 %v5670_v5  ;;  %v6353_v5 = vld [vmem:[#allocation22 + $0x314] sm:$0xf] }
 0xa08   :  { %4256 = vmatpush.bf16.msrb.mxu1 %v5862_v40  ;;  %v4005_v45 = vpop.f32.mrf.mxu1  ;;  %v5355_v40 = vld [vmem:[#allocation22 + $0x328] sm:$0xf0] }
 0xa09   :  { %4269 = vmatpush.bf16.msrb.mxu2 %v6054_v12  ;;  %v3979_v56 = vpop.f32.mrf.mxu3  ;;  %v6449_v12 = vld [vmem:[#allocation22 + $0x614] sm:$0xf]  ;;  %v5358_v26 = vor.u32 %v6353_v5, %v5355_v40 }
 0xa0b   :  { %4231 = vmatpush.bf16.msra.mxu3 %v5454_v14  ;;  %4244 = vmatpush.bf16.msrb.mxu0 %v5646_v9  ;;  %v4018_v55 = vpop.f32.mrf.mxu2  ;;  %v5550_v14 = vor.u32 %v6401_v8, %v5547_v11  ;;  %v5742_v9 = vor.u32 %v6449_v12, %v5739_v57 }
 0xa0c   :  { %4257 = vmatpush.bf16.msrb.mxu1 %v5838_v60  ;;  %v5934_v60 = vor.u32 %v6497_v13, %v5931_v23 }
 0xa0d   :  { %4270 = vmatpush.bf16.msrb.mxu2 %v6030_v36 }
 0xa0f   :  { %4232 = vmatpush.bf16.msra.mxu3 %v5430_v4  ;;  %4245 = vmatpush.bf16.msrb.mxu0 %v5622_v25  ;;  %v4004_v4 = vadd.f32 %v7589_v31, %v3991_v24  ;;  %v4291_v31 = vperm.slane %v7570_v43, 3 }
 0xa10   :  { %4258 = vmatpush.bf16.msrb.mxu1 %v5814_v3 }
 0xa11   :  { %4271 = vmatpush.bf16.msrb.mxu2 %v6006_v38 }
 0xa13   :  { %4233 = vmatpush.bf16.msra.mxu3 %v5406_v46  ;;  %4246 = vmatpush.bf16.msrb.mxu0 %v5598_v47 }
 0xa14   :  { %4259 = vmatpush.bf16.msrb.mxu1 %v5790_v51 }
 0xa15   :  { %4272 = vmatpush.bf16.msrb.mxu2 %v5982_v52 }
 0xa17   :  { %4234 = vmatpush.bf16.msra.mxu3 %v5382_v0  ;;  %4247 = vmatpush.bf16.msrb.mxu0 %v5574_v1 }
 0xa18   :  { %4260 = vmatpush.bf16.msrb.mxu1 %v5766_v2 }
 0xa19   :  { %4273 = vmatpush.bf16.msrb.mxu2 %v5958_v10 }
 0xa1b   :  { %4235 = vmatpush.bf16.msra.mxu3 %v5358_v26  ;;  %4248 = vmatpush.bf16.msrb.mxu0 %v5550_v14  ;;  %v4042_v15 = vpop.f32.mrf.mxu0 }
 0xa1c   :  { %4261 = vmatpush.bf16.msrb.mxu1 %v5742_v9 }
 0xa1d   :  { %4274 = vmatpush.bf16.msrb.mxu2 %v5934_v60 }
 0xa1e   :  { %4236 = vmatmul.bf16.vlgmr.msra.gmra.mxu3 %v7510_v20  ;;  %4249 = vmatmul.bf16.vlgmr.msrb.gmra.mxu0 %v7517_v44  ;;  %v4055_v16 = vpop.f32.mrf.mxu1  ;;  %v4017_v20 = vadd.f32 %v7593_v37, %v4004_v4  ;;  %v4292_v4 = vperm.slane %v7570_v43, 4 }
 0xa1f   :  { %4262 = vmatmul.bf16.vlgmr.msrb.gmra.mxu1 %v7537_v28 }
 0xa20   :  { %4275 = vmatmul.bf16.vlgmr.msrb.gmra.mxu2 %v7539_v29 }
 0xa21   :  { %v4029_v63 = vpop.f32.mrf.mxu3 }
 0xa22   :  { %v4030_v28 = vadd.f32 %v4029_v63, %v4017_v20 }
 0xa23   :  { %v4068_v36 = vpop.f32.mrf.mxu2  ;;  %v4044_v18 = vpop.f32.mrf.mxu0 }
 0xa24   :  { %v4069_v3 = vadd.f32 %v4068_v36, %v4055_v16  ;;  %v4043_v17 = vadd.f32 %v4042_v15, %v4030_v28 }
 0xa26   :  { %v4057_v19 = vpop.f32.mrf.mxu1  ;;  %v4282_v35 = vmul.f32 %v4043_v17, %v7573_v32 }
 0xa28   :  { %v4302_v6 = vadd.f32 %v4290_v58, %v4282_v35 }
 0xa29   :  { %v4031_v21 = vpop.f32.mrf.mxu3 }
 0xa2a   :  { %v4313_v47 = vrot.slane %v4302_v6, 4  ;;  %v4293_v21 = vperm.slane %v7570_v43, 5 }
 0xa2b   :  { %v4070_v22 = vpop.f32.mrf.mxu2 }
 0xa3b   :  { %v4094_v44 = vpop.f32.mrf.mxu0 }
 0xa3e   :  { %v4107_v25 = vpop.f32.mrf.mxu1 }
 0xa41   :  { %v4081_v29 = vpop.f32.mrf.mxu3 }
 0xa42   :  { %v4082_v50 = vadd.f32 %v4081_v29, %v4069_v3 }
 0xa43   :  { %v4120_v34 = vpop.f32.mrf.mxu2  ;;  %v4096_v39 = vpop.f32.mrf.mxu0 }
 0xa44   :  { %v4095_v38 = vadd.f32 %v4094_v44, %v4082_v50 }
 0xa46   :  { %v4109_v41 = vpop.f32.mrf.mxu1  ;;  %v4108_v59 = vadd.f32 %v4107_v25, %v4095_v38 }
 0xa48   :  { %v4121_v27 = vadd.f32 %v4120_v34, %v4108_v59 }
 0xa49   :  { %v4083_v37 = vpop.f32.mrf.mxu3 }
 0xa4a   :  { %v4283_v7 = vmul.f32 %v4121_v27, %v7573_v32 }
 0xa4b   :  { %v4122_v45 = vpop.f32.mrf.mxu2 }
 0xa4c   :  { %v4303_v46 = vadd.f32 %v4291_v31, %v4283_v7 }
 0xa4e   :  { %v4314_v51 = vrot.slane %v4303_v46, 2 }
 0xa50   :  { %v4318_v48 = vsel %vm4317_vm15, %v4313_v47, %v4314_v51 }
 0xa51   :  { %v4320_v30 = vsel %vm4319_vm0, %v7581_v61, %v4318_v48 }
 0xa52   :  { %4324 = vst [vmem:[%s7634_s15] sm:$0xff] %v4320_v30 }
 0xa5b   :  { %v4146_v49 = vpop.f32.mrf.mxu0 }
 0xa5e   :  { %v4159_v52 = vpop.f32.mrf.mxu1 }
 0xa61   :  { %v4133_v53 = vpop.f32.mrf.mxu3 }
 0xa62   :  { %v4147_v54 = vadd.f32 %v4146_v49, %v4133_v53 }
 0xa63   :  { %v4172_v62 = vpop.f32.mrf.mxu2  ;;  %v4148_v42 = vpop.f32.mrf.mxu0 }
 0xa64   :  { %v4160_v33 = vadd.f32 %v4159_v52, %v4147_v54 }
 0xa66   :  { %v4161_v0 = vpop.f32.mrf.mxu1  ;;  %v4173_v13 = vadd.f32 %v4172_v62, %v4160_v33 }
 0xa69   :  { %v4135_v1 = vpop.f32.mrf.mxu3 }
 0xa6b   :  { %v4174_v2 = vpop.f32.mrf.mxu2 }
 0xa7b   :  { %v4198_v56 = vpop.f32.mrf.mxu0 }
 0xa7e   :  { %v4211_v5 = vpop.f32.mrf.mxu1 }
 0xa81   :  { %v4185_v40 = vpop.f32.mrf.mxu3 }
 0xa82   :  { %v4186_v14 = vadd.f32 %v4185_v40, %v4173_v13 }
 0xa83   :  { %v4224_v8 = vpop.f32.mrf.mxu2  ;;  %v4200_v10 = vpop.f32.mrf.mxu0 }
 0xa84   :  { %v4225_v23 = vadd.f32 %v4224_v8, %v4211_v5  ;;  %v4199_v36 = vadd.f32 %v4198_v56, %v4186_v14 }
 0xa86   :  { %v4213_v61 = vpop.f32.mrf.mxu1  ;;  %v4284_v24 = vmul.f32 %v4199_v36, %v7573_v32 }
 0xa88   :  { %v4304_v28 = vadd.f32 %v4292_v4, %v4284_v24 }
 0xa89   :  { %v4187_v11 = vpop.f32.mrf.mxu3 }
 0xa8b   :  { %v4226_v12 = vpop.f32.mrf.mxu2 }
 0xa9b   :  { %v4250_v57 = vpop.f32.mrf.mxu0 }
 0xa9c   :  { %v4263_v55 = vpop.f32.mrf.mxu1 }
 0xaa1   :  { %v4237_v26 = vpop.f32.mrf.mxu3 }
 0xaa2   :  { %v4238_v9 = vadd.f32 %v4237_v26, %v4225_v23 }
 0xaa3   :  { %v4276_v60 = vpop.f32.mrf.mxu2  ;;  %v4252_v16 = vpop.f32.mrf.mxu0 }
 0xaa4   :  { %v4251_v15 = vadd.f32 %v4250_v57, %v4238_v9  ;;  %v4265_v63 = vpop.f32.mrf.mxu1 }
 0xaa6   :  { %v4264_v18 = vadd.f32 %v4263_v55, %v4251_v15 }
 0xaa8   :  { %v4277_v19 = vadd.f32 %v4276_v60, %v4264_v18 }
 0xaa9   :  { %v4239_v22 = vpop.f32.mrf.mxu3 }
 0xaaa   :  { %v4285_v20 = vmul.f32 %v4277_v19, %v7573_v32 }
 0xaab   :  { %v4278_v44 = vpop.f32.mrf.mxu2 }
 0xaac   :  { %v4305_v25 = vadd.f32 %v4293_v21, %v4285_v20 }
 0xaae   :  { %v4315_v3 = vrot.slane %v4305_v25, 6 }
 0xab0   :  { %v4321_v29 = vsel %vm304_vm4, %v4304_v28, %v4315_v3 }
 0xab1   :  { %4325 = vst [vmem:[%s7634_s15 + $0x8] sm:$0xf] %v4321_v29 }
 0xab2   :  { %4330 = vsyncpa [#allocation3], 1 }
 0xab3   :  { %4331 = vsyncpa [#allocation5], 1 }
 0xab4   :  { %4332 = vsyncpa [#allocation8], 1 }
 0xab5   :  { %4333 = vsyncpa [#allocation11], 1 }
 0xab6   :  { %4334 = vsyncpa [#allocation14], 1 }
 0xab7   :  { %4335 = vsyncpa [#allocation17], 1 }
 0xab8   :  { %4336 = vsyncpa [#allocation20], 1 }
 0xab9   :  { %4337 = vsyncpa [#allocation23], 1 }

</bundles_post_ra>
